<compile_context>
chip_gen: v7x
topology: tpu7x:2x2x1
jax: 0.10.0
libtpu: 0.0.40
codegen_flags: <defaults>
</compile_context>

<pallas_src>
import numpy as np
import jax
import jax.numpy as jnp
from jax import lax
from jax.experimental import pallas as pl
from jax.experimental.pallas import tpu as pltpu


# ---------------------------------------------------------------------------
# Fused kernel: BT images per grid step, everything stays in VMEM, all f32.
# ---------------------------------------------------------------------------
def _lenet_kernel(x_ref, w1_ref, b1_ref, w2_ref, b2_ref, s2_ref,
                  wf1_ref, bf1_ref, wf2_ref, bf2_ref, wf3_ref, bf3_ref,
                  o_ref, fc_ref):
    f32 = jnp.float32
    bt = x_ref.shape[0]                       # images per grid step (static)
    dn = (((2,), (1,)), ((0,), (0,)))         # (bt,Co,Ci) x (bt,Ci,L) -> (bt,Co,L)

    # Lane-layout invariants (the 32-wide row stride is kept through BOTH
    # stages, i.e. pooled maps are NOT compacted):
    #   input pixel (i,j)      -> lane 32*i + j        (i,j   < 32)
    #   conv1 output (oh,ow)   -> lane 32*oh + ow      (oh,ow < 28)
    #   pool1 output (h1,w1)   -> lane 64*h1 + 2*w1    (h1,w1 < 14)
    #   conv2 output (oh2,ow2) -> lane 64*oh2 + 2*ow2  (oh2,ow2 < 10)
    #   pool2 output (h2,w2)   -> lane 128*h2 + 4*w2   (h2,w2 < 5)
    # Every lane a later stage actually consumes only ever reads input lanes
    # < 1024 (max index 891 + 132 = 1023), so no zero-padding of the image is
    # needed; the never-consumed "in between" lanes hold finite garbage that
    # the final (529,25) selection matrix discards.  Do not change the slice
    # widths / offsets below without re-deriving this chain.

    x = x_ref[...]                                             # (bt, 3, 1024)
    w1 = w1_ref[...]                                           # (25, 6, 3)
    w2 = w2_ref[...]                                           # (25, 16, 6)

    # ---- conv1 (3->6, 5x5, valid) + bias + ReLU -----------------------------
    acc1 = None
    for kh in range(5):
        for kw in range(5):
            off = 32 * kh + kw
            wt = jnp.broadcast_to(w1[kh * 5 + kw], (bt, 6, 3))
            d = lax.dot_general(wt, x[:, :, off:off + 892], dn,
                                preferred_element_type=f32)
            acc1 = d if acc1 is None else acc1 + d
    y1 = jnp.maximum(acc1 + b1_ref[...][None, :, :], 0.0)      # (bt, 6, 892)

    # ---- maxpool 2x2 (kept sparse in the 32-wide-row layout) ----------------
    p1 = jnp.maximum(jnp.maximum(y1[:, :, 0:859], y1[:, :, 1:860]),
                     jnp.maximum(y1[:, :, 32:891], y1[:, :, 33:892]))
    # p1: (bt, 6, 859); value for (h1,w1) sits at lane 64*h1 + 2*w1.

    # ---- conv2 (6->16, 5x5, valid) + bias + ReLU ----------------------------
    acc2 = None
    for kh in range(5):
        for kw in range(5):
            off = 64 * kh + 2 * kw
            wt = jnp.broadcast_to(w2[kh * 5 + kw], (bt, 16, 6))
            d = lax.dot_general(wt, p1[:, :, off:off + 595], dn,
                                preferred_element_type=f32)
            acc2 = d if acc2 is None else acc2 + d
    y2 = jnp.maximum(acc2 + b2_ref[...][None, :, :], 0.0)      # (bt, 16, 595)

    # ---- maxpool 2x2 (still sparse) -----------------------------------------
    m2 = jnp.maximum(jnp.maximum(y2[:, :, 0:529], y2[:, :, 2:531]),
                     jnp.maximum(y2[:, :, 64:593], y2[:, :, 66:595]))
    # m2: (bt, 16, 529); value for (h2,w2) sits at lane 128*h2 + 4*w2.

    # ---- compact to torch's view(-1, 400) order: one small selection dot ----
    z = jnp.dot(m2.reshape(bt * 16, 529), s2_ref[...],
                preferred_element_type=f32)                    # (bt*16, 25)
    z = z.reshape(bt, 16, 25)
    for c in range(16):                        # flatten index = c*25 + h*5 + w
        fc_ref[:, c * 25:(c + 1) * 25] = z[:, c, :]

    # ---- classifier: batched MXU matmuls (M = bt) ---------------------------
    h = jnp.maximum(jnp.dot(fc_ref[...], wf1_ref[...],
                            preferred_element_type=f32) + bf1_ref[...], 0.0)
    h = jnp.maximum(jnp.dot(h, wf2_ref[...],
                            preferred_element_type=f32) + bf2_ref[...], 0.0)
    h = jnp.dot(h, wf3_ref[...], preferred_element_type=f32) + bf3_ref[...]
    o_ref[...] = h.astype(o_ref.dtype)                         # (bt, 10)


# ---------------------------------------------------------------------------
# Constant 0/1 "pool2 -> flat 25" selection matrix (built once at trace time).
# Row index = sparse lane 128*h2 + 4*w2, column index = h2*5 + w2.
# ---------------------------------------------------------------------------
def _pool2_flatten_select():
    s = np.zeros((529, 25), np.float32)
    for h in range(5):
        for w in range(5):
            s[128 * h + 4 * w, 5 * h + w] = 1.0
    return jnp.asarray(s)


# ---------------------------------------------------------------------------
# Full Net.forward (public interface is NCHW float32, like PyTorch).
# ---------------------------------------------------------------------------
def net_forward(x_nchw, p, block_batch=None):
    B = x_nchw.shape[0]
    # Batch tile: up to 8 images per grid step amortizes per-step overhead and
    # keeps >= 2 grid steps (v7x: 2 TensorCores) once B >= 16.
    BT = block_batch if block_batch is not None else (B if B <= 8 else 8)
    Bp = ((B + BT - 1) // BT) * BT

    x2 = x_nchw.reshape(B, 3, 1024)            # free view of NCHW; no pad/cast
    if Bp != B:                                # only pad when B is ragged
        x2 = jnp.pad(x2, ((0, Bp - B), (0, 0), (0, 0)))

    f32 = jnp.float32
    # Conv weights as per-tap (Cout, Cin) matrices, tap index t = kh*5 + kw.
    w1 = jnp.transpose(p["w_conv1"], (2, 3, 0, 1)).reshape(25, 6, 3).astype(f32)
    w2 = jnp.transpose(p["w_conv2"], (2, 3, 0, 1)).reshape(25, 16, 6).astype(f32)
    b1 = p["b_conv1"].reshape(6, 1).astype(f32)
    b2 = p["b_conv2"].reshape(16, 1).astype(f32)
    s2 = _pool2_flatten_select()

    # Torch Linear is y = x @ W.T + b; the flatten order already matches.
    wf1 = p["w_fc1"].T.astype(f32)             # (400, 120)
    wf2 = p["w_fc2"].T.astype(f32)             # (120, 84)
    wf3 = p["w_fc3"].T.astype(f32)             # (84, 10)
    bf1 = p["b_fc1"].reshape(1, 120).astype(f32)
    bf2 = p["b_fc2"].reshape(1, 84).astype(f32)
    bf3 = p["b_fc3"].reshape(1, 10).astype(f32)

    const2d = lambda shape: pl.BlockSpec(shape, lambda i: (0, 0))
    const3d = lambda shape: pl.BlockSpec(shape, lambda i: (0, 0, 0))

    out = pl.pallas_call(
        _lenet_kernel,
        out_shape=jax.ShapeDtypeStruct((Bp, 10), jnp.float32),
        grid_spec=pltpu.PrefetchScalarGridSpec(
            num_scalar_prefetch=0,
            grid=(Bp // BT,),
            in_specs=[
                pl.BlockSpec((BT, 3, 1024), lambda i: (i, 0, 0)),  # image block
                const3d((25, 6, 3)),      # conv1 weight taps
                const2d((6, 1)),          # conv1 bias
                const3d((25, 16, 6)),     # conv2 weight taps
                const2d((16, 1)),         # conv2 bias
                const2d((529, 25)),       # pool2 flatten selection
                const2d((400, 120)),      # fc1 weight
                const2d((1, 120)),        # fc1 bias
                const2d((120, 84)),       # fc2 weight
                const2d((1, 84)),         # fc2 bias
                const2d((84, 10)),        # fc3 weight
                const2d((1, 10)),         # fc3 bias
            ],
            out_specs=pl.BlockSpec((BT, 10), lambda i: (i, 0)),
            scratch_shapes=[pltpu.VMEM((BT, 400), jnp.float32)],
        ),
        compiler_params=pltpu.CompilerParams(
            dimension_semantics=("parallel",),     # shard batch blocks over TCs
            vmem_limit_bytes=32 * 1024 * 1024,     # working set is a few MiB
        ),
    )(x2, w1, b1, w2, b2, s2, wf1, bf1, wf2, bf2, wf3, bf3)
    return out[:B]


# ---------------------------------------------------------------------------
# Parameters + pure-JAX reference (PyTorch semantics) for validation.
# ---------------------------------------------------------------------------
def init_params(key):
    ks = jax.random.split(key, 10)

    def u(k, shape, fan_in):
        bound = fan_in ** -0.5
        return jax.random.uniform(k, shape, jnp.float32, -bound, bound)

    return {
        "w_conv1": u(ks[0], (6, 3, 5, 5), 3 * 5 * 5),
        "b_conv1": u(ks[1], (6,), 3 * 5 * 5),
        "w_conv2": u(ks[2], (16, 6, 5, 5), 6 * 5 * 5),
        "b_conv2": u(ks[3], (16,), 6 * 5 * 5),
        "w_fc1": u(ks[4], (120, 400), 400),
        "b_fc1": u(ks[5], (120,), 400),
        "w_fc2": u(ks[6], (84, 120), 120),
        "b_fc2": u(ks[7], (84,), 120),
        "w_fc3": u(ks[8], (10, 84), 84),
        "b_fc3": u(ks[9], (10,), 84),
    }


def reference_forward(x, p):
    dn = ("NCHW", "OIHW", "NCHW")
    y = lax.conv_general_dilated(x, p["w_conv1"], (1, 1), "VALID", dimension_numbers=dn)
    y = jnp.maximum(y + p["b_conv1"][None, :, None, None], 0.0)
    y = lax.reduce_window(y, -jnp.inf, lax.max, (1, 1, 2, 2), (1, 1, 2, 2), "VALID")
    y = lax.conv_general_dilated(y, p["w_conv2"], (1, 1), "VALID", dimension_numbers=dn)
    y = jnp.maximum(y + p["b_conv2"][None, :, None, None], 0.0)
    y = lax.reduce_window(y, -jnp.inf, lax.max, (1, 1, 2, 2), (1, 1, 2, 2), "VALID")
    y = y.reshape(y.shape[0], -1)
    y = jnp.maximum(y @ p["w_fc1"].T + p["b_fc1"], 0.0)
    y = jnp.maximum(y @ p["w_fc2"].T + p["b_fc2"], 0.0)
    return y @ p["w_fc3"].T + p["b_fc3"]


if __name__ == "__main__":
    key = jax.random.PRNGKey(0)
    pkey, xkey = jax.random.split(key)
    params = init_params(pkey)
    # Input must be 3x32x32 so the flattened feature size is 16*5*5 = 400.
    x = jax.random.normal(xkey, (2, 3, 32, 32), jnp.float32)

    out = jax.block_until_ready(jax.jit(net_forward)(x, params))
    ref = reference_forward(x, params)

    assert out.shape == (2, 10) and out.dtype == jnp.float32
    if not bool(jnp.allclose(out, ref, rtol=2e-2, atol=2e-2)):
        err = float(jnp.max(jnp.abs(out - ref)))
        raise AssertionError(
            f"Pallas output does not match JAX reference (max abs err {err})")
    print("KERNEL_OK")
</pallas_src>

<mosaic_0001>
module attributes {stable_mosaic.version = 11 : i64} {
  func.func @_lenet_kernel(%arg0: i32, %arg1: memref<2x3x1024xf32, #tpu.memory_space<vmem>>, %arg2: memref<25x6x3xf32, #tpu.memory_space<vmem>>, %arg3: memref<6x1xf32, #tpu.memory_space<vmem>>, %arg4: memref<25x16x6xf32, #tpu.memory_space<vmem>>, %arg5: memref<16x1xf32, #tpu.memory_space<vmem>>, %arg6: memref<529x25xf32, #tpu.memory_space<vmem>>, %arg7: memref<400x120xf32, #tpu.memory_space<vmem>>, %arg8: memref<1x120xf32, #tpu.memory_space<vmem>>, %arg9: memref<120x84xf32, #tpu.memory_space<vmem>>, %arg10: memref<1x84xf32, #tpu.memory_space<vmem>>, %arg11: memref<84x10xf32, #tpu.memory_space<vmem>>, %arg12: memref<1x10xf32, #tpu.memory_space<vmem>>, %arg13: memref<2x10xf32, #tpu.memory_space<vmem>>, %arg14: memref<2x400xf32, #tpu.memory_space<vmem>>) attributes {dimension_semantics = [#tpu.dimension_semantics<parallel>], iteration_bounds = array<i64: 1>, scalar_prefetch = 0 : i64, scratch_operands = 1 : i64, tpu.core_type = #tpu.core_type<tc>, window_params = [{transform_indices = @transform_0, window_bounds = array<i64: 2, 3, 1024>}, {pipeline_mode = #tpu.pipeline_mode<synchronous>, transform_indices = @transform_1, window_bounds = array<i64: 25, 6, 3>}, {pipeline_mode = #tpu.pipeline_mode<synchronous>, transform_indices = @transform_2, window_bounds = array<i64: 6, 1>}, {pipeline_mode = #tpu.pipeline_mode<synchronous>, transform_indices = @transform_3, window_bounds = array<i64: 25, 16, 6>}, {pipeline_mode = #tpu.pipeline_mode<synchronous>, transform_indices = @transform_4, window_bounds = array<i64: 16, 1>}, {pipeline_mode = #tpu.pipeline_mode<synchronous>, transform_indices = @transform_5, window_bounds = array<i64: 529, 25>}, {pipeline_mode = #tpu.pipeline_mode<synchronous>, transform_indices = @transform_6, window_bounds = array<i64: 400, 120>}, {pipeline_mode = #tpu.pipeline_mode<synchronous>, transform_indices = @transform_7, window_bounds = array<i64: 1, 120>}, {pipeline_mode = #tpu.pipeline_mode<synchronous>, transform_indices = @transform_8, window_bounds = array<i64: 120, 84>}, {pipeline_mode = #tpu.pipeline_mode<synchronous>, transform_indices = @transform_9, window_bounds = array<i64: 1, 84>}, {pipeline_mode = #tpu.pipeline_mode<synchronous>, transform_indices = @transform_10, window_bounds = array<i64: 84, 10>}, {pipeline_mode = #tpu.pipeline_mode<synchronous>, transform_indices = @transform_11, window_bounds = array<i64: 1, 10>}, {transform_indices = @transform_12, window_bounds = array<i64: 2, 10>}]} {
    %c0 = arith.constant 0 : index
    %c0_0 = arith.constant 0 : index
    %c0_1 = arith.constant 0 : index
    %0 = vector.load %arg1[%c0, %c0_0, %c0_1] : memref<2x3x1024xf32, #tpu.memory_space<vmem>>, vector<2x3x1024xf32>
    %c0_2 = arith.constant 0 : index
    %c0_3 = arith.constant 0 : index
    %c0_4 = arith.constant 0 : index
    %1 = vector.load %arg2[%c0_2, %c0_3, %c0_4] : memref<25x6x3xf32, #tpu.memory_space<vmem>>, vector<25x6x3xf32>
    %c0_5 = arith.constant 0 : index
    %c0_6 = arith.constant 0 : index
    %c0_7 = arith.constant 0 : index
    %2 = vector.load %arg4[%c0_5, %c0_6, %c0_7] : memref<25x16x6xf32, #tpu.memory_space<vmem>>, vector<25x16x6xf32>
    %3 = vector.extract_strided_slice %1 {offsets = [0, 0, 0], sizes = [1, 6, 3], strides = [1, 1, 1]} : vector<25x6x3xf32> to vector<1x6x3xf32>
    %4 = vector.shape_cast %3 : vector<1x6x3xf32> to vector<6x3xf32>
    %5 = vector.shape_cast %4 : vector<6x3xf32> to vector<1x6x3xf32>
    %6 = vector.broadcast %5 : vector<1x6x3xf32> to vector<2x6x3xf32>
    %7 = vector.extract_strided_slice %0 {offsets = [0, 0, 0], sizes = [2, 3, 892], strides = [1, 1, 1]} : vector<2x3x1024xf32> to vector<2x3x892xf32>
    %cst = arith.constant dense<0.000000e+00> : vector<2x6x892xf32>
    %8 = tpu.matmul %6, %7, %cst {dimension_numbers = #tpu.dot_dimension_numbers<[2], [1], [1], [2], [0, 0, 0, 1, 1, 2], [0], [0]>} : vector<2x6x3xf32>, vector<2x3x892xf32>, vector<2x6x892xf32> -> vector<2x6x892xf32>
    %9 = vector.extract_strided_slice %1 {offsets = [1, 0, 0], sizes = [1, 6, 3], strides = [1, 1, 1]} : vector<25x6x3xf32> to vector<1x6x3xf32>
    %10 = vector.shape_cast %9 : vector<1x6x3xf32> to vector<6x3xf32>
    %11 = vector.shape_cast %10 : vector<6x3xf32> to vector<1x6x3xf32>
    %12 = vector.broadcast %11 : vector<1x6x3xf32> to vector<2x6x3xf32>
    %13 = vector.extract_strided_slice %0 {offsets = [0, 0, 1], sizes = [2, 3, 892], strides = [1, 1, 1]} : vector<2x3x1024xf32> to vector<2x3x892xf32>
    %cst_8 = arith.constant dense<0.000000e+00> : vector<2x6x892xf32>
    %14 = tpu.matmul %12, %13, %cst_8 {dimension_numbers = #tpu.dot_dimension_numbers<[2], [1], [1], [2], [0, 0, 0, 1, 1, 2], [0], [0]>} : vector<2x6x3xf32>, vector<2x3x892xf32>, vector<2x6x892xf32> -> vector<2x6x892xf32>
    %15 = arith.addf %8, %14 : vector<2x6x892xf32>
    %16 = vector.extract_strided_slice %1 {offsets = [2, 0, 0], sizes = [1, 6, 3], strides = [1, 1, 1]} : vector<25x6x3xf32> to vector<1x6x3xf32>
    %17 = vector.shape_cast %16 : vector<1x6x3xf32> to vector<6x3xf32>
    %18 = vector.shape_cast %17 : vector<6x3xf32> to vector<1x6x3xf32>
    %19 = vector.broadcast %18 : vector<1x6x3xf32> to vector<2x6x3xf32>
    %20 = vector.extract_strided_slice %0 {offsets = [0, 0, 2], sizes = [2, 3, 892], strides = [1, 1, 1]} : vector<2x3x1024xf32> to vector<2x3x892xf32>
    %cst_9 = arith.constant dense<0.000000e+00> : vector<2x6x892xf32>
    %21 = tpu.matmul %19, %20, %cst_9 {dimension_numbers = #tpu.dot_dimension_numbers<[2], [1], [1], [2], [0, 0, 0, 1, 1, 2], [0], [0]>} : vector<2x6x3xf32>, vector<2x3x892xf32>, vector<2x6x892xf32> -> vector<2x6x892xf32>
    %22 = arith.addf %15, %21 : vector<2x6x892xf32>
    %23 = vector.extract_strided_slice %1 {offsets = [3, 0, 0], sizes = [1, 6, 3], strides = [1, 1, 1]} : vector<25x6x3xf32> to vector<1x6x3xf32>
    %24 = vector.shape_cast %23 : vector<1x6x3xf32> to vector<6x3xf32>
    %25 = vector.shape_cast %24 : vector<6x3xf32> to vector<1x6x3xf32>
    %26 = vector.broadcast %25 : vector<1x6x3xf32> to vector<2x6x3xf32>
    %27 = vector.extract_strided_slice %0 {offsets = [0, 0, 3], sizes = [2, 3, 892], strides = [1, 1, 1]} : vector<2x3x1024xf32> to vector<2x3x892xf32>
    %cst_10 = arith.constant dense<0.000000e+00> : vector<2x6x892xf32>
    %28 = tpu.matmul %26, %27, %cst_10 {dimension_numbers = #tpu.dot_dimension_numbers<[2], [1], [1], [2], [0, 0, 0, 1, 1, 2], [0], [0]>} : vector<2x6x3xf32>, vector<2x3x892xf32>, vector<2x6x892xf32> -> vector<2x6x892xf32>
    %29 = arith.addf %22, %28 : vector<2x6x892xf32>
    %30 = vector.extract_strided_slice %1 {offsets = [4, 0, 0], sizes = [1, 6, 3], strides = [1, 1, 1]} : vector<25x6x3xf32> to vector<1x6x3xf32>
    %31 = vector.shape_cast %30 : vector<1x6x3xf32> to vector<6x3xf32>
    %32 = vector.shape_cast %31 : vector<6x3xf32> to vector<1x6x3xf32>
    %33 = vector.broadcast %32 : vector<1x6x3xf32> to vector<2x6x3xf32>
    %34 = vector.extract_strided_slice %0 {offsets = [0, 0, 4], sizes = [2, 3, 892], strides = [1, 1, 1]} : vector<2x3x1024xf32> to vector<2x3x892xf32>
    %cst_11 = arith.constant dense<0.000000e+00> : vector<2x6x892xf32>
    %35 = tpu.matmul %33, %34, %cst_11 {dimension_numbers = #tpu.dot_dimension_numbers<[2], [1], [1], [2], [0, 0, 0, 1, 1, 2], [0], [0]>} : vector<2x6x3xf32>, vector<2x3x892xf32>, vector<2x6x892xf32> -> vector<2x6x892xf32>
    %36 = arith.addf %29, %35 : vector<2x6x892xf32>
    %37 = vector.extract_strided_slice %1 {offsets = [5, 0, 0], sizes = [1, 6, 3], strides = [1, 1, 1]} : vector<25x6x3xf32> to vector<1x6x3xf32>
    %38 = vector.shape_cast %37 : vector<1x6x3xf32> to vector<6x3xf32>
    %39 = vector.shape_cast %38 : vector<6x3xf32> to vector<1x6x3xf32>
    %40 = vector.broadcast %39 : vector<1x6x3xf32> to vector<2x6x3xf32>
    %41 = vector.extract_strided_slice %0 {offsets = [0, 0, 32], sizes = [2, 3, 892], strides = [1, 1, 1]} : vector<2x3x1024xf32> to vector<2x3x892xf32>
    %cst_12 = arith.constant dense<0.000000e+00> : vector<2x6x892xf32>
    %42 = tpu.matmul %40, %41, %cst_12 {dimension_numbers = #tpu.dot_dimension_numbers<[2], [1], [1], [2], [0, 0, 0, 1, 1, 2], [0], [0]>} : vector<2x6x3xf32>, vector<2x3x892xf32>, vector<2x6x892xf32> -> vector<2x6x892xf32>
    %43 = arith.addf %36, %42 : vector<2x6x892xf32>
    %44 = vector.extract_strided_slice %1 {offsets = [6, 0, 0], sizes = [1, 6, 3], strides = [1, 1, 1]} : vector<25x6x3xf32> to vector<1x6x3xf32>
    %45 = vector.shape_cast %44 : vector<1x6x3xf32> to vector<6x3xf32>
    %46 = vector.shape_cast %45 : vector<6x3xf32> to vector<1x6x3xf32>
    %47 = vector.broadcast %46 : vector<1x6x3xf32> to vector<2x6x3xf32>
    %48 = vector.extract_strided_slice %0 {offsets = [0, 0, 33], sizes = [2, 3, 892], strides = [1, 1, 1]} : vector<2x3x1024xf32> to vector<2x3x892xf32>
    %cst_13 = arith.constant dense<0.000000e+00> : vector<2x6x892xf32>
    %49 = tpu.matmul %47, %48, %cst_13 {dimension_numbers = #tpu.dot_dimension_numbers<[2], [1], [1], [2], [0, 0, 0, 1, 1, 2], [0], [0]>} : vector<2x6x3xf32>, vector<2x3x892xf32>, vector<2x6x892xf32> -> vector<2x6x892xf32>
    %50 = arith.addf %43, %49 : vector<2x6x892xf32>
    %51 = vector.extract_strided_slice %1 {offsets = [7, 0, 0], sizes = [1, 6, 3], strides = [1, 1, 1]} : vector<25x6x3xf32> to vector<1x6x3xf32>
    %52 = vector.shape_cast %51 : vector<1x6x3xf32> to vector<6x3xf32>
    %53 = vector.shape_cast %52 : vector<6x3xf32> to vector<1x6x3xf32>
    %54 = vector.broadcast %53 : vector<1x6x3xf32> to vector<2x6x3xf32>
    %55 = vector.extract_strided_slice %0 {offsets = [0, 0, 34], sizes = [2, 3, 892], strides = [1, 1, 1]} : vector<2x3x1024xf32> to vector<2x3x892xf32>
    %cst_14 = arith.constant dense<0.000000e+00> : vector<2x6x892xf32>
    %56 = tpu.matmul %54, %55, %cst_14 {dimension_numbers = #tpu.dot_dimension_numbers<[2], [1], [1], [2], [0, 0, 0, 1, 1, 2], [0], [0]>} : vector<2x6x3xf32>, vector<2x3x892xf32>, vector<2x6x892xf32> -> vector<2x6x892xf32>
    %57 = arith.addf %50, %56 : vector<2x6x892xf32>
    %58 = vector.extract_strided_slice %1 {offsets = [8, 0, 0], sizes = [1, 6, 3], strides = [1, 1, 1]} : vector<25x6x3xf32> to vector<1x6x3xf32>
    %59 = vector.shape_cast %58 : vector<1x6x3xf32> to vector<6x3xf32>
    %60 = vector.shape_cast %59 : vector<6x3xf32> to vector<1x6x3xf32>
    %61 = vector.broadcast %60 : vector<1x6x3xf32> to vector<2x6x3xf32>
    %62 = vector.extract_strided_slice %0 {offsets = [0, 0, 35], sizes = [2, 3, 892], strides = [1, 1, 1]} : vector<2x3x1024xf32> to vector<2x3x892xf32>
    %cst_15 = arith.constant dense<0.000000e+00> : vector<2x6x892xf32>
    %63 = tpu.matmul %61, %62, %cst_15 {dimension_numbers = #tpu.dot_dimension_numbers<[2], [1], [1], [2], [0, 0, 0, 1, 1, 2], [0], [0]>} : vector<2x6x3xf32>, vector<2x3x892xf32>, vector<2x6x892xf32> -> vector<2x6x892xf32>
    %64 = arith.addf %57, %63 : vector<2x6x892xf32>
    %65 = vector.extract_strided_slice %1 {offsets = [9, 0, 0], sizes = [1, 6, 3], strides = [1, 1, 1]} : vector<25x6x3xf32> to vector<1x6x3xf32>
    %66 = vector.shape_cast %65 : vector<1x6x3xf32> to vector<6x3xf32>
    %67 = vector.shape_cast %66 : vector<6x3xf32> to vector<1x6x3xf32>
    %68 = vector.broadcast %67 : vector<1x6x3xf32> to vector<2x6x3xf32>
    %69 = vector.extract_strided_slice %0 {offsets = [0, 0, 36], sizes = [2, 3, 892], strides = [1, 1, 1]} : vector<2x3x1024xf32> to vector<2x3x892xf32>
    %cst_16 = arith.constant dense<0.000000e+00> : vector<2x6x892xf32>
    %70 = tpu.matmul %68, %69, %cst_16 {dimension_numbers = #tpu.dot_dimension_numbers<[2], [1], [1], [2], [0, 0, 0, 1, 1, 2], [0], [0]>} : vector<2x6x3xf32>, vector<2x3x892xf32>, vector<2x6x892xf32> -> vector<2x6x892xf32>
    %71 = arith.addf %64, %70 : vector<2x6x892xf32>
    %72 = vector.extract_strided_slice %1 {offsets = [10, 0, 0], sizes = [1, 6, 3], strides = [1, 1, 1]} : vector<25x6x3xf32> to vector<1x6x3xf32>
    %73 = vector.shape_cast %72 : vector<1x6x3xf32> to vector<6x3xf32>
    %74 = vector.shape_cast %73 : vector<6x3xf32> to vector<1x6x3xf32>
    %75 = vector.broadcast %74 : vector<1x6x3xf32> to vector<2x6x3xf32>
    %76 = vector.extract_strided_slice %0 {offsets = [0, 0, 64], sizes = [2, 3, 892], strides = [1, 1, 1]} : vector<2x3x1024xf32> to vector<2x3x892xf32>
    %cst_17 = arith.constant dense<0.000000e+00> : vector<2x6x892xf32>
    %77 = tpu.matmul %75, %76, %cst_17 {dimension_numbers = #tpu.dot_dimension_numbers<[2], [1], [1], [2], [0, 0, 0, 1, 1, 2], [0], [0]>} : vector<2x6x3xf32>, vector<2x3x892xf32>, vector<2x6x892xf32> -> vector<2x6x892xf32>
    %78 = arith.addf %71, %77 : vector<2x6x892xf32>
    %79 = vector.extract_strided_slice %1 {offsets = [11, 0, 0], sizes = [1, 6, 3], strides = [1, 1, 1]} : vector<25x6x3xf32> to vector<1x6x3xf32>
    %80 = vector.shape_cast %79 : vector<1x6x3xf32> to vector<6x3xf32>
    %81 = vector.shape_cast %80 : vector<6x3xf32> to vector<1x6x3xf32>
    %82 = vector.broadcast %81 : vector<1x6x3xf32> to vector<2x6x3xf32>
    %83 = vector.extract_strided_slice %0 {offsets = [0, 0, 65], sizes = [2, 3, 892], strides = [1, 1, 1]} : vector<2x3x1024xf32> to vector<2x3x892xf32>
    %cst_18 = arith.constant dense<0.000000e+00> : vector<2x6x892xf32>
    %84 = tpu.matmul %82, %83, %cst_18 {dimension_numbers = #tpu.dot_dimension_numbers<[2], [1], [1], [2], [0, 0, 0, 1, 1, 2], [0], [0]>} : vector<2x6x3xf32>, vector<2x3x892xf32>, vector<2x6x892xf32> -> vector<2x6x892xf32>
    %85 = arith.addf %78, %84 : vector<2x6x892xf32>
    %86 = vector.extract_strided_slice %1 {offsets = [12, 0, 0], sizes = [1, 6, 3], strides = [1, 1, 1]} : vector<25x6x3xf32> to vector<1x6x3xf32>
    %87 = vector.shape_cast %86 : vector<1x6x3xf32> to vector<6x3xf32>
    %88 = vector.shape_cast %87 : vector<6x3xf32> to vector<1x6x3xf32>
    %89 = vector.broadcast %88 : vector<1x6x3xf32> to vector<2x6x3xf32>
    %90 = vector.extract_strided_slice %0 {offsets = [0, 0, 66], sizes = [2, 3, 892], strides = [1, 1, 1]} : vector<2x3x1024xf32> to vector<2x3x892xf32>
    %cst_19 = arith.constant dense<0.000000e+00> : vector<2x6x892xf32>
    %91 = tpu.matmul %89, %90, %cst_19 {dimension_numbers = #tpu.dot_dimension_numbers<[2], [1], [1], [2], [0, 0, 0, 1, 1, 2], [0], [0]>} : vector<2x6x3xf32>, vector<2x3x892xf32>, vector<2x6x892xf32> -> vector<2x6x892xf32>
    %92 = arith.addf %85, %91 : vector<2x6x892xf32>
    %93 = vector.extract_strided_slice %1 {offsets = [13, 0, 0], sizes = [1, 6, 3], strides = [1, 1, 1]} : vector<25x6x3xf32> to vector<1x6x3xf32>
    %94 = vector.shape_cast %93 : vector<1x6x3xf32> to vector<6x3xf32>
    %95 = vector.shape_cast %94 : vector<6x3xf32> to vector<1x6x3xf32>
    %96 = vector.broadcast %95 : vector<1x6x3xf32> to vector<2x6x3xf32>
    %97 = vector.extract_strided_slice %0 {offsets = [0, 0, 67], sizes = [2, 3, 892], strides = [1, 1, 1]} : vector<2x3x1024xf32> to vector<2x3x892xf32>
    %cst_20 = arith.constant dense<0.000000e+00> : vector<2x6x892xf32>
    %98 = tpu.matmul %96, %97, %cst_20 {dimension_numbers = #tpu.dot_dimension_numbers<[2], [1], [1], [2], [0, 0, 0, 1, 1, 2], [0], [0]>} : vector<2x6x3xf32>, vector<2x3x892xf32>, vector<2x6x892xf32> -> vector<2x6x892xf32>
    %99 = arith.addf %92, %98 : vector<2x6x892xf32>
    %100 = vector.extract_strided_slice %1 {offsets = [14, 0, 0], sizes = [1, 6, 3], strides = [1, 1, 1]} : vector<25x6x3xf32> to vector<1x6x3xf32>
    %101 = vector.shape_cast %100 : vector<1x6x3xf32> to vector<6x3xf32>
    %102 = vector.shape_cast %101 : vector<6x3xf32> to vector<1x6x3xf32>
    %103 = vector.broadcast %102 : vector<1x6x3xf32> to vector<2x6x3xf32>
    %104 = vector.extract_strided_slice %0 {offsets = [0, 0, 68], sizes = [2, 3, 892], strides = [1, 1, 1]} : vector<2x3x1024xf32> to vector<2x3x892xf32>
    %cst_21 = arith.constant dense<0.000000e+00> : vector<2x6x892xf32>
    %105 = tpu.matmul %103, %104, %cst_21 {dimension_numbers = #tpu.dot_dimension_numbers<[2], [1], [1], [2], [0, 0, 0, 1, 1, 2], [0], [0]>} : vector<2x6x3xf32>, vector<2x3x892xf32>, vector<2x6x892xf32> -> vector<2x6x892xf32>
    %106 = arith.addf %99, %105 : vector<2x6x892xf32>
    %107 = vector.extract_strided_slice %1 {offsets = [15, 0, 0], sizes = [1, 6, 3], strides = [1, 1, 1]} : vector<25x6x3xf32> to vector<1x6x3xf32>
    %108 = vector.shape_cast %107 : vector<1x6x3xf32> to vector<6x3xf32>
    %109 = vector.shape_cast %108 : vector<6x3xf32> to vector<1x6x3xf32>
    %110 = vector.broadcast %109 : vector<1x6x3xf32> to vector<2x6x3xf32>
    %111 = vector.extract_strided_slice %0 {offsets = [0, 0, 96], sizes = [2, 3, 892], strides = [1, 1, 1]} : vector<2x3x1024xf32> to vector<2x3x892xf32>
    %cst_22 = arith.constant dense<0.000000e+00> : vector<2x6x892xf32>
    %112 = tpu.matmul %110, %111, %cst_22 {dimension_numbers = #tpu.dot_dimension_numbers<[2], [1], [1], [2], [0, 0, 0, 1, 1, 2], [0], [0]>} : vector<2x6x3xf32>, vector<2x3x892xf32>, vector<2x6x892xf32> -> vector<2x6x892xf32>
    %113 = arith.addf %106, %112 : vector<2x6x892xf32>
    %114 = vector.extract_strided_slice %1 {offsets = [16, 0, 0], sizes = [1, 6, 3], strides = [1, 1, 1]} : vector<25x6x3xf32> to vector<1x6x3xf32>
    %115 = vector.shape_cast %114 : vector<1x6x3xf32> to vector<6x3xf32>
    %116 = vector.shape_cast %115 : vector<6x3xf32> to vector<1x6x3xf32>
    %117 = vector.broadcast %116 : vector<1x6x3xf32> to vector<2x6x3xf32>
    %118 = vector.extract_strided_slice %0 {offsets = [0, 0, 97], sizes = [2, 3, 892], strides = [1, 1, 1]} : vector<2x3x1024xf32> to vector<2x3x892xf32>
    %cst_23 = arith.constant dense<0.000000e+00> : vector<2x6x892xf32>
    %119 = tpu.matmul %117, %118, %cst_23 {dimension_numbers = #tpu.dot_dimension_numbers<[2], [1], [1], [2], [0, 0, 0, 1, 1, 2], [0], [0]>} : vector<2x6x3xf32>, vector<2x3x892xf32>, vector<2x6x892xf32> -> vector<2x6x892xf32>
    %120 = arith.addf %113, %119 : vector<2x6x892xf32>
    %121 = vector.extract_strided_slice %1 {offsets = [17, 0, 0], sizes = [1, 6, 3], strides = [1, 1, 1]} : vector<25x6x3xf32> to vector<1x6x3xf32>
    %122 = vector.shape_cast %121 : vector<1x6x3xf32> to vector<6x3xf32>
    %123 = vector.shape_cast %122 : vector<6x3xf32> to vector<1x6x3xf32>
    %124 = vector.broadcast %123 : vector<1x6x3xf32> to vector<2x6x3xf32>
    %125 = vector.extract_strided_slice %0 {offsets = [0, 0, 98], sizes = [2, 3, 892], strides = [1, 1, 1]} : vector<2x3x1024xf32> to vector<2x3x892xf32>
    %cst_24 = arith.constant dense<0.000000e+00> : vector<2x6x892xf32>
    %126 = tpu.matmul %124, %125, %cst_24 {dimension_numbers = #tpu.dot_dimension_numbers<[2], [1], [1], [2], [0, 0, 0, 1, 1, 2], [0], [0]>} : vector<2x6x3xf32>, vector<2x3x892xf32>, vector<2x6x892xf32> -> vector<2x6x892xf32>
    %127 = arith.addf %120, %126 : vector<2x6x892xf32>
    %128 = vector.extract_strided_slice %1 {offsets = [18, 0, 0], sizes = [1, 6, 3], strides = [1, 1, 1]} : vector<25x6x3xf32> to vector<1x6x3xf32>
    %129 = vector.shape_cast %128 : vector<1x6x3xf32> to vector<6x3xf32>
    %130 = vector.shape_cast %129 : vector<6x3xf32> to vector<1x6x3xf32>
    %131 = vector.broadcast %130 : vector<1x6x3xf32> to vector<2x6x3xf32>
    %132 = vector.extract_strided_slice %0 {offsets = [0, 0, 99], sizes = [2, 3, 892], strides = [1, 1, 1]} : vector<2x3x1024xf32> to vector<2x3x892xf32>
    %cst_25 = arith.constant dense<0.000000e+00> : vector<2x6x892xf32>
    %133 = tpu.matmul %131, %132, %cst_25 {dimension_numbers = #tpu.dot_dimension_numbers<[2], [1], [1], [2], [0, 0, 0, 1, 1, 2], [0], [0]>} : vector<2x6x3xf32>, vector<2x3x892xf32>, vector<2x6x892xf32> -> vector<2x6x892xf32>
    %134 = arith.addf %127, %133 : vector<2x6x892xf32>
    %135 = vector.extract_strided_slice %1 {offsets = [19, 0, 0], sizes = [1, 6, 3], strides = [1, 1, 1]} : vector<25x6x3xf32> to vector<1x6x3xf32>
    %136 = vector.shape_cast %135 : vector<1x6x3xf32> to vector<6x3xf32>
    %137 = vector.shape_cast %136 : vector<6x3xf32> to vector<1x6x3xf32>
    %138 = vector.broadcast %137 : vector<1x6x3xf32> to vector<2x6x3xf32>
    %139 = vector.extract_strided_slice %0 {offsets = [0, 0, 100], sizes = [2, 3, 892], strides = [1, 1, 1]} : vector<2x3x1024xf32> to vector<2x3x892xf32>
    %cst_26 = arith.constant dense<0.000000e+00> : vector<2x6x892xf32>
    %140 = tpu.matmul %138, %139, %cst_26 {dimension_numbers = #tpu.dot_dimension_numbers<[2], [1], [1], [2], [0, 0, 0, 1, 1, 2], [0], [0]>} : vector<2x6x3xf32>, vector<2x3x892xf32>, vector<2x6x892xf32> -> vector<2x6x892xf32>
    %141 = arith.addf %134, %140 : vector<2x6x892xf32>
    %142 = vector.extract_strided_slice %1 {offsets = [20, 0, 0], sizes = [1, 6, 3], strides = [1, 1, 1]} : vector<25x6x3xf32> to vector<1x6x3xf32>
    %143 = vector.shape_cast %142 : vector<1x6x3xf32> to vector<6x3xf32>
    %144 = vector.shape_cast %143 : vector<6x3xf32> to vector<1x6x3xf32>
    %145 = vector.broadcast %144 : vector<1x6x3xf32> to vector<2x6x3xf32>
    %146 = vector.extract_strided_slice %0 {offsets = [0, 0, 128], sizes = [2, 3, 892], strides = [1, 1, 1]} : vector<2x3x1024xf32> to vector<2x3x892xf32>
    %cst_27 = arith.constant dense<0.000000e+00> : vector<2x6x892xf32>
    %147 = tpu.matmul %145, %146, %cst_27 {dimension_numbers = #tpu.dot_dimension_numbers<[2], [1], [1], [2], [0, 0, 0, 1, 1, 2], [0], [0]>} : vector<2x6x3xf32>, vector<2x3x892xf32>, vector<2x6x892xf32> -> vector<2x6x892xf32>
    %148 = arith.addf %141, %147 : vector<2x6x892xf32>
    %149 = vector.extract_strided_slice %1 {offsets = [21, 0, 0], sizes = [1, 6, 3], strides = [1, 1, 1]} : vector<25x6x3xf32> to vector<1x6x3xf32>
    %150 = vector.shape_cast %149 : vector<1x6x3xf32> to vector<6x3xf32>
    %151 = vector.shape_cast %150 : vector<6x3xf32> to vector<1x6x3xf32>
    %152 = vector.broadcast %151 : vector<1x6x3xf32> to vector<2x6x3xf32>
    %153 = vector.extract_strided_slice %0 {offsets = [0, 0, 129], sizes = [2, 3, 892], strides = [1, 1, 1]} : vector<2x3x1024xf32> to vector<2x3x892xf32>
    %cst_28 = arith.constant dense<0.000000e+00> : vector<2x6x892xf32>
    %154 = tpu.matmul %152, %153, %cst_28 {dimension_numbers = #tpu.dot_dimension_numbers<[2], [1], [1], [2], [0, 0, 0, 1, 1, 2], [0], [0]>} : vector<2x6x3xf32>, vector<2x3x892xf32>, vector<2x6x892xf32> -> vector<2x6x892xf32>
    %155 = arith.addf %148, %154 : vector<2x6x892xf32>
    %156 = vector.extract_strided_slice %1 {offsets = [22, 0, 0], sizes = [1, 6, 3], strides = [1, 1, 1]} : vector<25x6x3xf32> to vector<1x6x3xf32>
    %157 = vector.shape_cast %156 : vector<1x6x3xf32> to vector<6x3xf32>
    %158 = vector.shape_cast %157 : vector<6x3xf32> to vector<1x6x3xf32>
    %159 = vector.broadcast %158 : vector<1x6x3xf32> to vector<2x6x3xf32>
    %160 = vector.extract_strided_slice %0 {offsets = [0, 0, 130], sizes = [2, 3, 892], strides = [1, 1, 1]} : vector<2x3x1024xf32> to vector<2x3x892xf32>
    %cst_29 = arith.constant dense<0.000000e+00> : vector<2x6x892xf32>
    %161 = tpu.matmul %159, %160, %cst_29 {dimension_numbers = #tpu.dot_dimension_numbers<[2], [1], [1], [2], [0, 0, 0, 1, 1, 2], [0], [0]>} : vector<2x6x3xf32>, vector<2x3x892xf32>, vector<2x6x892xf32> -> vector<2x6x892xf32>
    %162 = arith.addf %155, %161 : vector<2x6x892xf32>
    %163 = vector.extract_strided_slice %1 {offsets = [23, 0, 0], sizes = [1, 6, 3], strides = [1, 1, 1]} : vector<25x6x3xf32> to vector<1x6x3xf32>
    %164 = vector.shape_cast %163 : vector<1x6x3xf32> to vector<6x3xf32>
    %165 = vector.shape_cast %164 : vector<6x3xf32> to vector<1x6x3xf32>
    %166 = vector.broadcast %165 : vector<1x6x3xf32> to vector<2x6x3xf32>
    %167 = vector.extract_strided_slice %0 {offsets = [0, 0, 131], sizes = [2, 3, 892], strides = [1, 1, 1]} : vector<2x3x1024xf32> to vector<2x3x892xf32>
    %cst_30 = arith.constant dense<0.000000e+00> : vector<2x6x892xf32>
    %168 = tpu.matmul %166, %167, %cst_30 {dimension_numbers = #tpu.dot_dimension_numbers<[2], [1], [1], [2], [0, 0, 0, 1, 1, 2], [0], [0]>} : vector<2x6x3xf32>, vector<2x3x892xf32>, vector<2x6x892xf32> -> vector<2x6x892xf32>
    %169 = arith.addf %162, %168 : vector<2x6x892xf32>
    %170 = vector.extract_strided_slice %1 {offsets = [24, 0, 0], sizes = [1, 6, 3], strides = [1, 1, 1]} : vector<25x6x3xf32> to vector<1x6x3xf32>
    %171 = vector.shape_cast %170 : vector<1x6x3xf32> to vector<6x3xf32>
    %172 = vector.shape_cast %171 : vector<6x3xf32> to vector<1x6x3xf32>
    %173 = vector.broadcast %172 : vector<1x6x3xf32> to vector<2x6x3xf32>
    %174 = vector.extract_strided_slice %0 {offsets = [0, 0, 132], sizes = [2, 3, 892], strides = [1, 1, 1]} : vector<2x3x1024xf32> to vector<2x3x892xf32>
    %cst_31 = arith.constant dense<0.000000e+00> : vector<2x6x892xf32>
    %175 = tpu.matmul %173, %174, %cst_31 {dimension_numbers = #tpu.dot_dimension_numbers<[2], [1], [1], [2], [0, 0, 0, 1, 1, 2], [0], [0]>} : vector<2x6x3xf32>, vector<2x3x892xf32>, vector<2x6x892xf32> -> vector<2x6x892xf32>
    %176 = arith.addf %169, %175 : vector<2x6x892xf32>
    %c0_32 = arith.constant 0 : index
    %c0_33 = arith.constant 0 : index
    %177 = vector.load %arg3[%c0_32, %c0_33] : memref<6x1xf32, #tpu.memory_space<vmem>>, vector<6x1xf32>
    %178 = vector.shape_cast %177 : vector<6x1xf32> to vector<1x6x1xf32>
    %179 = vector.broadcast %178 : vector<1x6x1xf32> to vector<2x6x892xf32>
    %180 = arith.addf %176, %179 : vector<2x6x892xf32>
    %cst_34 = arith.constant 0.000000e+00 : f32
    %181 = vector.broadcast %cst_34 : f32 to vector<2x6x892xf32>
    %182 = arith.maximumf %180, %181 : vector<2x6x892xf32>
    %183 = vector.extract_strided_slice %182 {offsets = [0, 0, 0], sizes = [2, 6, 859], strides = [1, 1, 1]} : vector<2x6x892xf32> to vector<2x6x859xf32>
    %184 = vector.extract_strided_slice %182 {offsets = [0, 0, 1], sizes = [2, 6, 859], strides = [1, 1, 1]} : vector<2x6x892xf32> to vector<2x6x859xf32>
    %185 = arith.maximumf %183, %184 : vector<2x6x859xf32>
    %186 = vector.extract_strided_slice %182 {offsets = [0, 0, 32], sizes = [2, 6, 859], strides = [1, 1, 1]} : vector<2x6x892xf32> to vector<2x6x859xf32>
    %187 = vector.extract_strided_slice %182 {offsets = [0, 0, 33], sizes = [2, 6, 859], strides = [1, 1, 1]} : vector<2x6x892xf32> to vector<2x6x859xf32>
    %188 = arith.maximumf %186, %187 : vector<2x6x859xf32>
    %189 = arith.maximumf %185, %188 : vector<2x6x859xf32>
    %190 = vector.extract_strided_slice %2 {offsets = [0, 0, 0], sizes = [1, 16, 6], strides = [1, 1, 1]} : vector<25x16x6xf32> to vector<1x16x6xf32>
    %191 = vector.shape_cast %190 : vector<1x16x6xf32> to vector<16x6xf32>
    %192 = vector.shape_cast %191 : vector<16x6xf32> to vector<1x16x6xf32>
    %193 = vector.broadcast %192 : vector<1x16x6xf32> to vector<2x16x6xf32>
    %194 = vector.extract_strided_slice %189 {offsets = [0, 0, 0], sizes = [2, 6, 595], strides = [1, 1, 1]} : vector<2x6x859xf32> to vector<2x6x595xf32>
    %cst_35 = arith.constant dense<0.000000e+00> : vector<2x16x595xf32>
    %195 = tpu.matmul %193, %194, %cst_35 {dimension_numbers = #tpu.dot_dimension_numbers<[2], [1], [1], [2], [0, 0, 0, 1, 1, 2], [0], [0]>} : vector<2x16x6xf32>, vector<2x6x595xf32>, vector<2x16x595xf32> -> vector<2x16x595xf32>
    %196 = vector.extract_strided_slice %2 {offsets = [1, 0, 0], sizes = [1, 16, 6], strides = [1, 1, 1]} : vector<25x16x6xf32> to vector<1x16x6xf32>
    %197 = vector.shape_cast %196 : vector<1x16x6xf32> to vector<16x6xf32>
    %198 = vector.shape_cast %197 : vector<16x6xf32> to vector<1x16x6xf32>
    %199 = vector.broadcast %198 : vector<1x16x6xf32> to vector<2x16x6xf32>
    %200 = vector.extract_strided_slice %189 {offsets = [0, 0, 2], sizes = [2, 6, 595], strides = [1, 1, 1]} : vector<2x6x859xf32> to vector<2x6x595xf32>
    %cst_36 = arith.constant dense<0.000000e+00> : vector<2x16x595xf32>
    %201 = tpu.matmul %199, %200, %cst_36 {dimension_numbers = #tpu.dot_dimension_numbers<[2], [1], [1], [2], [0, 0, 0, 1, 1, 2], [0], [0]>} : vector<2x16x6xf32>, vector<2x6x595xf32>, vector<2x16x595xf32> -> vector<2x16x595xf32>
    %202 = arith.addf %195, %201 : vector<2x16x595xf32>
    %203 = vector.extract_strided_slice %2 {offsets = [2, 0, 0], sizes = [1, 16, 6], strides = [1, 1, 1]} : vector<25x16x6xf32> to vector<1x16x6xf32>
    %204 = vector.shape_cast %203 : vector<1x16x6xf32> to vector<16x6xf32>
    %205 = vector.shape_cast %204 : vector<16x6xf32> to vector<1x16x6xf32>
    %206 = vector.broadcast %205 : vector<1x16x6xf32> to vector<2x16x6xf32>
    %207 = vector.extract_strided_slice %189 {offsets = [0, 0, 4], sizes = [2, 6, 595], strides = [1, 1, 1]} : vector<2x6x859xf32> to vector<2x6x595xf32>
    %cst_37 = arith.constant dense<0.000000e+00> : vector<2x16x595xf32>
    %208 = tpu.matmul %206, %207, %cst_37 {dimension_numbers = #tpu.dot_dimension_numbers<[2], [1], [1], [2], [0, 0, 0, 1, 1, 2], [0], [0]>} : vector<2x16x6xf32>, vector<2x6x595xf32>, vector<2x16x595xf32> -> vector<2x16x595xf32>
    %209 = arith.addf %202, %208 : vector<2x16x595xf32>
    %210 = vector.extract_strided_slice %2 {offsets = [3, 0, 0], sizes = [1, 16, 6], strides = [1, 1, 1]} : vector<25x16x6xf32> to vector<1x16x6xf32>
    %211 = vector.shape_cast %210 : vector<1x16x6xf32> to vector<16x6xf32>
    %212 = vector.shape_cast %211 : vector<16x6xf32> to vector<1x16x6xf32>
    %213 = vector.broadcast %212 : vector<1x16x6xf32> to vector<2x16x6xf32>
    %214 = vector.extract_strided_slice %189 {offsets = [0, 0, 6], sizes = [2, 6, 595], strides = [1, 1, 1]} : vector<2x6x859xf32> to vector<2x6x595xf32>
    %cst_38 = arith.constant dense<0.000000e+00> : vector<2x16x595xf32>
    %215 = tpu.matmul %213, %214, %cst_38 {dimension_numbers = #tpu.dot_dimension_numbers<[2], [1], [1], [2], [0, 0, 0, 1, 1, 2], [0], [0]>} : vector<2x16x6xf32>, vector<2x6x595xf32>, vector<2x16x595xf32> -> vector<2x16x595xf32>
    %216 = arith.addf %209, %215 : vector<2x16x595xf32>
    %217 = vector.extract_strided_slice %2 {offsets = [4, 0, 0], sizes = [1, 16, 6], strides = [1, 1, 1]} : vector<25x16x6xf32> to vector<1x16x6xf32>
    %218 = vector.shape_cast %217 : vector<1x16x6xf32> to vector<16x6xf32>
    %219 = vector.shape_cast %218 : vector<16x6xf32> to vector<1x16x6xf32>
    %220 = vector.broadcast %219 : vector<1x16x6xf32> to vector<2x16x6xf32>
    %221 = vector.extract_strided_slice %189 {offsets = [0, 0, 8], sizes = [2, 6, 595], strides = [1, 1, 1]} : vector<2x6x859xf32> to vector<2x6x595xf32>
    %cst_39 = arith.constant dense<0.000000e+00> : vector<2x16x595xf32>
    %222 = tpu.matmul %220, %221, %cst_39 {dimension_numbers = #tpu.dot_dimension_numbers<[2], [1], [1], [2], [0, 0, 0, 1, 1, 2], [0], [0]>} : vector<2x16x6xf32>, vector<2x6x595xf32>, vector<2x16x595xf32> -> vector<2x16x595xf32>
    %223 = arith.addf %216, %222 : vector<2x16x595xf32>
    %224 = vector.extract_strided_slice %2 {offsets = [5, 0, 0], sizes = [1, 16, 6], strides = [1, 1, 1]} : vector<25x16x6xf32> to vector<1x16x6xf32>
    %225 = vector.shape_cast %224 : vector<1x16x6xf32> to vector<16x6xf32>
    %226 = vector.shape_cast %225 : vector<16x6xf32> to vector<1x16x6xf32>
    %227 = vector.broadcast %226 : vector<1x16x6xf32> to vector<2x16x6xf32>
    %228 = vector.extract_strided_slice %189 {offsets = [0, 0, 64], sizes = [2, 6, 595], strides = [1, 1, 1]} : vector<2x6x859xf32> to vector<2x6x595xf32>
    %cst_40 = arith.constant dense<0.000000e+00> : vector<2x16x595xf32>
    %229 = tpu.matmul %227, %228, %cst_40 {dimension_numbers = #tpu.dot_dimension_numbers<[2], [1], [1], [2], [0, 0, 0, 1, 1, 2], [0], [0]>} : vector<2x16x6xf32>, vector<2x6x595xf32>, vector<2x16x595xf32> -> vector<2x16x595xf32>
    %230 = arith.addf %223, %229 : vector<2x16x595xf32>
    %231 = vector.extract_strided_slice %2 {offsets = [6, 0, 0], sizes = [1, 16, 6], strides = [1, 1, 1]} : vector<25x16x6xf32> to vector<1x16x6xf32>
    %232 = vector.shape_cast %231 : vector<1x16x6xf32> to vector<16x6xf32>
    %233 = vector.shape_cast %232 : vector<16x6xf32> to vector<1x16x6xf32>
    %234 = vector.broadcast %233 : vector<1x16x6xf32> to vector<2x16x6xf32>
    %235 = vector.extract_strided_slice %189 {offsets = [0, 0, 66], sizes = [2, 6, 595], strides = [1, 1, 1]} : vector<2x6x859xf32> to vector<2x6x595xf32>
    %cst_41 = arith.constant dense<0.000000e+00> : vector<2x16x595xf32>
    %236 = tpu.matmul %234, %235, %cst_41 {dimension_numbers = #tpu.dot_dimension_numbers<[2], [1], [1], [2], [0, 0, 0, 1, 1, 2], [0], [0]>} : vector<2x16x6xf32>, vector<2x6x595xf32>, vector<2x16x595xf32> -> vector<2x16x595xf32>
    %237 = arith.addf %230, %236 : vector<2x16x595xf32>
    %238 = vector.extract_strided_slice %2 {offsets = [7, 0, 0], sizes = [1, 16, 6], strides = [1, 1, 1]} : vector<25x16x6xf32> to vector<1x16x6xf32>
    %239 = vector.shape_cast %238 : vector<1x16x6xf32> to vector<16x6xf32>
    %240 = vector.shape_cast %239 : vector<16x6xf32> to vector<1x16x6xf32>
    %241 = vector.broadcast %240 : vector<1x16x6xf32> to vector<2x16x6xf32>
    %242 = vector.extract_strided_slice %189 {offsets = [0, 0, 68], sizes = [2, 6, 595], strides = [1, 1, 1]} : vector<2x6x859xf32> to vector<2x6x595xf32>
    %cst_42 = arith.constant dense<0.000000e+00> : vector<2x16x595xf32>
    %243 = tpu.matmul %241, %242, %cst_42 {dimension_numbers = #tpu.dot_dimension_numbers<[2], [1], [1], [2], [0, 0, 0, 1, 1, 2], [0], [0]>} : vector<2x16x6xf32>, vector<2x6x595xf32>, vector<2x16x595xf32> -> vector<2x16x595xf32>
    %244 = arith.addf %237, %243 : vector<2x16x595xf32>
    %245 = vector.extract_strided_slice %2 {offsets = [8, 0, 0], sizes = [1, 16, 6], strides = [1, 1, 1]} : vector<25x16x6xf32> to vector<1x16x6xf32>
    %246 = vector.shape_cast %245 : vector<1x16x6xf32> to vector<16x6xf32>
    %247 = vector.shape_cast %246 : vector<16x6xf32> to vector<1x16x6xf32>
    %248 = vector.broadcast %247 : vector<1x16x6xf32> to vector<2x16x6xf32>
    %249 = vector.extract_strided_slice %189 {offsets = [0, 0, 70], sizes = [2, 6, 595], strides = [1, 1, 1]} : vector<2x6x859xf32> to vector<2x6x595xf32>
    %cst_43 = arith.constant dense<0.000000e+00> : vector<2x16x595xf32>
    %250 = tpu.matmul %248, %249, %cst_43 {dimension_numbers = #tpu.dot_dimension_numbers<[2], [1], [1], [2], [0, 0, 0, 1, 1, 2], [0], [0]>} : vector<2x16x6xf32>, vector<2x6x595xf32>, vector<2x16x595xf32> -> vector<2x16x595xf32>
    %251 = arith.addf %244, %250 : vector<2x16x595xf32>
    %252 = vector.extract_strided_slice %2 {offsets = [9, 0, 0], sizes = [1, 16, 6], strides = [1, 1, 1]} : vector<25x16x6xf32> to vector<1x16x6xf32>
    %253 = vector.shape_cast %252 : vector<1x16x6xf32> to vector<16x6xf32>
    %254 = vector.shape_cast %253 : vector<16x6xf32> to vector<1x16x6xf32>
    %255 = vector.broadcast %254 : vector<1x16x6xf32> to vector<2x16x6xf32>
    %256 = vector.extract_strided_slice %189 {offsets = [0, 0, 72], sizes = [2, 6, 595], strides = [1, 1, 1]} : vector<2x6x859xf32> to vector<2x6x595xf32>
    %cst_44 = arith.constant dense<0.000000e+00> : vector<2x16x595xf32>
    %257 = tpu.matmul %255, %256, %cst_44 {dimension_numbers = #tpu.dot_dimension_numbers<[2], [1], [1], [2], [0, 0, 0, 1, 1, 2], [0], [0]>} : vector<2x16x6xf32>, vector<2x6x595xf32>, vector<2x16x595xf32> -> vector<2x16x595xf32>
    %258 = arith.addf %251, %257 : vector<2x16x595xf32>
    %259 = vector.extract_strided_slice %2 {offsets = [10, 0, 0], sizes = [1, 16, 6], strides = [1, 1, 1]} : vector<25x16x6xf32> to vector<1x16x6xf32>
    %260 = vector.shape_cast %259 : vector<1x16x6xf32> to vector<16x6xf32>
    %261 = vector.shape_cast %260 : vector<16x6xf32> to vector<1x16x6xf32>
    %262 = vector.broadcast %261 : vector<1x16x6xf32> to vector<2x16x6xf32>
    %263 = vector.extract_strided_slice %189 {offsets = [0, 0, 128], sizes = [2, 6, 595], strides = [1, 1, 1]} : vector<2x6x859xf32> to vector<2x6x595xf32>
    %cst_45 = arith.constant dense<0.000000e+00> : vector<2x16x595xf32>
    %264 = tpu.matmul %262, %263, %cst_45 {dimension_numbers = #tpu.dot_dimension_numbers<[2], [1], [1], [2], [0, 0, 0, 1, 1, 2], [0], [0]>} : vector<2x16x6xf32>, vector<2x6x595xf32>, vector<2x16x595xf32> -> vector<2x16x595xf32>
    %265 = arith.addf %258, %264 : vector<2x16x595xf32>
    %266 = vector.extract_strided_slice %2 {offsets = [11, 0, 0], sizes = [1, 16, 6], strides = [1, 1, 1]} : vector<25x16x6xf32> to vector<1x16x6xf32>
    %267 = vector.shape_cast %266 : vector<1x16x6xf32> to vector<16x6xf32>
    %268 = vector.shape_cast %267 : vector<16x6xf32> to vector<1x16x6xf32>
    %269 = vector.broadcast %268 : vector<1x16x6xf32> to vector<2x16x6xf32>
    %270 = vector.extract_strided_slice %189 {offsets = [0, 0, 130], sizes = [2, 6, 595], strides = [1, 1, 1]} : vector<2x6x859xf32> to vector<2x6x595xf32>
    %cst_46 = arith.constant dense<0.000000e+00> : vector<2x16x595xf32>
    %271 = tpu.matmul %269, %270, %cst_46 {dimension_numbers = #tpu.dot_dimension_numbers<[2], [1], [1], [2], [0, 0, 0, 1, 1, 2], [0], [0]>} : vector<2x16x6xf32>, vector<2x6x595xf32>, vector<2x16x595xf32> -> vector<2x16x595xf32>
    %272 = arith.addf %265, %271 : vector<2x16x595xf32>
    %273 = vector.extract_strided_slice %2 {offsets = [12, 0, 0], sizes = [1, 16, 6], strides = [1, 1, 1]} : vector<25x16x6xf32> to vector<1x16x6xf32>
    %274 = vector.shape_cast %273 : vector<1x16x6xf32> to vector<16x6xf32>
    %275 = vector.shape_cast %274 : vector<16x6xf32> to vector<1x16x6xf32>
    %276 = vector.broadcast %275 : vector<1x16x6xf32> to vector<2x16x6xf32>
    %277 = vector.extract_strided_slice %189 {offsets = [0, 0, 132], sizes = [2, 6, 595], strides = [1, 1, 1]} : vector<2x6x859xf32> to vector<2x6x595xf32>
    %cst_47 = arith.constant dense<0.000000e+00> : vector<2x16x595xf32>
    %278 = tpu.matmul %276, %277, %cst_47 {dimension_numbers = #tpu.dot_dimension_numbers<[2], [1], [1], [2], [0, 0, 0, 1, 1, 2], [0], [0]>} : vector<2x16x6xf32>, vector<2x6x595xf32>, vector<2x16x595xf32> -> vector<2x16x595xf32>
    %279 = arith.addf %272, %278 : vector<2x16x595xf32>
    %280 = vector.extract_strided_slice %2 {offsets = [13, 0, 0], sizes = [1, 16, 6], strides = [1, 1, 1]} : vector<25x16x6xf32> to vector<1x16x6xf32>
    %281 = vector.shape_cast %280 : vector<1x16x6xf32> to vector<16x6xf32>
    %282 = vector.shape_cast %281 : vector<16x6xf32> to vector<1x16x6xf32>
    %283 = vector.broadcast %282 : vector<1x16x6xf32> to vector<2x16x6xf32>
    %284 = vector.extract_strided_slice %189 {offsets = [0, 0, 134], sizes = [2, 6, 595], strides = [1, 1, 1]} : vector<2x6x859xf32> to vector<2x6x595xf32>
    %cst_48 = arith.constant dense<0.000000e+00> : vector<2x16x595xf32>
    %285 = tpu.matmul %283, %284, %cst_48 {dimension_numbers = #tpu.dot_dimension_numbers<[2], [1], [1], [2], [0, 0, 0, 1, 1, 2], [0], [0]>} : vector<2x16x6xf32>, vector<2x6x595xf32>, vector<2x16x595xf32> -> vector<2x16x595xf32>
    %286 = arith.addf %279, %285 : vector<2x16x595xf32>
    %287 = vector.extract_strided_slice %2 {offsets = [14, 0, 0], sizes = [1, 16, 6], strides = [1, 1, 1]} : vector<25x16x6xf32> to vector<1x16x6xf32>
    %288 = vector.shape_cast %287 : vector<1x16x6xf32> to vector<16x6xf32>
    %289 = vector.shape_cast %288 : vector<16x6xf32> to vector<1x16x6xf32>
    %290 = vector.broadcast %289 : vector<1x16x6xf32> to vector<2x16x6xf32>
    %291 = vector.extract_strided_slice %189 {offsets = [0, 0, 136], sizes = [2, 6, 595], strides = [1, 1, 1]} : vector<2x6x859xf32> to vector<2x6x595xf32>
    %cst_49 = arith.constant dense<0.000000e+00> : vector<2x16x595xf32>
    %292 = tpu.matmul %290, %291, %cst_49 {dimension_numbers = #tpu.dot_dimension_numbers<[2], [1], [1], [2], [0, 0, 0, 1, 1, 2], [0], [0]>} : vector<2x16x6xf32>, vector<2x6x595xf32>, vector<2x16x595xf32> -> vector<2x16x595xf32>
    %293 = arith.addf %286, %292 : vector<2x16x595xf32>
    %294 = vector.extract_strided_slice %2 {offsets = [15, 0, 0], sizes = [1, 16, 6], strides = [1, 1, 1]} : vector<25x16x6xf32> to vector<1x16x6xf32>
    %295 = vector.shape_cast %294 : vector<1x16x6xf32> to vector<16x6xf32>
    %296 = vector.shape_cast %295 : vector<16x6xf32> to vector<1x16x6xf32>
    %297 = vector.broadcast %296 : vector<1x16x6xf32> to vector<2x16x6xf32>
    %298 = vector.extract_strided_slice %189 {offsets = [0, 0, 192], sizes = [2, 6, 595], strides = [1, 1, 1]} : vector<2x6x859xf32> to vector<2x6x595xf32>
    %cst_50 = arith.constant dense<0.000000e+00> : vector<2x16x595xf32>
    %299 = tpu.matmul %297, %298, %cst_50 {dimension_numbers = #tpu.dot_dimension_numbers<[2], [1], [1], [2], [0, 0, 0, 1, 1, 2], [0], [0]>} : vector<2x16x6xf32>, vector<2x6x595xf32>, vector<2x16x595xf32> -> vector<2x16x595xf32>
    %300 = arith.addf %293, %299 : vector<2x16x595xf32>
    %301 = vector.extract_strided_slice %2 {offsets = [16, 0, 0], sizes = [1, 16, 6], strides = [1, 1, 1]} : vector<25x16x6xf32> to vector<1x16x6xf32>
    %302 = vector.shape_cast %301 : vector<1x16x6xf32> to vector<16x6xf32>
    %303 = vector.shape_cast %302 : vector<16x6xf32> to vector<1x16x6xf32>
    %304 = vector.broadcast %303 : vector<1x16x6xf32> to vector<2x16x6xf32>
    %305 = vector.extract_strided_slice %189 {offsets = [0, 0, 194], sizes = [2, 6, 595], strides = [1, 1, 1]} : vector<2x6x859xf32> to vector<2x6x595xf32>
    %cst_51 = arith.constant dense<0.000000e+00> : vector<2x16x595xf32>
    %306 = tpu.matmul %304, %305, %cst_51 {dimension_numbers = #tpu.dot_dimension_numbers<[2], [1], [1], [2], [0, 0, 0, 1, 1, 2], [0], [0]>} : vector<2x16x6xf32>, vector<2x6x595xf32>, vector<2x16x595xf32> -> vector<2x16x595xf32>
    %307 = arith.addf %300, %306 : vector<2x16x595xf32>
    %308 = vector.extract_strided_slice %2 {offsets = [17, 0, 0], sizes = [1, 16, 6], strides = [1, 1, 1]} : vector<25x16x6xf32> to vector<1x16x6xf32>
    %309 = vector.shape_cast %308 : vector<1x16x6xf32> to vector<16x6xf32>
    %310 = vector.shape_cast %309 : vector<16x6xf32> to vector<1x16x6xf32>
    %311 = vector.broadcast %310 : vector<1x16x6xf32> to vector<2x16x6xf32>
    %312 = vector.extract_strided_slice %189 {offsets = [0, 0, 196], sizes = [2, 6, 595], strides = [1, 1, 1]} : vector<2x6x859xf32> to vector<2x6x595xf32>
    %cst_52 = arith.constant dense<0.000000e+00> : vector<2x16x595xf32>
    %313 = tpu.matmul %311, %312, %cst_52 {dimension_numbers = #tpu.dot_dimension_numbers<[2], [1], [1], [2], [0, 0, 0, 1, 1, 2], [0], [0]>} : vector<2x16x6xf32>, vector<2x6x595xf32>, vector<2x16x595xf32> -> vector<2x16x595xf32>
    %314 = arith.addf %307, %313 : vector<2x16x595xf32>
    %315 = vector.extract_strided_slice %2 {offsets = [18, 0, 0], sizes = [1, 16, 6], strides = [1, 1, 1]} : vector<25x16x6xf32> to vector<1x16x6xf32>
    %316 = vector.shape_cast %315 : vector<1x16x6xf32> to vector<16x6xf32>
    %317 = vector.shape_cast %316 : vector<16x6xf32> to vector<1x16x6xf32>
    %318 = vector.broadcast %317 : vector<1x16x6xf32> to vector<2x16x6xf32>
    %319 = vector.extract_strided_slice %189 {offsets = [0, 0, 198], sizes = [2, 6, 595], strides = [1, 1, 1]} : vector<2x6x859xf32> to vector<2x6x595xf32>
    %cst_53 = arith.constant dense<0.000000e+00> : vector<2x16x595xf32>
    %320 = tpu.matmul %318, %319, %cst_53 {dimension_numbers = #tpu.dot_dimension_numbers<[2], [1], [1], [2], [0, 0, 0, 1, 1, 2], [0], [0]>} : vector<2x16x6xf32>, vector<2x6x595xf32>, vector<2x16x595xf32> -> vector<2x16x595xf32>
    %321 = arith.addf %314, %320 : vector<2x16x595xf32>
    %322 = vector.extract_strided_slice %2 {offsets = [19, 0, 0], sizes = [1, 16, 6], strides = [1, 1, 1]} : vector<25x16x6xf32> to vector<1x16x6xf32>
    %323 = vector.shape_cast %322 : vector<1x16x6xf32> to vector<16x6xf32>
    %324 = vector.shape_cast %323 : vector<16x6xf32> to vector<1x16x6xf32>
    %325 = vector.broadcast %324 : vector<1x16x6xf32> to vector<2x16x6xf32>
    %326 = vector.extract_strided_slice %189 {offsets = [0, 0, 200], sizes = [2, 6, 595], strides = [1, 1, 1]} : vector<2x6x859xf32> to vector<2x6x595xf32>
    %cst_54 = arith.constant dense<0.000000e+00> : vector<2x16x595xf32>
    %327 = tpu.matmul %325, %326, %cst_54 {dimension_numbers = #tpu.dot_dimension_numbers<[2], [1], [1], [2], [0, 0, 0, 1, 1, 2], [0], [0]>} : vector<2x16x6xf32>, vector<2x6x595xf32>, vector<2x16x595xf32> -> vector<2x16x595xf32>
    %328 = arith.addf %321, %327 : vector<2x16x595xf32>
    %329 = vector.extract_strided_slice %2 {offsets = [20, 0, 0], sizes = [1, 16, 6], strides = [1, 1, 1]} : vector<25x16x6xf32> to vector<1x16x6xf32>
    %330 = vector.shape_cast %329 : vector<1x16x6xf32> to vector<16x6xf32>
    %331 = vector.shape_cast %330 : vector<16x6xf32> to vector<1x16x6xf32>
    %332 = vector.broadcast %331 : vector<1x16x6xf32> to vector<2x16x6xf32>
    %333 = vector.extract_strided_slice %189 {offsets = [0, 0, 256], sizes = [2, 6, 595], strides = [1, 1, 1]} : vector<2x6x859xf32> to vector<2x6x595xf32>
    %cst_55 = arith.constant dense<0.000000e+00> : vector<2x16x595xf32>
    %334 = tpu.matmul %332, %333, %cst_55 {dimension_numbers = #tpu.dot_dimension_numbers<[2], [1], [1], [2], [0, 0, 0, 1, 1, 2], [0], [0]>} : vector<2x16x6xf32>, vector<2x6x595xf32>, vector<2x16x595xf32> -> vector<2x16x595xf32>
    %335 = arith.addf %328, %334 : vector<2x16x595xf32>
    %336 = vector.extract_strided_slice %2 {offsets = [21, 0, 0], sizes = [1, 16, 6], strides = [1, 1, 1]} : vector<25x16x6xf32> to vector<1x16x6xf32>
    %337 = vector.shape_cast %336 : vector<1x16x6xf32> to vector<16x6xf32>
    %338 = vector.shape_cast %337 : vector<16x6xf32> to vector<1x16x6xf32>
    %339 = vector.broadcast %338 : vector<1x16x6xf32> to vector<2x16x6xf32>
    %340 = vector.extract_strided_slice %189 {offsets = [0, 0, 258], sizes = [2, 6, 595], strides = [1, 1, 1]} : vector<2x6x859xf32> to vector<2x6x595xf32>
    %cst_56 = arith.constant dense<0.000000e+00> : vector<2x16x595xf32>
    %341 = tpu.matmul %339, %340, %cst_56 {dimension_numbers = #tpu.dot_dimension_numbers<[2], [1], [1], [2], [0, 0, 0, 1, 1, 2], [0], [0]>} : vector<2x16x6xf32>, vector<2x6x595xf32>, vector<2x16x595xf32> -> vector<2x16x595xf32>
    %342 = arith.addf %335, %341 : vector<2x16x595xf32>
    %343 = vector.extract_strided_slice %2 {offsets = [22, 0, 0], sizes = [1, 16, 6], strides = [1, 1, 1]} : vector<25x16x6xf32> to vector<1x16x6xf32>
    %344 = vector.shape_cast %343 : vector<1x16x6xf32> to vector<16x6xf32>
    %345 = vector.shape_cast %344 : vector<16x6xf32> to vector<1x16x6xf32>
    %346 = vector.broadcast %345 : vector<1x16x6xf32> to vector<2x16x6xf32>
    %347 = vector.extract_strided_slice %189 {offsets = [0, 0, 260], sizes = [2, 6, 595], strides = [1, 1, 1]} : vector<2x6x859xf32> to vector<2x6x595xf32>
    %cst_57 = arith.constant dense<0.000000e+00> : vector<2x16x595xf32>
    %348 = tpu.matmul %346, %347, %cst_57 {dimension_numbers = #tpu.dot_dimension_numbers<[2], [1], [1], [2], [0, 0, 0, 1, 1, 2], [0], [0]>} : vector<2x16x6xf32>, vector<2x6x595xf32>, vector<2x16x595xf32> -> vector<2x16x595xf32>
    %349 = arith.addf %342, %348 : vector<2x16x595xf32>
    %350 = vector.extract_strided_slice %2 {offsets = [23, 0, 0], sizes = [1, 16, 6], strides = [1, 1, 1]} : vector<25x16x6xf32> to vector<1x16x6xf32>
    %351 = vector.shape_cast %350 : vector<1x16x6xf32> to vector<16x6xf32>
    %352 = vector.shape_cast %351 : vector<16x6xf32> to vector<1x16x6xf32>
    %353 = vector.broadcast %352 : vector<1x16x6xf32> to vector<2x16x6xf32>
    %354 = vector.extract_strided_slice %189 {offsets = [0, 0, 262], sizes = [2, 6, 595], strides = [1, 1, 1]} : vector<2x6x859xf32> to vector<2x6x595xf32>
    %cst_58 = arith.constant dense<0.000000e+00> : vector<2x16x595xf32>
    %355 = tpu.matmul %353, %354, %cst_58 {dimension_numbers = #tpu.dot_dimension_numbers<[2], [1], [1], [2], [0, 0, 0, 1, 1, 2], [0], [0]>} : vector<2x16x6xf32>, vector<2x6x595xf32>, vector<2x16x595xf32> -> vector<2x16x595xf32>
    %356 = arith.addf %349, %355 : vector<2x16x595xf32>
    %357 = vector.extract_strided_slice %2 {offsets = [24, 0, 0], sizes = [1, 16, 6], strides = [1, 1, 1]} : vector<25x16x6xf32> to vector<1x16x6xf32>
    %358 = vector.shape_cast %357 : vector<1x16x6xf32> to vector<16x6xf32>
    %359 = vector.shape_cast %358 : vector<16x6xf32> to vector<1x16x6xf32>
    %360 = vector.broadcast %359 : vector<1x16x6xf32> to vector<2x16x6xf32>
    %361 = vector.extract_strided_slice %189 {offsets = [0, 0, 264], sizes = [2, 6, 595], strides = [1, 1, 1]} : vector<2x6x859xf32> to vector<2x6x595xf32>
    %cst_59 = arith.constant dense<0.000000e+00> : vector<2x16x595xf32>
    %362 = tpu.matmul %360, %361, %cst_59 {dimension_numbers = #tpu.dot_dimension_numbers<[2], [1], [1], [2], [0, 0, 0, 1, 1, 2], [0], [0]>} : vector<2x16x6xf32>, vector<2x6x595xf32>, vector<2x16x595xf32> -> vector<2x16x595xf32>
    %363 = arith.addf %356, %362 : vector<2x16x595xf32>
    %c0_60 = arith.constant 0 : index
    %c0_61 = arith.constant 0 : index
    %364 = vector.load %arg5[%c0_60, %c0_61] : memref<16x1xf32, #tpu.memory_space<vmem>>, vector<16x1xf32>
    %365 = vector.shape_cast %364 : vector<16x1xf32> to vector<1x16x1xf32>
    %366 = vector.broadcast %365 : vector<1x16x1xf32> to vector<2x16x595xf32>
    %367 = arith.addf %363, %366 : vector<2x16x595xf32>
    %cst_62 = arith.constant 0.000000e+00 : f32
    %368 = vector.broadcast %cst_62 : f32 to vector<2x16x595xf32>
    %369 = arith.maximumf %367, %368 : vector<2x16x595xf32>
    %370 = vector.extract_strided_slice %369 {offsets = [0, 0, 0], sizes = [2, 16, 529], strides = [1, 1, 1]} : vector<2x16x595xf32> to vector<2x16x529xf32>
    %371 = vector.extract_strided_slice %369 {offsets = [0, 0, 2], sizes = [2, 16, 529], strides = [1, 1, 1]} : vector<2x16x595xf32> to vector<2x16x529xf32>
    %372 = arith.maximumf %370, %371 : vector<2x16x529xf32>
    %373 = vector.extract_strided_slice %369 {offsets = [0, 0, 64], sizes = [2, 16, 529], strides = [1, 1, 1]} : vector<2x16x595xf32> to vector<2x16x529xf32>
    %374 = vector.extract_strided_slice %369 {offsets = [0, 0, 66], sizes = [2, 16, 529], strides = [1, 1, 1]} : vector<2x16x595xf32> to vector<2x16x529xf32>
    %375 = arith.maximumf %373, %374 : vector<2x16x529xf32>
    %376 = arith.maximumf %372, %375 : vector<2x16x529xf32>
    %377 = vector.shape_cast %376 : vector<2x16x529xf32> to vector<32x529xf32>
    %c0_63 = arith.constant 0 : index
    %c0_64 = arith.constant 0 : index
    %378 = vector.load %arg6[%c0_63, %c0_64] : memref<529x25xf32, #tpu.memory_space<vmem>>, vector<529x25xf32>
    %cst_65 = arith.constant dense<0.000000e+00> : vector<32x25xf32>
    %379 = tpu.matmul %377, %378, %cst_65 {dimension_numbers = #tpu.dot_dimension_numbers<[1], [0], [0], [1], [0, 0, 1, 1], [], []>} : vector<32x529xf32>, vector<529x25xf32>, vector<32x25xf32> -> vector<32x25xf32>
    %380 = vector.shape_cast %379 : vector<32x25xf32> to vector<2x16x25xf32>
    %381 = vector.extract_strided_slice %380 {offsets = [0, 0, 0], sizes = [2, 1, 25], strides = [1, 1, 1]} : vector<2x16x25xf32> to vector<2x1x25xf32>
    %382 = vector.shape_cast %381 : vector<2x1x25xf32> to vector<2x25xf32>
    %c0_66 = arith.constant 0 : index
    %c0_67 = arith.constant 0 : index
    %383 = vector.load %arg14[%c0_66, %c0_67] : memref<2x400xf32, #tpu.memory_space<vmem>>, vector<2x25xf32>
    tpu.vector_store %arg14[%c0_66, %c0_67], %382 {strides = array<i32>} : memref<2x400xf32, #tpu.memory_space<vmem>>, vector<2x25xf32>,
    %384 = vector.extract_strided_slice %380 {offsets = [0, 1, 0], sizes = [2, 1, 25], strides = [1, 1, 1]} : vector<2x16x25xf32> to vector<2x1x25xf32>
    %385 = vector.shape_cast %384 : vector<2x1x25xf32> to vector<2x25xf32>
    %c0_68 = arith.constant 0 : index
    %c25 = arith.constant 25 : index
    %386 = vector.load %arg14[%c0_68, %c25] : memref<2x400xf32, #tpu.memory_space<vmem>>, vector<2x25xf32>
    tpu.vector_store %arg14[%c0_68, %c25], %385 {strides = array<i32>} : memref<2x400xf32, #tpu.memory_space<vmem>>, vector<2x25xf32>,
    %387 = vector.extract_strided_slice %380 {offsets = [0, 2, 0], sizes = [2, 1, 25], strides = [1, 1, 1]} : vector<2x16x25xf32> to vector<2x1x25xf32>
    %388 = vector.shape_cast %387 : vector<2x1x25xf32> to vector<2x25xf32>
    %c0_69 = arith.constant 0 : index
    %c50 = arith.constant 50 : index
    %389 = vector.load %arg14[%c0_69, %c50] : memref<2x400xf32, #tpu.memory_space<vmem>>, vector<2x25xf32>
    tpu.vector_store %arg14[%c0_69, %c50], %388 {strides = array<i32>} : memref<2x400xf32, #tpu.memory_space<vmem>>, vector<2x25xf32>,
    %390 = vector.extract_strided_slice %380 {offsets = [0, 3, 0], sizes = [2, 1, 25], strides = [1, 1, 1]} : vector<2x16x25xf32> to vector<2x1x25xf32>
    %391 = vector.shape_cast %390 : vector<2x1x25xf32> to vector<2x25xf32>
    %c0_70 = arith.constant 0 : index
    %c75 = arith.constant 75 : index
    %392 = vector.load %arg14[%c0_70, %c75] : memref<2x400xf32, #tpu.memory_space<vmem>>, vector<2x25xf32>
    tpu.vector_store %arg14[%c0_70, %c75], %391 {strides = array<i32>} : memref<2x400xf32, #tpu.memory_space<vmem>>, vector<2x25xf32>,
    %393 = vector.extract_strided_slice %380 {offsets = [0, 4, 0], sizes = [2, 1, 25], strides = [1, 1, 1]} : vector<2x16x25xf32> to vector<2x1x25xf32>
    %394 = vector.shape_cast %393 : vector<2x1x25xf32> to vector<2x25xf32>
    %c0_71 = arith.constant 0 : index
    %c100 = arith.constant 100 : index
    %395 = vector.load %arg14[%c0_71, %c100] : memref<2x400xf32, #tpu.memory_space<vmem>>, vector<2x25xf32>
    tpu.vector_store %arg14[%c0_71, %c100], %394 {strides = array<i32>} : memref<2x400xf32, #tpu.memory_space<vmem>>, vector<2x25xf32>,
    %396 = vector.extract_strided_slice %380 {offsets = [0, 5, 0], sizes = [2, 1, 25], strides = [1, 1, 1]} : vector<2x16x25xf32> to vector<2x1x25xf32>
    %397 = vector.shape_cast %396 : vector<2x1x25xf32> to vector<2x25xf32>
    %c0_72 = arith.constant 0 : index
    %c125 = arith.constant 125 : index
    %398 = vector.load %arg14[%c0_72, %c125] : memref<2x400xf32, #tpu.memory_space<vmem>>, vector<2x25xf32>
    tpu.vector_store %arg14[%c0_72, %c125], %397 {strides = array<i32>} : memref<2x400xf32, #tpu.memory_space<vmem>>, vector<2x25xf32>,
    %399 = vector.extract_strided_slice %380 {offsets = [0, 6, 0], sizes = [2, 1, 25], strides = [1, 1, 1]} : vector<2x16x25xf32> to vector<2x1x25xf32>
    %400 = vector.shape_cast %399 : vector<2x1x25xf32> to vector<2x25xf32>
    %c0_73 = arith.constant 0 : index
    %c150 = arith.constant 150 : index
    %401 = vector.load %arg14[%c0_73, %c150] : memref<2x400xf32, #tpu.memory_space<vmem>>, vector<2x25xf32>
    tpu.vector_store %arg14[%c0_73, %c150], %400 {strides = array<i32>} : memref<2x400xf32, #tpu.memory_space<vmem>>, vector<2x25xf32>,
    %402 = vector.extract_strided_slice %380 {offsets = [0, 7, 0], sizes = [2, 1, 25], strides = [1, 1, 1]} : vector<2x16x25xf32> to vector<2x1x25xf32>
    %403 = vector.shape_cast %402 : vector<2x1x25xf32> to vector<2x25xf32>
    %c0_74 = arith.constant 0 : index
    %c175 = arith.constant 175 : index
    %404 = vector.load %arg14[%c0_74, %c175] : memref<2x400xf32, #tpu.memory_space<vmem>>, vector<2x25xf32>
    tpu.vector_store %arg14[%c0_74, %c175], %403 {strides = array<i32>} : memref<2x400xf32, #tpu.memory_space<vmem>>, vector<2x25xf32>,
    %405 = vector.extract_strided_slice %380 {offsets = [0, 8, 0], sizes = [2, 1, 25], strides = [1, 1, 1]} : vector<2x16x25xf32> to vector<2x1x25xf32>
    %406 = vector.shape_cast %405 : vector<2x1x25xf32> to vector<2x25xf32>
    %c0_75 = arith.constant 0 : index
    %c200 = arith.constant 200 : index
    %407 = vector.load %arg14[%c0_75, %c200] : memref<2x400xf32, #tpu.memory_space<vmem>>, vector<2x25xf32>
    tpu.vector_store %arg14[%c0_75, %c200], %406 {strides = array<i32>} : memref<2x400xf32, #tpu.memory_space<vmem>>, vector<2x25xf32>,
    %408 = vector.extract_strided_slice %380 {offsets = [0, 9, 0], sizes = [2, 1, 25], strides = [1, 1, 1]} : vector<2x16x25xf32> to vector<2x1x25xf32>
    %409 = vector.shape_cast %408 : vector<2x1x25xf32> to vector<2x25xf32>
    %c0_76 = arith.constant 0 : index
    %c225 = arith.constant 225 : index
    %410 = vector.load %arg14[%c0_76, %c225] : memref<2x400xf32, #tpu.memory_space<vmem>>, vector<2x25xf32>
    tpu.vector_store %arg14[%c0_76, %c225], %409 {strides = array<i32>} : memref<2x400xf32, #tpu.memory_space<vmem>>, vector<2x25xf32>,
    %411 = vector.extract_strided_slice %380 {offsets = [0, 10, 0], sizes = [2, 1, 25], strides = [1, 1, 1]} : vector<2x16x25xf32> to vector<2x1x25xf32>
    %412 = vector.shape_cast %411 : vector<2x1x25xf32> to vector<2x25xf32>
    %c0_77 = arith.constant 0 : index
    %c250 = arith.constant 250 : index
    %413 = vector.load %arg14[%c0_77, %c250] : memref<2x400xf32, #tpu.memory_space<vmem>>, vector<2x25xf32>
    tpu.vector_store %arg14[%c0_77, %c250], %412 {strides = array<i32>} : memref<2x400xf32, #tpu.memory_space<vmem>>, vector<2x25xf32>,
    %414 = vector.extract_strided_slice %380 {offsets = [0, 11, 0], sizes = [2, 1, 25], strides = [1, 1, 1]} : vector<2x16x25xf32> to vector<2x1x25xf32>
    %415 = vector.shape_cast %414 : vector<2x1x25xf32> to vector<2x25xf32>
    %c0_78 = arith.constant 0 : index
    %c275 = arith.constant 275 : index
    %416 = vector.load %arg14[%c0_78, %c275] : memref<2x400xf32, #tpu.memory_space<vmem>>, vector<2x25xf32>
    tpu.vector_store %arg14[%c0_78, %c275], %415 {strides = array<i32>} : memref<2x400xf32, #tpu.memory_space<vmem>>, vector<2x25xf32>,
    %417 = vector.extract_strided_slice %380 {offsets = [0, 12, 0], sizes = [2, 1, 25], strides = [1, 1, 1]} : vector<2x16x25xf32> to vector<2x1x25xf32>
    %418 = vector.shape_cast %417 : vector<2x1x25xf32> to vector<2x25xf32>
    %c0_79 = arith.constant 0 : index
    %c300 = arith.constant 300 : index
    %419 = vector.load %arg14[%c0_79, %c300] : memref<2x400xf32, #tpu.memory_space<vmem>>, vector<2x25xf32>
    tpu.vector_store %arg14[%c0_79, %c300], %418 {strides = array<i32>} : memref<2x400xf32, #tpu.memory_space<vmem>>, vector<2x25xf32>,
    %420 = vector.extract_strided_slice %380 {offsets = [0, 13, 0], sizes = [2, 1, 25], strides = [1, 1, 1]} : vector<2x16x25xf32> to vector<2x1x25xf32>
    %421 = vector.shape_cast %420 : vector<2x1x25xf32> to vector<2x25xf32>
    %c0_80 = arith.constant 0 : index
    %c325 = arith.constant 325 : index
    %422 = vector.load %arg14[%c0_80, %c325] : memref<2x400xf32, #tpu.memory_space<vmem>>, vector<2x25xf32>
    tpu.vector_store %arg14[%c0_80, %c325], %421 {strides = array<i32>} : memref<2x400xf32, #tpu.memory_space<vmem>>, vector<2x25xf32>,
    %423 = vector.extract_strided_slice %380 {offsets = [0, 14, 0], sizes = [2, 1, 25], strides = [1, 1, 1]} : vector<2x16x25xf32> to vector<2x1x25xf32>
    %424 = vector.shape_cast %423 : vector<2x1x25xf32> to vector<2x25xf32>
    %c0_81 = arith.constant 0 : index
    %c350 = arith.constant 350 : index
    %425 = vector.load %arg14[%c0_81, %c350] : memref<2x400xf32, #tpu.memory_space<vmem>>, vector<2x25xf32>
    tpu.vector_store %arg14[%c0_81, %c350], %424 {strides = array<i32>} : memref<2x400xf32, #tpu.memory_space<vmem>>, vector<2x25xf32>,
    %426 = vector.extract_strided_slice %380 {offsets = [0, 15, 0], sizes = [2, 1, 25], strides = [1, 1, 1]} : vector<2x16x25xf32> to vector<2x1x25xf32>
    %427 = vector.shape_cast %426 : vector<2x1x25xf32> to vector<2x25xf32>
    %c0_82 = arith.constant 0 : index
    %c375 = arith.constant 375 : index
    %428 = vector.load %arg14[%c0_82, %c375] : memref<2x400xf32, #tpu.memory_space<vmem>>, vector<2x25xf32>
    tpu.vector_store %arg14[%c0_82, %c375], %427 {strides = array<i32>} : memref<2x400xf32, #tpu.memory_space<vmem>>, vector<2x25xf32>,
    %c0_83 = arith.constant 0 : index
    %c0_84 = arith.constant 0 : index
    %429 = vector.load %arg14[%c0_83, %c0_84] : memref<2x400xf32, #tpu.memory_space<vmem>>, vector<2x400xf32>
    %c0_85 = arith.constant 0 : index
    %c0_86 = arith.constant 0 : index
    %430 = vector.load %arg7[%c0_85, %c0_86] : memref<400x120xf32, #tpu.memory_space<vmem>>, vector<400x120xf32>
    %cst_87 = arith.constant dense<0.000000e+00> : vector<2x120xf32>
    %431 = tpu.matmul %429, %430, %cst_87 {dimension_numbers = #tpu.dot_dimension_numbers<[1], [0], [0], [1], [0, 0, 1, 1], [], []>} : vector<2x400xf32>, vector<400x120xf32>, vector<2x120xf32> -> vector<2x120xf32>
    %c0_88 = arith.constant 0 : index
    %c0_89 = arith.constant 0 : index
    %432 = vector.load %arg8[%c0_88, %c0_89] : memref<1x120xf32, #tpu.memory_space<vmem>>, vector<1x120xf32>
    %433 = vector.broadcast %432 : vector<1x120xf32> to vector<2x120xf32>
    %434 = arith.addf %431, %433 : vector<2x120xf32>
    %cst_90 = arith.constant 0.000000e+00 : f32
    %435 = vector.broadcast %cst_90 : f32 to vector<2x120xf32>
    %436 = arith.maximumf %434, %435 : vector<2x120xf32>
    %c0_91 = arith.constant 0 : index
    %c0_92 = arith.constant 0 : index
    %437 = vector.load %arg9[%c0_91, %c0_92] : memref<120x84xf32, #tpu.memory_space<vmem>>, vector<120x84xf32>
    %cst_93 = arith.constant dense<0.000000e+00> : vector<2x84xf32>
    %438 = tpu.matmul %436, %437, %cst_93 {dimension_numbers = #tpu.dot_dimension_numbers<[1], [0], [0], [1], [0, 0, 1, 1], [], []>} : vector<2x120xf32>, vector<120x84xf32>, vector<2x84xf32> -> vector<2x84xf32>
    %c0_94 = arith.constant 0 : index
    %c0_95 = arith.constant 0 : index
    %439 = vector.load %arg10[%c0_94, %c0_95] : memref<1x84xf32, #tpu.memory_space<vmem>>, vector<1x84xf32>
    %440 = vector.broadcast %439 : vector<1x84xf32> to vector<2x84xf32>
    %441 = arith.addf %438, %440 : vector<2x84xf32>
    %cst_96 = arith.constant 0.000000e+00 : f32
    %442 = vector.broadcast %cst_96 : f32 to vector<2x84xf32>
    %443 = arith.maximumf %441, %442 : vector<2x84xf32>
    %c0_97 = arith.constant 0 : index
    %c0_98 = arith.constant 0 : index
    %444 = vector.load %arg11[%c0_97, %c0_98] : memref<84x10xf32, #tpu.memory_space<vmem>>, vector<84x10xf32>
    %cst_99 = arith.constant dense<0.000000e+00> : vector<2x10xf32>
    %445 = tpu.matmul %443, %444, %cst_99 {dimension_numbers = #tpu.dot_dimension_numbers<[1], [0], [0], [1], [0, 0, 1, 1], [], []>} : vector<2x84xf32>, vector<84x10xf32>, vector<2x10xf32> -> vector<2x10xf32>
    %c0_100 = arith.constant 0 : index
    %c0_101 = arith.constant 0 : index
    %446 = vector.load %arg12[%c0_100, %c0_101] : memref<1x10xf32, #tpu.memory_space<vmem>>, vector<1x10xf32>
    %447 = vector.broadcast %446 : vector<1x10xf32> to vector<2x10xf32>
    %448 = arith.addf %445, %447 : vector<2x10xf32>
    %c0_102 = arith.constant 0 : index
    %c0_103 = arith.constant 0 : index
    %449 = vector.load %arg13[%c0_102, %c0_103] : memref<2x10xf32, #tpu.memory_space<vmem>>, vector<2x10xf32>
    tpu.vector_store %arg13[%c0_102, %c0_103], %448 {strides = array<i32>} : memref<2x10xf32, #tpu.memory_space<vmem>>, vector<2x10xf32>,
    return
  }
  func.func @transform_0(%arg0: i32) -> (i32, i32, i32) {
    %c0_i32 = arith.constant 0 : i32
    %c0_i32_0 = arith.constant 0 : i32
    %c0_i32_1 = arith.constant 0 : i32
    return %arg0, %c0_i32, %c0_i32_0 : i32, i32, i32
  }
  func.func @transform_1(%arg0: i32) -> (i32, i32, i32) {
    %c0_i32 = arith.constant 0 : i32
    %c0_i32_0 = arith.constant 0 : i32
    %c0_i32_1 = arith.constant 0 : i32
    %c0_i32_2 = arith.constant 0 : i32
    return %c0_i32, %c0_i32_0, %c0_i32_1 : i32, i32, i32
  }
  func.func @transform_2(%arg0: i32) -> (i32, i32) {
    %c0_i32 = arith.constant 0 : i32
    %c0_i32_0 = arith.constant 0 : i32
    %c0_i32_1 = arith.constant 0 : i32
    return %c0_i32, %c0_i32_0 : i32, i32
  }
  func.func @transform_3(%arg0: i32) -> (i32, i32, i32) {
    %c0_i32 = arith.constant 0 : i32
    %c0_i32_0 = arith.constant 0 : i32
    %c0_i32_1 = arith.constant 0 : i32
    %c0_i32_2 = arith.constant 0 : i32
    return %c0_i32, %c0_i32_0, %c0_i32_1 : i32, i32, i32
  }
  func.func @transform_4(%arg0: i32) -> (i32, i32) {
    %c0_i32 = arith.constant 0 : i32
    %c0_i32_0 = arith.constant 0 : i32
    %c0_i32_1 = arith.constant 0 : i32
    return %c0_i32, %c0_i32_0 : i32, i32
  }
  func.func @transform_5(%arg0: i32) -> (i32, i32) {
    %c0_i32 = arith.constant 0 : i32
    %c0_i32_0 = arith.constant 0 : i32
    %c0_i32_1 = arith.constant 0 : i32
    return %c0_i32, %c0_i32_0 : i32, i32
  }
  func.func @transform_6(%arg0: i32) -> (i32, i32) {
    %c0_i32 = arith.constant 0 : i32
    %c0_i32_0 = arith.constant 0 : i32
    %c0_i32_1 = arith.constant 0 : i32
    return %c0_i32, %c0_i32_0 : i32, i32
  }
  func.func @transform_7(%arg0: i32) -> (i32, i32) {
    %c0_i32 = arith.constant 0 : i32
    %c0_i32_0 = arith.constant 0 : i32
    %c0_i32_1 = arith.constant 0 : i32
    return %c0_i32, %c0_i32_0 : i32, i32
  }
  func.func @transform_8(%arg0: i32) -> (i32, i32) {
    %c0_i32 = arith.constant 0 : i32
    %c0_i32_0 = arith.constant 0 : i32
    %c0_i32_1 = arith.constant 0 : i32
    return %c0_i32, %c0_i32_0 : i32, i32
  }
  func.func @transform_9(%arg0: i32) -> (i32, i32) {
    %c0_i32 = arith.constant 0 : i32
    %c0_i32_0 = arith.constant 0 : i32
    %c0_i32_1 = arith.constant 0 : i32
    return %c0_i32, %c0_i32_0 : i32, i32
  }
  func.func @transform_10(%arg0: i32) -> (i32, i32) {
    %c0_i32 = arith.constant 0 : i32
    %c0_i32_0 = arith.constant 0 : i32
    %c0_i32_1 = arith.constant 0 : i32
    return %c0_i32, %c0_i32_0 : i32, i32
  }
  func.func @transform_11(%arg0: i32) -> (i32, i32) {
    %c0_i32 = arith.constant 0 : i32
    %c0_i32_0 = arith.constant 0 : i32
    %c0_i32_1 = arith.constant 0 : i32
    return %c0_i32, %c0_i32_0 : i32, i32
  }
  func.func @transform_12(%arg0: i32) -> (i32, i32) {
    %c0_i32 = arith.constant 0 : i32
    %c0_i32_0 = arith.constant 0 : i32
    return %arg0, %c0_i32 : i32, i32
  }
}

</mosaic_0001>

<bundles_post_ra>
// kernel: net_forward.1
= control target key start
LH: loop header
LB: loop body
LE: loop exit
PB: predicated region body
PF: predicated region fallthrough
CT: control target
= control target key end

     0   :  { %s33839_s25 = smov 127   ;;  %s39406_s0 = inlined_call_operand.vmem [shape: f32[2,3,1024], index: 0, kind: input, shape index: {}]   ;;  %s39407_s1 = inlined_call_operand.vmem [shape: f32[25,6,3], index: 1, kind: input, shape index: {}]   ;;  %s39408_s2 = inlined_call_operand.vmem [shape: f32[6,1], index: 2, kind: input, shape index: {}]   ;;  %s39409_s3 = inlined_call_operand.vmem [shape: f32[25,16,6], index: 3, kind: input, shape index: {}]   ;;  %s39410_s4 = inlined_call_operand.vmem [shape: f32[16,1], index: 4, kind: input, shape index: {}]   ;;  %s39411_s5 = inlined_call_operand.vmem [shape: f32[529,25], index: 5, kind: input, shape index: {}]   ;;  %s39412_s6 = inlined_call_operand.vmem [shape: f32[400,120], index: 6, kind: input, shape index: {}]   ;;  %s39413_s7 = inlined_call_operand.vmem [shape: f32[1,120], index: 7, kind: input, shape index: {}]   ;;  %s39414_s8 = inlined_call_operand.vmem [shape: f32[120,84], index: 8, kind: input, shape index: {}]   ;;  %s39415_s9 = inlined_call_operand.vmem [shape: f32[1,84], index: 9, kind: input, shape index: {}]   ;;  %s39416_s10 = inlined_call_operand.vmem [shape: f32[84,10], index: 10, kind: input, shape index: {}]   ;;  %s39417_s11 = inlined_call_operand.vmem [shape: f32[1,10], index: 11, kind: input, shape index: {}]   ;;  %s39418_s12 = inlined_call_operand.hbm [shape: f32[2,10], index: 12, kind: output, shape index: {}]  }
   0x1   :  { %v33948_v0 = vld [vmem:[%s39406_s0] sm:$0x77]  ;;  %v33953_v1 = vld [vmem:[%s39406_s0 + $0x8] sm:$0x77]  ;;  %v33968_v4 = vld [vmem:[%s39406_s0 + $0x10] sm:$0x77] }
   0x2   :  { %132 = vrot.lane.b32.xlu1 %v33948_v0, %s33839_s25  ;;  %v33959_v2 = vcombine.high %v33948_v0, %v33948_v0  ;;  %v33963_v3 = vcombine.high %v33953_v1, %v33953_v1 }
   0x4   :  { %134 = vrot.lane.b32.xlu0 %v33959_v2, %s33839_s25 }
   0x5   :  { %17 = vsyncpa [#allocation4], 0  ;;  %v33976_v5 = vcombine.high %v33968_v4, %v33968_v4  ;;  %v39419_v6 = vmov 0.0   ;;  %v33982_v7 = vld [vmem:[%s39406_s0 + $0x20] sm:$0x77]  ;;  %s33841_s20 = smov 126  }
   0x6   :  { %138 = vrot.lane.b32.xlu1 %v33963_v3, %s33839_s25  ;;  %236 = vmatprep.mubr.f32.mxu1 %v39419_v6  ;;  %v33991_v8 = vcombine.high %v33982_v7, %v33982_v7  ;;  %v33998_v9 = vld [vmem:[%s39406_s0 + $0x18] sm:$0x77]  ;;  %v34007_v10 = vld [vmem:[%s39406_s0 + $0x28] sm:$0x77]  ;;  %v34014_v11 = vld [vmem:[%s39406_s0 + $0x30] sm:$0x77] }
   0x7   :  { %378 = vmatprep.mubr.f32.mxu0 %v39419_v6  ;;  %v34020_v12 = vcombine.high %v34007_v10, %v34007_v10  ;;  %v34027_v13 = vld [vmem:[%s39406_s0 + $0x38] sm:$0x77]  ;;  %v34033_v14 = vcombine.high %v34014_v11, %v34014_v11  ;;  %s33842_s21 = smov 125   ;;  %s33843_s22 = smov 124   ;;  %vm146_vm0 = vcmask 1039360   ;;  %vm157_vm1 = vcmask 1042432  }
   0x8   :  { %136 = vrot.lane.b32.xlu0 %v33953_v1, %s33839_s25  ;;  %s33844_s23 = smov 96   ;;  %v34139_v19 = vcombine.high %v33998_v9, %v33998_v9  ;;  %v34146_v21 = vld [vmem:[%s39407_s1 + $0x8] sm:$0x3f]  ;;  %vm153_vm2 = vcmask 23552   ;;  %vm33845_vm3 = vmmov 0   ;;  %v34220_v39 = vcombine.high %v34027_v13, %v34027_v13  ;;  %s33846_s27 = smov 95  }
   0x9   :  { %v50_v47 = vld [vmem:[%s39407_s1] sm:$0x3f]  ;;  %vm1390_vm4 = vcmask 1031168   ;;  %v52_v63 = vld [vmem:[%s39407_s1 + $0x10] sm:$0x3f]  ;;  %vm2042_vm5 = vcmask 1022976  }
   0xa   :  { %142 = vrot.lane.b32.xlu1 %v33976_v5, %s33839_s25  ;;  %s33847_s14 = smov 94   ;;  %vm2694_vm6 = vcmask 1014784   ;;  %s33848_s19 = smov 93   ;;  %vm3349_vm7 = vcmask 785408   ;;  %vm4008_vm8 = vcmask 777216   ;;  %vm4666_vm9 = vcmask 769024  }
   0xb   :  { %s33850_s15 = smov 64   ;;  %s33851_s26 = smov 63   ;;  %vm5324_vm10 = vcmask 760832   ;;  %vm5982_vm11 = vcmask 752640   ;;  %vm6640_vm12 = vcmask 523264   ;;  %vm7298_vm13 = vcmask 515072  }
   0xc   :  { %140 = vrot.lane.b32.xlu0 %v33968_v4, %s33839_s25  ;;  %s33852_s29 = smov 62   ;;  %s33853_s16 = smov 61   ;;  %vm7956_vm14 = vcmask 506880   ;;  %vm8614_vm15 = vcmask 498688  }
   0xd   :  { %s33856_s13 = smov 31   ;;  %s33857_s18 = smov 30  }
   0xe   :  { %464 = vrot.lane.b32.xlu1 %v33991_v8, %s33839_s25  ;;  %s33859_s28 = smov 28  }
  0x10   :  { %144 = vrot.lane.b32.xlu0 %v33998_v9, %s33839_s25 }
  0x12   :  { %462 = vrot.lane.b32.xlu1 %v33982_v7, %s33839_s25 }
  0x14   :  { %466 = vrot.lane.b32.xlu0 %v34007_v10, %s33839_s25 }
  0x16   :  { %470 = vrot.lane.b32.xlu1 %v34014_v11, %s33839_s25 }
  0x18   :  { %468 = vrot.lane.b32.xlu0 %v34020_v12, %s33839_s25 }
  0x1a   :  { %474 = vrot.lane.b32.xlu1 %v34027_v13, %s33839_s25 }
  0x1c   :  { %472 = vrot.lane.b32.xlu0 %v34033_v14, %s33839_s25 }
  0x1e   :  { %1380 = vrot.lane.b32.xlu1 %v33953_v1, %s33841_s20 }
  0x20   :  { %1378 = vrot.lane.b32.xlu0 %v33959_v2, %s33841_s20 }
  0x22   :  { %1382 = vrot.lane.b32.xlu1 %v33963_v3, %s33841_s20 }
  0x24   :  { %1376 = vrot.lane.b32.xlu0 %v33948_v0, %s33841_s20 }
  0x26   :  { %1386 = vrot.lane.b32.xlu1 %v33976_v5, %s33841_s20 }
  0x28   :  { %1384 = vrot.lane.b32.xlu0 %v33968_v4, %s33841_s20 }
  0x2a   :  { %1699 = vrot.lane.b32.xlu1 %v33991_v8, %s33841_s20 }
  0x2c   :  { %1388 = vrot.lane.b32.xlu0 %v33998_v9, %s33841_s20 }
  0x2e   :  { %1697 = vrot.lane.b32.xlu1 %v33982_v7, %s33841_s20 }
  0x30   :  { %1701 = vrot.lane.b32.xlu0 %v34007_v10, %s33841_s20 }
  0x32   :  { %1705 = vrot.lane.b32.xlu1 %v34014_v11, %s33841_s20 }
  0x34   :  { %1703 = vrot.lane.b32.xlu0 %v34020_v12, %s33841_s20 }
  0x36   :  { %1709 = vrot.lane.b32.xlu1 %v34027_v13, %s33841_s20 }
  0x38   :  { %1707 = vrot.lane.b32.xlu0 %v34033_v14, %s33841_s20 }
  0x3a   :  { %2032 = vrot.lane.b32.xlu1 %v33953_v1, %s33842_s21 }
  0x3c   :  { %2030 = vrot.lane.b32.xlu0 %v33959_v2, %s33842_s21 }
  0x3e   :  { %2034 = vrot.lane.b32.xlu1 %v33963_v3, %s33842_s21 }
  0x40   :  { %2028 = vrot.lane.b32.xlu0 %v33948_v0, %s33842_s21 }
  0x42   :  { %2038 = vrot.lane.b32.xlu1 %v33976_v5, %s33842_s21 }
  0x44   :  { %2036 = vrot.lane.b32.xlu0 %v33968_v4, %s33842_s21 }
  0x46   :  { %2351 = vrot.lane.b32.xlu1 %v33991_v8, %s33842_s21 }
  0x48   :  { %2040 = vrot.lane.b32.xlu0 %v33998_v9, %s33842_s21 }
  0x4a   :  { %2349 = vrot.lane.b32.xlu1 %v33982_v7, %s33842_s21 }
  0x4c   :  { %2353 = vrot.lane.b32.xlu0 %v34007_v10, %s33842_s21 }
  0x4e   :  { %2357 = vrot.lane.b32.xlu1 %v34014_v11, %s33842_s21 }
  0x50   :  { %2355 = vrot.lane.b32.xlu0 %v34020_v12, %s33842_s21 }
  0x52   :  { %2361 = vrot.lane.b32.xlu1 %v34027_v13, %s33842_s21 }
  0x54   :  { %2359 = vrot.lane.b32.xlu0 %v34033_v14, %s33842_s21 }
  0x56   :  { %2684 = vrot.lane.b32.xlu1 %v33953_v1, %s33843_s22 }
  0x58   :  { %2682 = vrot.lane.b32.xlu0 %v33959_v2, %s33843_s22 }
  0x5a   :  { %2686 = vrot.lane.b32.xlu1 %v33963_v3, %s33843_s22 }
  0x5c   :  { %2680 = vrot.lane.b32.xlu0 %v33948_v0, %s33843_s22 }
  0x5e   :  { %2690 = vrot.lane.b32.xlu1 %v33976_v5, %s33843_s22 }
  0x60   :  { %2688 = vrot.lane.b32.xlu0 %v33968_v4, %s33843_s22 }
  0x62   :  { %3003 = vrot.lane.b32.xlu1 %v33991_v8, %s33843_s22 }
  0x64   :  { %2692 = vrot.lane.b32.xlu0 %v33998_v9, %s33843_s22 }
  0x66   :  { %3001 = vrot.lane.b32.xlu1 %v33982_v7, %s33843_s22 }
  0x68   :  { %3005 = vrot.lane.b32.xlu0 %v34007_v10, %s33843_s22 }
  0x6a   :  { %3009 = vrot.lane.b32.xlu1 %v34014_v11, %s33843_s22 }
  0x6c   :  { %3007 = vrot.lane.b32.xlu0 %v34020_v12, %s33843_s22 }
  0x6e   :  { %3013 = vrot.lane.b32.xlu1 %v34027_v13, %s33843_s22 }
  0x70   :  { %3011 = vrot.lane.b32.xlu0 %v34033_v14, %s33843_s22 }
  0x72   :  { %3337 = vrot.lane.b32.xlu1 %v33953_v1, %s33844_s23 }
  0x74   :  { %v34125_v15 = vpop.permute.xlu1 %132  ;;  %3335 = vrot.lane.b32.xlu0 %v33959_v2, %s33844_s23 }
  0x76   :  { %v135_v16 = vpop.permute.xlu0 %134  ;;  %3339 = vrot.lane.b32.xlu1 %v33963_v3, %s33844_s23 }
  0x77   :  { %v147_v23 = vsel %vm146_vm0, %v34125_v15, %v135_v16 }
  0x78   :  { %v139_v17 = vpop.permute.xlu1 %138  ;;  %3333 = vrot.lane.b32.xlu0 %v33948_v0, %s33844_s23 }
  0x7a   :  { %v34133_v18 = vpop.permute.xlu0 %136  ;;  %3343 = vrot.lane.b32.xlu1 %v33976_v5, %s33844_s23 }
  0x7b   :  { %v148_v20 = vsel %vm146_vm0, %v135_v16, %v34133_v18  ;;  %v149_v27 = vsel %vm146_vm0, %v34133_v18, %v139_v17 }
  0x7c   :  { %v143_v22 = vpop.permute.xlu1 %142  ;;  %3341 = vrot.lane.b32.xlu0 %v33968_v4, %s33844_s23  ;;  %30648 = vmatprep.subr.msk.mxu1 %vm157_vm1, %v148_v20 }
  0x7d   :  { %30649 = vmatpush1.msk.msra.mxu1 %vm157_vm1, %v147_v23 }
  0x7e   :  { %v34154_v24 = vpop.permute.xlu0 %140  ;;  %30650 = vmatmul.mubr.msk.f32.vlgmr.msra.gmra.mrb[0].mxu1 %vm153_vm2, %v34146_v21  ;;  %3347 = vrot.lane.b32.xlu1 %v34139_v19, %s33844_s23 }
  0x7f   :  { %v150_v25 = vsel %vm146_vm0, %v139_v17, %v34154_v24  ;;  %307 = vmatprep.mubr.f32.mxu1 %v39419_v6  ;;  %v151_v31 = vsel %vm146_vm0, %v34154_v24, %v143_v22 }
  0x80   :  { %v465_v26 = vpop.permute.xlu1 %464  ;;  %3345 = vrot.lane.b32.xlu0 %v33998_v9, %s33844_s23  ;;  %30651 = vmatprep.subr.msk.mxu1 %vm157_vm1, %v150_v25 }
  0x81   :  { %30652 = vmatpush1.msk.msra.mxu1 %vm157_vm1, %v149_v27 }
  0x82   :  { %32168 = vmatprep.subr.mxu1 %v39419_v6  ;;  %v34170_v28 = vpop.permute.xlu0 %144  ;;  %30653 = vmatmul.mubr.msk.f32.vlgmr.msra.gmra.mrb[2].mxu1 %vm153_vm2, %v34146_v21 }
  0x83   :  { %32169 = vmatpush3.msk.msra.mxu1 %vm157_vm1, %v34170_v28  ;;  %3662 = vrot.lane.b32.xlu1 %v34007_v10, %s33844_s23  ;;  %v152_v29 = vsel %vm146_vm0, %v143_v22, %v34170_v28 }
  0x84   :  { %v34180_v30 = vpop.permute.xlu1 %462  ;;  %3660 = vrot.lane.b32.xlu0 %v33991_v8, %s33844_s23  ;;  %30654 = vmatprep.subr.msk.mxu0 %vm157_vm1, %v152_v29 }
  0x85   :  { %30655 = vmatpush1.msk.msra.mxu0 %vm157_vm1, %v151_v31  ;;  %32170 = vmatprep.mubr.msk.f32.mxu1 %vm33845_vm3, %v39419_v6  ;;  %v476_v32 = vsel %vm146_vm0, %v34180_v30, %v465_v26 }
  0x86   :  { %v34192_v33 = vpop.permute.xlu0 %466  ;;  %30656 = vmatmul.mubr.msk.f32.vlgmr.msra.gmra.mrb[0].mxu0 %vm153_vm2, %v34146_v21  ;;  %32171 = vmatmul.mubr.msk.f32.vlgmr.msra.gmra.mrb[4].mxu1 %vm153_vm2, %v34146_v21 }
  0x87   :  { %3664 = vrot.lane.b32.xlu1 %v34020_v12, %s33844_s23  ;;  %v477_v34 = vsel %vm146_vm0, %v465_v26, %v34192_v33  ;;  %560 = vmatprep.mubr.f32.mxu0 %v39419_v6 }
  0x88   :  { %v34203_v35 = vpop.permute.xlu1 %470  ;;  %3658 = vrot.lane.b32.xlu0 %v33982_v7, %s33844_s23  ;;  %30659 = vmatprep.subr.msk.mxu0 %vm157_vm1, %v477_v34 }
  0x89   :  { %30660 = vmatpush1.msk.msra.mxu0 %vm157_vm1, %v476_v32  ;;  %631 = vmatprep.mubr.f32.mxu1 %v39419_v6 }
  0x8a   :  { %v469_v36 = vpop.permute.xlu0 %468  ;;  %30661 = vmatmul.mubr.msk.f32.vlgmr.msra.gmra.mrb[2].mxu0 %vm153_vm2, %v34146_v21 }
  0x8b   :  { %v478_v37 = vsel %vm146_vm0, %v34192_v33, %v469_v36  ;;  %3668 = vrot.lane.b32.xlu1 %v34033_v14, %s33844_s23  ;;  %v479_v38 = vsel %vm146_vm0, %v469_v36, %v34203_v35  ;;  %702 = vmatprep.mubr.f32.mxu0 %v39419_v6 }
  0x8c   :  { %v34223_v40 = vpop.permute.xlu1 %474  ;;  %3666 = vrot.lane.b32.xlu0 %v34014_v11, %s33844_s23  ;;  %30662 = vmatprep.subr.msk.mxu1 %vm157_vm1, %v479_v38 }
  0x8d   :  { %30663 = vmatpush1.msk.msra.mxu1 %vm157_vm1, %v478_v37 }
  0x8e   :  { %30664 = vmatmul.mubr.msk.f32.vlgmr.msra.gmra.mrb[6].mxu1 %vm153_vm2, %v34146_v21  ;;  %v473_v41 = vpop.permute.xlu0 %472  ;;  %32173 = vmatprep.subr.mxu1 %v39419_v6 }
  0x8f   :  { %v480_v42 = vsel %vm146_vm0, %v34203_v35, %v473_v41  ;;  %3672 = vrot.lane.b32.xlu1 %v34220_v39, %s33844_s23  ;;  %v481_v43 = vsel %vm146_vm0, %v473_v41, %v34223_v40  ;;  %32174 = vmatpush3.msk.msra.mxu1 %vm157_vm1, %v34223_v40 }
  0x90   :  { %v34240_v44 = vpop.permute.xlu1 %1380  ;;  %3670 = vrot.lane.b32.xlu0 %v34027_v13, %s33844_s23  ;;  %30665 = vmatprep.subr.msk.mxu0 %vm157_vm1, %v481_v43 }
  0x91   :  { %30666 = vmatpush1.msk.msra.mxu0 %vm157_vm1, %v480_v42  ;;  %32175 = vmatprep.mubr.msk.f32.mxu1 %vm33845_vm3, %v39419_v6 }
  0x92   :  { %30667 = vmatmul.mubr.msk.f32.vlgmr.msra.gmra.mrb[4].mxu0 %vm153_vm2, %v34146_v21  ;;  %32176 = vmatmul.mubr.msk.f32.vlgmr.msra.gmra.mrb[8].mxu1 %vm153_vm2, %v34146_v21  ;;  %v1379_v45 = vpop.permute.xlu0 %1378 }
  0x93   :  { %3996 = vrot.lane.b32.xlu1 %v33953_v1, %s33846_s27  ;;  %30670 = vmatprep.subr.msk.mxu0 %vm157_vm1, %v33959_v2  ;;  %v1392_v55 = vsel %vm1390_vm4, %v1379_v45, %v34240_v44 }
  0x94   :  { %v1383_v46 = vpop.permute.xlu1 %1382  ;;  %3994 = vrot.lane.b32.xlu0 %v33959_v2, %s33846_s27  ;;  %30673 = vmatprep.subr.msk.mxu1 %vm157_vm1, %v33963_v3 }
  0x95   :  { %30671 = vmatpush1.msk.msra.mxu0 %vm157_vm1, %v33948_v0  ;;  %860 = vmatprep.mubr.f32.mxu0 %v39419_v6  ;;  %v1393_v59 = vsel %vm1390_vm4, %v34240_v44, %v1383_v46 }
  0x96   :  { %30674 = vmatpush1.msk.msra.mxu1 %vm157_vm1, %v33953_v1  ;;  %931 = vmatprep.mubr.f32.mxu1 %v39419_v6  ;;  %v34269_v48 = vpop.permute.xlu0 %1376 }
  0x97   :  { %30672 = vmatmul.mubr.msk.f32.vlgmr.msra.gmra.mrb[6].mxu0 %vm153_vm2, %v50_v47  ;;  %30675 = vmatmul.mubr.msk.f32.vlgmr.msra.gmra.mrb[2].mxu1 %vm153_vm2, %v50_v47  ;;  %v1391_v60 = vsel %vm1390_vm4, %v34269_v48, %v1379_v45 }
  0x98   :  { %3998 = vrot.lane.b32.xlu1 %v33963_v3, %s33846_s27  ;;  %v1387_v49 = vpop.permute.xlu1 %1386  ;;  %3992 = vrot.lane.b32.xlu0 %v33948_v0, %s33846_s27 }
  0x99   :  { %30676 = vmatprep.subr.msk.mxu0 %vm157_vm1, %v33976_v5  ;;  %32178 = vmatprep.subr.mxu1 %v39419_v6 }
  0x9a   :  { %30677 = vmatpush1.msk.msra.mxu0 %vm157_vm1, %v33968_v4  ;;  %1002 = vmatprep.mubr.f32.mxu0 %v39419_v6  ;;  %v34283_v50 = vpop.permute.xlu0 %1384 }
  0x9b   :  { %32179 = vmatpush3.msk.msra.mxu1 %vm157_vm1, %v33998_v9  ;;  %32180 = vmatprep.mubr.msk.f32.mxu1 %vm33845_vm3, %v39419_v6  ;;  %v1394_v56 = vsel %vm1390_vm4, %v1383_v46, %v34283_v50  ;;  %v1395_v17 = vsel %vm1390_vm4, %v34283_v50, %v1387_v49 }
  0x9c   :  { %30678 = vmatmul.mubr.msk.f32.vlgmr.msra.gmra.mrb[0].mxu0 %vm153_vm2, %v50_v47  ;;  %32181 = vmatmul.mubr.msk.f32.vlgmr.msra.gmra.mrb[10].mxu1 %vm153_vm2, %v50_v47  ;;  %v1700_v51 = vpop.permute.xlu1 %1699 }
  0x9d   :  { %30681 = vmatprep.subr.msk.mxu0 %vm157_vm1, %v33991_v8  ;;  %30684 = vmatprep.subr.msk.mxu1 %vm157_vm1, %v34020_v12 }
  0x9e   :  { %4002 = vrot.lane.b32.xlu1 %v33976_v5, %s33846_s27  ;;  %4000 = vrot.lane.b32.xlu0 %v33968_v4, %s33846_s27  ;;  %v34299_v52 = vpop.permute.xlu0 %1388 }
  0x9f   :  { %30682 = vmatpush1.msk.msra.mxu0 %vm157_vm1, %v33982_v7  ;;  %30685 = vmatpush1.msk.msra.mxu1 %vm157_vm1, %v34007_v10  ;;  %v1396_v61 = vsel %vm1390_vm4, %v1387_v49, %v34299_v52 }
  0xa0   :  { %1157 = vmatprep.mubr.f32.mxu0 %v39419_v6  ;;  %1228 = vmatprep.mubr.f32.mxu1 %v39419_v6  ;;  %v34307_v53 = vpop.permute.xlu1 %1697 }
  0xa1   :  { %30687 = vmatprep.subr.msk.mxu0 %vm157_vm1, %v34033_v14  ;;  %32183 = vmatprep.subr.mxu1 %v39419_v6  ;;  %v1711_v26 = vsel %vm1390_vm4, %v34307_v53, %v1700_v51 }
  0xa2   :  { %30683 = vmatmul.mubr.msk.f32.vlgmr.msra.gmra.mrb[2].mxu0 %vm153_vm2, %v50_v47  ;;  %30686 = vmatmul.mubr.msk.f32.vlgmr.msra.gmra.mrb[6].mxu1 %vm153_vm2, %v50_v47  ;;  %v34314_v54 = vpop.permute.xlu0 %1701 }
  0xa3   :  { %30688 = vmatpush1.msk.msra.mxu0 %vm157_vm1, %v34014_v11  ;;  %32184 = vmatpush3.msk.msra.mxu1 %vm157_vm1, %v34027_v13  ;;  %v1712_v22 = vsel %vm1390_vm4, %v1700_v51, %v34314_v54 }
  0xa4   :  { %30692 = vmatprep.subr.msk.mxu0 %vm157_vm1, %v1392_v55  ;;  %30695 = vmatprep.subr.msk.mxu1 %vm157_vm1, %v1394_v56  ;;  %v34326_v57 = vpop.permute.xlu1 %1705 }
  0xa5   :  { %4006 = vrot.lane.b32.xlu1 %v34139_v19, %s33846_s27  ;;  %4004 = vrot.lane.b32.xlu0 %v33998_v9, %s33846_s27 }
  0xa6   :  { %1299 = vmatprep.mubr.f32.mxu0 %v39419_v6  ;;  %32185 = vmatprep.mubr.msk.f32.mxu1 %vm33845_vm3, %v39419_v6  ;;  %v1704_v58 = vpop.permute.xlu0 %1703 }
  0xa7   :  { %30689 = vmatmul.mubr.msk.f32.vlgmr.msra.gmra.mrb[4].mxu0 %vm153_vm2, %v50_v47  ;;  %32186 = vmatmul.mubr.msk.f32.vlgmr.msra.gmra.mrb[12].mxu1 %vm153_vm2, %v50_v47  ;;  %v1714_v20 = vsel %vm1390_vm4, %v1704_v58, %v34326_v57  ;;  %v1713_v27 = vsel %vm1390_vm4, %v34314_v54, %v1704_v58  ;;  %v34441_v47 = vld [vmem:[%s39407_s1 + $0x18] sm:$0x3f] }
  0xa8   :  { %30693 = vmatpush1.msk.msra.mxu0 %vm157_vm1, %v1391_v60  ;;  %30696 = vmatpush1.msk.msra.mxu1 %vm157_vm1, %v1393_v59  ;;  %v34345_v62 = vpop.permute.xlu1 %1709 }
  0xa9   :  { %30698 = vmatprep.subr.msk.mxu0 %vm157_vm1, %v1396_v61  ;;  %4320 = vrot.lane.b32.xlu1 %v34007_v10, %s33846_s27 }
  0xaa   :  { %4318 = vrot.lane.b32.xlu0 %v33991_v8, %s33846_s27  ;;  %1478 = vmatprep.mubr.f32.mxu0 %v39419_v6  ;;  %v1708_v16 = vpop.permute.xlu0 %1707 }
  0xab   :  { %1549 = vmatprep.mubr.f32.mxu1 %v39419_v6  ;;  %32188 = vmatprep.subr.mxu1 %v39419_v6  ;;  %v1716_v29 = vsel %vm1390_vm4, %v1708_v16, %v34345_v62  ;;  %v1715_v34 = vsel %vm1390_vm4, %v34326_v57, %v1708_v16 }
  0xac   :  { %30694 = vmatmul.mubr.msk.f32.vlgmr.msra.gmra.mrb[6].mxu0 %vm153_vm2, %v52_v63  ;;  %30697 = vmatmul.mubr.msk.f32.vlgmr.msra.gmra.mrb[2].mxu1 %vm153_vm2, %v52_v63  ;;  %v34364_v21 = vpop.permute.xlu1 %2032 }
  0xad   :  { %30699 = vmatpush1.msk.msra.mxu0 %vm157_vm1, %v1395_v17  ;;  %32189 = vmatpush3.msk.msra.mxu1 %vm157_vm1, %v34299_v52 }
  0xae   :  { %30703 = vmatprep.subr.msk.mxu0 %vm157_vm1, %v1712_v22  ;;  %4322 = vrot.lane.b32.xlu1 %v34020_v12, %s33846_s27  ;;  %v2031_v23 = vpop.permute.xlu0 %2030 }
  0xaf   :  { %4316 = vrot.lane.b32.xlu0 %v33982_v7, %s33846_s27  ;;  %30706 = vmatprep.subr.msk.mxu1 %vm157_vm1, %v1714_v20  ;;  %v2044_v36 = vsel %vm2042_vm5, %v2031_v23, %v34364_v21 }
  0xb0   :  { %1620 = vmatprep.mubr.f32.mxu0 %v39419_v6  ;;  %32190 = vmatprep.mubr.msk.f32.mxu1 %vm33845_vm3, %v39419_v6  ;;  %v2035_v25 = vpop.permute.xlu1 %2034 }
  0xb1   :  { %30700 = vmatmul.mubr.msk.f32.vlgmr.msra.gmra.mrb[0].mxu0 %vm153_vm2, %v52_v63  ;;  %32191 = vmatmul.mubr.msk.f32.vlgmr.msra.gmra.mrb[14].mxu1 %vm153_vm2, %v52_v63  ;;  %v2045_v46 = vsel %vm2042_vm5, %v34364_v21, %v2035_v25 }
  0xb2   :  { %30704 = vmatpush1.msk.msra.mxu0 %vm157_vm1, %v1711_v26  ;;  %30707 = vmatpush1.msk.msra.mxu1 %vm157_vm1, %v1713_v27  ;;  %v34390_v31 = vpop.permute.xlu0 %2028 }
  0xb3   :  { %4326 = vrot.lane.b32.xlu1 %v34033_v14, %s33846_s27  ;;  %4324 = vrot.lane.b32.xlu0 %v34014_v11, %s33846_s27  ;;  %v2043_v38 = vsel %vm2042_vm5, %v34390_v31, %v2031_v23 }
  0xb4   :  { %30709 = vmatprep.subr.msk.mxu0 %vm157_vm1, %v1716_v29  ;;  %1795 = vmatprep.mubr.f32.mxu0 %v39419_v6  ;;  %v2039_v32 = vpop.permute.xlu1 %2038 }
  0xb5   :  { %30705 = vmatmul.mubr.msk.f32.vlgmr.msra.gmra.mrb[2].mxu0 %vm153_vm2, %v52_v63  ;;  %1866 = vmatprep.mubr.f32.mxu1 %v39419_v6 }
  0xb6   :  { %30710 = vmatpush1.msk.msra.mxu0 %vm157_vm1, %v1715_v34  ;;  %32193 = vmatprep.subr.mxu1 %v39419_v6  ;;  %v34406_v37 = vpop.permute.xlu0 %2036 }
  0xb7   :  { %30708 = vmatmul.mubr.msk.f32.vlgmr.msra.gmra.mrb[6].mxu1 %vm153_vm2, %v52_v63  ;;  %4330 = vrot.lane.b32.xlu1 %v34220_v39, %s33846_s27  ;;  %v2046_v42 = vsel %vm2042_vm5, %v2035_v25, %v34406_v37  ;;  %v2047_v56 = vsel %vm2042_vm5, %v34406_v37, %v2039_v32 }
  0xb8   :  { %32194 = vmatpush3.msk.msra.mxu1 %vm157_vm1, %v34345_v62  ;;  %4328 = vrot.lane.b32.xlu0 %v34027_v13, %s33846_s27  ;;  %v2352_v41 = vpop.permute.xlu1 %2351  ;;  %s33849_s27 = smov 92  }
  0xb9   :  { %30714 = vmatprep.subr.msk.mxu0 %vm157_vm1, %v2044_v36  ;;  %1937 = vmatprep.mubr.f32.mxu0 %v39419_v6 }
  0xba   :  { %30711 = vmatmul.mubr.msk.f32.vlgmr.msra.gmra.mrb[4].mxu0 %vm153_vm2, %v52_v63  ;;  %32195 = vmatprep.mubr.msk.f32.mxu1 %vm33845_vm3, %v39419_v6  ;;  %v34424_v43 = vpop.permute.xlu0 %2040 }
  0xbb   :  { %4654 = vrot.lane.b32.xlu1 %v33953_v1, %s33847_s14  ;;  %30715 = vmatpush1.msk.msra.mxu0 %vm157_vm1, %v2043_v38  ;;  %v2048_v49 = vsel %vm2042_vm5, %v2039_v32, %v34424_v43 }
  0xbc   :  { %4652 = vrot.lane.b32.xlu0 %v33959_v2, %s33847_s14  ;;  %32196 = vmatmul.mubr.msk.f32.vlgmr.msra.gmra.mrb[16].mxu1 %vm153_vm2, %v52_v63  ;;  %v34432_v45 = vpop.permute.xlu1 %2349 }
  0xbd   :  { %30717 = vmatprep.subr.msk.mxu1 %vm157_vm1, %v2046_v42  ;;  %2201 = vmatprep.mubr.f32.mxu1 %v39419_v6  ;;  %v2363_v61 = vsel %vm2042_vm5, %v34432_v45, %v2352_v41 }
  0xbe   :  { %30718 = vmatpush1.msk.msra.mxu1 %vm157_vm1, %v2045_v46  ;;  %2130 = vmatprep.mubr.f32.mxu0 %v39419_v6  ;;  %v34447_v51 = vpop.permute.xlu0 %2353 }
  0xbf   :  { %4656 = vrot.lane.b32.xlu1 %v33963_v3, %s33847_s14  ;;  %32198 = vmatprep.subr.mxu1 %v39419_v6  ;;  %v2364_v58 = vsel %vm2042_vm5, %v2352_v41, %v34447_v51  ;;  %v54_v41 = vld [vmem:[%s39407_s1 + $0x20] sm:$0x3f] }
  0xc0   :  { %4650 = vrot.lane.b32.xlu0 %v33948_v0, %s33847_s14  ;;  %30719 = vmatmul.mubr.msk.f32.vlgmr.msra.gmra.mrb[2].mxu1 %vm153_vm2, %v34441_v47  ;;  %v34456_v55 = vpop.permute.xlu1 %2357 }
  0xc1   :  { %32199 = vmatpush3.msk.msra.mxu1 %vm157_vm1, %v34424_v43  ;;  %30720 = vmatprep.subr.msk.mxu0 %vm157_vm1, %v2048_v49 }
  0xc2   :  { %30716 = vmatmul.mubr.msk.f32.vlgmr.msra.gmra.mrb[6].mxu0 %vm153_vm2, %v34441_v47  ;;  %v2356_v59 = vpop.permute.xlu0 %2355  ;;  %32200 = vmatprep.mubr.msk.f32.mxu1 %vm33845_vm3, %v39419_v6 }
  0xc3   :  { %4660 = vrot.lane.b32.xlu1 %v33976_v5, %s33847_s14  ;;  %30721 = vmatpush1.msk.msra.mxu0 %vm157_vm1, %v2047_v56  ;;  %v2366_v60 = vsel %vm2042_vm5, %v2356_v59, %v34456_v55  ;;  %v2365_v16 = vsel %vm2042_vm5, %v34447_v51, %v2356_v59 }
  0xc4   :  { %4658 = vrot.lane.b32.xlu0 %v33968_v4, %s33847_s14  ;;  %2272 = vmatprep.mubr.f32.mxu0 %v39419_v6  ;;  %v34479_v63 = vpop.permute.xlu1 %2361 }
  0xc5   :  { %30725 = vmatprep.subr.msk.mxu0 %vm157_vm1, %v2364_v58  ;;  %30728 = vmatprep.subr.msk.mxu1 %vm157_vm1, %v2366_v60 }
  0xc6   :  { %30722 = vmatmul.mubr.msk.f32.vlgmr.msra.gmra.mrb[0].mxu0 %vm153_vm2, %v34441_v47  ;;  %32201 = vmatmul.mubr.msk.f32.vlgmr.msra.gmra.mrb[18].mxu1 %vm153_vm2, %v34441_v47  ;;  %v2360_v17 = vpop.permute.xlu0 %2359 }
  0xc7   :  { %4664 = vrot.lane.b32.xlu1 %v34139_v19, %s33847_s14  ;;  %30726 = vmatpush1.msk.msra.mxu0 %vm157_vm1, %v2363_v61  ;;  %v2368_v20 = vsel %vm2042_vm5, %v2360_v17, %v34479_v63  ;;  %v2367_v22 = vsel %vm2042_vm5, %v34456_v55, %v2360_v17 }
  0xc8   :  { %4662 = vrot.lane.b32.xlu0 %v33998_v9, %s33847_s14  ;;  %30729 = vmatpush1.msk.msra.mxu1 %vm157_vm1, %v2365_v16  ;;  %v34499_v23 = vpop.permute.xlu1 %2684 }
  0xc9   :  { %2447 = vmatprep.mubr.f32.mxu0 %v39419_v6  ;;  %30731 = vmatprep.subr.msk.mxu0 %vm157_vm1, %v2368_v20 }
  0xca   :  { %30727 = vmatmul.mubr.msk.f32.vlgmr.msra.gmra.mrb[2].mxu0 %vm153_vm2, %v34441_v47  ;;  %2518 = vmatprep.mubr.f32.mxu1 %v39419_v6  ;;  %v2683_v25 = vpop.permute.xlu0 %2682 }
  0xcb   :  { %4978 = vrot.lane.b32.xlu1 %v34007_v10, %s33847_s14  ;;  %30732 = vmatpush1.msk.msra.mxu0 %vm157_vm1, %v2367_v22  ;;  %v2696_v26 = vsel %vm2694_vm6, %v2683_v25, %v34499_v23 }
  0xcc   :  { %4976 = vrot.lane.b32.xlu0 %v33991_v8, %s33847_s14  ;;  %32203 = vmatprep.subr.mxu1 %v39419_v6  ;;  %v2687_v27 = vpop.permute.xlu1 %2686 }
  0xcd   :  { %30730 = vmatmul.mubr.msk.f32.vlgmr.msra.gmra.mrb[6].mxu1 %vm153_vm2, %v34441_v47  ;;  %30736 = vmatprep.subr.msk.mxu0 %vm157_vm1, %v2696_v26  ;;  %v2697_v42 = vsel %vm2694_vm6, %v34499_v23, %v2687_v27 }
  0xce   :  { %32204 = vmatpush3.msk.msra.mxu1 %vm157_vm1, %v34479_v63  ;;  %v34519_v29 = vpop.permute.xlu0 %2680  ;;  %2589 = vmatprep.mubr.f32.mxu0 %v39419_v6 }
  0xcf   :  { %4980 = vrot.lane.b32.xlu1 %v34020_v12, %s33847_s14  ;;  %v2695_v32 = vsel %vm2694_vm6, %v34519_v29, %v2683_v25  ;;  %30733 = vmatmul.mubr.msk.f32.vlgmr.msra.gmra.mrb[4].mxu0 %vm153_vm2, %v34441_v47 }
  0xd0   :  { %4974 = vrot.lane.b32.xlu0 %v33982_v7, %s33847_s14  ;;  %v2691_v34 = vpop.permute.xlu1 %2690  ;;  %30737 = vmatpush1.msk.msra.mxu0 %vm157_vm1, %v2695_v32 }
  0xd1   :  { %32205 = vmatprep.mubr.msk.f32.mxu1 %vm33845_vm3, %v39419_v6  ;;  %2782 = vmatprep.mubr.f32.mxu0 %v39419_v6 }
  0xd2   :  { %v34534_v36 = vpop.permute.xlu0 %2688  ;;  %32206 = vmatmul.mubr.msk.f32.vlgmr.msra.gmra.mrb[20].mxu1 %vm153_vm2, %v34441_v47 }
  0xd3   :  { %4984 = vrot.lane.b32.xlu1 %v34033_v14, %s33847_s14  ;;  %v2698_v38 = vsel %vm2694_vm6, %v2687_v27, %v34534_v36  ;;  %2853 = vmatprep.mubr.f32.mxu1 %v39419_v6  ;;  %v2699_v58 = vsel %vm2694_vm6, %v34534_v36, %v2691_v34 }
  0xd4   :  { %4982 = vrot.lane.b32.xlu0 %v34014_v11, %s33847_s14  ;;  %v3004_v46 = vpop.permute.xlu1 %3003  ;;  %30739 = vmatprep.subr.msk.mxu1 %vm157_vm1, %v2698_v38 }
  0xd5   :  { %30740 = vmatpush1.msk.msra.mxu1 %vm157_vm1, %v2697_v42  ;;  %30738 = vmatmul.mubr.msk.f32.vlgmr.msra.gmra.mrb[6].mxu0 %vm153_vm2, %v54_v41 }
  0xd6   :  { %32208 = vmatprep.subr.mxu1 %v39419_v6  ;;  %v34554_v47 = vpop.permute.xlu0 %2692  ;;  %30741 = vmatmul.mubr.msk.f32.vlgmr.msra.gmra.mrb[2].mxu1 %vm153_vm2, %v54_v41 }
  0xd7   :  { %4988 = vrot.lane.b32.xlu1 %v34220_v39, %s33847_s14  ;;  %32209 = vmatpush3.msk.msra.mxu1 %vm157_vm1, %v34554_v47  ;;  %v2700_v49 = vsel %vm2694_vm6, %v2691_v34, %v34554_v47 }
  0xd8   :  { %4986 = vrot.lane.b32.xlu0 %v34027_v13, %s33847_s14  ;;  %v34565_v56 = vpop.permute.xlu1 %3001  ;;  %30742 = vmatprep.subr.msk.mxu0 %vm157_vm1, %v2700_v49 }
  0xd9   :  { %30743 = vmatpush1.msk.msra.mxu0 %vm157_vm1, %v2699_v58  ;;  %2924 = vmatprep.mubr.f32.mxu0 %v39419_v6  ;;  %v3015_v59 = vsel %vm2694_vm6, %v34565_v56, %v3004_v46 }
  0xda   :  { %v34574_v60 = vpop.permute.xlu0 %3005  ;;  %30744 = vmatmul.mubr.msk.f32.vlgmr.msra.gmra.mrb[0].mxu0 %vm153_vm2, %v54_v41  ;;  %32210 = vmatprep.mubr.msk.f32.mxu1 %vm33845_vm3, %v39419_v6 }
  0xdb   :  { %5312 = vrot.lane.b32.xlu1 %v33953_v1, %s33848_s19  ;;  %v3016_v61 = vsel %vm2694_vm6, %v3004_v46, %v34574_v60  ;;  %32211 = vmatmul.mubr.msk.f32.vlgmr.msra.gmra.mrb[22].mxu1 %vm153_vm2, %v54_v41 }
  0xdc   :  { %5310 = vrot.lane.b32.xlu0 %v33959_v2, %s33848_s19  ;;  %v34586_v16 = vpop.permute.xlu1 %3009  ;;  %30747 = vmatprep.subr.msk.mxu0 %vm157_vm1, %v3016_v61 }
  0xdd   :  { %30748 = vmatpush1.msk.msra.mxu0 %vm157_vm1, %v3015_v59  ;;  %3099 = vmatprep.mubr.f32.mxu0 %v39419_v6 }
  0xde   :  { %v3008_v17 = vpop.permute.xlu0 %3007  ;;  %30749 = vmatmul.mubr.msk.f32.vlgmr.msra.gmra.mrb[2].mxu0 %vm153_vm2, %v54_v41  ;;  %3170 = vmatprep.mubr.f32.mxu1 %v39419_v6 }
  0xdf   :  { %5314 = vrot.lane.b32.xlu1 %v33963_v3, %s33848_s19  ;;  %v3017_v20 = vsel %vm2694_vm6, %v34574_v60, %v3008_v17  ;;  %v3018_v22 = vsel %vm2694_vm6, %v3008_v17, %v34586_v16  ;;  %3241 = vmatprep.mubr.f32.mxu0 %v39419_v6 }
  0xe0   :  { %5308 = vrot.lane.b32.xlu0 %v33948_v0, %s33848_s19  ;;  %30750 = vmatprep.subr.msk.mxu1 %vm157_vm1, %v3018_v22  ;;  %v34603_v25 = vpop.permute.xlu1 %3013 }
  0xe1   :  { %30751 = vmatpush1.msk.msra.mxu1 %vm157_vm1, %v3017_v20 }
  0xe2   :  { %v3012_v26 = vpop.permute.xlu0 %3011  ;;  %32213 = vmatprep.subr.mxu1 %v39419_v6  ;;  %30752 = vmatmul.mubr.msk.f32.vlgmr.msra.gmra.mrb[6].mxu1 %vm153_vm2, %v54_v41 }
  0xe3   :  { %5318 = vrot.lane.b32.xlu1 %v33976_v5, %s33848_s19  ;;  %v3019_v27 = vsel %vm2694_vm6, %v34586_v16, %v3012_v26  ;;  %v3020_v32 = vsel %vm2694_vm6, %v3012_v26, %v34603_v25  ;;  %32214 = vmatpush3.msk.msra.mxu1 %vm157_vm1, %v34603_v25 }
  0xe4   :  { %5316 = vrot.lane.b32.xlu0 %v33968_v4, %s33848_s19  ;;  %30753 = vmatprep.subr.msk.mxu0 %vm157_vm1, %v3020_v32  ;;  %v3338_v34 = vpop.permute.xlu1 %3337 }
  0xe5   :  { %30754 = vmatpush1.msk.msra.mxu0 %vm157_vm1, %v3019_v27  ;;  %32215 = vmatprep.mubr.msk.f32.mxu1 %vm33845_vm3, %v39419_v6 }
  0xe6   :  { %v3336_v38 = vpop.permute.xlu0 %3335  ;;  %30755 = vmatmul.mubr.msk.f32.vlgmr.msra.gmra.mrb[4].mxu0 %vm153_vm2, %v54_v41  ;;  %32216 = vmatmul.mubr.msk.f32.vlgmr.msra.gmra.mrb[24].mxu1 %vm153_vm2, %v54_v41  ;;  %v34635_v41 = vld [vmem:[%s39407_s1 + $0x28] sm:$0x3f] }
  0xe7   :  { %5322 = vrot.lane.b32.xlu1 %v34139_v19, %s33848_s19  ;;  %v3351_v42 = vsel %vm3349_vm7, %v3336_v38, %v3338_v34  ;;  %3509 = vmatprep.mubr.f32.mxu1 %v39419_v6 }
  0xe8   :  { %5320 = vrot.lane.b32.xlu0 %v33998_v9, %s33848_s19  ;;  %30758 = vmatprep.subr.msk.mxu0 %vm157_vm1, %v3351_v42  ;;  %v3340_v46 = vpop.permute.xlu1 %3339 }
  0xe9   :  { %3438 = vmatprep.mubr.f32.mxu0 %v39419_v6  ;;  %v3352_v20 = vsel %vm3349_vm7, %v3338_v34, %v3340_v46 }
  0xea   :  { %v3334_v49 = vpop.permute.xlu0 %3333 }
  0xeb   :  { %5636 = vrot.lane.b32.xlu1 %v34007_v10, %s33848_s19  ;;  %v3350_v58 = vsel %vm3349_vm7, %v3334_v49, %v3336_v38 }
  0xec   :  { %5634 = vrot.lane.b32.xlu0 %v33991_v8, %s33848_s19  ;;  %30759 = vmatpush1.msk.msra.mxu0 %vm157_vm1, %v3350_v58  ;;  %v3344_v59 = vpop.permute.xlu1 %3343 }
  0xed   :  { %30760 = vmatmul.mubr.msk.f32.vlgmr.msra.gmra.mrb[6].mxu0 %vm153_vm2, %v34635_v41 }
  0xee   :  { %v3342_v61 = vpop.permute.xlu0 %3341  ;;  %3580 = vmatprep.mubr.f32.mxu0 %v39419_v6 }
  0xef   :  { %5638 = vrot.lane.b32.xlu1 %v34020_v12, %s33848_s19  ;;  %v3353_v17 = vsel %vm3349_vm7, %v3340_v46, %v3342_v61  ;;  %v3354_v34 = vsel %vm3349_vm7, %v3342_v61, %v3344_v59 }
  0xf0   :  { %5632 = vrot.lane.b32.xlu0 %v33982_v7, %s33848_s19  ;;  %30761 = vmatprep.subr.msk.mxu1 %vm157_vm1, %v3353_v17  ;;  %v3348_v22 = vpop.permute.xlu1 %3347 }
  0xf1   :  { %30762 = vmatpush1.msk.msra.mxu1 %vm157_vm1, %v3352_v20 }
  0xf2   :  { %v3346_v26 = vpop.permute.xlu0 %3345  ;;  %32218 = vmatprep.subr.mxu1 %v39419_v6  ;;  %30763 = vmatmul.mubr.msk.f32.vlgmr.msra.gmra.mrb[2].mxu1 %vm153_vm2, %v34635_v41 }
  0xf3   :  { %5642 = vrot.lane.b32.xlu1 %v34033_v14, %s33848_s19  ;;  %v3356_v27 = vsel %vm3349_vm7, %v3346_v26, %v3348_v22  ;;  %v3355_v32 = vsel %vm3349_vm7, %v3344_v59, %v3346_v26  ;;  %32220 = vmatprep.mubr.msk.f32.mxu1 %vm33845_vm3, %v39419_v6 }
  0xf4   :  { %5640 = vrot.lane.b32.xlu0 %v34014_v11, %s33848_s19  ;;  %30764 = vmatprep.subr.msk.mxu0 %vm157_vm1, %v3355_v32 }
  0xf5   :  { %32219 = vmatpush3.msk.msra.mxu1 %vm157_vm1, %v3356_v27  ;;  %30765 = vmatpush1.msk.msra.mxu0 %vm157_vm1, %v3354_v34  ;;  %v3663_v38 = vpop.permute.xlu1 %3662 }
  0xf6   :  { %v3661_v42 = vpop.permute.xlu0 %3660  ;;  %30766 = vmatmul.mubr.msk.f32.vlgmr.msra.gmra.mrb[0].mxu0 %vm153_vm2, %v34635_v41  ;;  %32221 = vmatmul.mubr.msk.f32.vlgmr.msra.gmra.mrb[26].mxu1 %vm153_vm2, %v34635_v41 }
  0xf7   :  { %5646 = vrot.lane.b32.xlu1 %v34220_v39, %s33848_s19  ;;  %v3675_v46 = vsel %vm3349_vm7, %v3661_v42, %v3663_v38  ;;  %3830 = vmatprep.mubr.f32.mxu1 %v39419_v6 }
  0xf8   :  { %5644 = vrot.lane.b32.xlu0 %v34027_v13, %s33848_s19  ;;  %30769 = vmatprep.subr.msk.mxu0 %vm157_vm1, %v3675_v46  ;;  %v34728_v46 = vld [vmem:[%s39407_s1 + $0x30] sm:$0x3f]  ;;  %s33854_s19 = smov 60  }
  0xf9   :  { %v3665_v49 = vpop.permute.xlu1 %3664  ;;  %3759 = vmatprep.mubr.f32.mxu0 %v39419_v6 }
  0xfa   :  { %v3659_v58 = vpop.permute.xlu0 %3658 }
  0xfb   :  { %5970 = vrot.lane.b32.xlu1 %v33953_v1, %s33849_s27  ;;  %v3674_v59 = vsel %vm3349_vm7, %v3659_v58, %v3661_v42  ;;  %v3676_v1 = vsel %vm3349_vm7, %v3663_v38, %v3665_v49 }
  0xfc   :  { %5968 = vrot.lane.b32.xlu0 %v33959_v2, %s33849_s27  ;;  %30770 = vmatpush1.msk.msra.mxu0 %vm157_vm1, %v3674_v59 }
  0xfd   :  { %v3669_v61 = vpop.permute.xlu1 %3668  ;;  %30771 = vmatmul.mubr.msk.f32.vlgmr.msra.gmra.mrb[2].mxu0 %vm153_vm2, %v34635_v41 }
  0xfe   :  { %v3667_v17 = vpop.permute.xlu0 %3666  ;;  %3901 = vmatprep.mubr.f32.mxu0 %v39419_v6 }
  0xff   :  { %5972 = vrot.lane.b32.xlu1 %v33963_v3, %s33849_s27  ;;  %v3677_v20 = vsel %vm3349_vm7, %v3665_v49, %v3667_v17  ;;  %v3678_v32 = vsel %vm3349_vm7, %v3667_v17, %v3669_v61 }
 0x100   :  { %5966 = vrot.lane.b32.xlu0 %v33948_v0, %s33849_s27  ;;  %30772 = vmatprep.subr.msk.mxu1 %vm157_vm1, %v3677_v20 }
 0x101   :  { %30773 = vmatpush1.msk.msra.mxu1 %vm157_vm1, %v3676_v1  ;;  %v3673_v22 = vpop.permute.xlu1 %3672  ;;  %v34771_v1 = vld [vmem:[%s39406_s0 + $0x8] sm:$0x77] }
 0x102   :  { %v3671_v26 = vpop.permute.xlu0 %3670  ;;  %32223 = vmatprep.subr.mxu1 %v39419_v6  ;;  %30774 = vmatmul.mubr.msk.f32.vlgmr.msra.gmra.mrb[6].mxu1 %vm153_vm2, %v34635_v41 }
 0x103   :  { %5976 = vrot.lane.b32.xlu1 %v33976_v5, %s33849_s27  ;;  %v3680_v27 = vsel %vm3349_vm7, %v3671_v26, %v3673_v22  ;;  %v3679_v0 = vsel %vm3349_vm7, %v3669_v61, %v3671_v26  ;;  %32225 = vmatprep.mubr.msk.f32.mxu1 %vm33845_vm3, %v39419_v6 }
 0x104   :  { %5974 = vrot.lane.b32.xlu0 %v33968_v4, %s33849_s27  ;;  %30775 = vmatprep.subr.msk.mxu0 %vm157_vm1, %v3679_v0 }
 0x105   :  { %32224 = vmatpush3.msk.msra.mxu1 %vm157_vm1, %v3680_v27  ;;  %30776 = vmatpush1.msk.msra.mxu0 %vm157_vm1, %v3678_v32  ;;  %v3997_v34 = vpop.permute.xlu1 %3996  ;;  %v34788_v27 = vld [vmem:[%s39406_s0] sm:$0x77] }
 0x106   :  { %v3995_v38 = vpop.permute.xlu0 %3994  ;;  %30777 = vmatmul.mubr.msk.f32.vlgmr.msra.gmra.mrb[4].mxu0 %vm153_vm2, %v34635_v41  ;;  %32226 = vmatmul.mubr.msk.f32.vlgmr.msra.gmra.mrb[28].mxu1 %vm153_vm2, %v34635_v41 }
 0x107   :  { %5980 = vrot.lane.b32.xlu1 %v34139_v19, %s33849_s27  ;;  %v4010_v4 = vsel %vm4008_vm8, %v3995_v38, %v3997_v34  ;;  %4168 = vmatprep.mubr.f32.mxu1 %v39419_v6 }
 0x108   :  { %5978 = vrot.lane.b32.xlu0 %v33998_v9, %s33849_s27  ;;  %30780 = vmatprep.subr.msk.mxu0 %vm157_vm1, %v4010_v4 }
 0x109   :  { %4097 = vmatprep.mubr.f32.mxu0 %v39419_v6 }
 0x10a   :  { %v3993_v42 = vpop.permute.xlu0 %3992  ;;  %v3999_v41 = vpop.permute.xlu1 %3998 }
 0x10b   :  { %6294 = vrot.lane.b32.xlu1 %v34007_v10, %s33849_s27  ;;  %v4009_v49 = vsel %vm4008_vm8, %v3993_v42, %v3995_v38  ;;  %v4011_v59 = vsel %vm4008_vm8, %v3997_v34, %v3999_v41  ;;  %v34799_v38 = vld [vmem:[%s39406_s0 + $0x10] sm:$0x77] }
 0x10c   :  { %6292 = vrot.lane.b32.xlu0 %v33991_v8, %s33849_s27  ;;  %30781 = vmatpush1.msk.msra.mxu0 %vm157_vm1, %v4009_v49 }
 0x10d   :  { %30782 = vmatmul.mubr.msk.f32.vlgmr.msra.gmra.mrb[6].mxu0 %vm153_vm2, %v34728_v46 }
 0x10e   :  { %4239 = vmatprep.mubr.f32.mxu0 %v39419_v6 }
 0x10f   :  { %6296 = vrot.lane.b32.xlu1 %v34020_v12, %s33849_s27 }
 0x110   :  { %6290 = vrot.lane.b32.xlu0 %v33982_v7, %s33849_s27  ;;  %v4001_v9 = vpop.permute.xlu0 %4000  ;;  %v4003_v10 = vpop.permute.xlu1 %4002 }
 0x111   :  { %v4012_v58 = vsel %vm4008_vm8, %v3999_v41, %v4001_v9  ;;  %v4013_v20 = vsel %vm4008_vm8, %v4001_v9, %v4003_v10  ;;  %v34814_v9 = vld [vmem:[%s39406_s0 + $0x18] sm:$0x77] }
 0x112   :  { %30783 = vmatprep.subr.msk.mxu1 %vm157_vm1, %v4012_v58 }
 0x113   :  { %6300 = vrot.lane.b32.xlu1 %v34033_v14, %s33849_s27  ;;  %30784 = vmatpush1.msk.msra.mxu1 %vm157_vm1, %v4011_v59 }
 0x114   :  { %6298 = vrot.lane.b32.xlu0 %v34014_v11, %s33849_s27  ;;  %32228 = vmatprep.subr.mxu1 %v39419_v6 }
 0x115   :  { %30785 = vmatmul.mubr.msk.f32.vlgmr.msra.gmra.mrb[2].mxu1 %vm153_vm2, %v34728_v46 }
 0x116   :  { %32230 = vmatprep.mubr.msk.f32.mxu1 %vm33845_vm3, %v39419_v6 }
 0x117   :  { %6304 = vrot.lane.b32.xlu1 %v34220_v39, %s33849_s27  ;;  %v4007_v7 = vpop.permute.xlu1 %4006  ;;  %v4005_v61 = vpop.permute.xlu0 %4004 }
 0x118   :  { %6302 = vrot.lane.b32.xlu0 %v34027_v13, %s33849_s27  ;;  %v4015_v17 = vsel %vm4008_vm8, %v4005_v61, %v4007_v7  ;;  %v4014_v11 = vsel %vm4008_vm8, %v4003_v10, %v4005_v61  ;;  %v34828_v7 = vld [vmem:[%s39406_s0 + $0x28] sm:$0x77]  ;;  %s33855_s27 = smov 32  }
 0x119   :  { %30786 = vmatprep.subr.msk.mxu0 %vm157_vm1, %v4014_v11  ;;  %32229 = vmatpush3.msk.msra.mxu1 %vm157_vm1, %v4015_v17 }
 0x11a   :  { %30787 = vmatpush1.msk.msra.mxu0 %vm157_vm1, %v4013_v20  ;;  %32231 = vmatmul.mubr.msk.f32.vlgmr.msra.gmra.mrb[30].mxu1 %vm153_vm2, %v34728_v46 }
 0x11b   :  { %6628 = vrot.lane.b32.xlu1 %v34771_v1, %s33850_s15  ;;  %v4321_v13 = vpop.permute.xlu1 %4320  ;;  %30788 = vmatmul.mubr.msk.f32.vlgmr.msra.gmra.mrb[0].mxu0 %vm153_vm2, %v34728_v46 }
 0x11c   :  { %6626 = vrot.lane.b32.xlu0 %v33959_v2, %s33850_s15  ;;  %v4319_v22 = vpop.permute.xlu0 %4318  ;;  %4488 = vmatprep.mubr.f32.mxu1 %v39419_v6 }
 0x11d   :  { %v4333_v26 = vsel %vm4008_vm8, %v4319_v22, %v4321_v13  ;;  %4417 = vmatprep.mubr.f32.mxu0 %v39419_v6 }
 0x11e   :  { %30791 = vmatprep.subr.msk.mxu0 %vm157_vm1, %v4333_v26 }
 0x11f   :  { %6630 = vrot.lane.b32.xlu1 %v33963_v3, %s33850_s15 }
 0x120   :  { %6624 = vrot.lane.b32.xlu0 %v34788_v27, %s33850_s15  ;;  %v4323_v0 = vpop.permute.xlu1 %4322 }
 0x121   :  { %v4317_v32 = vpop.permute.xlu0 %4316  ;;  %v4334_v49 = vsel %vm4008_vm8, %v4321_v13, %v4323_v0 }
 0x122   :  { %v4332_v34 = vsel %vm4008_vm8, %v4317_v32, %v4319_v22  ;;  %v34850_v22 = vld [vmem:[%s39406_s0 + $0x20] sm:$0x77] }
 0x123   :  { %6634 = vrot.lane.b32.xlu1 %v33976_v5, %s33850_s15  ;;  %30792 = vmatpush1.msk.msra.mxu0 %vm157_vm1, %v4332_v34  ;;  %v34867_v34 = vld [vmem:[%s39406_s0 + $0x30] sm:$0x77] }
 0x124   :  { %6632 = vrot.lane.b32.xlu0 %v34799_v38, %s33850_s15  ;;  %30793 = vmatmul.mubr.msk.f32.vlgmr.msra.gmra.mrb[2].mxu0 %vm153_vm2, %v34728_v46 }
 0x125   :  { %v4327_v4 = vpop.permute.xlu1 %4326  ;;  %v4325_v42 = vpop.permute.xlu0 %4324  ;;  %4559 = vmatprep.mubr.f32.mxu0 %v39419_v6 }
 0x126   :  { %v4335_v41 = vsel %vm4008_vm8, %v4323_v0, %v4325_v42  ;;  %v4336_v17 = vsel %vm4008_vm8, %v4325_v42, %v4327_v4  ;;  %v34859_v0 = vld [vmem:[%s39407_s1 + $0x38] sm:$0x3f] }
 0x127   :  { %6638 = vrot.lane.b32.xlu1 %v34139_v19, %s33850_s15  ;;  %30794 = vmatprep.subr.msk.mxu1 %vm157_vm1, %v4335_v41 }
 0x128   :  { %6636 = vrot.lane.b32.xlu0 %v34814_v9, %s33850_s15  ;;  %30795 = vmatpush1.msk.msra.mxu1 %vm157_vm1, %v4334_v49 }
 0x129   :  { %v4331_v10 = vpop.permute.xlu1 %4330  ;;  %32233 = vmatprep.subr.mxu1 %v39419_v6  ;;  %30796 = vmatmul.mubr.msk.f32.vlgmr.msra.gmra.mrb[6].mxu1 %vm153_vm2, %v34728_v46 }
 0x12a   :  { %v4329_v58 = vpop.permute.xlu0 %4328  ;;  %32235 = vmatprep.mubr.msk.f32.mxu1 %vm33845_vm3, %v39419_v6 }
 0x12b   :  { %v4338_v59 = vsel %vm4008_vm8, %v4329_v58, %v4331_v10  ;;  %6952 = vrot.lane.b32.xlu1 %v34828_v7, %s33850_s15  ;;  %v4337_v61 = vsel %vm4008_vm8, %v4327_v4, %v4329_v58  ;;  %v34882_v10 = vld [vmem:[%s39406_s0 + $0x38] sm:$0x77]  ;;  %vm9272_vm8 = vcmask 490496  }
 0x12c   :  { %6950 = vrot.lane.b32.xlu0 %v33991_v8, %s33850_s15  ;;  %30797 = vmatprep.subr.msk.mxu0 %vm157_vm1, %v4337_v61 }
 0x12d   :  { %32234 = vmatpush3.msk.msra.mxu1 %vm157_vm1, %v4338_v59  ;;  %30798 = vmatpush1.msk.msra.mxu0 %vm157_vm1, %v4336_v17  ;;  %v4655_v11 = vpop.permute.xlu1 %4654 }
 0x12e   :  { %v4653_v20 = vpop.permute.xlu0 %4652  ;;  %30799 = vmatmul.mubr.msk.f32.vlgmr.msra.gmra.mrb[4].mxu0 %vm153_vm2, %v34728_v46  ;;  %32236 = vmatmul.mubr.msk.f32.vlgmr.msra.gmra.mrb[32].mxu1 %vm153_vm2, %v34728_v46 }
 0x12f   :  { %6954 = vrot.lane.b32.xlu1 %v34020_v12, %s33850_s15  ;;  %v4668_v13 = vsel %vm4666_vm9, %v4653_v20, %v4655_v11  ;;  %4826 = vmatprep.mubr.f32.mxu1 %v39419_v6 }
 0x130   :  { %6948 = vrot.lane.b32.xlu0 %v34850_v22, %s33850_s15  ;;  %30802 = vmatprep.subr.msk.mxu0 %vm157_vm1, %v4668_v13 }
 0x131   :  { %v4657_v26 = vpop.permute.xlu1 %4656  ;;  %4755 = vmatprep.mubr.f32.mxu0 %v39419_v6 }
 0x132   :  { %v4651_v46 = vpop.permute.xlu0 %4650  ;;  %v4669_v49 = vsel %vm4666_vm9, %v4655_v11, %v4657_v26 }
 0x133   :  { %v4667_v32 = vsel %vm4666_vm9, %v4651_v46, %v4653_v20  ;;  %6958 = vrot.lane.b32.xlu1 %v34033_v14, %s33850_s15 }
 0x134   :  { %6956 = vrot.lane.b32.xlu0 %v34867_v34, %s33850_s15  ;;  %30803 = vmatpush1.msk.msra.mxu0 %vm157_vm1, %v4667_v32 }
 0x135   :  { %v4661_v4 = vpop.permute.xlu1 %4660  ;;  %30804 = vmatmul.mubr.msk.f32.vlgmr.msra.gmra.mrb[6].mxu0 %vm153_vm2, %v34859_v0 }
 0x136   :  { %v4659_v42 = vpop.permute.xlu0 %4658  ;;  %4897 = vmatprep.mubr.f32.mxu0 %v39419_v6 }
 0x137   :  { %6962 = vrot.lane.b32.xlu1 %v34220_v39, %s33850_s15  ;;  %v4670_v41 = vsel %vm4666_vm9, %v4657_v26, %v4659_v42  ;;  %v4671_v11 = vsel %vm4666_vm9, %v4659_v42, %v4661_v4 }
 0x138   :  { %6960 = vrot.lane.b32.xlu0 %v34882_v10, %s33850_s15  ;;  %30805 = vmatprep.subr.msk.mxu1 %vm157_vm1, %v4670_v41 }
 0x139   :  { %30806 = vmatpush1.msk.msra.mxu1 %vm157_vm1, %v4669_v49  ;;  %v4665_v58 = vpop.permute.xlu1 %4664 }
 0x13a   :  { %v4663_v59 = vpop.permute.xlu0 %4662  ;;  %32238 = vmatprep.subr.mxu1 %v39419_v6  ;;  %30807 = vmatmul.mubr.msk.f32.vlgmr.msra.gmra.mrb[2].mxu1 %vm153_vm2, %v34859_v0 }
 0x13b   :  { %v4673_v61 = vsel %vm4666_vm9, %v4663_v59, %v4665_v58  ;;  %7286 = vrot.lane.b32.xlu1 %v34771_v1, %s33851_s26  ;;  %v4672_v17 = vsel %vm4666_vm9, %v4661_v4, %v4663_v59  ;;  %32240 = vmatprep.mubr.msk.f32.mxu1 %vm33845_vm3, %v39419_v6 }
 0x13c   :  { %7284 = vrot.lane.b32.xlu0 %v33959_v2, %s33851_s26  ;;  %30808 = vmatprep.subr.msk.mxu0 %vm157_vm1, %v4672_v17 }
 0x13d   :  { %32239 = vmatpush3.msk.msra.mxu1 %vm157_vm1, %v4673_v61  ;;  %30809 = vmatpush1.msk.msra.mxu0 %vm157_vm1, %v4671_v11  ;;  %v4979_v20 = vpop.permute.xlu1 %4978 }
 0x13e   :  { %v4977_v13 = vpop.permute.xlu0 %4976  ;;  %30810 = vmatmul.mubr.msk.f32.vlgmr.msra.gmra.mrb[0].mxu0 %vm153_vm2, %v34859_v0  ;;  %32241 = vmatmul.mubr.msk.f32.vlgmr.msra.gmra.mrb[34].mxu1 %vm153_vm2, %v34859_v0 }
 0x13f   :  { %7288 = vrot.lane.b32.xlu1 %v33963_v3, %s33851_s26  ;;  %v4991_v26 = vsel %vm4666_vm9, %v4977_v13, %v4979_v20  ;;  %5146 = vmatprep.mubr.f32.mxu1 %v39419_v6 }
 0x140   :  { %7282 = vrot.lane.b32.xlu0 %v34788_v27, %s33851_s26  ;;  %30813 = vmatprep.subr.msk.mxu0 %vm157_vm1, %v4991_v26 }
 0x141   :  { %v4981_v46 = vpop.permute.xlu1 %4980  ;;  %5075 = vmatprep.mubr.f32.mxu0 %v39419_v6 }
 0x142   :  { %v4975_v32 = vpop.permute.xlu0 %4974  ;;  %v4992_v58 = vsel %vm4666_vm9, %v4979_v20, %v4981_v46 }
 0x143   :  { %v4990_v4 = vsel %vm4666_vm9, %v4975_v32, %v4977_v13  ;;  %7292 = vrot.lane.b32.xlu1 %v33976_v5, %s33851_s26 }
 0x144   :  { %7290 = vrot.lane.b32.xlu0 %v34799_v38, %s33851_s26  ;;  %30814 = vmatpush1.msk.msra.mxu0 %vm157_vm1, %v4990_v4 }
 0x145   :  { %v4985_v42 = vpop.permute.xlu1 %4984  ;;  %30815 = vmatmul.mubr.msk.f32.vlgmr.msra.gmra.mrb[2].mxu0 %vm153_vm2, %v34859_v0 }
 0x146   :  { %v4983_v41 = vpop.permute.xlu0 %4982  ;;  %5217 = vmatprep.mubr.f32.mxu0 %v39419_v6 }
 0x147   :  { %7296 = vrot.lane.b32.xlu1 %v34139_v19, %s33851_s26  ;;  %v4993_v49 = vsel %vm4666_vm9, %v4981_v46, %v4983_v41  ;;  %v4994_v20 = vsel %vm4666_vm9, %v4983_v41, %v4985_v42 }
 0x148   :  { %7294 = vrot.lane.b32.xlu0 %v34814_v9, %s33851_s26  ;;  %30816 = vmatprep.subr.msk.mxu1 %vm157_vm1, %v4993_v49 }
 0x149   :  { %30817 = vmatpush1.msk.msra.mxu1 %vm157_vm1, %v4992_v58  ;;  %v4989_v59 = vpop.permute.xlu1 %4988 }
 0x14a   :  { %v4987_v61 = vpop.permute.xlu0 %4986  ;;  %32243 = vmatprep.subr.mxu1 %v39419_v6  ;;  %30818 = vmatmul.mubr.msk.f32.vlgmr.msra.gmra.mrb[6].mxu1 %vm153_vm2, %v34859_v0 }
 0x14b   :  { %v4996_v17 = vsel %vm4666_vm9, %v4987_v61, %v4989_v59  ;;  %7610 = vrot.lane.b32.xlu1 %v34828_v7, %s33851_s26  ;;  %v4995_v11 = vsel %vm4666_vm9, %v4985_v42, %v4987_v61  ;;  %32245 = vmatprep.mubr.msk.f32.mxu1 %vm33845_vm3, %v39419_v6  ;;  %vm9930_vm9 = vcmask 261120  }
 0x14c   :  { %7608 = vrot.lane.b32.xlu0 %v33991_v8, %s33851_s26  ;;  %30819 = vmatprep.subr.msk.mxu0 %vm157_vm1, %v4995_v11 }
 0x14d   :  { %32244 = vmatpush3.msk.msra.mxu1 %vm157_vm1, %v4996_v17  ;;  %30820 = vmatpush1.msk.msra.mxu0 %vm157_vm1, %v4994_v20  ;;  %v5313_v13 = vpop.permute.xlu1 %5312 }
 0x14e   :  { %v5311_v26 = vpop.permute.xlu0 %5310  ;;  %30821 = vmatmul.mubr.msk.f32.vlgmr.msra.gmra.mrb[4].mxu0 %vm153_vm2, %v34859_v0  ;;  %32246 = vmatmul.mubr.msk.f32.vlgmr.msra.gmra.mrb[36].mxu1 %vm153_vm2, %v34859_v0  ;;  %v34962_v0 = vld [vmem:[%s39407_s1 + $0x40] sm:$0x3f] }
 0x14f   :  { %7612 = vrot.lane.b32.xlu1 %v34020_v12, %s33851_s26  ;;  %v5326_v46 = vsel %vm5324_vm10, %v5311_v26, %v5313_v13  ;;  %5484 = vmatprep.mubr.f32.mxu1 %v39419_v6 }
 0x150   :  { %7606 = vrot.lane.b32.xlu0 %v34850_v22, %s33851_s26  ;;  %30824 = vmatprep.subr.msk.mxu0 %vm157_vm1, %v5326_v46 }
 0x151   :  { %v5315_v32 = vpop.permute.xlu1 %5314  ;;  %5413 = vmatprep.mubr.f32.mxu0 %v39419_v6 }
 0x152   :  { %v5309_v4 = vpop.permute.xlu0 %5308  ;;  %v5327_v59 = vsel %vm5324_vm10, %v5313_v13, %v5315_v32 }
 0x153   :  { %v5325_v42 = vsel %vm5324_vm10, %v5309_v4, %v5311_v26  ;;  %7616 = vrot.lane.b32.xlu1 %v34033_v14, %s33851_s26 }
 0x154   :  { %7614 = vrot.lane.b32.xlu0 %v34867_v34, %s33851_s26  ;;  %30825 = vmatpush1.msk.msra.mxu0 %vm157_vm1, %v5325_v42 }
 0x155   :  { %v5319_v41 = vpop.permute.xlu1 %5318  ;;  %30826 = vmatmul.mubr.msk.f32.vlgmr.msra.gmra.mrb[6].mxu0 %vm153_vm2, %v34962_v0 }
 0x156   :  { %v5317_v49 = vpop.permute.xlu0 %5316  ;;  %5555 = vmatprep.mubr.f32.mxu0 %v39419_v6 }
 0x157   :  { %7620 = vrot.lane.b32.xlu1 %v34220_v39, %s33851_s26  ;;  %v5328_v58 = vsel %vm5324_vm10, %v5315_v32, %v5317_v49  ;;  %v5329_v13 = vsel %vm5324_vm10, %v5317_v49, %v5319_v41 }
 0x158   :  { %7618 = vrot.lane.b32.xlu0 %v34882_v10, %s33851_s26  ;;  %30827 = vmatprep.subr.msk.mxu1 %vm157_vm1, %v5328_v58  ;;  %s33858_s26 = smov 29  }
 0x159   :  { %30828 = vmatpush1.msk.msra.mxu1 %vm157_vm1, %v5327_v59  ;;  %v5323_v61 = vpop.permute.xlu1 %5322 }
 0x15a   :  { %v5321_v17 = vpop.permute.xlu0 %5320  ;;  %32248 = vmatprep.subr.mxu1 %v39419_v6  ;;  %30829 = vmatmul.mubr.msk.f32.vlgmr.msra.gmra.mrb[2].mxu1 %vm153_vm2, %v34962_v0 }
 0x15b   :  { %v5331_v11 = vsel %vm5324_vm10, %v5321_v17, %v5323_v61  ;;  %7944 = vrot.lane.b32.xlu1 %v34771_v1, %s33852_s29  ;;  %v5330_v20 = vsel %vm5324_vm10, %v5319_v41, %v5321_v17  ;;  %32250 = vmatprep.mubr.msk.f32.mxu1 %vm33845_vm3, %v39419_v6 }
 0x15c   :  { %7942 = vrot.lane.b32.xlu0 %v33959_v2, %s33852_s29  ;;  %30830 = vmatprep.subr.msk.mxu0 %vm157_vm1, %v5330_v20 }
 0x15d   :  { %32249 = vmatpush3.msk.msra.mxu1 %vm157_vm1, %v5331_v11  ;;  %30831 = vmatpush1.msk.msra.mxu0 %vm157_vm1, %v5329_v13  ;;  %v5637_v26 = vpop.permute.xlu1 %5636 }
 0x15e   :  { %v5635_v46 = vpop.permute.xlu0 %5634  ;;  %30832 = vmatmul.mubr.msk.f32.vlgmr.msra.gmra.mrb[0].mxu0 %vm153_vm2, %v34962_v0  ;;  %32251 = vmatmul.mubr.msk.f32.vlgmr.msra.gmra.mrb[38].mxu1 %vm153_vm2, %v34962_v0 }
 0x15f   :  { %7946 = vrot.lane.b32.xlu1 %v33963_v3, %s33852_s29  ;;  %v5649_v32 = vsel %vm5324_vm10, %v5635_v46, %v5637_v26  ;;  %5804 = vmatprep.mubr.f32.mxu1 %v39419_v6 }
 0x160   :  { %7940 = vrot.lane.b32.xlu0 %v34788_v27, %s33852_s29  ;;  %30835 = vmatprep.subr.msk.mxu0 %vm157_vm1, %v5649_v32 }
 0x161   :  { %v5639_v4 = vpop.permute.xlu1 %5638  ;;  %5733 = vmatprep.mubr.f32.mxu0 %v39419_v6 }
 0x162   :  { %v5633_v42 = vpop.permute.xlu0 %5632  ;;  %v5650_v61 = vsel %vm5324_vm10, %v5637_v26, %v5639_v4 }
 0x163   :  { %v5648_v41 = vsel %vm5324_vm10, %v5633_v42, %v5635_v46  ;;  %7950 = vrot.lane.b32.xlu1 %v33976_v5, %s33852_s29 }
 0x164   :  { %7948 = vrot.lane.b32.xlu0 %v34799_v38, %s33852_s29  ;;  %30836 = vmatpush1.msk.msra.mxu0 %vm157_vm1, %v5648_v41 }
 0x165   :  { %v5643_v49 = vpop.permute.xlu1 %5642  ;;  %30837 = vmatmul.mubr.msk.f32.vlgmr.msra.gmra.mrb[2].mxu0 %vm153_vm2, %v34962_v0 }
 0x166   :  { %v5641_v58 = vpop.permute.xlu0 %5640  ;;  %5875 = vmatprep.mubr.f32.mxu0 %v39419_v6 }
 0x167   :  { %7954 = vrot.lane.b32.xlu1 %v34139_v19, %s33852_s29  ;;  %v5651_v59 = vsel %vm5324_vm10, %v5639_v4, %v5641_v58  ;;  %v5652_v26 = vsel %vm5324_vm10, %v5641_v58, %v5643_v49 }
 0x168   :  { %7952 = vrot.lane.b32.xlu0 %v34814_v9, %s33852_s29  ;;  %30838 = vmatprep.subr.msk.mxu1 %vm157_vm1, %v5651_v59 }
 0x169   :  { %30839 = vmatpush1.msk.msra.mxu1 %vm157_vm1, %v5650_v61  ;;  %v5647_v17 = vpop.permute.xlu1 %5646 }
 0x16a   :  { %v5645_v11 = vpop.permute.xlu0 %5644  ;;  %32253 = vmatprep.subr.mxu1 %v39419_v6  ;;  %30840 = vmatmul.mubr.msk.f32.vlgmr.msra.gmra.mrb[6].mxu1 %vm153_vm2, %v34962_v0 }
 0x16b   :  { %v5654_v20 = vsel %vm5324_vm10, %v5645_v11, %v5647_v17  ;;  %8268 = vrot.lane.b32.xlu1 %v34828_v7, %s33852_s29  ;;  %v5653_v13 = vsel %vm5324_vm10, %v5643_v49, %v5645_v11  ;;  %32255 = vmatprep.mubr.msk.f32.mxu1 %vm33845_vm3, %v39419_v6  ;;  %vm10588_vm10 = vcmask 252928  }
 0x16c   :  { %8266 = vrot.lane.b32.xlu0 %v33991_v8, %s33852_s29  ;;  %30841 = vmatprep.subr.msk.mxu0 %vm157_vm1, %v5653_v13 }
 0x16d   :  { %32254 = vmatpush3.msk.msra.mxu1 %vm157_vm1, %v5654_v20  ;;  %30842 = vmatpush1.msk.msra.mxu0 %vm157_vm1, %v5652_v26  ;;  %v5971_v46 = vpop.permute.xlu1 %5970 }
 0x16e   :  { %v5969_v32 = vpop.permute.xlu0 %5968  ;;  %30843 = vmatmul.mubr.msk.f32.vlgmr.msra.gmra.mrb[4].mxu0 %vm153_vm2, %v34962_v0  ;;  %32256 = vmatmul.mubr.msk.f32.vlgmr.msra.gmra.mrb[40].mxu1 %vm153_vm2, %v34962_v0  ;;  %v35055_v0 = vld [vmem:[%s39407_s1 + $0x48] sm:$0x3f] }
 0x16f   :  { %8270 = vrot.lane.b32.xlu1 %v34020_v12, %s33852_s29  ;;  %v5984_v4 = vsel %vm5982_vm11, %v5969_v32, %v5971_v46  ;;  %6142 = vmatprep.mubr.f32.mxu1 %v39419_v6 }
 0x170   :  { %8264 = vrot.lane.b32.xlu0 %v34850_v22, %s33852_s29  ;;  %30846 = vmatprep.subr.msk.mxu0 %vm157_vm1, %v5984_v4 }
 0x171   :  { %v5973_v42 = vpop.permute.xlu1 %5972  ;;  %6071 = vmatprep.mubr.f32.mxu0 %v39419_v6 }
 0x172   :  { %v5967_v41 = vpop.permute.xlu0 %5966  ;;  %v5985_v17 = vsel %vm5982_vm11, %v5971_v46, %v5973_v42 }
 0x173   :  { %v5983_v49 = vsel %vm5982_vm11, %v5967_v41, %v5969_v32  ;;  %8274 = vrot.lane.b32.xlu1 %v34033_v14, %s33852_s29 }
 0x174   :  { %8272 = vrot.lane.b32.xlu0 %v34867_v34, %s33852_s29  ;;  %30847 = vmatpush1.msk.msra.mxu0 %vm157_vm1, %v5983_v49 }
 0x175   :  { %v5977_v58 = vpop.permute.xlu1 %5976  ;;  %30848 = vmatmul.mubr.msk.f32.vlgmr.msra.gmra.mrb[6].mxu0 %vm153_vm2, %v35055_v0 }
 0x176   :  { %v5975_v59 = vpop.permute.xlu0 %5974  ;;  %6213 = vmatprep.mubr.f32.mxu0 %v39419_v6 }
 0x177   :  { %8278 = vrot.lane.b32.xlu1 %v34220_v39, %s33852_s29  ;;  %v5986_v61 = vsel %vm5982_vm11, %v5973_v42, %v5975_v59  ;;  %v5987_v46 = vsel %vm5982_vm11, %v5975_v59, %v5977_v58 }
 0x178   :  { %8276 = vrot.lane.b32.xlu0 %v34882_v10, %s33852_s29  ;;  %30849 = vmatprep.subr.msk.mxu1 %vm157_vm1, %v5986_v61 }
 0x179   :  { %30850 = vmatpush1.msk.msra.mxu1 %vm157_vm1, %v5985_v17  ;;  %v5981_v11 = vpop.permute.xlu1 %5980 }
 0x17a   :  { %v5979_v20 = vpop.permute.xlu0 %5978  ;;  %32258 = vmatprep.subr.mxu1 %v39419_v6  ;;  %30851 = vmatmul.mubr.msk.f32.vlgmr.msra.gmra.mrb[2].mxu1 %vm153_vm2, %v35055_v0 }
 0x17b   :  { %v5989_v13 = vsel %vm5982_vm11, %v5979_v20, %v5981_v11  ;;  %8602 = vrot.lane.b32.xlu1 %v34771_v1, %s33853_s16  ;;  %v5988_v26 = vsel %vm5982_vm11, %v5977_v58, %v5979_v20  ;;  %32260 = vmatprep.mubr.msk.f32.mxu1 %vm33845_vm3, %v39419_v6 }
 0x17c   :  { %8600 = vrot.lane.b32.xlu0 %v33959_v2, %s33853_s16  ;;  %30852 = vmatprep.subr.msk.mxu0 %vm157_vm1, %v5988_v26 }
 0x17d   :  { %32259 = vmatpush3.msk.msra.mxu1 %vm157_vm1, %v5989_v13  ;;  %30853 = vmatpush1.msk.msra.mxu0 %vm157_vm1, %v5987_v46  ;;  %v6295_v32 = vpop.permute.xlu1 %6294 }
 0x17e   :  { %v6293_v4 = vpop.permute.xlu0 %6292  ;;  %30854 = vmatmul.mubr.msk.f32.vlgmr.msra.gmra.mrb[0].mxu0 %vm153_vm2, %v35055_v0  ;;  %32261 = vmatmul.mubr.msk.f32.vlgmr.msra.gmra.mrb[42].mxu1 %vm153_vm2, %v35055_v0 }
 0x17f   :  { %8604 = vrot.lane.b32.xlu1 %v33963_v3, %s33853_s16  ;;  %v6307_v42 = vsel %vm5982_vm11, %v6293_v4, %v6295_v32  ;;  %6462 = vmatprep.mubr.f32.mxu1 %v39419_v6 }
 0x180   :  { %8598 = vrot.lane.b32.xlu0 %v34788_v27, %s33853_s16  ;;  %30857 = vmatprep.subr.msk.mxu0 %vm157_vm1, %v6307_v42 }
 0x181   :  { %v6297_v41 = vpop.permute.xlu1 %6296  ;;  %6391 = vmatprep.mubr.f32.mxu0 %v39419_v6 }
 0x182   :  { %v6291_v49 = vpop.permute.xlu0 %6290  ;;  %v6308_v11 = vsel %vm5982_vm11, %v6295_v32, %v6297_v41 }
 0x183   :  { %v6306_v58 = vsel %vm5982_vm11, %v6291_v49, %v6293_v4  ;;  %8608 = vrot.lane.b32.xlu1 %v33976_v5, %s33853_s16 }
 0x184   :  { %8606 = vrot.lane.b32.xlu0 %v34799_v38, %s33853_s16  ;;  %30858 = vmatpush1.msk.msra.mxu0 %vm157_vm1, %v6306_v58 }
 0x185   :  { %v6301_v59 = vpop.permute.xlu1 %6300  ;;  %30859 = vmatmul.mubr.msk.f32.vlgmr.msra.gmra.mrb[2].mxu0 %vm153_vm2, %v35055_v0 }
 0x186   :  { %v6299_v61 = vpop.permute.xlu0 %6298  ;;  %6533 = vmatprep.mubr.f32.mxu0 %v39419_v6 }
 0x187   :  { %8612 = vrot.lane.b32.xlu1 %v34139_v19, %s33853_s16  ;;  %v6309_v17 = vsel %vm5982_vm11, %v6297_v41, %v6299_v61  ;;  %v6310_v32 = vsel %vm5982_vm11, %v6299_v61, %v6301_v59 }
 0x188   :  { %8610 = vrot.lane.b32.xlu0 %v34814_v9, %s33853_s16  ;;  %30860 = vmatprep.subr.msk.mxu1 %vm157_vm1, %v6309_v17 }
 0x189   :  { %30861 = vmatpush1.msk.msra.mxu1 %vm157_vm1, %v6308_v11  ;;  %v6305_v20 = vpop.permute.xlu1 %6304 }
 0x18a   :  { %v6303_v13 = vpop.permute.xlu0 %6302  ;;  %32263 = vmatprep.subr.mxu1 %v39419_v6  ;;  %30862 = vmatmul.mubr.msk.f32.vlgmr.msra.gmra.mrb[6].mxu1 %vm153_vm2, %v35055_v0 }
 0x18b   :  { %v6312_v26 = vsel %vm5982_vm11, %v6303_v13, %v6305_v20  ;;  %8926 = vrot.lane.b32.xlu1 %v34828_v7, %s33853_s16  ;;  %v6311_v46 = vsel %vm5982_vm11, %v6301_v59, %v6303_v13  ;;  %32265 = vmatprep.mubr.msk.f32.mxu1 %vm33845_vm3, %v39419_v6  ;;  %vm11246_vm11 = vcmask 244736  }
 0x18c   :  { %8924 = vrot.lane.b32.xlu0 %v33991_v8, %s33853_s16  ;;  %30863 = vmatprep.subr.msk.mxu0 %vm157_vm1, %v6311_v46 }
 0x18d   :  { %32264 = vmatpush3.msk.msra.mxu1 %vm157_vm1, %v6312_v26  ;;  %30864 = vmatpush1.msk.msra.mxu0 %vm157_vm1, %v6310_v32  ;;  %v6629_v4 = vpop.permute.xlu1 %6628 }
 0x18e   :  { %v6627_v42 = vpop.permute.xlu0 %6626  ;;  %30865 = vmatmul.mubr.msk.f32.vlgmr.msra.gmra.mrb[4].mxu0 %vm153_vm2, %v35055_v0  ;;  %32266 = vmatmul.mubr.msk.f32.vlgmr.msra.gmra.mrb[44].mxu1 %vm153_vm2, %v35055_v0  ;;  %v35148_v0 = vld [vmem:[%s39407_s1 + $0x50] sm:$0x3f] }
 0x18f   :  { %8928 = vrot.lane.b32.xlu1 %v34020_v12, %s33853_s16  ;;  %v6642_v41 = vsel %vm6640_vm12, %v6627_v42, %v6629_v4  ;;  %6800 = vmatprep.mubr.f32.mxu1 %v39419_v6 }
 0x190   :  { %8922 = vrot.lane.b32.xlu0 %v34850_v22, %s33853_s16  ;;  %30868 = vmatprep.subr.msk.mxu0 %vm157_vm1, %v6642_v41 }
 0x191   :  { %v6631_v49 = vpop.permute.xlu1 %6630  ;;  %6729 = vmatprep.mubr.f32.mxu0 %v39419_v6 }
 0x192   :  { %v6625_v58 = vpop.permute.xlu0 %6624  ;;  %v6643_v20 = vsel %vm6640_vm12, %v6629_v4, %v6631_v49 }
 0x193   :  { %v6641_v59 = vsel %vm6640_vm12, %v6625_v58, %v6627_v42  ;;  %8932 = vrot.lane.b32.xlu1 %v34033_v14, %s33853_s16 }
 0x194   :  { %8930 = vrot.lane.b32.xlu0 %v34867_v34, %s33853_s16  ;;  %30869 = vmatpush1.msk.msra.mxu0 %vm157_vm1, %v6641_v59 }
 0x195   :  { %v6635_v61 = vpop.permute.xlu1 %6634  ;;  %30870 = vmatmul.mubr.msk.f32.vlgmr.msra.gmra.mrb[6].mxu0 %vm153_vm2, %v35148_v0 }
 0x196   :  { %v6633_v17 = vpop.permute.xlu0 %6632  ;;  %6871 = vmatprep.mubr.f32.mxu0 %v39419_v6 }
 0x197   :  { %8936 = vrot.lane.b32.xlu1 %v34220_v39, %s33853_s16  ;;  %v6644_v11 = vsel %vm6640_vm12, %v6631_v49, %v6633_v17  ;;  %v6645_v4 = vsel %vm6640_vm12, %v6633_v17, %v6635_v61 }
 0x198   :  { %8934 = vrot.lane.b32.xlu0 %v34882_v10, %s33853_s16  ;;  %30871 = vmatprep.subr.msk.mxu1 %vm157_vm1, %v6644_v11 }
 0x199   :  { %30872 = vmatpush1.msk.msra.mxu1 %vm157_vm1, %v6643_v20  ;;  %v6639_v13 = vpop.permute.xlu1 %6638 }
 0x19a   :  { %v6637_v26 = vpop.permute.xlu0 %6636  ;;  %32268 = vmatprep.subr.mxu1 %v39419_v6  ;;  %30873 = vmatmul.mubr.msk.f32.vlgmr.msra.gmra.mrb[2].mxu1 %vm153_vm2, %v35148_v0 }
 0x19b   :  { %v6647_v46 = vsel %vm6640_vm12, %v6637_v26, %v6639_v13  ;;  %9260 = vrot.lane.b32.xlu1 %v34771_v1, %s33854_s19  ;;  %v6646_v32 = vsel %vm6640_vm12, %v6635_v61, %v6637_v26  ;;  %32270 = vmatprep.mubr.msk.f32.mxu1 %vm33845_vm3, %v39419_v6 }
 0x19c   :  { %9258 = vrot.lane.b32.xlu0 %v33959_v2, %s33854_s19  ;;  %30874 = vmatprep.subr.msk.mxu0 %vm157_vm1, %v6646_v32 }
 0x19d   :  { %32269 = vmatpush3.msk.msra.mxu1 %vm157_vm1, %v6647_v46  ;;  %30875 = vmatpush1.msk.msra.mxu0 %vm157_vm1, %v6645_v4  ;;  %v6953_v42 = vpop.permute.xlu1 %6952 }
 0x19e   :  { %v6951_v41 = vpop.permute.xlu0 %6950  ;;  %30876 = vmatmul.mubr.msk.f32.vlgmr.msra.gmra.mrb[0].mxu0 %vm153_vm2, %v35148_v0  ;;  %32271 = vmatmul.mubr.msk.f32.vlgmr.msra.gmra.mrb[46].mxu1 %vm153_vm2, %v35148_v0 }
 0x19f   :  { %9262 = vrot.lane.b32.xlu1 %v33963_v3, %s33854_s19  ;;  %v6965_v49 = vsel %vm6640_vm12, %v6951_v41, %v6953_v42  ;;  %7120 = vmatprep.mubr.f32.mxu1 %v39419_v6 }
 0x1a0   :  { %9256 = vrot.lane.b32.xlu0 %v34788_v27, %s33854_s19  ;;  %30879 = vmatprep.subr.msk.mxu0 %vm157_vm1, %v6965_v49 }
 0x1a1   :  { %v6955_v58 = vpop.permute.xlu1 %6954  ;;  %7049 = vmatprep.mubr.f32.mxu0 %v39419_v6 }
 0x1a2   :  { %v6949_v59 = vpop.permute.xlu0 %6948  ;;  %v6966_v13 = vsel %vm6640_vm12, %v6953_v42, %v6955_v58 }
 0x1a3   :  { %v6964_v61 = vsel %vm6640_vm12, %v6949_v59, %v6951_v41  ;;  %9266 = vrot.lane.b32.xlu1 %v33976_v5, %s33854_s19 }
 0x1a4   :  { %9264 = vrot.lane.b32.xlu0 %v34799_v38, %s33854_s19  ;;  %30880 = vmatpush1.msk.msra.mxu0 %vm157_vm1, %v6964_v61 }
 0x1a5   :  { %v6959_v17 = vpop.permute.xlu1 %6958  ;;  %30881 = vmatmul.mubr.msk.f32.vlgmr.msra.gmra.mrb[2].mxu0 %vm153_vm2, %v35148_v0 }
 0x1a6   :  { %v6957_v11 = vpop.permute.xlu0 %6956  ;;  %7191 = vmatprep.mubr.f32.mxu0 %v39419_v6 }
 0x1a7   :  { %9270 = vrot.lane.b32.xlu1 %v34139_v19, %s33854_s19  ;;  %v6967_v20 = vsel %vm6640_vm12, %v6955_v58, %v6957_v11  ;;  %v6968_v42 = vsel %vm6640_vm12, %v6957_v11, %v6959_v17 }
 0x1a8   :  { %9268 = vrot.lane.b32.xlu0 %v34814_v9, %s33854_s19  ;;  %30882 = vmatprep.subr.msk.mxu1 %vm157_vm1, %v6967_v20 }
 0x1a9   :  { %30883 = vmatpush1.msk.msra.mxu1 %vm157_vm1, %v6966_v13  ;;  %v6963_v26 = vpop.permute.xlu1 %6962 }
 0x1aa   :  { %v6961_v46 = vpop.permute.xlu0 %6960  ;;  %32273 = vmatprep.subr.mxu1 %v39419_v6  ;;  %30884 = vmatmul.mubr.msk.f32.vlgmr.msra.gmra.mrb[6].mxu1 %vm153_vm2, %v35148_v0 }
 0x1ab   :  { %v6970_v32 = vsel %vm6640_vm12, %v6961_v46, %v6963_v26  ;;  %9584 = vrot.lane.b32.xlu1 %v34828_v7, %s33854_s19  ;;  %v6969_v4 = vsel %vm6640_vm12, %v6959_v17, %v6961_v46  ;;  %32275 = vmatprep.mubr.msk.f32.mxu1 %vm33845_vm3, %v39419_v6 }
 0x1ac   :  { %9582 = vrot.lane.b32.xlu0 %v33991_v8, %s33854_s19  ;;  %30885 = vmatprep.subr.msk.mxu0 %vm157_vm1, %v6969_v4 }
 0x1ad   :  { %32274 = vmatpush3.msk.msra.mxu1 %vm157_vm1, %v6970_v32  ;;  %30886 = vmatpush1.msk.msra.mxu0 %vm157_vm1, %v6968_v42  ;;  %v7287_v41 = vpop.permute.xlu1 %7286 }
 0x1ae   :  { %v7285_v49 = vpop.permute.xlu0 %7284  ;;  %30887 = vmatmul.mubr.msk.f32.vlgmr.msra.gmra.mrb[4].mxu0 %vm153_vm2, %v35148_v0  ;;  %32276 = vmatmul.mubr.msk.f32.vlgmr.msra.gmra.mrb[48].mxu1 %vm153_vm2, %v35148_v0  ;;  %v35247_v0 = vld [vmem:[%s39407_s1 + $0x58] sm:$0x3f] }
 0x1af   :  { %9586 = vrot.lane.b32.xlu1 %v34020_v12, %s33854_s19  ;;  %v7300_v58 = vsel %vm7298_vm13, %v7285_v49, %v7287_v41  ;;  %7458 = vmatprep.mubr.f32.mxu1 %v39419_v6 }
 0x1b0   :  { %9580 = vrot.lane.b32.xlu0 %v34850_v22, %s33854_s19  ;;  %30890 = vmatprep.subr.msk.mxu0 %vm157_vm1, %v7300_v58 }
 0x1b1   :  { %v7289_v59 = vpop.permute.xlu1 %7288  ;;  %7387 = vmatprep.mubr.f32.mxu0 %v39419_v6 }
 0x1b2   :  { %v7283_v61 = vpop.permute.xlu0 %7282  ;;  %v7301_v26 = vsel %vm7298_vm13, %v7287_v41, %v7289_v59 }
 0x1b3   :  { %v7299_v17 = vsel %vm7298_vm13, %v7283_v61, %v7285_v49  ;;  %9590 = vrot.lane.b32.xlu1 %v34033_v14, %s33854_s19 }
 0x1b4   :  { %9588 = vrot.lane.b32.xlu0 %v34867_v34, %s33854_s19  ;;  %30891 = vmatpush1.msk.msra.mxu0 %vm157_vm1, %v7299_v17 }
 0x1b5   :  { %v7293_v11 = vpop.permute.xlu1 %7292  ;;  %30892 = vmatmul.mubr.msk.f32.vlgmr.msra.gmra.mrb[6].mxu0 %vm153_vm2, %v35247_v0 }
 0x1b6   :  { %v7291_v20 = vpop.permute.xlu0 %7290  ;;  %7529 = vmatprep.mubr.f32.mxu0 %v39419_v6 }
 0x1b7   :  { %9594 = vrot.lane.b32.xlu1 %v34220_v39, %s33854_s19  ;;  %v7302_v13 = vsel %vm7298_vm13, %v7289_v59, %v7291_v20  ;;  %v7303_v41 = vsel %vm7298_vm13, %v7291_v20, %v7293_v11 }
 0x1b8   :  { %9592 = vrot.lane.b32.xlu0 %v34882_v10, %s33854_s19  ;;  %30893 = vmatprep.subr.msk.mxu1 %vm157_vm1, %v7302_v13 }
 0x1b9   :  { %30894 = vmatpush1.msk.msra.mxu1 %vm157_vm1, %v7301_v26  ;;  %v7297_v46 = vpop.permute.xlu1 %7296 }
 0x1ba   :  { %30895 = vmatmul.mubr.msk.f32.vlgmr.msra.gmra.mrb[2].mxu1 %vm153_vm2, %v35247_v0  ;;  %v7295_v32 = vpop.permute.xlu0 %7294  ;;  %32278 = vmatprep.subr.mxu1 %v39419_v6 }
 0x1bb   :  { %v7305_v4 = vsel %vm7298_vm13, %v7295_v32, %v7297_v46  ;;  %9918 = vrot.lane.b32.xlu1 %v34771_v1, %s33855_s27  ;;  %v7304_v42 = vsel %vm7298_vm13, %v7293_v11, %v7295_v32  ;;  %32280 = vmatprep.mubr.msk.f32.mxu1 %vm33845_vm3, %v39419_v6 }
 0x1bc   :  { %9916 = vrot.lane.b32.xlu0 %v33959_v2, %s33855_s27  ;;  %30896 = vmatprep.subr.msk.mxu0 %vm157_vm1, %v7304_v42 }
 0x1bd   :  { %32279 = vmatpush3.msk.msra.mxu1 %vm157_vm1, %v7305_v4  ;;  %30897 = vmatpush1.msk.msra.mxu0 %vm157_vm1, %v7303_v41  ;;  %v7611_v49 = vpop.permute.xlu1 %7610 }
 0x1be   :  { %32281 = vmatmul.mubr.msk.f32.vlgmr.msra.gmra.mrb[50].mxu1 %vm153_vm2, %v35247_v0  ;;  %v7609_v58 = vpop.permute.xlu0 %7608  ;;  %30898 = vmatmul.mubr.msk.f32.vlgmr.msra.gmra.mrb[0].mxu0 %vm153_vm2, %v35247_v0 }
 0x1bf   :  { %9920 = vrot.lane.b32.xlu1 %v33963_v3, %s33855_s27  ;;  %v7623_v59 = vsel %vm7298_vm13, %v7609_v58, %v7611_v49  ;;  %7778 = vmatprep.mubr.f32.mxu1 %v39419_v6 }
 0x1c0   :  { %9914 = vrot.lane.b32.xlu0 %v34788_v27, %s33855_s27  ;;  %30901 = vmatprep.subr.msk.mxu0 %vm157_vm1, %v7623_v59 }
 0x1c1   :  { %v7613_v61 = vpop.permute.xlu1 %7612  ;;  %7707 = vmatprep.mubr.f32.mxu0 %v39419_v6 }
 0x1c2   :  { %v7607_v17 = vpop.permute.xlu0 %7606  ;;  %v7624_v46 = vsel %vm7298_vm13, %v7611_v49, %v7613_v61 }
 0x1c3   :  { %v7622_v11 = vsel %vm7298_vm13, %v7607_v17, %v7609_v58  ;;  %9924 = vrot.lane.b32.xlu1 %v33976_v5, %s33855_s27 }
 0x1c4   :  { %9922 = vrot.lane.b32.xlu0 %v34799_v38, %s33855_s27  ;;  %30902 = vmatpush1.msk.msra.mxu0 %vm157_vm1, %v7622_v11 }
 0x1c5   :  { %v7617_v20 = vpop.permute.xlu1 %7616  ;;  %30903 = vmatmul.mubr.msk.f32.vlgmr.msra.gmra.mrb[2].mxu0 %vm153_vm2, %v35247_v0 }
 0x1c6   :  { %v7615_v13 = vpop.permute.xlu0 %7614  ;;  %7849 = vmatprep.mubr.f32.mxu0 %v39419_v6 }
 0x1c7   :  { %9928 = vrot.lane.b32.xlu1 %v34139_v19, %s33855_s27  ;;  %v7625_v26 = vsel %vm7298_vm13, %v7613_v61, %v7615_v13  ;;  %v7626_v49 = vsel %vm7298_vm13, %v7615_v13, %v7617_v20 }
 0x1c8   :  { %9926 = vrot.lane.b32.xlu0 %v34814_v9, %s33855_s27  ;;  %30904 = vmatprep.subr.msk.mxu1 %vm157_vm1, %v7625_v26 }
 0x1c9   :  { %30905 = vmatpush1.msk.msra.mxu1 %vm157_vm1, %v7624_v46  ;;  %v7621_v32 = vpop.permute.xlu1 %7620 }
 0x1ca   :  { %30906 = vmatmul.mubr.msk.f32.vlgmr.msra.gmra.mrb[6].mxu1 %vm153_vm2, %v35247_v0  ;;  %v7619_v4 = vpop.permute.xlu0 %7618  ;;  %32283 = vmatprep.subr.mxu1 %v39419_v6 }
 0x1cb   :  { %v7628_v42 = vsel %vm7298_vm13, %v7619_v4, %v7621_v32  ;;  %10242 = vrot.lane.b32.xlu1 %v34828_v7, %s33855_s27  ;;  %v7627_v41 = vsel %vm7298_vm13, %v7617_v20, %v7619_v4  ;;  %32285 = vmatprep.mubr.msk.f32.mxu1 %vm33845_vm3, %v39419_v6  ;;  %vm11904_vm13 = vcmask 236544  }
 0x1cc   :  { %10240 = vrot.lane.b32.xlu0 %v33991_v8, %s33855_s27  ;;  %30907 = vmatprep.subr.msk.mxu0 %vm157_vm1, %v7627_v41 }
 0x1cd   :  { %32284 = vmatpush3.msk.msra.mxu1 %vm157_vm1, %v7628_v42  ;;  %30908 = vmatpush1.msk.msra.mxu0 %vm157_vm1, %v7626_v49  ;;  %v7945_v58 = vpop.permute.xlu1 %7944 }
 0x1ce   :  { %32286 = vmatmul.mubr.msk.f32.vlgmr.msra.gmra.mrb[52].mxu1 %vm153_vm2, %v35247_v0  ;;  %v7943_v59 = vpop.permute.xlu0 %7942  ;;  %30909 = vmatmul.mubr.msk.f32.vlgmr.msra.gmra.mrb[4].mxu0 %vm153_vm2, %v35247_v0 }
 0x1cf   :  { %10244 = vrot.lane.b32.xlu1 %v34020_v12, %s33855_s27  ;;  %v7958_v61 = vsel %vm7956_vm14, %v7943_v59, %v7945_v58  ;;  %8116 = vmatprep.mubr.f32.mxu1 %v39419_v6 }
 0x1d0   :  { %10238 = vrot.lane.b32.xlu0 %v34850_v22, %s33855_s27  ;;  %30912 = vmatprep.subr.msk.mxu0 %vm157_vm1, %v7958_v61  ;;  %v35340_v22 = vld [vmem:[%s39407_s1 + $0x60] sm:$0x3f] }
 0x1d1   :  { %v7947_v17 = vpop.permute.xlu1 %7946  ;;  %8045 = vmatprep.mubr.f32.mxu0 %v39419_v6 }
 0x1d2   :  { %v7941_v11 = vpop.permute.xlu0 %7940 }
 0x1d3   :  { %v7957_v20 = vsel %vm7956_vm14, %v7941_v11, %v7943_v59  ;;  %10248 = vrot.lane.b32.xlu1 %v34033_v14, %s33855_s27 }
 0x1d4   :  { %10246 = vrot.lane.b32.xlu0 %v34867_v34, %s33855_s27  ;;  %30913 = vmatpush1.msk.msra.mxu0 %vm157_vm1, %v7957_v20  ;;  %v7959_v34 = vsel %vm7956_vm14, %v7945_v58, %v7947_v17 }
 0x1d5   :  { %v7951_v0 = vpop.permute.xlu1 %7950  ;;  %30914 = vmatmul.mubr.msk.f32.vlgmr.msra.gmra.mrb[6].mxu0 %vm153_vm2, %v35340_v22 }
 0x1d6   :  { %v7949_v13 = vpop.permute.xlu0 %7948  ;;  %8187 = vmatprep.mubr.f32.mxu0 %v39419_v6 }
 0x1d7   :  { %10252 = vrot.lane.b32.xlu1 %v34220_v39, %s33855_s27  ;;  %v7960_v26 = vsel %vm7956_vm14, %v7947_v17, %v7949_v13  ;;  %v7961_v41 = vsel %vm7956_vm14, %v7949_v13, %v7951_v0 }
 0x1d8   :  { %10250 = vrot.lane.b32.xlu0 %v34882_v10, %s33855_s27  ;;  %30915 = vmatprep.subr.msk.mxu1 %vm157_vm1, %v7960_v26  ;;  %v35362_v10 = vpop.f32.mrb[0].mxu1  ;;  %s33870_s27 = smov 97  }
 0x1d9   :  { %30916 = vmatpush1.msk.msra.mxu1 %vm157_vm1, %v7959_v34  ;;  %v7955_v46 = vpop.permute.xlu1 %7954  ;;  %v35368_v49 = vpop.f32.mrb[1].mxu1 }
 0x1da   :  { %30917 = vmatmul.mubr.msk.f32.vlgmr.msra.gmra.mrb[2].mxu1 %vm153_vm2, %v35340_v22  ;;  %v7953_v32 = vpop.permute.xlu0 %7952  ;;  %32288 = vmatprep.subr.mxu1 %v39419_v6  ;;  %v451_v58 = vpop.f32.mrb[4].mxu1 }
 0x1db   :  { %v7963_v4 = vsel %vm7956_vm14, %v7953_v32, %v7955_v46  ;;  %10576 = vrot.lane.b32.xlu1 %v34771_v1, %s33856_s13  ;;  %v7962_v42 = vsel %vm7956_vm14, %v7951_v0, %v7953_v32  ;;  %32290 = vmatprep.mubr.msk.f32.mxu1 %vm33845_vm3, %v39419_v6  ;;  %v32172_v61 = vpop.f32.mrb[5].mxu1 }
 0x1dc   :  { %10574 = vrot.lane.b32.xlu0 %v33959_v2, %s33856_s13  ;;  %30918 = vmatprep.subr.msk.mxu0 %vm157_vm1, %v7962_v42  ;;  %v775_v11 = vpop.f32.mrb[8].mxu1 }
 0x1dd   :  { %32289 = vmatpush3.msk.msra.mxu1 %vm157_vm1, %v7963_v4  ;;  %30919 = vmatpush1.msk.msra.mxu0 %vm157_vm1, %v7961_v41  ;;  %v8269_v1 = vpop.permute.xlu1 %8268  ;;  %v32177_v20 = vpop.f32.mrb[9].mxu1 }
 0x1de   :  { %32291 = vmatmul.mubr.msk.f32.vlgmr.msra.gmra.mrb[54].mxu1 %vm153_vm2, %v35340_v22  ;;  %v8267_v59 = vpop.permute.xlu0 %8266  ;;  %30920 = vmatmul.mubr.msk.f32.vlgmr.msra.gmra.mrb[0].mxu0 %vm153_vm2, %v35340_v22  ;;  %v1075_v13 = vpop.f32.mrb[10].mxu1 }
 0x1df   :  { %10578 = vrot.lane.b32.xlu1 %v33963_v3, %s33856_s13  ;;  %v8281_v17 = vsel %vm7956_vm14, %v8267_v59, %v8269_v1  ;;  %8436 = vmatprep.mubr.f32.mxu1 %v39419_v6  ;;  %v1076_v34 = vadd.f32 %v1075_v13, %v451_v58  ;;  %v32182_v46 = vpop.f32.mrb[11].mxu1 }
 0x1e0   :  { %10572 = vrot.lane.b32.xlu0 %v34788_v27, %s33856_s13  ;;  %30923 = vmatprep.subr.msk.mxu0 %vm157_vm1, %v8281_v17  ;;  %v1372_v4 = vpop.f32.mrb[12].mxu1 }
 0x1e1   :  { %v8271_v0 = vpop.permute.xlu1 %8270  ;;  %8365 = vmatprep.mubr.f32.mxu0 %v39419_v6  ;;  %v1373_v27 = vadd.f32 %v1372_v4, %v775_v11  ;;  %v32187_v42 = vpop.f32.mrb[13].mxu1 }
 0x1e2   :  { %v8265_v26 = vpop.permute.xlu0 %8264  ;;  %v1693_v61 = vpop.f32.mrb[14].mxu1  ;;  %v8282_v13 = vsel %vm7956_vm14, %v8269_v1, %v8271_v0 }
 0x1e3   :  { %v8280_v32 = vsel %vm7956_vm14, %v8265_v26, %v8267_v59  ;;  %10582 = vrot.lane.b32.xlu1 %v33976_v5, %s33856_s13  ;;  %v2020_v59 = vadd.f32 %v1693_v61, %v1076_v34  ;;  %v32192_v17 = vpop.f32.mrb[15].mxu1 }
 0x1e4   :  { %10580 = vrot.lane.b32.xlu0 %v34799_v38, %s33856_s13  ;;  %30924 = vmatpush1.msk.msra.mxu0 %vm157_vm1, %v8280_v32  ;;  %v2010_v38 = vpop.f32.mrb[16].mxu1 }
 0x1e5   :  { %v8275_v41 = vpop.permute.xlu1 %8274  ;;  %30925 = vmatmul.mubr.msk.f32.vlgmr.msra.gmra.mrb[2].mxu0 %vm153_vm2, %v35340_v22  ;;  %v2027_v11 = vadd.f32 %v2010_v38, %v1373_v27  ;;  %v32197_v26 = vpop.f32.mrb[17].mxu1 }
 0x1e6   :  { %v8273_v58 = vpop.permute.xlu0 %8272  ;;  %8507 = vmatprep.mubr.f32.mxu0 %v39419_v6  ;;  %v2345_v34 = vpop.f32.mrb[18].mxu1 }
 0x1e7   :  { %10586 = vrot.lane.b32.xlu1 %v34139_v19, %s33856_s13  ;;  %v8283_v20 = vsel %vm7956_vm14, %v8271_v0, %v8273_v58  ;;  %v2672_v4 = vadd.f32 %v2345_v34, %v2020_v59  ;;  %v32202_v42 = vpop.f32.mrb[19].mxu1  ;;  %v8284_v27 = vsel %vm7956_vm14, %v8273_v58, %v8275_v41 }
 0x1e8   :  { %10584 = vrot.lane.b32.xlu0 %v34814_v9, %s33856_s13  ;;  %30926 = vmatprep.subr.msk.mxu1 %vm157_vm1, %v8283_v20  ;;  %v2662_v0 = vpop.f32.mrb[20].mxu1 }
 0x1e9   :  { %30927 = vmatpush1.msk.msra.mxu1 %vm157_vm1, %v8282_v13  ;;  %v8279_v46 = vpop.permute.xlu1 %8278  ;;  %v2679_v61 = vadd.f32 %v2662_v0, %v2027_v11  ;;  %v32207_v59 = vpop.f32.mrb[21].mxu1  ;;  %v35427_v11 = vld [vmem:[%s39406_s0 + $0x20] sm:$0x77]  ;;  %v35439_v0 = vld [vmem:[%s39406_s0 + $0x30] sm:$0x77] }
 0x1ea   :  { %30928 = vmatmul.mubr.msk.f32.vlgmr.msra.gmra.mrb[6].mxu1 %vm153_vm2, %v35340_v22  ;;  %v8277_v32 = vpop.permute.xlu0 %8276  ;;  %32293 = vmatprep.subr.mxu1 %v39419_v6  ;;  %v2997_v17 = vpop.f32.mrb[22].mxu1 }
 0x1eb   :  { %v8286_v1 = vsel %vm7956_vm14, %v8277_v32, %v8279_v46  ;;  %10900 = vrot.lane.b32.xlu1 %v34828_v7, %s33856_s13  ;;  %v8285_v9 = vsel %vm7956_vm14, %v8275_v41, %v8277_v32  ;;  %32295 = vmatprep.mubr.msk.f32.mxu1 %vm33845_vm3, %v39419_v6  ;;  %v3324_v41 = vadd.f32 %v2997_v17, %v2672_v4  ;;  %v32212_v58 = vpop.f32.mrb[23].mxu1 }
 0x1ec   :  { %10898 = vrot.lane.b32.xlu0 %v33991_v8, %s33856_s13  ;;  %30929 = vmatprep.subr.msk.mxu0 %vm157_vm1, %v8285_v9  ;;  %v3314_v13 = vpop.f32.mrb[24].mxu1 }
 0x1ed   :  { %32294 = vmatpush3.msk.msra.mxu1 %vm157_vm1, %v8286_v1  ;;  %30930 = vmatpush1.msk.msra.mxu0 %vm157_vm1, %v8284_v27  ;;  %v8603_v7 = vpop.permute.xlu1 %8602  ;;  %v32217_v26 = vpop.f32.mrb[25].mxu1  ;;  %v35447_v27 = vld [vmem:[%s39407_s1 + $0x68] sm:$0x3f] }
 0x1ee   :  { %32296 = vmatmul.mubr.msk.f32.vlgmr.msra.gmra.mrb[56].mxu1 %vm153_vm2, %v35340_v22  ;;  %v8601_v20 = vpop.permute.xlu0 %8600  ;;  %30931 = vmatmul.mubr.msk.f32.vlgmr.msra.gmra.mrb[4].mxu0 %vm153_vm2, %v35340_v22  ;;  %v3331_v22 = vadd.f32 %v3314_v13, %v2679_v61  ;;  %v3653_v34 = vpop.f32.mrb[26].mxu1 }
 0x1ef   :  { %10902 = vrot.lane.b32.xlu1 %v34020_v12, %s33856_s13  ;;  %v8616_v38 = vsel %vm8614_vm15, %v8601_v20, %v8603_v7  ;;  %8774 = vmatprep.mubr.f32.mxu1 %v39419_v6  ;;  %v3984_v4 = vadd.f32 %v3653_v34, %v3324_v41  ;;  %v32222_v42 = vpop.f32.mrb[27].mxu1 }
 0x1f0   :  { %10896 = vrot.lane.b32.xlu0 %v35427_v11, %s33856_s13  ;;  %30934 = vmatprep.subr.msk.mxu0 %vm157_vm1, %v8616_v38  ;;  %v3974_v9 = vpop.f32.mrb[28].mxu1 }
 0x1f1   :  { %v8605_v46 = vpop.permute.xlu1 %8604  ;;  %8703 = vmatprep.mubr.f32.mxu0 %v39419_v6  ;;  %v3991_v61 = vadd.f32 %v3974_v9, %v3331_v22  ;;  %v32227_v59 = vpop.f32.mrb[29].mxu1  ;;  %v35461_v22 = vld [vmem:[%s39406_s0 + $0x38] sm:$0x77] }
 0x1f2   :  { %v8599_v32 = vpop.permute.xlu0 %8598  ;;  %v8617_v26 = vsel %vm8614_vm15, %v8603_v7, %v8605_v46 }
 0x1f3   :  { %v8615_v1 = vsel %vm8614_vm15, %v8599_v32, %v8601_v20  ;;  %10906 = vrot.lane.b32.xlu1 %v34033_v14, %s33856_s13  ;;  %v4312_v20 = vpop.f32.mrb[30].mxu1 }
 0x1f4   :  { %10904 = vrot.lane.b32.xlu0 %v35439_v0, %s33856_s13  ;;  %30935 = vmatpush1.msk.msra.mxu0 %vm157_vm1, %v8615_v1  ;;  %v35452_v58 = vadd.f32 %v4312_v20, %v3984_v4  ;;  %v32232_v38 = vpop.f32.mrb[31].mxu1 }
 0x1f5   :  { %v8609_v17 = vpop.permute.xlu1 %8608  ;;  %30936 = vmatmul.mubr.msk.f32.vlgmr.msra.gmra.mrb[6].mxu0 %vm153_vm2, %v35447_v27 }
 0x1f6   :  { %v8607_v41 = vpop.permute.xlu0 %8606  ;;  %8845 = vmatprep.mubr.f32.mxu0 %v39419_v6 }
 0x1f7   :  { %10910 = vrot.lane.b32.xlu1 %v34220_v39, %s33856_s13  ;;  %v8618_v13 = vsel %vm8614_vm15, %v8605_v46, %v8607_v41  ;;  %v35474_v46 = vld [vmem:[%s39406_s0 + $0x8] sm:$0x77]  ;;  %v8619_v42 = vsel %vm8614_vm15, %v8607_v41, %v8609_v17 }
 0x1f8   :  { %10908 = vrot.lane.b32.xlu0 %v35461_v22, %s33856_s13  ;;  %30937 = vmatprep.subr.msk.mxu1 %vm157_vm1, %v8618_v13  ;;  %s33863_s13 = smov 58  }
 0x1f9   :  { %30938 = vmatpush1.msk.msra.mxu1 %vm157_vm1, %v8617_v26  ;;  %v8613_v34 = vpop.permute.xlu1 %8612 }
 0x1fa   :  { %30939 = vmatmul.mubr.msk.f32.vlgmr.msra.gmra.mrb[2].mxu1 %vm153_vm2, %v35447_v27  ;;  %v8611_v32 = vpop.permute.xlu0 %8610  ;;  %32298 = vmatprep.subr.mxu1 %v39419_v6 }
 0x1fb   :  { %v8621_v7 = vsel %vm8614_vm15, %v8611_v32, %v8613_v34  ;;  %11234 = vrot.lane.b32.xlu1 %v35474_v46, %s33857_s18  ;;  %v8620_v4 = vsel %vm8614_vm15, %v8609_v17, %v8611_v32  ;;  %32300 = vmatprep.mubr.msk.f32.mxu1 %vm33845_vm3, %v39419_v6  ;;  %v35498_v17 = vld [vmem:[%s39406_s0] sm:$0x77]  ;;  %v35512_v32 = vld [vmem:[%s39406_s0 + $0x10] sm:$0x77] }
 0x1fc   :  { %11232 = vrot.lane.b32.xlu0 %v33959_v2, %s33857_s18  ;;  %30940 = vmatprep.subr.msk.mxu0 %vm157_vm1, %v8620_v4 }
 0x1fd   :  { %32299 = vmatpush3.msk.msra.mxu1 %vm157_vm1, %v8621_v7  ;;  %30941 = vmatpush1.msk.msra.mxu0 %vm157_vm1, %v8619_v42  ;;  %v8927_v1 = vpop.permute.xlu1 %8926 }
 0x1fe   :  { %32301 = vmatmul.mubr.msk.f32.vlgmr.msra.gmra.mrb[58].mxu1 %vm153_vm2, %v35447_v27  ;;  %v8925_v9 = vpop.permute.xlu0 %8924  ;;  %30942 = vmatmul.mubr.msk.f32.vlgmr.msra.gmra.mrb[0].mxu0 %vm153_vm2, %v35447_v27 }
 0x1ff   :  { %11236 = vrot.lane.b32.xlu1 %v33963_v3, %s33857_s18  ;;  %v8939_v59 = vsel %vm8614_vm15, %v8925_v9, %v8927_v1  ;;  %9094 = vmatprep.mubr.f32.mxu1 %v39419_v6 }
 0x200   :  { %11230 = vrot.lane.b32.xlu0 %v35498_v17, %s33857_s18  ;;  %30945 = vmatprep.subr.msk.mxu0 %vm157_vm1, %v8939_v59 }
 0x201   :  { %v8929_v20 = vpop.permute.xlu1 %8928  ;;  %9023 = vmatprep.mubr.f32.mxu0 %v39419_v6  ;;  %v4632_v41 = vpop.f32.mrb[32].mxu1 }
 0x202   :  { %v8923_v38 = vpop.permute.xlu0 %8922  ;;  %v35504_v13 = vadd.f32 %v4632_v41, %v3991_v61  ;;  %v32237_v26 = vpop.f32.mrb[33].mxu1  ;;  %v8940_v42 = vsel %vm8614_vm15, %v8927_v1, %v8929_v20 }
 0x203   :  { %v8938_v34 = vsel %vm8614_vm15, %v8923_v38, %v8925_v9  ;;  %11240 = vrot.lane.b32.xlu1 %v33976_v5, %s33857_s18  ;;  %v35527_v9 = vld [vmem:[%s39406_s0 + $0x18] sm:$0x77] }
 0x204   :  { %11238 = vrot.lane.b32.xlu0 %v35512_v32, %s33857_s18  ;;  %30946 = vmatpush1.msk.msra.mxu0 %vm157_vm1, %v8938_v34 }
 0x205   :  { %v8933_v7 = vpop.permute.xlu1 %8932  ;;  %30947 = vmatmul.mubr.msk.f32.vlgmr.msra.gmra.mrb[2].mxu0 %vm153_vm2, %v35447_v27 }
 0x206   :  { %v8931_v61 = vpop.permute.xlu0 %8930  ;;  %9165 = vmatprep.mubr.f32.mxu0 %v39419_v6 }
 0x207   :  { %11244 = vrot.lane.b32.xlu1 %v34139_v19, %s33857_s18  ;;  %v8941_v4 = vsel %vm8614_vm15, %v8929_v20, %v8931_v61  ;;  %v35540_v20 = vld [vmem:[%s39406_s0 + $0x28] sm:$0x77]  ;;  %v8942_v26 = vsel %vm8614_vm15, %v8931_v61, %v8933_v7 }
 0x208   :  { %11242 = vrot.lane.b32.xlu0 %v35527_v9, %s33857_s18  ;;  %30948 = vmatprep.subr.msk.mxu1 %vm157_vm1, %v8941_v4 }
 0x209   :  { %30949 = vmatpush1.msk.msra.mxu1 %vm157_vm1, %v8940_v42  ;;  %v8937_v59 = vpop.permute.xlu1 %8936 }
 0x20a   :  { %30950 = vmatmul.mubr.msk.f32.vlgmr.msra.gmra.mrb[6].mxu1 %vm153_vm2, %v35447_v27  ;;  %v8935_v41 = vpop.permute.xlu0 %8934  ;;  %32303 = vmatprep.subr.mxu1 %v39419_v6 }
 0x20b   :  { %v8944_v1 = vsel %vm8614_vm15, %v8935_v41, %v8937_v59  ;;  %11558 = vrot.lane.b32.xlu1 %v35540_v20, %s33857_s18  ;;  %v8943_v38 = vsel %vm8614_vm15, %v8933_v7, %v8935_v41  ;;  %32305 = vmatprep.mubr.msk.f32.mxu1 %vm33845_vm3, %v39419_v6  ;;  %vm12562_vm15 = vcmask 228352  }
 0x20c   :  { %11556 = vrot.lane.b32.xlu0 %v33991_v8, %s33857_s18  ;;  %30951 = vmatprep.subr.msk.mxu0 %vm157_vm1, %v8943_v38  ;;  %v35577_v38 = vld [vmem:[%s39407_s1 + $0x70] sm:$0x3f] }
 0x20d   :  { %32304 = vmatpush3.msk.msra.mxu1 %vm157_vm1, %v8944_v1  ;;  %30952 = vmatpush1.msk.msra.mxu0 %vm157_vm1, %v8942_v26  ;;  %v9261_v34 = vpop.permute.xlu1 %9260 }
 0x20e   :  { %32306 = vmatmul.mubr.msk.f32.vlgmr.msra.gmra.mrb[60].mxu1 %vm153_vm2, %v35447_v27  ;;  %v9259_v4 = vpop.permute.xlu0 %9258  ;;  %30953 = vmatmul.mubr.msk.f32.vlgmr.msra.gmra.mrb[4].mxu0 %vm153_vm2, %v35447_v27 }
 0x20f   :  { %11560 = vrot.lane.b32.xlu1 %v34020_v12, %s33857_s18  ;;  %v9274_v7 = vsel %vm9272_vm8, %v9259_v4, %v9261_v34  ;;  %9432 = vmatprep.mubr.f32.mxu1 %v39419_v6 }
 0x210   :  { %11554 = vrot.lane.b32.xlu0 %v35427_v11, %s33857_s18  ;;  %30956 = vmatprep.subr.msk.mxu0 %vm157_vm1, %v9274_v7 }
 0x211   :  { %v9263_v61 = vpop.permute.xlu1 %9262  ;;  %9361 = vmatprep.mubr.f32.mxu0 %v39419_v6  ;;  %v4970_v42 = vpop.f32.mrb[34].mxu1 }
 0x212   :  { %v9257_v59 = vpop.permute.xlu0 %9256  ;;  %v35566_v41 = vadd.f32 %v4970_v42, %v35452_v58  ;;  %v32242_v27 = vpop.f32.mrb[35].mxu1  ;;  %v9275_v7 = vsel %vm9272_vm8, %v9261_v34, %v9263_v61 }
 0x213   :  { %v9273_v1 = vsel %vm9272_vm8, %v9257_v59, %v9259_v4  ;;  %11564 = vrot.lane.b32.xlu1 %v34033_v14, %s33857_s18 }
 0x214   :  { %11562 = vrot.lane.b32.xlu0 %v35439_v0, %s33857_s18  ;;  %30957 = vmatpush1.msk.msra.mxu0 %vm157_vm1, %v9273_v1 }
 0x215   :  { %v9267_v26 = vpop.permute.xlu1 %9266  ;;  %30958 = vmatmul.mubr.msk.f32.vlgmr.msra.gmra.mrb[6].mxu0 %vm153_vm2, %v35577_v38 }
 0x216   :  { %v9265_v58 = vpop.permute.xlu0 %9264  ;;  %9503 = vmatprep.mubr.f32.mxu0 %v39419_v6 }
 0x217   :  { %11568 = vrot.lane.b32.xlu1 %v34220_v39, %s33857_s18  ;;  %v9276_v4 = vsel %vm9272_vm8, %v9263_v61, %v9265_v58  ;;  %v9277_v61 = vsel %vm9272_vm8, %v9265_v58, %v9267_v26 }
 0x218   :  { %11566 = vrot.lane.b32.xlu0 %v35461_v22, %s33857_s18  ;;  %30959 = vmatprep.subr.msk.mxu1 %vm157_vm1, %v9276_v4  ;;  %s33864_s18 = smov 56  }
 0x219   :  { %30960 = vmatpush1.msk.msra.mxu1 %vm157_vm1, %v9275_v7  ;;  %v9271_v42 = vpop.permute.xlu1 %9270 }
 0x21a   :  { %30961 = vmatmul.mubr.msk.f32.vlgmr.msra.gmra.mrb[2].mxu1 %vm153_vm2, %v35577_v38  ;;  %v9269_v59 = vpop.permute.xlu0 %9268  ;;  %32308 = vmatprep.subr.mxu1 %v39419_v6 }
 0x21b   :  { %v9279_v27 = vsel %vm9272_vm8, %v9269_v59, %v9271_v42  ;;  %11892 = vrot.lane.b32.xlu1 %v35474_v46, %s33858_s26  ;;  %v9278_v34 = vsel %vm9272_vm8, %v9267_v26, %v9269_v59  ;;  %32310 = vmatprep.mubr.msk.f32.mxu1 %vm33845_vm3, %v39419_v6 }
 0x21c   :  { %11890 = vrot.lane.b32.xlu0 %v33959_v2, %s33858_s26  ;;  %30962 = vmatprep.subr.msk.mxu0 %vm157_vm1, %v9278_v34 }
 0x21d   :  { %32309 = vmatpush3.msk.msra.mxu1 %vm157_vm1, %v9279_v27  ;;  %30963 = vmatpush1.msk.msra.mxu0 %vm157_vm1, %v9277_v61  ;;  %v9585_v1 = vpop.permute.xlu1 %9584 }
 0x21e   :  { %32311 = vmatmul.mubr.msk.f32.vlgmr.msra.gmra.mrb[62].mxu1 %vm153_vm2, %v35577_v38  ;;  %v9583_v4 = vpop.permute.xlu0 %9582  ;;  %30964 = vmatmul.mubr.msk.f32.vlgmr.msra.gmra.mrb[0].mxu0 %vm153_vm2, %v35577_v38 }
 0x21f   :  { %11894 = vrot.lane.b32.xlu1 %v33963_v3, %s33858_s26  ;;  %v9597_v26 = vsel %vm9272_vm8, %v9583_v4, %v9585_v1  ;;  %9752 = vmatprep.mubr.f32.mxu1 %v39419_v6 }
 0x220   :  { %11888 = vrot.lane.b32.xlu0 %v35498_v17, %s33858_s26  ;;  %30967 = vmatprep.subr.msk.mxu0 %vm157_vm1, %v9597_v26 }
 0x221   :  { %v9587_v58 = vpop.permute.xlu1 %9586  ;;  %9681 = vmatprep.mubr.f32.mxu0 %v39419_v6  ;;  %v5290_v7 = vpop.f32.mrb[36].mxu1 }
 0x222   :  { %v9581_v42 = vpop.permute.xlu0 %9580  ;;  %v35618_v59 = vadd.f32 %v5290_v7, %v35504_v13  ;;  %v32247_v27 = vpop.f32.mrb[37].mxu1 }
 0x223   :  { %v9596_v34 = vsel %vm9272_vm8, %v9581_v42, %v9583_v4  ;;  %11898 = vrot.lane.b32.xlu1 %v33976_v5, %s33858_s26  ;;  %v9598_v4 = vsel %vm9272_vm8, %v9585_v1, %v9587_v58 }
 0x224   :  { %11896 = vrot.lane.b32.xlu0 %v35512_v32, %s33858_s26  ;;  %30968 = vmatpush1.msk.msra.mxu0 %vm157_vm1, %v9596_v34 }
 0x225   :  { %v9591_v61 = vpop.permute.xlu1 %9590  ;;  %30969 = vmatmul.mubr.msk.f32.vlgmr.msra.gmra.mrb[2].mxu0 %vm153_vm2, %v35577_v38 }
 0x226   :  { %v9589_v26 = vpop.permute.xlu0 %9588  ;;  %9823 = vmatprep.mubr.f32.mxu0 %v39419_v6 }
 0x227   :  { %11902 = vrot.lane.b32.xlu1 %v34139_v19, %s33858_s26  ;;  %v9599_v13 = vsel %vm9272_vm8, %v9587_v58, %v9589_v26  ;;  %v9600_v58 = vsel %vm9272_vm8, %v9589_v26, %v9591_v61 }
 0x228   :  { %11900 = vrot.lane.b32.xlu0 %v35527_v9, %s33858_s26  ;;  %30970 = vmatprep.subr.msk.mxu1 %vm157_vm1, %v9599_v13 }
 0x229   :  { %30971 = vmatpush1.msk.msra.mxu1 %vm157_vm1, %v9598_v4  ;;  %v9595_v7 = vpop.permute.xlu1 %9594 }
 0x22a   :  { %30972 = vmatmul.mubr.msk.f32.vlgmr.msra.gmra.mrb[6].mxu1 %vm153_vm2, %v35577_v38  ;;  %v9593_v42 = vpop.permute.xlu0 %9592  ;;  %32313 = vmatprep.subr.mxu1 %v39419_v6 }
 0x22b   :  { %v9602_v27 = vsel %vm9272_vm8, %v9593_v42, %v9595_v7  ;;  %12216 = vrot.lane.b32.xlu1 %v35540_v20, %s33858_s26  ;;  %v9601_v1 = vsel %vm9272_vm8, %v9591_v61, %v9593_v42  ;;  %32315 = vmatprep.mubr.msk.f32.mxu1 %vm33845_vm3, %v39419_v6 }
 0x22c   :  { %12214 = vrot.lane.b32.xlu0 %v33991_v8, %s33858_s26  ;;  %30973 = vmatprep.subr.msk.mxu0 %vm157_vm1, %v9601_v1  ;;  %v35676_v1 = vld [vmem:[%s39407_s1 + $0x78] sm:$0x3f] }
 0x22d   :  { %32314 = vmatpush3.msk.msra.mxu1 %vm157_vm1, %v9602_v27  ;;  %30974 = vmatpush1.msk.msra.mxu0 %vm157_vm1, %v9600_v58  ;;  %v9919_v34 = vpop.permute.xlu1 %9918 }
 0x22e   :  { %32316 = vmatmul.mubr.msk.f32.vlgmr.msra.gmra.mrb[64].mxu1 %vm153_vm2, %v35577_v38  ;;  %v9917_v13 = vpop.permute.xlu0 %9916  ;;  %30975 = vmatmul.mubr.msk.f32.vlgmr.msra.gmra.mrb[4].mxu0 %vm153_vm2, %v35577_v38 }
 0x22f   :  { %12218 = vrot.lane.b32.xlu1 %v34020_v12, %s33858_s26  ;;  %v9932_v61 = vsel %vm9930_vm9, %v9917_v13, %v9919_v34  ;;  %10090 = vmatprep.mubr.f32.mxu1 %v39419_v6 }
 0x230   :  { %12212 = vrot.lane.b32.xlu0 %v35427_v11, %s33858_s26  ;;  %30978 = vmatprep.subr.msk.mxu0 %vm157_vm1, %v9932_v61 }
 0x231   :  { %v9921_v26 = vpop.permute.xlu1 %9920  ;;  %10019 = vmatprep.mubr.f32.mxu0 %v39419_v6  ;;  %v5628_v4 = vpop.f32.mrb[38].mxu1 }
 0x232   :  { %v9915_v7 = vpop.permute.xlu0 %9914  ;;  %v35665_v42 = vadd.f32 %v5628_v4, %v35566_v41  ;;  %v32252_v38 = vpop.f32.mrb[39].mxu1  ;;  %v9933_v61 = vsel %vm9930_vm9, %v9919_v34, %v9921_v26 }
 0x233   :  { %v9931_v27 = vsel %vm9930_vm9, %v9915_v7, %v9917_v13  ;;  %12222 = vrot.lane.b32.xlu1 %v34033_v14, %s33858_s26 }
 0x234   :  { %12220 = vrot.lane.b32.xlu0 %v35439_v0, %s33858_s26  ;;  %30979 = vmatpush1.msk.msra.mxu0 %vm157_vm1, %v9931_v27 }
 0x235   :  { %v9925_v58 = vpop.permute.xlu1 %9924  ;;  %30980 = vmatmul.mubr.msk.f32.vlgmr.msra.gmra.mrb[6].mxu0 %vm153_vm2, %v35676_v1 }
 0x236   :  { %v9923_v41 = vpop.permute.xlu0 %9922  ;;  %10161 = vmatprep.mubr.f32.mxu0 %v39419_v6 }
 0x237   :  { %12226 = vrot.lane.b32.xlu1 %v34220_v39, %s33858_s26  ;;  %v9934_v13 = vsel %vm9930_vm9, %v9921_v26, %v9923_v41  ;;  %v9935_v26 = vsel %vm9930_vm9, %v9923_v41, %v9925_v58 }
 0x238   :  { %12224 = vrot.lane.b32.xlu0 %v35461_v22, %s33858_s26  ;;  %30981 = vmatprep.subr.msk.mxu1 %vm157_vm1, %v9934_v13 }
 0x239   :  { %30982 = vmatpush1.msk.msra.mxu1 %vm157_vm1, %v9933_v61  ;;  %v9929_v4 = vpop.permute.xlu1 %9928 }
 0x23a   :  { %30983 = vmatmul.mubr.msk.f32.vlgmr.msra.gmra.mrb[2].mxu1 %vm153_vm2, %v35676_v1  ;;  %v9927_v7 = vpop.permute.xlu0 %9926  ;;  %32318 = vmatprep.subr.mxu1 %v39419_v6 }
 0x23b   :  { %v9937_v38 = vsel %vm9930_vm9, %v9927_v7, %v9929_v4  ;;  %12550 = vrot.lane.b32.xlu1 %v35474_v46, %s33859_s28  ;;  %v9936_v34 = vsel %vm9930_vm9, %v9925_v58, %v9927_v7  ;;  %32320 = vmatprep.mubr.msk.f32.mxu1 %vm33845_vm3, %v39419_v6 }
 0x23c   :  { %12548 = vrot.lane.b32.xlu0 %v33959_v2, %s33859_s28  ;;  %30984 = vmatprep.subr.msk.mxu0 %vm157_vm1, %v9936_v34 }
 0x23d   :  { %32319 = vmatpush3.msk.msra.mxu1 %vm157_vm1, %v9937_v38  ;;  %30985 = vmatpush1.msk.msra.mxu0 %vm157_vm1, %v9935_v26  ;;  %v10243_v27 = vpop.permute.xlu1 %10242 }
 0x23e   :  { %32321 = vmatmul.mubr.msk.f32.vlgmr.msra.gmra.mrb[66].mxu1 %vm153_vm2, %v35676_v1  ;;  %v10241_v13 = vpop.permute.xlu0 %10240  ;;  %30986 = vmatmul.mubr.msk.f32.vlgmr.msra.gmra.mrb[0].mxu0 %vm153_vm2, %v35676_v1 }
 0x23f   :  { %12552 = vrot.lane.b32.xlu1 %v33963_v3, %s33859_s28  ;;  %v10255_v58 = vsel %vm9930_vm9, %v10241_v13, %v10243_v27  ;;  %10410 = vmatprep.mubr.f32.mxu1 %v39419_v6 }
 0x240   :  { %12546 = vrot.lane.b32.xlu0 %v35498_v17, %s33859_s28  ;;  %30989 = vmatprep.subr.msk.mxu0 %vm157_vm1, %v10255_v58 }
 0x241   :  { %v10245_v2 = vpop.permute.xlu1 %10244  ;;  %10339 = vmatprep.mubr.f32.mxu0 %v39419_v6  ;;  %v5948_v41 = vpop.f32.mrb[40].mxu1 }
 0x242   :  { %v10239_v61 = vpop.permute.xlu0 %10238  ;;  %v35717_v4 = vadd.f32 %v5948_v41, %v35618_v59  ;;  %v32257_v7 = vpop.f32.mrb[41].mxu1  ;;  %v10256_v26 = vsel %vm9930_vm9, %v10243_v27, %v10245_v2 }
 0x243   :  { %v10254_v3 = vsel %vm9930_vm9, %v10239_v61, %v10241_v13  ;;  %12556 = vrot.lane.b32.xlu1 %v33976_v5, %s33859_s28 }
 0x244   :  { %12554 = vrot.lane.b32.xlu0 %v35512_v32, %s33859_s28  ;;  %30990 = vmatpush1.msk.msra.mxu0 %vm157_vm1, %v10254_v3 }
 0x245   :  { %v10249_v38 = vpop.permute.xlu1 %10248  ;;  %30991 = vmatmul.mubr.msk.f32.vlgmr.msra.gmra.mrb[2].mxu0 %vm153_vm2, %v35676_v1 }
 0x246   :  { %v10247_v34 = vpop.permute.xlu0 %10246  ;;  %10481 = vmatprep.mubr.f32.mxu0 %v39419_v6 }
 0x247   :  { %12560 = vrot.lane.b32.xlu1 %v34139_v19, %s33859_s28  ;;  %v10257_v59 = vsel %vm9930_vm9, %v10245_v2, %v10247_v34  ;;  %v10258_v58 = vsel %vm9930_vm9, %v10247_v34, %v10249_v38 }
 0x248   :  { %12558 = vrot.lane.b32.xlu0 %v35527_v9, %s33859_s28  ;;  %30992 = vmatprep.subr.msk.mxu1 %vm157_vm1, %v10257_v59 }
 0x249   :  { %30993 = vmatpush1.msk.msra.mxu1 %vm157_vm1, %v10256_v26  ;;  %v10253_v5 = vpop.permute.xlu1 %10252 }
 0x24a   :  { %30994 = vmatmul.mubr.msk.f32.vlgmr.msra.gmra.mrb[6].mxu1 %vm153_vm2, %v35676_v1  ;;  %v10251_v13 = vpop.permute.xlu0 %10250  ;;  %32323 = vmatprep.subr.mxu1 %v39419_v6 }
 0x24b   :  { %v10260_v19 = vsel %vm9930_vm9, %v10251_v13, %v10253_v5  ;;  %12874 = vrot.lane.b32.xlu1 %v35540_v20, %s33859_s28  ;;  %v10259_v27 = vsel %vm9930_vm9, %v10249_v38, %v10251_v13  ;;  %32325 = vmatprep.mubr.msk.f32.mxu1 %vm33845_vm3, %v39419_v6  ;;  %vm39464_vm9 = vcmask 1043456  }
 0x24c   :  { %12872 = vrot.lane.b32.xlu0 %v33991_v8, %s33859_s28  ;;  %30995 = vmatprep.subr.msk.mxu0 %vm157_vm1, %v10259_v27 }
 0x24d   :  { %32324 = vmatpush3.msk.msra.mxu1 %vm157_vm1, %v10260_v19  ;;  %30996 = vmatpush1.msk.msra.mxu0 %vm157_vm1, %v10258_v58  ;;  %v10577_v2 = vpop.permute.xlu1 %10576 }
 0x24e   :  { %32326 = vmatmul.mubr.msk.f32.vlgmr.msra.gmra.mrb[68].mxu1 %vm153_vm2, %v35676_v1  ;;  %v10575_v41 = vpop.permute.xlu0 %10574  ;;  %30997 = vmatmul.mubr.msk.f32.vlgmr.msra.gmra.mrb[4].mxu0 %vm153_vm2, %v35676_v1 }
 0x24f   :  { %12876 = vrot.lane.b32.xlu1 %v34020_v12, %s33859_s28  ;;  %v10590_v8 = vsel %vm10588_vm10, %v10575_v41, %v10577_v2  ;;  %10748 = vmatprep.mubr.f32.mxu1 %v39419_v6 }
 0x250   :  { %12870 = vrot.lane.b32.xlu0 %v35427_v11, %s33859_s28  ;;  %31000 = vmatprep.subr.msk.mxu0 %vm157_vm1, %v10590_v8  ;;  %v66_v11 = vld [vmem:[%s39407_s1 + $0x80] sm:$0x3f] }
 0x251   :  { %v10579_v61 = vpop.permute.xlu1 %10578  ;;  %10677 = vmatprep.mubr.f32.mxu0 %v39419_v6  ;;  %v6286_v7 = vpop.f32.mrb[42].mxu1 }
 0x252   :  { %v10573_v3 = vpop.permute.xlu0 %10572  ;;  %v35764_v38 = vadd.f32 %v6286_v7, %v35665_v42  ;;  %v32262_v1 = vpop.f32.mrb[43].mxu1  ;;  %v10591_v59 = vsel %vm10588_vm10, %v10577_v2, %v10579_v61 }
 0x253   :  { %v10589_v12 = vsel %vm10588_vm10, %v10573_v3, %v10575_v41  ;;  %12880 = vrot.lane.b32.xlu1 %v34033_v14, %s33859_s28 }
 0x254   :  { %12878 = vrot.lane.b32.xlu0 %v35439_v0, %s33859_s28  ;;  %31001 = vmatpush1.msk.msra.mxu0 %vm157_vm1, %v10589_v12 }
 0x255   :  { %v10583_v34 = vpop.permute.xlu1 %10582  ;;  %31002 = vmatmul.mubr.msk.f32.vlgmr.msra.gmra.mrb[6].mxu0 %vm153_vm2, %v66_v11 }
 0x256   :  { %v10581_v42 = vpop.permute.xlu0 %10580  ;;  %10819 = vmatprep.mubr.f32.mxu0 %v39419_v6 }
 0x257   :  { %12884 = vrot.lane.b32.xlu1 %v34220_v39, %s33859_s28  ;;  %v10592_v14 = vsel %vm10588_vm10, %v10579_v61, %v10581_v42  ;;  %v10593_v13 = vsel %vm10588_vm10, %v10581_v42, %v10583_v34 }
 0x258   :  { %12882 = vrot.lane.b32.xlu0 %v35461_v22, %s33859_s28  ;;  %31003 = vmatprep.subr.msk.mxu1 %vm157_vm1, %v10592_v14  ;;  %s33874_s28 = smov 72  }
 0x259   :  { %31004 = vmatpush1.msk.msra.mxu1 %vm157_vm1, %v10591_v59  ;;  %v10587_v0 = vpop.permute.xlu1 %10586 }
 0x25a   :  { %31005 = vmatmul.mubr.msk.f32.vlgmr.msra.gmra.mrb[2].mxu1 %vm153_vm2, %v66_v11  ;;  %v10585_v26 = vpop.permute.xlu0 %10584  ;;  %32328 = vmatprep.subr.mxu1 %v39419_v6 }
 0x25b   :  { %v10595_v5 = vsel %vm10588_vm10, %v10585_v26, %v10587_v0  ;;  %v10594_v39 = vsel %vm10588_vm10, %v10583_v34, %v10585_v26  ;;  %32330 = vmatprep.mubr.msk.f32.mxu1 %vm33845_vm3, %v39419_v6 }
 0x25c   :  { %31006 = vmatprep.subr.msk.mxu0 %vm157_vm1, %v10594_v39  ;;  %32329 = vmatpush3.msk.msra.mxu1 %vm157_vm1, %v10595_v5 }
 0x25d   :  { %31007 = vmatpush1.msk.msra.mxu0 %vm157_vm1, %v10593_v13  ;;  %v10901_v22 = vpop.permute.xlu1 %10900 }
 0x25e   :  { %32331 = vmatmul.mubr.msk.f32.vlgmr.msra.gmra.mrb[70].mxu1 %vm153_vm2, %v66_v11  ;;  %v10899_v19 = vpop.permute.xlu0 %10898  ;;  %31008 = vmatmul.mubr.msk.f32.vlgmr.msra.gmra.mrb[0].mxu0 %vm153_vm2, %v66_v11 }
 0x25f   :  { %v10913_v27 = vsel %vm10588_vm10, %v10899_v19, %v10901_v22  ;;  %11068 = vmatprep.mubr.f32.mxu1 %v39419_v6  ;;  %10997 = vmatprep.mubr.f32.mxu0 %v39419_v6 }
 0x260   :  { %31011 = vmatprep.subr.msk.mxu0 %vm157_vm1, %v10913_v27 }
 0x261   :  { %v10903_v58 = vpop.permute.xlu1 %10902  ;;  %v6606_v2 = vpop.f32.mrb[44].mxu1 }
 0x262   :  { %v10897_v41 = vpop.permute.xlu0 %10896  ;;  %v35802_v8 = vadd.f32 %v6606_v2, %v35717_v4  ;;  %v32267_v61 = vpop.f32.mrb[45].mxu1  ;;  %v10914_v34 = vsel %vm10588_vm10, %v10901_v22, %v10903_v58 }
 0x263   :  { %v10912_v7 = vsel %vm10588_vm10, %v10897_v41, %v10899_v19 }
 0x264   :  { %31012 = vmatpush1.msk.msra.mxu0 %vm157_vm1, %v10912_v7 }
 0x265   :  { %v10907_v3 = vpop.permute.xlu1 %10906  ;;  %31013 = vmatmul.mubr.msk.f32.vlgmr.msra.gmra.mrb[2].mxu0 %vm153_vm2, %v66_v11 }
 0x266   :  { %v10905_v1 = vpop.permute.xlu0 %10904  ;;  %11139 = vmatprep.mubr.f32.mxu0 %v39419_v6 }
 0x267   :  { %v10915_v12 = vsel %vm10588_vm10, %v10903_v58, %v10905_v1  ;;  %v10916_v0 = vsel %vm10588_vm10, %v10905_v1, %v10907_v3 }
 0x268   :  { %31014 = vmatprep.subr.msk.mxu1 %vm157_vm1, %v10915_v12 }
 0x269   :  { %31015 = vmatpush1.msk.msra.mxu1 %vm157_vm1, %v10914_v34  ;;  %v10911_v4 = vpop.permute.xlu1 %10910 }
 0x26a   :  { %31016 = vmatmul.mubr.msk.f32.vlgmr.msra.gmra.mrb[6].mxu1 %vm153_vm2, %v66_v11  ;;  %v10909_v42 = vpop.permute.xlu0 %10908  ;;  %32333 = vmatprep.subr.mxu1 %v39419_v6 }
 0x26b   :  { %v10918_v14 = vsel %vm10588_vm10, %v10909_v42, %v10911_v4  ;;  %v10917_v59 = vsel %vm10588_vm10, %v10907_v3, %v10909_v42  ;;  %32335 = vmatprep.mubr.msk.f32.mxu1 %vm33845_vm3, %v39419_v6  ;;  %vm20816_vm10 = vcmask 474112  }
 0x26c   :  { %31017 = vmatprep.subr.msk.mxu0 %vm157_vm1, %v10917_v59  ;;  %32334 = vmatpush3.msk.msra.mxu1 %vm157_vm1, %v10918_v14 }
 0x26d   :  { %31018 = vmatpush1.msk.msra.mxu0 %vm157_vm1, %v10916_v0  ;;  %v11235_v26 = vpop.permute.xlu1 %11234 }
 0x26e   :  { %32336 = vmatmul.mubr.msk.f32.vlgmr.msra.gmra.mrb[72].mxu1 %vm153_vm2, %v66_v11  ;;  %v11233_v5 = vpop.permute.xlu0 %11232  ;;  %31019 = vmatmul.mubr.msk.f32.vlgmr.msra.gmra.mrb[4].mxu0 %vm153_vm2, %v66_v11  ;;  %v67_v11 = vld [vmem:[%s39407_s1 + $0x88] sm:$0x3f] }
 0x26f   :  { %v11248_v39 = vsel %vm11246_vm11, %v11233_v5, %v11235_v26  ;;  %11406 = vmatprep.mubr.f32.mxu1 %v39419_v6  ;;  %11335 = vmatprep.mubr.f32.mxu0 %v39419_v6 }
 0x270   :  { %31022 = vmatprep.subr.msk.mxu0 %vm157_vm1, %v11248_v39 }
 0x271   :  { %v11237_v13 = vpop.permute.xlu1 %11236  ;;  %v6944_v22 = vpop.f32.mrb[46].mxu1 }
 0x272   :  { %v11231_v19 = vpop.permute.xlu0 %11230  ;;  %v35829_v27 = vadd.f32 %v6944_v22, %v35764_v38  ;;  %v32272_v58 = vpop.f32.mrb[47].mxu1  ;;  %v11249_v38 = vsel %vm11246_vm11, %v11235_v26, %v11237_v13 }
 0x273   :  { %v11247_v2 = vsel %vm11246_vm11, %v11231_v19, %v11233_v5 }
 0x274   :  { %31023 = vmatpush1.msk.msra.mxu0 %vm157_vm1, %v11247_v2 }
 0x275   :  { %v11241_v41 = vpop.permute.xlu1 %11240  ;;  %31024 = vmatmul.mubr.msk.f32.vlgmr.msra.gmra.mrb[6].mxu0 %vm153_vm2, %v67_v11 }
 0x276   :  { %v11239_v61 = vpop.permute.xlu0 %11238  ;;  %11477 = vmatprep.mubr.f32.mxu0 %v39419_v6 }
 0x277   :  { %v11250_v7 = vsel %vm11246_vm11, %v11237_v13, %v11239_v61  ;;  %v11251_v4 = vsel %vm11246_vm11, %v11239_v61, %v11241_v41 }
 0x278   :  { %31025 = vmatprep.subr.msk.mxu1 %vm157_vm1, %v11250_v7 }
 0x279   :  { %31026 = vmatpush1.msk.msra.mxu1 %vm157_vm1, %v11249_v38  ;;  %v11245_v3 = vpop.permute.xlu1 %11244 }
 0x27a   :  { %31027 = vmatmul.mubr.msk.f32.vlgmr.msra.gmra.mrb[2].mxu1 %vm153_vm2, %v67_v11  ;;  %v11243_v1 = vpop.permute.xlu0 %11242  ;;  %32338 = vmatprep.subr.mxu1 %v39419_v6 }
 0x27b   :  { %v11253_v12 = vsel %vm11246_vm11, %v11243_v1, %v11245_v3  ;;  %v11252_v34 = vsel %vm11246_vm11, %v11241_v41, %v11243_v1  ;;  %32340 = vmatprep.mubr.msk.f32.mxu1 %vm33845_vm3, %v39419_v6 }
 0x27c   :  { %31028 = vmatprep.subr.msk.mxu0 %vm157_vm1, %v11252_v34  ;;  %32339 = vmatpush3.msk.msra.mxu1 %vm157_vm1, %v11253_v12 }
 0x27d   :  { %31029 = vmatpush1.msk.msra.mxu0 %vm157_vm1, %v11251_v4  ;;  %v11559_v42 = vpop.permute.xlu1 %11558 }
 0x27e   :  { %32341 = vmatmul.mubr.msk.f32.vlgmr.msra.gmra.mrb[74].mxu1 %vm153_vm2, %v67_v11  ;;  %v11557_v14 = vpop.permute.xlu0 %11556  ;;  %31030 = vmatmul.mubr.msk.f32.vlgmr.msra.gmra.mrb[0].mxu0 %vm153_vm2, %v67_v11 }
 0x27f   :  { %v11571_v59 = vsel %vm11246_vm11, %v11557_v14, %v11559_v42  ;;  %11726 = vmatprep.mubr.f32.mxu1 %v39419_v6  ;;  %11655 = vmatprep.mubr.f32.mxu0 %v39419_v6 }
 0x280   :  { %31033 = vmatprep.subr.msk.mxu0 %vm157_vm1, %v11571_v59 }
 0x281   :  { %v11561_v0 = vpop.permute.xlu1 %11560  ;;  %v7264_v26 = vpop.f32.mrb[48].mxu1 }
 0x282   :  { %v11555_v5 = vpop.permute.xlu0 %11554  ;;  %v35859_v39 = vadd.f32 %v7264_v26, %v35802_v8  ;;  %v32277_v13 = vpop.f32.mrb[49].mxu1  ;;  %v11572_v41 = vsel %vm11246_vm11, %v11559_v42, %v11561_v0 }
 0x283   :  { %v11570_v22 = vsel %vm11246_vm11, %v11555_v5, %v11557_v14 }
 0x284   :  { %31034 = vmatpush1.msk.msra.mxu0 %vm157_vm1, %v11570_v22 }
 0x285   :  { %v11565_v19 = vpop.permute.xlu1 %11564  ;;  %31035 = vmatmul.mubr.msk.f32.vlgmr.msra.gmra.mrb[2].mxu0 %vm153_vm2, %v67_v11 }
 0x286   :  { %v11563_v58 = vpop.permute.xlu0 %11562  ;;  %11797 = vmatprep.mubr.f32.mxu0 %v39419_v6 }
 0x287   :  { %v11573_v2 = vsel %vm11246_vm11, %v11561_v0, %v11563_v58  ;;  %v11574_v3 = vsel %vm11246_vm11, %v11563_v58, %v11565_v19 }
 0x288   :  { %31036 = vmatprep.subr.msk.mxu1 %vm157_vm1, %v11573_v2 }
 0x289   :  { %31037 = vmatpush1.msk.msra.mxu1 %vm157_vm1, %v11572_v41  ;;  %v11569_v8 = vpop.permute.xlu1 %11568 }
 0x28a   :  { %31038 = vmatmul.mubr.msk.f32.vlgmr.msra.gmra.mrb[6].mxu1 %vm153_vm2, %v67_v11  ;;  %v11567_v61 = vpop.permute.xlu0 %11566  ;;  %32343 = vmatprep.subr.mxu1 %v39419_v6 }
 0x28b   :  { %v11576_v7 = vsel %vm11246_vm11, %v11567_v61, %v11569_v8  ;;  %v11575_v38 = vsel %vm11246_vm11, %v11565_v19, %v11567_v61  ;;  %32345 = vmatprep.mubr.msk.f32.mxu1 %vm33845_vm3, %v39419_v6  ;;  %vm21355_vm11 = vcmask 457728  }
 0x28c   :  { %31039 = vmatprep.subr.msk.mxu0 %vm157_vm1, %v11575_v38  ;;  %32344 = vmatpush3.msk.msra.mxu1 %vm157_vm1, %v11576_v7 }
 0x28d   :  { %31040 = vmatpush1.msk.msra.mxu0 %vm157_vm1, %v11574_v3  ;;  %v11893_v1 = vpop.permute.xlu1 %11892 }
 0x28e   :  { %32346 = vmatmul.mubr.msk.f32.vlgmr.msra.gmra.mrb[76].mxu1 %vm153_vm2, %v67_v11  ;;  %v11891_v12 = vpop.permute.xlu0 %11890  ;;  %31041 = vmatmul.mubr.msk.f32.vlgmr.msra.gmra.mrb[4].mxu0 %vm153_vm2, %v67_v11  ;;  %v68_v11 = vld [vmem:[%s39407_s1 + $0x90] sm:$0x3f] }
 0x28f   :  { %v11906_v34 = vsel %vm11904_vm13, %v11891_v12, %v11893_v1  ;;  %12064 = vmatprep.mubr.f32.mxu1 %v39419_v6  ;;  %11993 = vmatprep.mubr.f32.mxu0 %v39419_v6 }
 0x290   :  { %31044 = vmatprep.subr.msk.mxu0 %vm157_vm1, %v11906_v34 }
 0x291   :  { %v7602_v4 = vpop.f32.mrb[50].mxu1  ;;  %v11895_v42 = vpop.permute.xlu1 %11894 }
 0x292   :  { %v35886_v14 = vadd.f32 %v7602_v4, %v35829_v27  ;;  %v11889_v59 = vpop.permute.xlu0 %11888  ;;  %v32282_v0 = vpop.f32.mrb[51].mxu1  ;;  %v11907_v27 = vsel %vm11904_vm13, %v11893_v1, %v11895_v42 }
 0x293   :  { %v11905_v26 = vsel %vm11904_vm13, %v11889_v59, %v11891_v12 }
 0x294   :  { %31045 = vmatpush1.msk.msra.mxu0 %vm157_vm1, %v11905_v26 }
 0x295   :  { %v11899_v5 = vpop.permute.xlu1 %11898  ;;  %31046 = vmatmul.mubr.msk.f32.vlgmr.msra.gmra.mrb[6].mxu0 %vm153_vm2, %v68_v11 }
 0x296   :  { %v11897_v13 = vpop.permute.xlu0 %11896  ;;  %12135 = vmatprep.mubr.f32.mxu0 %v39419_v6 }
 0x297   :  { %v11908_v22 = vsel %vm11904_vm13, %v11895_v42, %v11897_v13  ;;  %v11909_v8 = vsel %vm11904_vm13, %v11897_v13, %v11899_v5 }
 0x298   :  { %31047 = vmatprep.subr.msk.mxu1 %vm157_vm1, %v11908_v22 }
 0x299   :  { %31048 = vmatpush1.msk.msra.mxu1 %vm157_vm1, %v11907_v27  ;;  %v11903_v19 = vpop.permute.xlu1 %11902 }
 0x29a   :  { %31049 = vmatmul.mubr.msk.f32.vlgmr.msra.gmra.mrb[2].mxu1 %vm153_vm2, %v68_v11  ;;  %v11901_v58 = vpop.permute.xlu0 %11900  ;;  %32348 = vmatprep.subr.mxu1 %v39419_v6 }
 0x29b   :  { %v11911_v2 = vsel %vm11904_vm13, %v11901_v58, %v11903_v19  ;;  %v11910_v41 = vsel %vm11904_vm13, %v11899_v5, %v11901_v58  ;;  %32350 = vmatprep.mubr.msk.f32.mxu1 %vm33845_vm3, %v39419_v6 }
 0x29c   :  { %31050 = vmatprep.subr.msk.mxu0 %vm157_vm1, %v11910_v41  ;;  %32349 = vmatpush3.msk.msra.mxu1 %vm157_vm1, %v11911_v2 }
 0x29d   :  { %31051 = vmatpush1.msk.msra.mxu0 %vm157_vm1, %v11909_v8  ;;  %v12217_v61 = vpop.permute.xlu1 %12216 }
 0x29e   :  { %32351 = vmatmul.mubr.msk.f32.vlgmr.msra.gmra.mrb[78].mxu1 %vm153_vm2, %v68_v11  ;;  %v12215_v7 = vpop.permute.xlu0 %12214  ;;  %31052 = vmatmul.mubr.msk.f32.vlgmr.msra.gmra.mrb[0].mxu0 %vm153_vm2, %v68_v11 }
 0x29f   :  { %v12229_v38 = vsel %vm11904_vm13, %v12215_v7, %v12217_v61  ;;  %12384 = vmatprep.mubr.f32.mxu1 %v39419_v6  ;;  %12313 = vmatprep.mubr.f32.mxu0 %v39419_v6 }
 0x2a0   :  { %31055 = vmatprep.subr.msk.mxu0 %vm157_vm1, %v12229_v38 }
 0x2a1   :  { %v7922_v3 = vpop.f32.mrb[52].mxu1  ;;  %v12219_v1 = vpop.permute.xlu1 %12218 }
 0x2a2   :  { %v35916_v12 = vadd.f32 %v7922_v3, %v35859_v39  ;;  %v12213_v34 = vpop.permute.xlu0 %12212  ;;  %v32287_v4 = vpop.f32.mrb[53].mxu1  ;;  %v12230_v5 = vsel %vm11904_vm13, %v12217_v61, %v12219_v1 }
 0x2a3   :  { %v12228_v42 = vsel %vm11904_vm13, %v12213_v34, %v12215_v7 }
 0x2a4   :  { %31056 = vmatpush1.msk.msra.mxu0 %vm157_vm1, %v12228_v42 }
 0x2a5   :  { %v12223_v59 = vpop.permute.xlu1 %12222  ;;  %31057 = vmatmul.mubr.msk.f32.vlgmr.msra.gmra.mrb[2].mxu0 %vm153_vm2, %v68_v11 }
 0x2a6   :  { %v12221_v0 = vpop.permute.xlu0 %12220  ;;  %12455 = vmatprep.mubr.f32.mxu0 %v39419_v6 }
 0x2a7   :  { %v12231_v26 = vsel %vm11904_vm13, %v12219_v1, %v12221_v0  ;;  %v12232_v19 = vsel %vm11904_vm13, %v12221_v0, %v12223_v59 }
 0x2a8   :  { %31058 = vmatprep.subr.msk.mxu1 %vm157_vm1, %v12231_v26 }
 0x2a9   :  { %31059 = vmatpush1.msk.msra.mxu1 %vm157_vm1, %v12230_v5  ;;  %v12227_v39 = vpop.permute.xlu1 %12226 }
 0x2aa   :  { %31060 = vmatmul.mubr.msk.f32.vlgmr.msra.gmra.mrb[6].mxu1 %vm153_vm2, %v68_v11  ;;  %v12225_v13 = vpop.permute.xlu0 %12224  ;;  %32353 = vmatprep.subr.mxu1 %v39419_v6 }
 0x2ab   :  { %v12234_v22 = vsel %vm11904_vm13, %v12225_v13, %v12227_v39  ;;  %v12233_v27 = vsel %vm11904_vm13, %v12223_v59, %v12225_v13  ;;  %32355 = vmatprep.mubr.msk.f32.mxu1 %vm33845_vm3, %v39419_v6  ;;  %vm29964_vm13 = vcmask 1047559  }
 0x2ac   :  { %31061 = vmatprep.subr.msk.mxu0 %vm157_vm1, %v12233_v27  ;;  %32354 = vmatpush3.msk.msra.mxu1 %vm157_vm1, %v12234_v22 }
 0x2ad   :  { %31062 = vmatpush1.msk.msra.mxu0 %vm157_vm1, %v12232_v19  ;;  %v12551_v58 = vpop.permute.xlu1 %12550 }
 0x2ae   :  { %32356 = vmatmul.mubr.msk.f32.vlgmr.msra.gmra.mrb[80].mxu1 %vm153_vm2, %v68_v11  ;;  %v12549_v2 = vpop.permute.xlu0 %12548  ;;  %31063 = vmatmul.mubr.msk.f32.vlgmr.msra.gmra.mrb[4].mxu0 %vm153_vm2, %v68_v11  ;;  %v35950_v11 = vld [vmem:[%s39407_s1 + $0x98] sm:$0x3f] }
 0x2af   :  { %v12564_v41 = vsel %vm12562_vm15, %v12549_v2, %v12551_v58  ;;  %12722 = vmatprep.mubr.f32.mxu1 %v39419_v6  ;;  %12651 = vmatprep.mubr.f32.mxu0 %v39419_v6 }
 0x2b0   :  { %31066 = vmatprep.subr.msk.mxu0 %vm157_vm1, %v12564_v41 }
 0x2b1   :  { %v8260_v8 = vpop.f32.mrb[54].mxu1  ;;  %v12553_v61 = vpop.permute.xlu1 %12552 }
 0x2b2   :  { %v35943_v7 = vadd.f32 %v8260_v8, %v35886_v14  ;;  %v12547_v38 = vpop.permute.xlu0 %12546  ;;  %v32292_v3 = vpop.f32.mrb[55].mxu1  ;;  %v12565_v42 = vsel %vm12562_vm15, %v12551_v58, %v12553_v61 }
 0x2b3   :  { %v12563_v1 = vsel %vm12562_vm15, %v12547_v38, %v12549_v2  ;;  %v13206_v38 = vrot.slane %v35512_v32, 4 }
 0x2b4   :  { %31067 = vmatpush1.msk.msra.mxu0 %vm157_vm1, %v12563_v1  ;;  %v13204_v1 = vrot.slane %v35498_v17, 4 }
 0x2b5   :  { %v12557_v34 = vpop.permute.xlu1 %12556  ;;  %31068 = vmatmul.mubr.msk.f32.vlgmr.msra.gmra.mrb[6].mxu0 %vm153_vm2, %v35950_v11 }
 0x2b6   :  { %v12555_v4 = vpop.permute.xlu0 %12554  ;;  %12793 = vmatprep.mubr.f32.mxu0 %v39419_v6 }
 0x2b7   :  { %v12566_v14 = vsel %vm12562_vm15, %v12553_v61, %v12555_v4  ;;  %v12567_v39 = vsel %vm12562_vm15, %v12555_v4, %v12557_v34  ;;  %v13205_v61 = vrot.slane %v35474_v46, 4  ;;  %v13207_v46 = vrot.slane %v35527_v9, 4 }
 0x2b8   :  { %31069 = vmatprep.subr.msk.mxu1 %vm157_vm1, %v12566_v14 }
 0x2b9   :  { %31070 = vmatpush1.msk.msra.mxu1 %vm157_vm1, %v12565_v42  ;;  %v12561_v59 = vpop.permute.xlu1 %12560  ;;  %v13209_v17 = vsel %vm39464_vm9, %v13204_v1, %v13205_v61  ;;  %v13211_v9 = vsel %vm39464_vm9, %v13206_v38, %v13207_v46  ;;  %v13836_v1 = vrot.slane %v34125_v15, 4 }
 0x2ba   :  { %31071 = vmatmul.mubr.msk.f32.vlgmr.msra.gmra.mrb[2].mxu1 %vm153_vm2, %v35950_v11  ;;  %v12559_v0 = vpop.permute.xlu0 %12558  ;;  %32358 = vmatprep.subr.mxu1 %v39419_v6 }
 0x2bb   :  { %v12569_v26 = vsel %vm12562_vm15, %v12559_v0, %v12561_v59  ;;  %v12568_v5 = vsel %vm12562_vm15, %v12557_v34, %v12559_v0  ;;  %32360 = vmatprep.mubr.msk.f32.mxu1 %vm33845_vm3, %v39419_v6 }
 0x2bc   :  { %31072 = vmatprep.subr.msk.mxu0 %vm157_vm1, %v12568_v5  ;;  %32359 = vmatpush3.msk.msra.mxu1 %vm157_vm1, %v12569_v26  ;;  %v33812_v26 = vld [vmem:[%s39406_s0 + $0x20] sm:$0x77] }
 0x2bd   :  { %31073 = vmatpush1.msk.msra.mxu0 %vm157_vm1, %v12567_v39  ;;  %v12875_v13 = vpop.permute.xlu1 %12874  ;;  %v13515_v5 = vrot.slane %v33812_v26, 4  ;;  %v13516_v39 = vrot.slane %v35540_v20, 4  ;;  %v13214_v20 = vcombine.high %v13211_v9, %v13211_v9 }
 0x2be   :  { %32361 = vmatmul.mubr.msk.f32.vlgmr.msra.gmra.mrb[82].mxu1 %vm153_vm2, %v35950_v11  ;;  %v12873_v22 = vpop.permute.xlu0 %12872  ;;  %31074 = vmatmul.mubr.msk.f32.vlgmr.msra.gmra.mrb[0].mxu0 %vm153_vm2, %v35950_v11 }
 0x2bf   :  { %v12887_v27 = vsel %vm12562_vm15, %v12873_v22, %v12875_v13  ;;  %12971 = vmatprep.mubr.f32.mxu0 %v39419_v6  ;;  %13042 = vmatprep.mubr.f32.mxu1 %v39419_v6 }
 0x2c0   :  { %31077 = vmatprep.subr.msk.mxu0 %vm157_vm1, %v12887_v27  ;;  %v13212_v27 = vcombine.high %v13209_v17, %v13209_v17 }
 0x2c1   :  { %v8580_v19 = vpop.f32.mrb[56].mxu1  ;;  %v12877_v58 = vpop.permute.xlu1 %12876 }
 0x2c2   :  { %v35979_v2 = vadd.f32 %v8580_v19, %v35916_v12  ;;  %v12871_v41 = vpop.permute.xlu0 %12870  ;;  %v32297_v8 = vpop.f32.mrb[57].mxu1  ;;  %v13210_v12 = vsel %vm39464_vm9, %v13205_v61, %v13206_v38  ;;  %v12888_v14 = vsel %vm12562_vm15, %v12875_v13, %v12877_v58  ;;  %v33814_v61 = vld [vmem:[%s39406_s0 + $0x38] sm:$0x77] }
 0x2c3   :  { %v12886_v3 = vsel %vm12562_vm15, %v12871_v41, %v12873_v22  ;;  %v13213_v59 = vcombine.high %v13210_v12, %v13210_v12  ;;  %v13519_v8 = vsel %vm39464_vm9, %v13515_v5, %v13516_v39  ;;  %v13518_v38 = vrot.slane %v33814_v61, 4 }
 0x2c4   :  { %31078 = vmatpush1.msk.msra.mxu0 %vm157_vm1, %v12886_v3  ;;  %v70_v3 = vld [vmem:[%s39407_s1 + $0xa0] sm:$0x3f]  ;;  %v14150_v5 = vrot.slane %v34192_v33, 4  ;;  %v14474_v61 = vrot.slane %v34240_v44, 4 }
 0x2c5   :  { %v12881_v34 = vpop.permute.xlu1 %12880  ;;  %31079 = vmatmul.mubr.msk.f32.vlgmr.msra.gmra.mrb[2].mxu0 %vm153_vm2, %v35950_v11 }
 0x2c6   :  { %v12879_v4 = vpop.permute.xlu0 %12878  ;;  %13113 = vmatprep.mubr.f32.mxu0 %v39419_v6 }
 0x2c7   :  { %v12889_v32 = vsel %vm12562_vm15, %v12877_v58, %v12879_v4  ;;  %v12890_v19 = vsel %vm12562_vm15, %v12879_v4, %v12881_v34  ;;  %v33813_v58 = vld [vmem:[%s39406_s0 + $0x30] sm:$0x77]  ;;  %v13838_v4 = vrot.slane %v34154_v24, 4  ;;  %s33868_s0 = smov 50  }
 0x2c8   :  { %31080 = vmatprep.subr.msk.mxu1 %vm157_vm1, %v12889_v32  ;;  %v13517_v41 = vrot.slane %v33813_v58, 4 }
 0x2c9   :  { %31081 = vmatpush1.msk.msra.mxu1 %vm157_vm1, %v12888_v14  ;;  %v12885_v42 = vpop.permute.xlu1 %12884  ;;  %v13522_v14 = vcombine.high %v13519_v8, %v13519_v8 }
 0x2ca   :  { %31082 = vmatmul.mubr.msk.f32.vlgmr.msra.gmra.mrb[6].mxu1 %vm153_vm2, %v35950_v11  ;;  %v12883_v0 = vpop.permute.xlu0 %12882  ;;  %32363 = vmatprep.subr.mxu1 %v39419_v6  ;;  %v13521_v15 = vsel %vm39464_vm9, %v13517_v41, %v13518_v38 }
 0x2cb   :  { %v12892_v13 = vsel %vm12562_vm15, %v12883_v0, %v12885_v42  ;;  %v12891_v22 = vsel %vm12562_vm15, %v12881_v34, %v12883_v0  ;;  %32365 = vmatprep.mubr.msk.f32.mxu1 %vm33845_vm3, %v39419_v6  ;;  %v13837_v34 = vrot.slane %v34133_v18, 4  ;;  %v13524_v0 = vcombine.high %v13521_v15, %v13521_v15 }
 0x2cc   :  { %31083 = vmatprep.subr.msk.mxu0 %vm157_vm1, %v12891_v22  ;;  %32364 = vmatpush3.msk.msra.mxu1 %vm157_vm1, %v12892_v13  ;;  %v14151_v22 = vrot.slane %v34203_v35, 4  ;;  %vm29967_vm15 = vcmask 197632  }
 0x2cd   :  { %31084 = vmatpush1.msk.msra.mxu0 %vm157_vm1, %v12890_v19  ;;  %31091 = vmatprep.subr.msk.mxu1 %vm157_vm1, %v13213_v59  ;;  %v13839_v59 = vrot.slane %v34170_v28, 4  ;;  %v13842_v26 = vsel %vm39464_vm9, %v13837_v34, %v13838_v4 }
 0x2ce   :  { %31085 = vmatmul.mubr.msk.f32.vlgmr.msra.gmra.mrb[4].mxu0 %vm153_vm2, %v35950_v11  ;;  %32366 = vmatmul.mubr.msk.f32.vlgmr.msra.gmra.mrb[84].mxu1 %vm153_vm2, %v35950_v11  ;;  %v13520_v11 = vsel %vm39464_vm9, %v13516_v39, %v13517_v41  ;;  %v13843_v39 = vsel %vm146_vm0, %v13842_v26, %v34154_v24  ;;  %v14155_v58 = vsel %vm39464_vm9, %v14150_v5, %v14151_v22  ;;  %v14788_v26 = vrot.slane %v34326_v57, 4 }
 0x2cf   :  { %31088 = vmatprep.subr.msk.mxu0 %vm157_vm1, %v13212_v27  ;;  %13296 = vmatprep.mubr.f32.mxu0 %v39419_v6  ;;  %v13844_v13 = vsel %vm39464_vm9, %v13838_v4, %v13839_v59  ;;  %v13847_v24 = vcombine.high %v13843_v39, %v13843_v39  ;;  %v14152_v27 = vrot.slane %v34223_v40, 4 }
 0x2d0   :  { %31089 = vmatpush1.msk.msra.mxu0 %vm157_vm1, %v13209_v17  ;;  %31092 = vmatpush1.msk.msra.mxu1 %vm157_vm1, %v13210_v12  ;;  %v13523_v17 = vcombine.high %v13520_v11, %v13520_v11 }
 0x2d1   :  { %v8918_v32 = vpop.f32.mrb[58].mxu1  ;;  %13367 = vmatprep.mubr.f32.mxu1 %v39419_v6  ;;  %31094 = vmatprep.subr.msk.mxu0 %vm157_vm1, %v13214_v20  ;;  %v71_v20 = vld [vmem:[%s39407_s1 + $0xa8] sm:$0x3f] }
 0x2d2   :  { %v36038_v42 = vadd.f32 %v8918_v32, %v35943_v7  ;;  %31090 = vmatmul.mubr.msk.f32.vlgmr.msra.gmra.mrb[6].mxu0 %vm153_vm2, %v70_v3  ;;  %31093 = vmatmul.mubr.msk.f32.vlgmr.msra.gmra.mrb[2].mxu1 %vm153_vm2, %v70_v3  ;;  %v32302_v12 = vpop.f32.mrb[59].mxu1  ;;  %v13840_v7 = vsel %vm39464_vm9, %v13836_v1, %v13837_v34  ;;  %v14157_v1 = vsel %vm39464_vm9, %v14151_v22, %v14152_v27  ;;  %v14475_v34 = vrot.slane %v34283_v50, 4 }
 0x2d3   :  { %32368 = vmatprep.subr.mxu1 %v39419_v6  ;;  %31095 = vmatpush1.msk.msra.mxu0 %vm157_vm1, %v13211_v9  ;;  %v14149_v9 = vrot.slane %v34180_v30, 4  ;;  %v13845_v30 = vsel %vm146_vm0, %v13844_v13, %v34170_v28  ;;  %v14158_v32 = vsel %vm146_vm0, %v14157_v1, %v34223_v40  ;;  %v72_v40 = vld [vmem:[%s39407_s1 + $0xb0] sm:$0x3f]  ;;  %v15111_v22 = vrot.slane %v34364_v21, 4 }
 0x2d4   :  { %13438 = vmatprep.mubr.f32.mxu0 %v39419_v6  ;;  %32369 = vmatpush3.msk.msra.mxu1 %vm157_vm1, %v13207_v46  ;;  %v13841_v46 = vsel %vm146_vm0, %v13840_v7, %v34133_v18  ;;  %v13848_v41 = vcombine.high %v13845_v30, %v13845_v30  ;;  %v14161_v12 = vcombine.high %v14158_v32, %v14158_v32 }
 0x2d5   :  { %32370 = vmatprep.mubr.msk.f32.mxu1 %vm33845_vm3, %v39419_v6  ;;  %31099 = vmatprep.subr.msk.mxu0 %vm157_vm1, %v13522_v14  ;;  %v13846_v18 = vcombine.high %v13841_v46, %v13841_v46  ;;  %v14153_v19 = vsel %vm39464_vm9, %v14149_v9, %v14150_v5 }
 0x2d6   :  { %31096 = vmatmul.mubr.msk.f32.vlgmr.msra.gmra.mrb[0].mxu0 %vm153_vm2, %v70_v3  ;;  %32371 = vmatmul.mubr.msk.f32.vlgmr.msra.gmra.mrb[86].mxu1 %vm153_vm2, %v70_v3 }
 0x2d7   :  { %31102 = vmatprep.subr.msk.mxu1 %vm157_vm1, %v13523_v17  ;;  %31100 = vmatpush1.msk.msra.mxu0 %vm157_vm1, %v13519_v8  ;;  %v14154_v8 = vsel %vm146_vm0, %v14153_v19, %v34192_v33  ;;  %v14786_v17 = vrot.slane %v34307_v53, 4 }
 0x2d8   :  { %31103 = vmatpush1.msk.msra.mxu1 %vm157_vm1, %v13520_v11  ;;  %13603 = vmatprep.mubr.f32.mxu0 %v39419_v6 }
 0x2d9   :  { %13674 = vmatprep.mubr.f32.mxu1 %v39419_v6  ;;  %31105 = vmatprep.subr.msk.mxu0 %vm157_vm1, %v13524_v0 }
 0x2da   :  { %32373 = vmatprep.subr.mxu1 %v39419_v6  ;;  %31101 = vmatmul.mubr.msk.f32.vlgmr.msra.gmra.mrb[2].mxu0 %vm153_vm2, %v70_v3 }
 0x2db   :  { %31104 = vmatmul.mubr.msk.f32.vlgmr.msra.gmra.mrb[6].mxu1 %vm153_vm2, %v70_v3  ;;  %31106 = vmatpush1.msk.msra.mxu0 %vm157_vm1, %v13521_v15  ;;  %v14476_v15 = vrot.slane %v34299_v52, 4 }
 0x2dc   :  { %32374 = vmatpush3.msk.msra.mxu1 %vm157_vm1, %v13518_v38  ;;  %31110 = vmatprep.subr.msk.mxu0 %vm157_vm1, %v13846_v18  ;;  %v14473_v38 = vrot.slane %v34269_v48, 4  ;;  %v14159_v48 = vcombine.high %v14154_v8, %v14154_v8  ;;  %v15110_v18 = vrot.slane %v34390_v31, 4 }
 0x2dd   :  { %31113 = vmatprep.subr.msk.mxu1 %vm157_vm1, %v13847_v24  ;;  %13745 = vmatprep.mubr.f32.mxu0 %v39419_v6  ;;  %v14481_v0 = vsel %vm39464_vm9, %v14475_v34, %v14476_v15 }
 0x2de   :  { %32375 = vmatprep.mubr.msk.f32.mxu1 %vm33845_vm3, %v39419_v6  ;;  %31107 = vmatmul.mubr.msk.f32.vlgmr.msra.gmra.mrb[4].mxu0 %vm153_vm2, %v70_v3  ;;  %v14477_v14 = vsel %vm39464_vm9, %v14473_v38, %v14474_v61  ;;  %v14482_v53 = vsel %vm1390_vm4, %v14481_v0, %v34299_v52  ;;  %v15423_v38 = vrot.slane %v34432_v45, 4 }
 0x2df   :  { %32376 = vmatmul.mubr.msk.f32.vlgmr.msra.gmra.mrb[88].mxu1 %vm153_vm2, %v70_v3  ;;  %31111 = vmatpush1.msk.msra.mxu0 %vm157_vm1, %v13841_v46  ;;  %v14156_v3 = vsel %vm146_vm0, %v14155_v58, %v34203_v35  ;;  %v14478_v28 = vsel %vm1390_vm4, %v14477_v14, %v34240_v44  ;;  %v14789_v46 = vrot.slane %v34345_v62, 4 }
 0x2e0   :  { %31114 = vmatpush1.msk.msra.mxu1 %vm157_vm1, %v13843_v39  ;;  %31116 = vmatprep.subr.msk.mxu0 %vm157_vm1, %v13848_v41  ;;  %v14160_v4 = vcombine.high %v14156_v3, %v14156_v3  ;;  %v14483_v44 = vcombine.high %v14478_v28, %v14478_v28  ;;  %v14485_v39 = vcombine.high %v14482_v53, %v14482_v53 }
 0x2e1   :  { %v9238_v11 = vpop.f32.mrb[60].mxu1  ;;  %13930 = vmatprep.mubr.f32.mxu0 %v39419_v6  ;;  %14001 = vmatprep.mubr.f32.mxu1 %v39419_v6 }
 0x2e2   :  { %v36107_v33 = vadd.f32 %v9238_v11, %v35979_v2  ;;  %32378 = vmatprep.subr.mxu1 %v39419_v6  ;;  %31112 = vmatmul.mubr.msk.f32.vlgmr.msra.gmra.mrb[6].mxu0 %vm153_vm2, %v71_v20  ;;  %v32307_v35 = vpop.f32.mrb[61].mxu1  ;;  %v14479_v2 = vsel %vm39464_vm9, %v14474_v61, %v14475_v34  ;;  %v15425_v11 = vrot.slane %v34456_v55, 4 }
 0x2e3   :  { %31115 = vmatmul.mubr.msk.f32.vlgmr.msra.gmra.mrb[2].mxu1 %vm153_vm2, %v71_v20  ;;  %31117 = vmatpush1.msk.msra.mxu0 %vm157_vm1, %v13845_v30  ;;  %v14480_v7 = vsel %vm1390_vm4, %v14479_v2, %v34283_v50  ;;  %v14794_v30 = vsel %vm39464_vm9, %v14788_v26, %v14789_v46  ;;  %v15747_v2 = vrot.slane %v34519_v29, 4 }
 0x2e4   :  { %32379 = vmatpush3.msk.msra.mxu1 %vm157_vm1, %v13839_v59  ;;  %31121 = vmatprep.subr.msk.mxu0 %vm157_vm1, %v14159_v48  ;;  %v14787_v59 = vrot.slane %v34314_v54, 4  ;;  %v14484_v50 = vcombine.high %v14480_v7, %v14480_v7  ;;  %v14795_v41 = vsel %vm1390_vm4, %v14794_v30, %v34345_v62  ;;  %v15426_v48 = vrot.slane %v34479_v63, 4  ;;  %v73_v62 = vld [vmem:[%s39407_s1 + $0xb8] sm:$0x3f] }
 0x2e5   :  { %31124 = vmatprep.subr.msk.mxu1 %vm157_vm1, %v14160_v4  ;;  %14072 = vmatprep.mubr.f32.mxu0 %v39419_v6  ;;  %v14798_v61 = vcombine.high %v14795_v41, %v14795_v41 }
 0x2e6   :  { %32380 = vmatprep.mubr.msk.f32.mxu1 %vm33845_vm3, %v39419_v6  ;;  %31118 = vmatmul.mubr.msk.f32.vlgmr.msra.gmra.mrb[0].mxu0 %vm153_vm2, %v71_v20  ;;  %v14790_v9 = vsel %vm39464_vm9, %v14786_v17, %v14787_v59  ;;  %v14792_v5 = vsel %vm39464_vm9, %v14787_v59, %v14788_v26  ;;  %v15749_v17 = vrot.slane %v34534_v36, 4 }
 0x2e7   :  { %32381 = vmatmul.mubr.msk.f32.vlgmr.msra.gmra.mrb[90].mxu1 %vm153_vm2, %v71_v20  ;;  %31122 = vmatpush1.msk.msra.mxu0 %vm157_vm1, %v14154_v8  ;;  %v14791_v13 = vsel %vm1390_vm4, %v14790_v9, %v34314_v54  ;;  %v14793_v24 = vsel %vm1390_vm4, %v14792_v5, %v34326_v57  ;;  %v15113_v8 = vrot.slane %v34424_v43, 4 }
 0x2e8   :  { %31125 = vmatpush1.msk.msra.mxu1 %vm157_vm1, %v14156_v3  ;;  %31127 = vmatprep.subr.msk.mxu0 %vm157_vm1, %v14161_v12  ;;  %v14796_v31 = vcombine.high %v14791_v13, %v14791_v13  ;;  %v14797_v58 = vcombine.high %v14793_v24, %v14793_v24  ;;  %v15424_v3 = vrot.slane %v34447_v51, 4 }
 0x2e9   :  { %14240 = vmatprep.mubr.f32.mxu0 %v39419_v6  ;;  %14311 = vmatprep.mubr.f32.mxu1 %v39419_v6 }
 0x2ea   :  { %32383 = vmatprep.subr.mxu1 %v39419_v6  ;;  %31123 = vmatmul.mubr.msk.f32.vlgmr.msra.gmra.mrb[2].mxu0 %vm153_vm2, %v71_v20  ;;  %v15427_v35 = vsel %vm39464_vm9, %v15423_v38, %v15424_v3  ;;  %v15429_v4 = vsel %vm39464_vm9, %v15424_v3, %v15425_v11 }
 0x2eb   :  { %31126 = vmatmul.mubr.msk.f32.vlgmr.msra.gmra.mrb[6].mxu1 %vm153_vm2, %v71_v20  ;;  %31128 = vmatpush1.msk.msra.mxu0 %vm157_vm1, %v14158_v32  ;;  %v15428_v14 = vsel %vm2042_vm5, %v15427_v35, %v34447_v51  ;;  %v15430_v12 = vsel %vm2042_vm5, %v15429_v4, %v34456_v55 }
 0x2ec   :  { %32384 = vmatpush3.msk.msra.mxu1 %vm157_vm1, %v14152_v27  ;;  %31132 = vmatprep.subr.msk.mxu0 %vm157_vm1, %v14483_v44  ;;  %v15112_v27 = vrot.slane %v34406_v37, 4  ;;  %v15433_v29 = vcombine.high %v15428_v14, %v15428_v14  ;;  %v15750_v44 = vrot.slane %v34554_v47, 4 }
 0x2ed   :  { %31135 = vmatprep.subr.msk.mxu1 %vm157_vm1, %v14484_v50  ;;  %14382 = vmatprep.mubr.f32.mxu0 %v39419_v6 }
 0x2ee   :  { %32385 = vmatprep.mubr.msk.f32.mxu1 %vm33845_vm3, %v39419_v6  ;;  %31129 = vmatmul.mubr.msk.f32.vlgmr.msra.gmra.mrb[4].mxu0 %vm153_vm2, %v71_v20  ;;  %v15118_v34 = vsel %vm39464_vm9, %v15112_v27, %v15113_v8  ;;  %v15755_v5 = vsel %vm39464_vm9, %v15749_v17, %v15750_v44 }
 0x2ef   :  { %32386 = vmatmul.mubr.msk.f32.vlgmr.msra.gmra.mrb[92].mxu1 %vm153_vm2, %v71_v20  ;;  %31133 = vmatpush1.msk.msra.mxu0 %vm157_vm1, %v14478_v28  ;;  %v15114_v20 = vsel %vm39464_vm9, %v15110_v18, %v15111_v22  ;;  %v15119_v45 = vsel %vm2042_vm5, %v15118_v34, %v34424_v43  ;;  %v15431_v28 = vsel %vm39464_vm9, %v15425_v11, %v15426_v48 }
 0x2f0   :  { %31136 = vmatpush1.msk.msra.mxu1 %vm157_vm1, %v14480_v7  ;;  %31138 = vmatprep.subr.msk.mxu0 %vm157_vm1, %v14485_v39  ;;  %v15115_v52 = vsel %vm2042_vm5, %v15114_v20, %v34364_v21  ;;  %v15122_v32 = vcombine.high %v15119_v45, %v15119_v45  ;;  %v15434_v7 = vcombine.high %v15430_v12, %v15430_v12  ;;  %v16062_v39 = vrot.slane %v34586_v16, 4 }
 0x2f1   :  { %v9576_v19 = vpop.f32.mrb[62].mxu1  ;;  %14567 = vmatprep.mubr.f32.mxu0 %v39419_v6  ;;  %14638 = vmatprep.mubr.f32.mxu1 %v39419_v6  ;;  %v15120_v21 = vcombine.high %v15115_v52, %v15115_v52  ;;  %v15432_v0 = vsel %vm2042_vm5, %v15431_v28, %v34479_v63  ;;  %v74_v63 = vld [vmem:[%s39407_s1 + $0xc0] sm:$0x3f]  ;;  %s33875_s1 = smov 19  }
 0x2f2   :  { %v36181_v54 = vadd.f32 %v9576_v19, %v36038_v42  ;;  %32388 = vmatprep.subr.mxu1 %v39419_v6  ;;  %31134 = vmatmul.mubr.msk.f32.vlgmr.msra.gmra.mrb[6].mxu0 %vm153_vm2, %v72_v40  ;;  %v32312_v57 = vpop.f32.mrb[63].mxu1  ;;  %v15116_v42 = vsel %vm39464_vm9, %v15111_v22, %v15112_v27  ;;  %v15435_v50 = vcombine.high %v15432_v0, %v15432_v0 }
 0x2f3   :  { %31137 = vmatmul.mubr.msk.f32.vlgmr.msra.gmra.mrb[2].mxu1 %vm153_vm2, %v72_v40  ;;  %31139 = vmatpush1.msk.msra.mxu0 %vm157_vm1, %v14482_v53  ;;  %v15117_v1 = vsel %vm2042_vm5, %v15116_v42, %v34406_v37  ;;  %v16060_v53 = vrot.slane %v34565_v56, 4 }
 0x2f4   :  { %32389 = vmatpush3.msk.msra.mxu1 %vm157_vm1, %v14476_v15  ;;  %31143 = vmatprep.subr.msk.mxu0 %vm157_vm1, %v14796_v31  ;;  %v15121_v37 = vcombine.high %v15117_v1, %v15117_v1  ;;  %v15748_v15 = vrot.slane %v34499_v23, 4 }
 0x2f5   :  { %31146 = vmatprep.subr.msk.mxu1 %vm157_vm1, %v14797_v58  ;;  %14709 = vmatprep.mubr.f32.mxu0 %v39419_v6  ;;  %v33860_v58 = vmov 0  }
 0x2f6   :  { %32390 = vmatprep.mubr.msk.f32.mxu1 %vm33845_vm3, %v39419_v6  ;;  %31140 = vmatmul.mubr.msk.f32.vlgmr.msra.gmra.mrb[0].mxu0 %vm153_vm2, %v72_v40  ;;  %v15751_v26 = vsel %vm39464_vm9, %v15747_v2, %v15748_v15 }
 0x2f7   :  { %32391 = vmatmul.mubr.msk.f32.vlgmr.msra.gmra.mrb[94].mxu1 %vm153_vm2, %v72_v40  ;;  %31144 = vmatpush1.msk.msra.mxu0 %vm157_vm1, %v14791_v13  ;;  %v15752_v43 = vsel %vm2694_vm6, %v15751_v26, %v34499_v23 }
 0x2f8   :  { %31147 = vmatpush1.msk.msra.mxu1 %vm157_vm1, %v14793_v24  ;;  %31149 = vmatprep.subr.msk.mxu0 %vm157_vm1, %v14798_v61  ;;  %v15757_v23 = vcombine.high %v15752_v43, %v15752_v43 }
 0x2f9   :  { %14877 = vmatprep.mubr.f32.mxu0 %v39419_v6  ;;  %14948 = vmatprep.mubr.f32.mxu1 %v39419_v6 }
 0x2fa   :  { %32393 = vmatprep.subr.mxu1 %v39419_v6  ;;  %31145 = vmatmul.mubr.msk.f32.vlgmr.msra.gmra.mrb[2].mxu0 %vm153_vm2, %v72_v40 }
 0x2fb   :  { %31148 = vmatmul.mubr.msk.f32.vlgmr.msra.gmra.mrb[6].mxu1 %vm153_vm2, %v72_v40  ;;  %31150 = vmatpush1.msk.msra.mxu0 %vm157_vm1, %v14795_v41 }
 0x2fc   :  { %32394 = vmatpush3.msk.msra.mxu1 %vm157_vm1, %v14789_v46  ;;  %31154 = vmatprep.subr.msk.mxu0 %vm157_vm1, %v15120_v21  ;;  %v16061_v46 = vrot.slane %v34574_v60, 4 }
 0x2fd   :  { %31157 = vmatprep.subr.msk.mxu1 %vm157_vm1, %v15121_v37  ;;  %15019 = vmatprep.mubr.f32.mxu0 %v39419_v6 }
 0x2fe   :  { %32395 = vmatprep.mubr.msk.f32.mxu1 %vm33845_vm3, %v39419_v6  ;;  %31151 = vmatmul.mubr.msk.f32.vlgmr.msra.gmra.mrb[4].mxu0 %vm153_vm2, %v72_v40  ;;  %v16064_v13 = vsel %vm39464_vm9, %v16060_v53, %v16061_v46  ;;  %v16066_v22 = vsel %vm39464_vm9, %v16061_v46, %v16062_v39 }
 0x2ff   :  { %32396 = vmatmul.mubr.msk.f32.vlgmr.msra.gmra.mrb[96].mxu1 %vm153_vm2, %v72_v40  ;;  %31155 = vmatpush1.msk.msra.mxu0 %vm157_vm1, %v15115_v52  ;;  %v16063_v40 = vrot.slane %v34603_v25, 4  ;;  %v16065_v18 = vsel %vm2694_vm6, %v16064_v13, %v34574_v60  ;;  %v16067_v24 = vsel %vm2694_vm6, %v16066_v22, %v34586_v16 }
 0x300   :  { %31158 = vmatpush1.msk.msra.mxu1 %vm157_vm1, %v15117_v1  ;;  %31160 = vmatprep.subr.msk.mxu0 %vm157_vm1, %v15122_v32  ;;  %v16070_v60 = vcombine.high %v16065_v18, %v16065_v18  ;;  %v16071_v16 = vcombine.high %v16067_v24, %v16067_v24 }
 0x301   :  { %v9896_v59 = vpop.f32.mrb[64].mxu1  ;;  %15204 = vmatprep.mubr.f32.mxu0 %v39419_v6  ;;  %15275 = vmatprep.mubr.f32.mxu1 %v39419_v6  ;;  %v16068_v30 = vsel %vm39464_vm9, %v16062_v39, %v16063_v40 }
 0x302   :  { %v36255_v51 = vadd.f32 %v9896_v59, %v36107_v33  ;;  %32398 = vmatprep.subr.mxu1 %v39419_v6  ;;  %31156 = vmatmul.mubr.msk.f32.vlgmr.msra.gmra.mrb[6].mxu0 %vm153_vm2, %v73_v62  ;;  %v32317_v55 = vpop.f32.mrb[65].mxu1  ;;  %v15753_v33 = vsel %vm39464_vm9, %v15748_v15, %v15749_v17  ;;  %v16069_v57 = vsel %vm2694_vm6, %v16068_v30, %v34603_v25  ;;  %v16384_v25 = vld [vmem:[%s39408_s2] sm:$0x3f]  ;;  %s33861_s2 = smov 122   ;;  %vm30132_vm9 = vcmask 150530  }
 0x303   :  { %31159 = vmatmul.mubr.msk.f32.vlgmr.msra.gmra.mrb[2].mxu1 %vm153_vm2, %v73_v62  ;;  %31161 = vmatpush1.msk.msra.mxu0 %vm157_vm1, %v15119_v45  ;;  %v15754_v9 = vsel %vm2694_vm6, %v15753_v33, %v34534_v36  ;;  %v15756_v36 = vsel %vm2694_vm6, %v15755_v5, %v34554_v47 }
 0x304   :  { %32399 = vmatpush3.msk.msra.mxu1 %vm157_vm1, %v15113_v8  ;;  %31165 = vmatprep.subr.msk.mxu0 %vm157_vm1, %v15433_v29  ;;  %v15758_v56 = vcombine.high %v15754_v9, %v15754_v9  ;;  %v15759_v47 = vcombine.high %v15756_v36, %v15756_v36 }
 0x305   :  { %31168 = vmatprep.subr.msk.mxu1 %vm157_vm1, %v15434_v7  ;;  %15346 = vmatprep.mubr.f32.mxu0 %v39419_v6 }
 0x306   :  { %32400 = vmatprep.mubr.msk.f32.mxu1 %vm33845_vm3, %v39419_v6  ;;  %31162 = vmatmul.mubr.msk.f32.vlgmr.msra.gmra.mrb[0].mxu0 %vm153_vm2, %v73_v62 }
 0x307   :  { %32401 = vmatmul.mubr.msk.f32.vlgmr.msra.gmra.mrb[98].mxu1 %vm153_vm2, %v73_v62  ;;  %31166 = vmatpush1.msk.msra.mxu0 %vm157_vm1, %v15428_v14 }
 0x308   :  { %31169 = vmatpush1.msk.msra.mxu1 %vm157_vm1, %v15430_v12  ;;  %31171 = vmatprep.subr.msk.mxu0 %vm157_vm1, %v15435_v50 }
 0x309   :  { %15514 = vmatprep.mubr.f32.mxu0 %v39419_v6  ;;  %15585 = vmatprep.mubr.f32.mxu1 %v39419_v6 }
 0x30a   :  { %32403 = vmatprep.subr.mxu1 %v39419_v6  ;;  %31167 = vmatmul.mubr.msk.f32.vlgmr.msra.gmra.mrb[2].mxu0 %vm153_vm2, %v73_v62 }
 0x30b   :  { %31170 = vmatmul.mubr.msk.f32.vlgmr.msra.gmra.mrb[6].mxu1 %vm153_vm2, %v73_v62  ;;  %31172 = vmatpush1.msk.msra.mxu0 %vm157_vm1, %v15432_v0 }
 0x30c   :  { %32404 = vmatpush3.msk.msra.mxu1 %vm157_vm1, %v15426_v48  ;;  %31176 = vmatprep.subr.msk.mxu0 %vm157_vm1, %v15757_v23 }
 0x30d   :  { %31179 = vmatprep.subr.msk.mxu1 %vm157_vm1, %v15758_v56  ;;  %15656 = vmatprep.mubr.f32.mxu0 %v39419_v6 }
 0x30e   :  { %32405 = vmatprep.mubr.msk.f32.mxu1 %vm33845_vm3, %v39419_v6  ;;  %31173 = vmatmul.mubr.msk.f32.vlgmr.msra.gmra.mrb[4].mxu0 %vm153_vm2, %v73_v62 }
 0x30f   :  { %32406 = vmatmul.mubr.msk.f32.vlgmr.msra.gmra.mrb[100].mxu1 %vm153_vm2, %v73_v62  ;;  %31177 = vmatpush1.msk.msra.mxu0 %vm157_vm1, %v15752_v43 }
 0x310   :  { %31180 = vmatpush1.msk.msra.mxu1 %vm157_vm1, %v15754_v9  ;;  %31182 = vmatprep.subr.msk.mxu0 %vm157_vm1, %v15759_v47 }
 0x311   :  { %v10234_v27 = vpop.f32.mrb[66].mxu1  ;;  %15841 = vmatprep.mubr.f32.mxu0 %v39419_v6  ;;  %15912 = vmatprep.mubr.f32.mxu1 %v39419_v6 }
 0x312   :  { %v10564_v19 = vadd.f32 %v10234_v27, %v36181_v54  ;;  %32408 = vmatprep.subr.mxu1 %v39419_v6  ;;  %31178 = vmatmul.mubr.msk.f32.vlgmr.msra.gmra.mrb[6].mxu0 %vm153_vm2, %v74_v63  ;;  %v32322_v31 = vpop.f32.mrb[67].mxu1  ;;  %v16072_v54 = vcombine.high %v16069_v57, %v16069_v57 }
 0x313   :  { %31181 = vmatmul.mubr.msk.f32.vlgmr.msra.gmra.mrb[2].mxu1 %vm153_vm2, %v74_v63  ;;  %31183 = vmatpush1.msk.msra.mxu0 %vm157_vm1, %v15756_v36 }
 0x314   :  { %32409 = vmatpush3.msk.msra.mxu1 %vm157_vm1, %v15750_v44  ;;  %31187 = vmatprep.subr.msk.mxu0 %vm157_vm1, %v16070_v60 }
 0x315   :  { %31190 = vmatprep.subr.msk.mxu1 %vm157_vm1, %v16071_v16  ;;  %15983 = vmatprep.mubr.f32.mxu0 %v39419_v6 }
 0x316   :  { %32410 = vmatprep.mubr.msk.f32.mxu1 %vm33845_vm3, %v39419_v6  ;;  %31184 = vmatmul.mubr.msk.f32.vlgmr.msra.gmra.mrb[0].mxu0 %vm153_vm2, %v74_v63 }
 0x317   :  { %32411 = vmatmul.mubr.msk.f32.vlgmr.msra.gmra.mrb[102].mxu1 %vm153_vm2, %v74_v63  ;;  %31188 = vmatpush1.msk.msra.mxu0 %vm157_vm1, %v16065_v18 }
 0x318   :  { %31191 = vmatpush1.msk.msra.mxu1 %vm157_vm1, %v16067_v24  ;;  %31193 = vmatprep.subr.msk.mxu0 %vm157_vm1, %v16072_v54 }
 0x319   :  { %16151 = vmatprep.mubr.f32.mxu0 %v39419_v6  ;;  %16222 = vmatprep.mubr.f32.mxu1 %v39419_v6 }
 0x31a   :  { %32413 = vmatprep.subr.mxu1 %v39419_v6  ;;  %31189 = vmatmul.mubr.msk.f32.vlgmr.msra.gmra.mrb[2].mxu0 %vm153_vm2, %v74_v63 }
 0x31b   :  { %31192 = vmatmul.mubr.msk.f32.vlgmr.msra.gmra.mrb[6].mxu1 %vm153_vm2, %v74_v63  ;;  %31194 = vmatpush1.msk.msra.mxu0 %vm157_vm1, %v16069_v57 }
 0x31c   :  { %32414 = vmatpush3.msk.msra.mxu1 %vm157_vm1, %v16063_v40  ;;  %16293 = vmatprep.mubr.f32.mxu0 %v39419_v6  ;;  %vm16601_vm1 = vcmask 48128  }
 0x31d   :  { %32415 = vmatprep.mubr.msk.f32.mxu1 %vm33845_vm3, %v39419_v6  ;;  %33710 = vset.pattern.permute.xlu0 %v33860_v58 }
 0x31e   :  { %31195 = vmatmul.mubr.msk.f32.vlgmr.msra.gmra.mrb[4].mxu0 %vm153_vm2, %v74_v63  ;;  %16387 = vperm.xlu0 %33710, %v16384_v25  }
 0x31f   :  { %32416 = vmatmul.mubr.msk.f32.vlgmr.msra.gmra.mrb[104].mxu1 %vm153_vm2, %v74_v63  ;;  %16683 = vmatprep.mubr.f32.mxu0 %v39419_v6  ;;  %vm18132_vm2 = vcmask 998400  }
 0x320   :  { %16760 = vmatprep.mubr.f32.mxu1 %v39419_v6  ;;  %33711 = vset.pattern.permute.xlu1 %v33860_v58 }
 0x321   :  { %v10554_v41 = vpop.f32.mrb[68].mxu1 }
 0x322   :  { %v10571_v20 = vadd.f32 %v10554_v41, %v36255_v51  ;;  %v32327_v8 = vpop.f32.mrb[69].mxu1 }
 0x331   :  { %v10892_v42 = vpop.f32.mrb[70].mxu1 }
 0x332   :  { %v11222_v61 = vadd.f32 %v10892_v42, %v10564_v19  ;;  %v32332_v52 = vpop.f32.mrb[71].mxu1 }
 0x341   :  { %v11212_v38 = vpop.f32.mrb[72].mxu1 }
 0x342   :  { %v11229_v3 = vadd.f32 %v11212_v38, %v10571_v20  ;;  %v32337_v1 = vpop.f32.mrb[73].mxu1 }
 0x351   :  { %v11550_v34 = vpop.f32.mrb[74].mxu1 }
 0x352   :  { %v11880_v11 = vadd.f32 %v11550_v34, %v11222_v61  ;;  %v32342_v21 = vpop.f32.mrb[75].mxu1 }
 0x361   :  { %v11870_v37 = vpop.f32.mrb[76].mxu1 }
 0x362   :  { %v11887_v45 = vadd.f32 %v11870_v37, %v11229_v3  ;;  %v32347_v48 = vpop.f32.mrb[77].mxu1 }
 0x371   :  { %v12208_v35 = vpop.f32.mrb[78].mxu1 }
 0x372   :  { %v12538_v4 = vadd.f32 %v12208_v35, %v11880_v11  ;;  %v32352_v32 = vpop.f32.mrb[79].mxu1 }
 0x381   :  { %v12528_v62 = vpop.f32.mrb[80].mxu1 }
 0x382   :  { %v12545_v14 = vadd.f32 %v12528_v62, %v11887_v45  ;;  %v32357_v15 = vpop.f32.mrb[81].mxu1 }
 0x391   :  { %v12866_v2 = vpop.f32.mrb[82].mxu1 }
 0x392   :  { %v13196_v12 = vadd.f32 %v12866_v2, %v12538_v4  ;;  %v32362_v28 = vpop.f32.mrb[83].mxu1 }
 0x39d   :  { %v16388_v31 = vpop.permute.xlu0 %16387 }
 0x3a1   :  { %v13186_v17 = vpop.f32.mrb[84].mxu1 }
 0x3a2   :  { %v13203_v59 = vadd.f32 %v13186_v17, %v12545_v14  ;;  %v32367_v51 = vpop.f32.mrb[85].mxu1 }
 0x3a9   :  { %v13511_v29 = vpop.f32.mrb[86].mxu1 }
 0x3aa   :  { %v13828_v55 = vadd.f32 %v13511_v29, %v13196_v12  ;;  %v32372_v7 = vpop.f32.mrb[87].mxu1 }
 0x3b2   :  { %v13818_v0 = vpop.f32.mrb[88].mxu1 }
 0x3b3   :  { %v13835_v26 = vadd.f32 %v13818_v0, %v13203_v59  ;;  %v32377_v44 = vpop.f32.mrb[89].mxu1 }
 0x3ba   :  { %v14145_v33 = vpop.f32.mrb[90].mxu1 }
 0x3bb   :  { %v14465_v50 = vadd.f32 %v14145_v33, %v13828_v55  ;;  %v32382_v43 = vpop.f32.mrb[91].mxu1 }
 0x3c2   :  { %v14455_v53 = vpop.f32.mrb[92].mxu1 }
 0x3c3   :  { %v14472_v46 = vadd.f32 %v14455_v53, %v13835_v26  ;;  %v32387_v9 = vpop.f32.mrb[93].mxu1 }
 0x3ca   :  { %v14782_v5 = vpop.f32.mrb[94].mxu1 }
 0x3cb   :  { %v15102_v39 = vadd.f32 %v14782_v5, %v14465_v50  ;;  %v32392_v23 = vpop.f32.mrb[95].mxu1 }
 0x3d2   :  { %v15092_v56 = vpop.f32.mrb[96].mxu1 }
 0x3d3   :  { %v15109_v36 = vadd.f32 %v15092_v56, %v14472_v46  ;;  %v32397_v40 = vpop.f32.mrb[97].mxu1 }
 0x3da   :  { %v15419_v13 = vpop.f32.mrb[98].mxu1 }
 0x3db   :  { %v15739_v22 = vadd.f32 %v15419_v13, %v15102_v39  ;;  %v32402_v47 = vpop.f32.mrb[99].mxu1 }
 0x3e2   :  { %v15729_v63 = vpop.f32.mrb[100].mxu1 }
 0x3e3   :  { %v15746_v18 = vadd.f32 %v15729_v63, %v15109_v36  ;;  %v32407_v24 = vpop.f32.mrb[101].mxu1 }
 0x3e5   :  { %v15843_v30 = vpop.f32.mrb[6].mxu0 }
 0x3e6   :  { %v32901_v27 = vadd.f32 %v15843_v30, %v35362_v10  ;;  %v15914_v19 = vpop.f32.mrb[2].mxu1  ;;  %v15845_v60 = vpop.f32.mrb[7].mxu0 }
 0x3e7   :  { %v32902_v16 = vadd.f32 %v15845_v60, %v35368_v49  ;;  %v15916_v57 = vpop.f32.mrb[3].mxu1  ;;  %v16392_v14 = vadd.f32 %v16388_v31, %v15914_v19 }
 0x3e8   :  { %v16390_v54 = vadd.f32 %v32901_v27, %v16388_v31  ;;  %v36361_v41 = vadd.f32 %v16388_v31, %v15916_v57 }
 0x3e9   :  { %v36359_v25 = vadd.f32 %v32902_v16, %v16388_v31  ;;  %v15985_v58 = vpop.f32.mrb[0].mxu0  ;;  %v16406_v17 = vmax.f32 %v16392_v14, 0.0 }
 0x3ea   :  { %v16056_v20 = vpop.f32.mrb[102].mxu1  ;;  %v15987_v8 = vpop.f32.mrb[1].mxu0  ;;  %v16404_v42 = vmax.f32 %v16390_v54, 0.0  ;;  %v16394_v52 = vadd.f32 %v16388_v31, %v15985_v58  ;;  %v16407_v49 = vmax.f32 %v36361_v41, 0.0 }
 0x3eb   :  { %v16405_v61 = vmax.f32 %v36359_v25, 0.0  ;;  %v16376_v38 = vadd.f32 %v16056_v20, %v15739_v22  ;;  %v32412_v10 = vpop.f32.mrb[103].mxu1  ;;  %v36369_v21 = vadd.f32 %v16388_v31, %v15987_v8 }
 0x3ec   :  { %16432 = vrot.lane.b32.xlu0 %v16404_v42, %s33839_s25  ;;  %v16408_v11 = vmax.f32 %v16394_v52, 0.0 }
 0x3ed   :  { %v16153_v3 = vpop.f32.mrb[2].mxu0  ;;  %16434 = vrot.lane.b32.xlu1 %v16405_v61, %s33839_s25  ;;  %v16409_v32 = vmax.f32 %v36369_v21, 0.0  ;;  %v36378_v2 = vadd.f32 %v16388_v31, %v16376_v38 }
 0x3ee   :  { %v16224_v1 = vpop.f32.mrb[6].mxu1  ;;  %v16155_v34 = vpop.f32.mrb[3].mxu0  ;;  %v16397_v50 = vadd.f32 %v16388_v31, %v16153_v3 }
 0x3ef   :  { %v16226_v37 = vpop.f32.mrb[7].mxu1  ;;  %v16398_v28 = vadd.f32 %v16388_v31, %v16155_v34  ;;  %v16410_v59 = vmax.f32 %v36378_v2, 0.0  ;;  %v16399_v51 = vadd.f32 %v16388_v31, %v16224_v1 }
 0x3f0   :  { %16438 = vrot.lane.b32.xlu0 %v16407_v49, %s33839_s25  ;;  %v16400_v26 = vadd.f32 %v16388_v31, %v16226_v37  ;;  %v16411_v53 = vmax.f32 %v16397_v50, 0.0 }
 0x3f1   :  { %v16295_v45 = vpop.f32.mrb[4].mxu0  ;;  %16440 = vrot.lane.b32.xlu1 %v16408_v11, %s33839_s25  ;;  %v16412_v29 = vmax.f32 %v16398_v28, 0.0  ;;  %v16413_v7 = vmax.f32 %v16399_v51, 0.0 }
 0x3f2   :  { %v36375_v48 = vadd.f32 %v16388_v31, %v16295_v45  ;;  %v16366_v35 = vpop.f32.mrb[104].mxu1  ;;  %v16297_v4 = vpop.f32.mrb[5].mxu0  ;;  %v16414_v43 = vmax.f32 %v16400_v26, 0.0 }
 0x3f3   :  { %v16383_v62 = vadd.f32 %v16366_v35, %v15746_v18  ;;  %v32417_v15 = vpop.f32.mrb[105].mxu1  ;;  %v16402_v55 = vadd.f32 %v16388_v31, %v16297_v4 }
 0x3f4   :  { %v16415_v12 = vmax.f32 %v36375_v48, 0.0 }
 0x3f5   :  { %16442 = vrot.lane.b32.xlu1 %v16409_v32, %s33839_s25  ;;  %v36388_v0 = vadd.f32 %v16388_v31, %v16383_v62  ;;  %v16416_v44 = vmax.f32 %v16402_v55, 0.0 }
 0x3f6   :  { %16454 = vrot.lane.b32.xlu0 %v16415_v12, %s33839_s25 }
 0x3f7   :  { %v16417_v33 = vmax.f32 %v36388_v0, 0.0 }
 0x3f9   :  { %16436 = vrot.lane.b32.xlu1 %v16406_v17, %s33839_s25 }
 0x3fa   :  { %16444 = vrot.lane.b32.xlu0 %v16410_v59, %s33839_s25 }
 0x3fd   :  { %16448 = vrot.lane.b32.xlu1 %v16412_v29, %s33839_s25 }
 0x3fe   :  { %16450 = vrot.lane.b32.xlu0 %v16413_v7, %s33839_s25 }
 0x401   :  { %16456 = vrot.lane.b32.xlu1 %v16416_v44, %s33839_s25 }
 0x402   :  { %16458 = vrot.lane.b32.xlu0 %v16417_v33, %s33839_s25 }
 0x405   :  { %16452 = vrot.lane.b32.xlu1 %v16414_v43, %s33839_s25 }
 0x409   :  { %16446 = vrot.lane.b32.xlu1 %v16411_v53, %s33839_s25  ;;  %s33862_s25 = smov 120  }
 0x45e   :  { %v16433_v46 = vpop.permute.xlu0 %16432 }
 0x45f   :  { %v16435_v9 = vpop.permute.xlu1 %16434 }
 0x460   :  { %v16460_v5 = vsel %vm146_vm0, %v16433_v46, %v16435_v9 }
 0x461   :  { %v16486_v39 = vmax.f32 %v16404_v42, %v16460_v5 }
 0x462   :  { %v16439_v56 = vpop.permute.xlu0 %16438 }
 0x463   :  { %v16441_v23 = vpop.permute.xlu1 %16440  ;;  %16514 = vrot.lane.b32.xlu1 %v16486_v39, %s33844_s23 }
 0x464   :  { %v16463_v19 = vsel %vm146_vm0, %v16439_v56, %v16441_v23 }
 0x465   :  { %v16489_v57 = vmax.f32 %v16407_v49, %v16463_v19 }
 0x467   :  { %v16443_v36 = vpop.permute.xlu1 %16442 }
 0x468   :  { %v16464_v40 = vsel %vm146_vm0, %v16441_v23, %v16443_v36  ;;  %v16455_v13 = vpop.permute.xlu0 %16454 }
 0x469   :  { %v16490_v22 = vmax.f32 %v16408_v11, %v16464_v40 }
 0x46b   :  { %16522 = vrot.lane.b32.xlu0 %v16490_v22, %s33844_s23  ;;  %v16437_v47 = vpop.permute.xlu1 %16436 }
 0x46c   :  { %v16461_v63 = vsel %vm146_vm0, %v16435_v9, %v16437_v47  ;;  %v16462_v18 = vsel %vm146_vm0, %v16437_v47, %v16439_v56  ;;  %v36405_v24 = vpop.permute.xlu0 %16444 }
 0x46d   :  { %v16487_v30 = vmax.f32 %v16405_v61, %v16461_v63  ;;  %v16488_v27 = vmax.f32 %v16406_v17, %v16462_v18  ;;  %v16465_v60 = vsel %vm146_vm0, %v16443_v36, %v36405_v24  ;;  %v36510_v63 = vmax.f32 %v16410_v59, %v36405_v24 }
 0x46e   :  { %v36416_v54 = vmax.f32 %v16409_v32, %v16465_v60 }
 0x46f   :  { %16518 = vrot.lane.b32.xlu1 %v16488_v27, %s33844_s23  ;;  %16516 = vrot.lane.b32.xlu0 %v16487_v30, %s33844_s23  ;;  %v16449_v31 = vpop.permute.xlu1 %16448 }
 0x470   :  { %v16451_v16 = vpop.permute.xlu0 %16450 }
 0x471   :  { %v16467_v25 = vsel %vm146_vm0, %v16449_v31, %v16451_v16 }
 0x472   :  { %v16494_v8 = vmax.f32 %v16412_v29, %v16467_v25 }
 0x473   :  { %16524 = vrot.lane.b32.xlu1 %v36416_v54, %s33844_s23  ;;  %16520 = vrot.lane.b32.xlu0 %v16489_v57, %s33844_s23  ;;  %v16457_v58 = vpop.permute.xlu1 %16456 }
 0x474   :  { %v16470_v20 = vsel %vm146_vm0, %v16455_v13, %v16457_v58  ;;  %v36423_v61 = vpop.permute.xlu0 %16458 }
 0x475   :  { %v16497_v42 = vmax.f32 %v16415_v12, %v16470_v20  ;;  %v16471_v49 = vsel %vm146_vm0, %v16457_v58, %v36423_v61  ;;  %v36523_v18 = vmax.f32 %v16417_v33, %v36423_v61 }
 0x476   :  { %v36434_v11 = vmax.f32 %v16416_v44, %v16471_v49 }
 0x477   :  { %16530 = vrot.lane.b32.xlu0 %v16494_v8, %s33844_s23  ;;  %16536 = vrot.lane.b32.xlu1 %v16497_v42, %s33844_s23  ;;  %v16453_v41 = vpop.permute.xlu1 %16452 }
 0x478   :  { %v16468_v52 = vsel %vm146_vm0, %v16451_v16, %v16453_v41  ;;  %v16469_v38 = vsel %vm146_vm0, %v16453_v41, %v16455_v13  ;;  %v78_v16 = vld [vmem:[%s39409_s3 + $0x18] sm:$0xff] }
 0x479   :  { %v16495_v10 = vmax.f32 %v16413_v7, %v16468_v52  ;;  %v16496_v3 = vmax.f32 %v16414_v43, %v16469_v38 }
 0x47b   :  { %16534 = vrot.lane.b32.xlu0 %v16496_v3, %s33844_s23  ;;  %16532 = vrot.lane.b32.xlu1 %v16495_v10, %s33844_s23  ;;  %v16447_v1 = vpop.permute.xlu1 %16446 }
 0x47c   :  { %v16466_v34 = vsel %vm146_vm0, %v16447_v1, %v16449_v31  ;;  %vm16608_vm0 = vcmask 1045504  }
 0x47d   :  { %v16493_v21 = vmax.f32 %v16411_v53, %v16466_v34 }
 0x47f   :  { %16538 = vrot.lane.b32.xlu0 %v36434_v11, %s33844_s23  ;;  %16528 = vrot.lane.b32.xlu1 %v16493_v21, %s33844_s23 }
 0x4d5   :  { %v16515_v37 = vpop.permute.xlu1 %16514 }
 0x4dd   :  { %v16523_v45 = vpop.permute.xlu0 %16522 }
 0x4e1   :  { %v16517_v48 = vpop.permute.xlu0 %16516  ;;  %v16519_v35 = vpop.permute.xlu1 %16518 }
 0x4e2   :  { %v16542_v4 = vsel %vm3349_vm7, %v16515_v37, %v16517_v48  ;;  %v16543_v62 = vsel %vm3349_vm7, %v16517_v48, %v16519_v35 }
 0x4e3   :  { %v36440_v32 = vmax.f32 %v16486_v39, %v16542_v4  ;;  %v36448_v28 = vmax.f32 %v16487_v30, %v16543_v62  ;;  %v77_v30 = vld [vmem:[%s39409_s3 + $0x10] sm:$0xff] }
 0x4e5   :  { %v16521_v14 = vpop.permute.xlu0 %16520  ;;  %16587 = vrot.lane.b32.xlu0 %v36440_v32, %s33841_s20  ;;  %v36445_v15 = vpop.permute.xlu1 %16524 }
 0x4e6   :  { %v16544_v12 = vsel %vm3349_vm7, %v16519_v35, %v16521_v14  ;;  %v16545_v51 = vsel %vm3349_vm7, %v16521_v14, %v16523_v45  ;;  %v16546_v29 = vsel %vm3349_vm7, %v16523_v45, %v36445_v15  ;;  %v76_v35 = vld [vmem:[%s39409_s3 + $0x8] sm:$0xff] }
 0x4e7   :  { %v36450_v17 = vmax.f32 %v16488_v27, %v16544_v12  ;;  %v36459_v26 = vmax.f32 %v16489_v57, %v16545_v51  ;;  %v36461_v44 = vmax.f32 %v16490_v22, %v16546_v29 }
 0x4e9   :  { %v16531_v55 = vpop.permute.xlu0 %16530  ;;  %16591 = vrot.lane.b32.xlu1 %v36450_v17, %s33841_s20  ;;  %16589 = vrot.lane.b32.xlu0 %v36448_v28, %s33841_s20  ;;  %v16537_v7 = vpop.permute.xlu1 %16536 }
 0x4ed   :  { %v16535_v50 = vpop.permute.xlu0 %16534  ;;  %16593 = vrot.lane.b32.xlu1 %v36459_v26, %s33841_s20  ;;  %16595 = vrot.lane.b32.xlu0 %v36461_v44, %s33841_s20  ;;  %v16533_v43 = vpop.permute.xlu1 %16532 }
 0x4ee   :  { %v16550_v53 = vsel %vm3349_vm7, %v16533_v43, %v16535_v50  ;;  %v16549_v40 = vsel %vm3349_vm7, %v16531_v55, %v16533_v43  ;;  %v16551_v22 = vsel %vm3349_vm7, %v16535_v50, %v16537_v7 }
 0x4ef   :  { %v36468_v46 = vmax.f32 %v16495_v10, %v16550_v53  ;;  %v36486_v13 = vmax.f32 %v16494_v8, %v16549_v40  ;;  %v36493_v47 = vmax.f32 %v16496_v3, %v16551_v22 }
 0x4f1   :  { %v36470_v9 = vpop.permute.xlu0 %16538  ;;  %16857 = vrot.lane.b32.xlu0 %v36468_v46, %s33841_s20  ;;  %v16529_v5 = vpop.permute.xlu1 %16528 }
 0x4f2   :  { %v16552_v39 = vsel %vm3349_vm7, %v16537_v7, %v36470_v9  ;;  %v16548_v23 = vsel %vm3349_vm7, %v16529_v5, %v16531_v55 }
 0x4f3   :  { %v36477_v56 = vmax.f32 %v16497_v42, %v16552_v39  ;;  %v36479_v36 = vmax.f32 %v16493_v21, %v16548_v23  ;;  %v75_v21 = vld [vmem:[%s39409_s3] sm:$0xff] }
 0x4f4   :  { %v79_v39 = vld [vmem:[%s39409_s3 + $0x20] sm:$0xff] }
 0x4f5   :  { %16861 = vrot.lane.b32.xlu0 %v36477_v56, %s33841_s20  ;;  %16853 = vrot.lane.b32.xlu1 %v36479_v36, %s33841_s20 }
 0x4f9   :  { %17592 = vrot.lane.b32.xlu0 %v36448_v28, %s33843_s22  ;;  %16855 = vrot.lane.b32.xlu1 %v36486_v13, %s33841_s20 }
 0x4fd   :  { %17590 = vrot.lane.b32.xlu0 %v36440_v32, %s33843_s22  ;;  %16859 = vrot.lane.b32.xlu1 %v36493_v47, %s33841_s20 }
 0x501   :  { %17598 = vrot.lane.b32.xlu0 %v36461_v44, %s33843_s22  ;;  %17594 = vrot.lane.b32.xlu1 %v36450_v17, %s33843_s22 }
 0x505   :  { %17851 = vrot.lane.b32.xlu0 %v36486_v13, %s33843_s22  ;;  %17596 = vrot.lane.b32.xlu1 %v36459_v26, %s33843_s22 }
 0x509   :  { %17855 = vrot.lane.b32.xlu0 %v36493_v47, %s33843_s22  ;;  %16526 = vrot.lane.b32.xlu1 %v36510_v63, %s33844_s23 }
 0x50d   :  { %17849 = vrot.lane.b32.xlu0 %v36479_v36, %s33843_s22  ;;  %17853 = vrot.lane.b32.xlu1 %v36468_v46, %s33843_s22 }
 0x511   :  { %18124 = vrot.lane.b32.xlu0 %v36448_v28, %s33861_s2  ;;  %16540 = vrot.lane.b32.xlu1 %v36523_v18, %s33844_s23  ;;  %s33872_s23 = smov 22  }
 0x515   :  { %18122 = vrot.lane.b32.xlu0 %v36440_v32, %s33861_s2  ;;  %18126 = vrot.lane.b32.xlu1 %v36450_v17, %s33861_s2 }
 0x519   :  { %18130 = vrot.lane.b32.xlu0 %v36461_v44, %s33861_s2  ;;  %18128 = vrot.lane.b32.xlu1 %v36459_v26, %s33861_s2 }
 0x51d   :  { %18386 = vrot.lane.b32.xlu0 %v36468_v46, %s33861_s2  ;;  %18384 = vrot.lane.b32.xlu1 %v36486_v13, %s33861_s2 }
 0x521   :  { %18657 = vrot.lane.b32.xlu0 %v36448_v28, %s33862_s25  ;;  %18388 = vrot.lane.b32.xlu1 %v36493_v47, %s33861_s2 }
 0x525   :  { %18655 = vrot.lane.b32.xlu0 %v36440_v32, %s33862_s25  ;;  %17857 = vrot.lane.b32.xlu1 %v36477_v56, %s33843_s22 }
 0x529   :  { %18663 = vrot.lane.b32.xlu0 %v36461_v44, %s33862_s25  ;;  %18382 = vrot.lane.b32.xlu1 %v36479_v36, %s33861_s2 }
 0x52d   :  { %18919 = vrot.lane.b32.xlu0 %v36468_v46, %s33862_s25  ;;  %18659 = vrot.lane.b32.xlu1 %v36450_v17, %s33862_s25 }
 0x531   :  { %18390 = vrot.lane.b32.xlu0 %v36477_v56, %s33861_s2  ;;  %18661 = vrot.lane.b32.xlu1 %v36459_v26, %s33862_s25 }
 0x535   :  { %19191 = vrot.lane.b32.xlu0 %v36448_v28, %s33850_s15  ;;  %18917 = vrot.lane.b32.xlu1 %v36486_v13, %s33862_s25 }
 0x539   :  { %19189 = vrot.lane.b32.xlu0 %v36440_v32, %s33850_s15  ;;  %18921 = vrot.lane.b32.xlu1 %v36493_v47, %s33862_s25 }
 0x53d   :  { %19197 = vrot.lane.b32.xlu0 %v36461_v44, %s33850_s15  ;;  %18915 = vrot.lane.b32.xlu1 %v36479_v36, %s33862_s25 }
 0x541   :  { %19454 = vrot.lane.b32.xlu0 %v36486_v13, %s33850_s15  ;;  %19193 = vrot.lane.b32.xlu1 %v36450_v17, %s33850_s15 }
 0x545   :  { %18923 = vrot.lane.b32.xlu0 %v36477_v56, %s33862_s25  ;;  %19195 = vrot.lane.b32.xlu1 %v36459_v26, %s33850_s15 }
 0x549   :  { %19458 = vrot.lane.b32.xlu0 %v36493_v47, %s33850_s15 }
 0x54d   :  { %19452 = vrot.lane.b32.xlu0 %v36479_v36, %s33850_s15 }
 0x551   :  { %19730 = vrot.lane.b32.xlu0 %v36448_v28, %s33852_s29 }
 0x555   :  { %19728 = vrot.lane.b32.xlu0 %v36440_v32, %s33852_s29 }
 0x557   :  { %v16588_v2 = vpop.permute.xlu0 %16587 }
 0x559   :  { %19736 = vrot.lane.b32.xlu0 %v36461_v44, %s33852_s29 }
 0x55b   :  { %v16590_v59 = vpop.permute.xlu0 %16589  ;;  %v16592_v0 = vpop.permute.xlu1 %16591 }
 0x55c   :  { %v16597_v33 = vsel %vm1390_vm4, %v16588_v2, %v16590_v59  ;;  %v36593_v24 = vsel %vm1390_vm4, %v16590_v59, %v16592_v0  ;;  %v80_v2 = vld [vmem:[%s39409_s3 + $0x28] sm:$0xff] }
 0x55d   :  { %19992 = vrot.lane.b32.xlu0 %v36486_v13, %s33852_s29  ;;  %31198 = vmatprep.subr.msk.mxu0 %vm16608_vm0, %v36593_v24 }
 0x55e   :  { %31199 = vmatpush1.msk.msra.mxu0 %vm16608_vm0, %v16597_v33 }
 0x55f   :  { %v36603_v27 = vpop.permute.xlu0 %16595  ;;  %v16594_v19 = vpop.permute.xlu1 %16593  ;;  %31200 = vmatmul.mubr.msk.f32.vlgmr.msra.gmra.mrb[8].mxu0 %vm16601_vm1, %v77_v30 }
 0x560   :  { %v36607_v60 = vsel %vm1390_vm4, %v16592_v0, %v16594_v19  ;;  %32418 = vmatprep.subr.msk.mxu0 %vm16608_vm0, %v36603_v27  ;;  %v36613_v31 = vsel %vm1390_vm4, %v16594_v19, %v36603_v27  ;;  %16689 = vmatprep.mubr.f32.mxu0 %v39419_v6 }
 0x561   :  { %19996 = vrot.lane.b32.xlu0 %v36493_v47, %s33852_s29  ;;  %31202 = vmatprep.subr.msk.mxu1 %vm16608_vm0, %v36613_v31 }
 0x562   :  { %32419 = vmatpush3.msk.msra.mxu0 %vm16608_vm0, %v36603_v27  ;;  %31203 = vmatpush1.msk.msra.mxu1 %vm16608_vm0, %v36607_v60 }
 0x563   :  { %v16858_v57 = vpop.permute.xlu0 %16857  ;;  %31204 = vmatmul.mubr.msk.f32.vlgmr.msra.gmra.mrb[106].mxu1 %vm16601_vm1, %v77_v30  ;;  %31201 = vmatmul.mubr.msk.f32.gmra.mrb[10].mxu0 %vm16601_vm1, %v78_v16 }
 0x564   :  { %16766 = vmatprep.mubr.f32.mxu1 %v39419_v6  ;;  %32420 = vmatprep.mubr.msk.f32.mxu0 %vm16601_vm1, %v77_v30 }
 0x565   :  { %19990 = vrot.lane.b32.xlu0 %v36479_v36, %s33852_s29 }
 0x567   :  { %v36633_v25 = vpop.permute.xlu0 %16861  ;;  %v16854_v58 = vpop.permute.xlu1 %16853  ;;  %31205 = vmatmul.mubr.msk.f32.gmra.mrb[108].mxu1 %vm16601_vm1, %v78_v16  ;;  %32421 = vmatmul.mubr.msk.f32.vlgmr.msra.gmra.mrb[12].mxu0 %vm16601_vm1, %v78_v16 }
 0x568   :  { %16941 = vmatprep.mubr.f32.mxu1 %v39419_v6  ;;  %17018 = vmatprep.mubr.f32.mxu0 %v39419_v6 }
 0x569   :  { %20268 = vrot.lane.b32.xlu0 %v36448_v28, %s33854_s19 }
 0x56b   :  { %v36641_v20 = vpop.permute.xlu0 %17592  ;;  %v16856_v8 = vpop.permute.xlu1 %16855 }
 0x56c   :  { %v16863_v42 = vsel %vm1390_vm4, %v16854_v58, %v16856_v8  ;;  %v36645_v61 = vsel %vm1390_vm4, %v16856_v8, %v16858_v57 }
 0x56d   :  { %20266 = vrot.lane.b32.xlu0 %v36440_v32, %s33854_s19  ;;  %31209 = vmatprep.subr.msk.mxu1 %vm16608_vm0, %v36645_v61 }
 0x56e   :  { %31210 = vmatpush1.msk.msra.mxu1 %vm16608_vm0, %v16863_v42 }
 0x56f   :  { %v36652_v41 = vpop.permute.xlu0 %17590  ;;  %31211 = vmatmul.mubr.msk.f32.vlgmr.msra.gmra.mrb[110].mxu1 %vm16601_vm1, %v77_v30  ;;  %32423 = vmatprep.subr.msk.mxu1 %vm16608_vm0, %v36633_v25  ;;  %v16860_v52 = vpop.permute.xlu1 %16859 }
 0x570   :  { %v36658_v38 = vsel %vm1390_vm4, %v16858_v57, %v16860_v52  ;;  %32424 = vmatpush3.msk.msra.mxu1 %vm16608_vm0, %v36633_v25  ;;  %v36664_v10 = vsel %vm1390_vm4, %v16860_v52, %v36633_v25  ;;  %16947 = vmatprep.mubr.f32.mxu1 %v39419_v6  ;;  %v17600_v7 = vsel %vm2694_vm6, %v36652_v41, %v36641_v20 }
 0x571   :  { %20274 = vrot.lane.b32.xlu0 %v36461_v44, %s33854_s19  ;;  %31213 = vmatprep.subr.msk.mxu0 %vm16608_vm0, %v36664_v10 }
 0x572   :  { %31224 = vmatprep.subr.msk.mxu1 %vm16608_vm0, %v36459_v26  ;;  %31214 = vmatpush1.msk.msra.mxu0 %vm16608_vm0, %v36658_v38 }
 0x573   :  { %v36675_v3 = vpop.permute.xlu0 %17598  ;;  %31212 = vmatmul.mubr.msk.f32.gmra.mrb[112].mxu1 %vm16601_vm1, %v78_v16  ;;  %31215 = vmatmul.mubr.msk.f32.vlgmr.msra.gmra.mrb[14].mxu0 %vm16601_vm1, %v77_v30  ;;  %v36679_v49 = vpop.permute.xlu1 %17594 }
 0x574   :  { %31220 = vmatprep.subr.msk.mxu0 %vm16608_vm0, %v36448_v28  ;;  %17024 = vmatprep.mubr.f32.mxu0 %v39419_v6  ;;  %v36758_v12 = vsel %vm2694_vm6, %v36641_v20, %v36679_v49 }
 0x575   :  { %31221 = vmatpush1.msk.msra.mxu0 %vm16608_vm0, %v36440_v32  ;;  %20530 = vrot.lane.b32.xlu0 %v36486_v13, %s33854_s19 }
 0x576   :  { %32428 = vmatprep.subr.msk.mxu0 %vm16608_vm0, %v36461_v44  ;;  %32425 = vmatprep.mubr.msk.f32.mxu1 %vm16601_vm1, %v77_v30 }
 0x577   :  { %v36691_v1 = vpop.permute.xlu0 %17851  ;;  %31216 = vmatmul.mubr.msk.f32.gmra.mrb[16].mxu0 %vm16601_vm1, %v78_v16  ;;  %32426 = vmatmul.mubr.msk.f32.vlgmr.msra.gmra.mrb[114].mxu1 %vm16601_vm1, %v78_v16  ;;  %v17597_v34 = vpop.permute.xlu1 %17596 }
 0x578   :  { %31225 = vmatpush1.msk.msra.mxu1 %vm16608_vm0, %v36450_v17  ;;  %17186 = vmatprep.mubr.f32.mxu0 %v39419_v6  ;;  %v36762_v51 = vsel %vm2694_vm6, %v17597_v34, %v36675_v3  ;;  %v36796_v53 = vsel %vm2694_vm6, %v36679_v49, %v17597_v34  ;;  %v81_v34 = vld [vmem:[%s39409_s3 + $0x30] sm:$0xff] }
 0x579   :  { %31231 = vmatprep.subr.msk.mxu1 %vm16608_vm0, %v36486_v13  ;;  %20534 = vrot.lane.b32.xlu0 %v36493_v47, %s33854_s19 }
 0x57a   :  { %17263 = vmatprep.mubr.f32.mxu1 %v39419_v6 }
 0x57b   :  { %v36706_v37 = vpop.permute.xlu0 %17855  ;;  %31222 = vmatmul.mubr.msk.f32.vlgmr.msra.gmra.mrb[8].mxu0 %vm16601_vm1, %v75_v21  ;;  %31226 = vmatmul.mubr.msk.f32.vlgmr.msra.gmra.mrb[106].mxu1 %vm16601_vm1, %v75_v21  ;;  %v36710_v45 = vpop.permute.xlu1 %16526 }
 0x57c   :  { %32429 = vmatpush3.msk.msra.mxu0 %vm16608_vm0, %v36461_v44  ;;  %31232 = vmatpush1.msk.msra.mxu1 %vm16608_vm0, %v36479_v36  ;;  %v16547_v48 = vsel %vm3349_vm7, %v36445_v15, %v36710_v45 }
 0x57d   :  { %v36723_v4 = vmax.f32 %v36416_v54, %v16547_v48  ;;  %31235 = vmatprep.subr.msk.mxu0 %vm16608_vm0, %v36493_v47  ;;  %32433 = vmatprep.subr.msk.mxu1 %vm16608_vm0, %v36477_v56 }
 0x57e   :  { %20528 = vrot.lane.b32.xlu0 %v36479_v36, %s33854_s19  ;;  %17192 = vmatprep.mubr.f32.mxu0 %v39419_v6 }
 0x57f   :  { %17269 = vmatprep.mubr.f32.mxu1 %v39419_v6  ;;  %v17850_v62 = vpop.permute.xlu0 %17849  ;;  %31223 = vmatmul.mubr.msk.f32.gmra.mrb[10].mxu0 %vm16601_vm1, %v76_v35  ;;  %v36734_v14 = vpop.permute.xlu1 %17853 }
 0x580   :  { %31227 = vmatmul.mubr.msk.f32.gmra.mrb[108].mxu1 %vm16601_vm1, %v76_v35  ;;  %19199 = vrot.lane.b32.xlu1 %v36723_v4, %s33850_s15  ;;  %v36807_v5 = vsel %vm2694_vm6, %v36691_v1, %v36734_v14  ;;  %v17859_v22 = vsel %vm2694_vm6, %v17850_v62, %v36691_v1  ;;  %v36870_v16 = vsel %vm2694_vm6, %v36734_v14, %v36706_v37  ;;  %v82_v62 = vld [vmem:[%s39409_s3 + $0x38] sm:$0xff] }
 0x581   :  { %32430 = vmatprep.mubr.msk.f32.mxu0 %vm16601_vm1, %v75_v21  ;;  %17425 = vmatprep.mubr.f32.mxu1 %v39419_v6 }
 0x582   :  { %20806 = vrot.lane.b32.xlu0 %v36448_v28, %s33863_s13 }
 0x583   :  { %v36743_v54 = vpop.permute.xlu0 %18124  ;;  %32431 = vmatmul.mubr.msk.f32.vlgmr.msra.gmra.mrb[12].mxu0 %vm16601_vm1, %v76_v35  ;;  %v36746_v15 = vpop.permute.xlu1 %16540 }
 0x584   :  { %31233 = vmatmul.mubr.msk.f32.vlgmr.msra.gmra.mrb[110].mxu1 %vm16601_vm1, %v75_v21  ;;  %31236 = vmatpush1.msk.msra.mxu0 %vm16608_vm0, %v36468_v46  ;;  %v16553_v8 = vsel %vm3349_vm7, %v36470_v9, %v36746_v15  ;;  %vm18665_vm7 = vcmask 982016  }
 0x585   :  { %32434 = vmatpush3.msk.msra.mxu1 %vm16608_vm0, %v36477_v56  ;;  %19456 = vrot.lane.b32.xlu1 %v36468_v46, %s33850_s15  ;;  %v36909_v52 = vmax.f32 %v36434_v11, %v16553_v8 }
 0x586   :  { %31242 = vmatprep.subr.msk.mxu0 %vm16608_vm0, %v36758_v12  ;;  %31246 = vmatprep.subr.msk.mxu1 %vm16608_vm0, %v36762_v51 }
 0x587   :  { %20804 = vrot.lane.b32.xlu0 %v36440_v32, %s33863_s13  ;;  %17431 = vmatprep.mubr.f32.mxu1 %v39419_v6  ;;  %v36771_v29 = vpop.permute.xlu0 %18122  ;;  %v36773_v55 = vpop.permute.xlu1 %18126 }
 0x588   :  { %17502 = vmatprep.mubr.f32.mxu0 %v39419_v6  ;;  %31234 = vmatmul.mubr.msk.f32.gmra.mrb[112].mxu1 %vm16601_vm1, %v76_v35  ;;  %v36898_v42 = vsel %vm18132_vm2, %v36743_v54, %v36773_v55  ;;  %v18133_v41 = vsel %vm18132_vm2, %v36771_v29, %v36743_v54 }
 0x589   :  { %31237 = vmatmul.mubr.msk.f32.vlgmr.msra.gmra.mrb[14].mxu0 %vm16601_vm1, %v75_v21  ;;  %19732 = vrot.lane.b32.xlu1 %v36450_v17, %s33852_s29 }
 0x58a   :  { %31243 = vmatpush1.msk.msra.mxu0 %vm16608_vm0, %v17600_v7  ;;  %17508 = vmatprep.mubr.f32.mxu0 %v39419_v6 }
 0x58b   :  { %32438 = vmatprep.subr.msk.mxu0 %vm16608_vm0, %v36675_v3  ;;  %20812 = vrot.lane.b32.xlu0 %v36461_v44, %s33863_s13  ;;  %v36789_v50 = vpop.permute.xlu0 %18130  ;;  %v36791_v43 = vpop.permute.xlu1 %18128 }
 0x58c   :  { %32435 = vmatprep.mubr.msk.f32.mxu1 %vm16601_vm1, %v75_v21  ;;  %v36884_v20 = vsel %vm18132_vm2, %v36791_v43, %v36789_v50  ;;  %v36925_v11 = vsel %vm18132_vm2, %v36773_v55, %v36791_v43 }
 0x58d   :  { %31238 = vmatmul.mubr.msk.f32.gmra.mrb[16].mxu0 %vm16601_vm1, %v76_v35  ;;  %32436 = vmatmul.mubr.msk.f32.vlgmr.msra.gmra.mrb[114].mxu1 %vm16601_vm1, %v76_v35 }
 0x58e   :  { %31247 = vmatpush1.msk.msra.mxu1 %vm16608_vm0, %v36796_v53  ;;  %19734 = vrot.lane.b32.xlu1 %v36459_v26, %s33852_s29 }
 0x58f   :  { %31253 = vmatprep.subr.msk.mxu1 %vm16608_vm0, %v36807_v5  ;;  %21069 = vrot.lane.b32.xlu0 %v36486_v13, %s33863_s13  ;;  %v36816_v23 = vpop.permute.xlu0 %18386  ;;  %v36818_v40 = vpop.permute.xlu1 %18384 }
 0x590   :  { %17684 = vmatprep.mubr.f32.mxu0 %v39419_v6  ;;  %17761 = vmatprep.mubr.f32.mxu1 %v39419_v6  ;;  %v36936_v1 = vsel %vm18132_vm2, %v36818_v40, %v36816_v23 }
 0x591   :  { %31244 = vmatmul.mubr.msk.f32.vlgmr.msra.gmra.mrb[8].mxu0 %vm16601_vm1, %v79_v39  ;;  %31248 = vmatmul.mubr.msk.f32.vlgmr.msra.gmra.mrb[106].mxu1 %vm16601_vm1, %v79_v39 }
 0x592   :  { %32439 = vmatpush3.msk.msra.mxu0 %vm16608_vm0, %v36675_v3  ;;  %19738 = vrot.lane.b32.xlu1 %v36723_v4, %s33852_s29 }
 0x593   :  { %31254 = vmatpush1.msk.msra.mxu1 %vm16608_vm0, %v17859_v22  ;;  %21073 = vrot.lane.b32.xlu0 %v36493_v47, %s33863_s13  ;;  %v36836_v59 = vpop.permute.xlu0 %18657  ;;  %v36838_v0 = vpop.permute.xlu1 %18388 }
 0x594   :  { %17690 = vmatprep.mubr.f32.mxu0 %v39419_v6  ;;  %17767 = vmatprep.mubr.f32.mxu1 %v39419_v6  ;;  %v36991_v55 = vsel %vm18132_vm2, %v36816_v23, %v36838_v0 }
 0x595   :  { %31245 = vmatmul.mubr.msk.f32.gmra.mrb[10].mxu0 %vm16601_vm1, %v80_v2  ;;  %31249 = vmatmul.mubr.msk.f32.gmra.mrb[108].mxu1 %vm16601_vm1, %v80_v2 }
 0x596   :  { %19994 = vrot.lane.b32.xlu1 %v36468_v46, %s33852_s29  ;;  %32440 = vmatprep.mubr.msk.f32.mxu0 %vm16601_vm1, %v79_v39 }
 0x597   :  { %21067 = vrot.lane.b32.xlu0 %v36479_v36, %s33863_s13  ;;  %17937 = vmatprep.mubr.f32.mxu1 %v39419_v6  ;;  %v36850_v33 = vpop.permute.xlu0 %18655  ;;  %v36852_v30 = vpop.permute.xlu1 %17857 }
 0x598   :  { %32443 = vmatprep.subr.msk.mxu1 %vm16608_vm0, %v36852_v30  ;;  %v36859_v19 = vsel %vm2694_vm6, %v36706_v37, %v36852_v30 }
 0x599   :  { %32441 = vmatmul.mubr.msk.f32.vlgmr.msra.gmra.mrb[12].mxu0 %vm16601_vm1, %v80_v2  ;;  %31255 = vmatmul.mubr.msk.f32.vlgmr.msra.gmra.mrb[110].mxu1 %vm16601_vm1, %v79_v39 }
 0x59a   :  { %19460 = vrot.lane.b32.xlu1 %v36477_v56, %s33850_s15  ;;  %31257 = vmatprep.subr.msk.mxu0 %vm16608_vm0, %v36859_v19 }
 0x59b   :  { %21345 = vrot.lane.b32.xlu0 %v36448_v28, %s33864_s18  ;;  %32444 = vmatpush3.msk.msra.mxu1 %vm16608_vm0, %v36852_v30  ;;  %v36876_v57 = vpop.permute.xlu0 %18663  ;;  %v18383_v58 = vpop.permute.xlu1 %18382 }
 0x59c   :  { %17943 = vmatprep.mubr.f32.mxu1 %v39419_v6  ;;  %31258 = vmatpush1.msk.msra.mxu0 %vm16608_vm0, %v36870_v16  ;;  %v18392_v37 = vsel %vm18132_vm2, %v18383_v58, %v36818_v40  ;;  %v18666_v40 = vsel %vm18665_vm7, %v36850_v33, %v36836_v59 }
 0x59d   :  { %18014 = vmatprep.mubr.f32.mxu0 %v39419_v6  ;;  %31268 = vmatprep.subr.msk.mxu1 %vm16608_vm0, %v36884_v20 }
 0x59e   :  { %20270 = vrot.lane.b32.xlu1 %v36450_v17, %s33854_s19  ;;  %31256 = vmatmul.mubr.msk.f32.gmra.mrb[112].mxu1 %vm16601_vm1, %v80_v2 }
 0x59f   :  { %31259 = vmatmul.mubr.msk.f32.vlgmr.msra.gmra.mrb[14].mxu0 %vm16601_vm1, %v79_v39  ;;  %31264 = vmatprep.subr.msk.mxu0 %vm16608_vm0, %v36898_v42  ;;  %v36906_v9 = vpop.permute.xlu0 %18919  ;;  %v36914_v49 = vpop.permute.xlu1 %18659 }
 0x5a0   :  { %31265 = vmatpush1.msk.msra.mxu0 %vm16608_vm0, %v18133_v41  ;;  %21343 = vrot.lane.b32.xlu0 %v36440_v32, %s33864_s18  ;;  %v37002_v7 = vsel %vm18665_vm7, %v36836_v59, %v36914_v49  ;;  %v84_v41 = vld [vmem:[%s39409_s3 + $0x48] sm:$0xff] }
 0x5a1   :  { %32448 = vmatprep.subr.msk.mxu0 %vm16608_vm0, %v36789_v50  ;;  %18020 = vmatprep.mubr.f32.mxu0 %v39419_v6 }
 0x5a2   :  { %32445 = vmatprep.mubr.msk.f32.mxu1 %vm16601_vm1, %v79_v39  ;;  %19462 = vrot.lane.b32.xlu1 %v36909_v52, %s33850_s15 }
 0x5a3   :  { %31260 = vmatmul.mubr.msk.f32.gmra.mrb[16].mxu0 %vm16601_vm1, %v80_v2  ;;  %32446 = vmatmul.mubr.msk.f32.vlgmr.msra.gmra.mrb[114].mxu1 %vm16601_vm1, %v80_v2  ;;  %v36929_v32 = vpop.permute.xlu0 %18390  ;;  %v18662_v21 = vpop.permute.xlu1 %18661 }
 0x5a4   :  { %31269 = vmatpush1.msk.msra.mxu1 %vm16608_vm0, %v36925_v11  ;;  %21351 = vrot.lane.b32.xlu0 %v36461_v44, %s33864_s18  ;;  %v36956_v48 = vsel %vm18132_vm2, %v36838_v0, %v36929_v32  ;;  %v37006_v43 = vsel %vm18665_vm7, %v18662_v21, %v36876_v57  ;;  %v37036_v22 = vsel %vm18665_vm7, %v36914_v49, %v18662_v21  ;;  %v83_v0 = vld [vmem:[%s39409_s3 + $0x40] sm:$0xff] }
 0x5a5   :  { %31275 = vmatprep.subr.msk.mxu1 %vm16608_vm0, %v36936_v1  ;;  %18217 = vmatprep.mubr.f32.mxu0 %v39419_v6 }
 0x5a6   :  { %18294 = vmatprep.mubr.f32.mxu1 %v39419_v6  ;;  %20272 = vrot.lane.b32.xlu1 %v36459_v26, %s33854_s19 }
 0x5a7   :  { %31266 = vmatmul.mubr.msk.f32.vlgmr.msra.gmra.mrb[8].mxu0 %vm16601_vm1, %v81_v34  ;;  %31270 = vmatmul.mubr.msk.f32.vlgmr.msra.gmra.mrb[106].mxu1 %vm16601_vm1, %v81_v34  ;;  %v36958_v35 = vpop.permute.xlu0 %19191  ;;  %v18918_v54 = vpop.permute.xlu1 %18917 }
 0x5a8   :  { %32449 = vmatpush3.msk.msra.mxu0 %vm16608_vm0, %v36789_v50  ;;  %31276 = vmatpush1.msk.msra.mxu1 %vm16608_vm0, %v18392_v37  ;;  %v37044_v2 = vsel %vm18665_vm7, %v18918_v54, %v36906_v9  ;;  %v37100_v37 = vmax.f32 %v36510_v63, %v36710_v45 }
 0x5a9   :  { %32453 = vmatprep.subr.msk.mxu1 %vm16608_vm0, %v36929_v32  ;;  %21608 = vrot.lane.b32.xlu0 %v36486_v13, %s33864_s18  ;;  %39465 = vst [vmem:[#allocation6_spill] sm:$0xff] %v37044_v2 }
 0x5aa   :  { %31279 = vmatprep.subr.msk.mxu0 %vm16608_vm0, %v36956_v48  ;;  %18223 = vmatprep.mubr.f32.mxu0 %v39419_v6  ;;  %39469 = vst [vmem:[#allocation10_spill] sm:$0xff] %v37100_v37 }
 0x5ab   :  { %18300 = vmatprep.mubr.f32.mxu1 %v39419_v6  ;;  %20276 = vrot.lane.b32.xlu1 %v36723_v4, %s33854_s19  ;;  %v36976_v14 = vpop.permute.xlu0 %19189  ;;  %v18922_v39 = vpop.permute.xlu1 %18921 }
 0x5ac   :  { %31267 = vmatmul.mubr.msk.f32.gmra.mrb[10].mxu0 %vm16601_vm1, %v82_v62  ;;  %31271 = vmatmul.mubr.msk.f32.gmra.mrb[108].mxu1 %vm16601_vm1, %v82_v62  ;;  %v37094_v21 = vsel %vm18665_vm7, %v36906_v9, %v18922_v39  ;;  %v19201_v63 = vsel %vm6640_vm12, %v36976_v14, %v36958_v35 }
 0x5ad   :  { %21612 = vrot.lane.b32.xlu0 %v36493_v47, %s33864_s18  ;;  %32450 = vmatprep.mubr.msk.f32.mxu0 %vm16601_vm1, %v81_v34  ;;  %39468 = vst [vmem:[#allocation9_spill] sm:$0xff] %v37094_v21 }
 0x5ae   :  { %18470 = vmatprep.mubr.f32.mxu1 %v39419_v6 }
 0x5af   :  { %19998 = vrot.lane.b32.xlu1 %v36477_v56, %s33852_s29  ;;  %v36986_v29 = vpop.permute.xlu0 %19197 }
 0x5b0   :  { %32451 = vmatmul.mubr.msk.f32.vlgmr.msra.gmra.mrb[12].mxu0 %vm16601_vm1, %v82_v62  ;;  %31277 = vmatmul.mubr.msk.f32.vlgmr.msra.gmra.mrb[110].mxu1 %vm16601_vm1, %v81_v34 }
 0x5b1   :  { %31280 = vmatpush1.msk.msra.mxu0 %vm16608_vm0, %v36991_v55  ;;  %32454 = vmatpush3.msk.msra.mxu1 %vm16608_vm0, %v36929_v32 }
 0x5b2   :  { %31286 = vmatprep.subr.msk.mxu0 %vm16608_vm0, %v37002_v7  ;;  %31290 = vmatprep.subr.msk.mxu1 %vm16608_vm0, %v37006_v43 }
 0x5b3   :  { %21606 = vrot.lane.b32.xlu0 %v36479_v36, %s33864_s18  ;;  %18476 = vmatprep.mubr.f32.mxu1 %v39419_v6  ;;  %v37018_v23 = vpop.permute.xlu0 %19454  ;;  %v18916_v36 = vpop.permute.xlu1 %18915 }
 0x5b4   :  { %18547 = vmatprep.mubr.f32.mxu0 %v39419_v6  ;;  %20532 = vrot.lane.b32.xlu1 %v36468_v46, %s33854_s19  ;;  %v18925_v33 = vsel %vm18665_vm7, %v18916_v36, %v18918_v54 }
 0x5b5   :  { %31278 = vmatmul.mubr.msk.f32.gmra.mrb[112].mxu1 %vm16601_vm1, %v82_v62  ;;  %31281 = vmatmul.mubr.msk.f32.vlgmr.msra.gmra.mrb[14].mxu0 %vm16601_vm1, %v81_v34 }
 0x5b6   :  { %31287 = vmatpush1.msk.msra.mxu0 %vm16608_vm0, %v18666_v40  ;;  %18553 = vmatprep.mubr.f32.mxu0 %v39419_v6 }
 0x5b7   :  { %32458 = vmatprep.subr.msk.mxu0 %vm16608_vm0, %v36876_v57  ;;  %22370 = vrot.lane.b32.xlu0 %v36723_v4, %s33841_s20  ;;  %v37047_v59 = vpop.permute.xlu0 %18923  ;;  %v19194_v8 = vpop.permute.xlu1 %19193 }
 0x5b8   :  { %32455 = vmatprep.mubr.msk.f32.mxu1 %vm16601_vm1, %v81_v34  ;;  %20000 = vrot.lane.b32.xlu1 %v36909_v52, %s33852_s29  ;;  %39466 = vst [vmem:[#allocation7_spill] sm:$0xff] %v37047_v59  ;;  %v37064_v58 = vsel %vm18665_vm7, %v18922_v39, %v37047_v59  ;;  %v37164_v39 = vld [vmem:[%s39409_s3 + $0x58] sm:$0xff] }
 0x5b9   :  { %31282 = vmatmul.mubr.msk.f32.gmra.mrb[16].mxu0 %vm16601_vm1, %v82_v62  ;;  %32456 = vmatmul.mubr.msk.f32.vlgmr.msra.gmra.mrb[114].mxu1 %vm16601_vm1, %v82_v62  ;;  %39467 = vst [vmem:[#allocation8_spill] sm:$0xff] %v37064_v58  ;;  %v37108_v62 = vsel %vm6640_vm12, %v36958_v35, %v19194_v8  ;;  %v37147_v35 = vld [vmem:[%s39409_s3 + $0x50] sm:$0xff] }
 0x5ba   :  { %31291 = vmatpush1.msk.msra.mxu1 %vm16608_vm0, %v37036_v22  ;;  %18750 = vmatprep.mubr.f32.mxu0 %v39419_v6  ;;  %39470 = vst [vmem:[#allocation11_spill] sm:$0xff] %v37108_v62 }
 0x5bb   :  { %31297 = vmatprep.subr.msk.mxu1 %vm16608_vm0, %v37044_v2  ;;  %22868 = vrot.lane.b32.xlu0 %v36723_v4, %s33843_s22  ;;  %v19196_v49 = vpop.permute.xlu1 %19195  ;;  %v37088_v34 = vpop.permute.xlu0 %19458 }
 0x5bc   :  { %18827 = vmatprep.mubr.f32.mxu1 %v39419_v6  ;;  %20808 = vrot.lane.b32.xlu1 %v36450_v17, %s33863_s13  ;;  %v37112_v9 = vsel %vm6640_vm12, %v19196_v49, %v36986_v29  ;;  %v37137_v54 = vsel %vm6640_vm12, %v19194_v8, %v19196_v49  ;;  %v29314_v8 = vld [vmem:[%s39410_s4] sm:$0xff] }
 0x5bd   :  { %31288 = vmatmul.mubr.msk.f32.vlgmr.msra.gmra.mrb[8].mxu0 %vm16601_vm1, %v83_v0  ;;  %31292 = vmatmul.mubr.msk.f32.vlgmr.msra.gmra.mrb[106].mxu1 %vm16601_vm1, %v83_v0  ;;  %39471 = vst [vmem:[#allocation12_spill] sm:$0xff] %v37112_v9  ;;  %39472 = vst [vmem:[#allocation13_spill] sm:$0xff] %v37137_v54 }
 0x5be   :  { %32459 = vmatpush3.msk.msra.mxu0 %vm16608_vm0, %v36876_v57  ;;  %31298 = vmatpush1.msk.msra.mxu1 %vm16608_vm0, %v18925_v33 }
 0x5bf   :  { %32463 = vmatprep.subr.msk.mxu1 %vm16608_vm0, %v37047_v59  ;;  %23366 = vrot.lane.b32.xlu0 %v36723_v4, %s33861_s2  ;;  %v19453_v45 = vpop.permute.xlu0 %19452 }
 0x5c0   :  { %31301 = vmatprep.subr.msk.mxu0 %vm16608_vm0, %v37064_v58  ;;  %18756 = vmatprep.mubr.f32.mxu0 %v39419_v6 }
 0x5c1   :  { %18833 = vmatprep.mubr.f32.mxu1 %v39419_v6  ;;  %20810 = vrot.lane.b32.xlu1 %v36459_v26, %s33863_s13 }
 0x5c2   :  { %31289 = vmatmul.mubr.msk.f32.gmra.mrb[10].mxu0 %vm16601_vm1, %v84_v41  ;;  %31293 = vmatmul.mubr.msk.f32.gmra.mrb[108].mxu1 %vm16601_vm1, %v84_v41 }
 0x5c3   :  { %23864 = vrot.lane.b32.xlu0 %v36723_v4, %s33862_s25  ;;  %32460 = vmatprep.mubr.msk.f32.mxu0 %vm16601_vm1, %v83_v0  ;;  %v37149_v14 = vpop.permute.xlu0 %19730 }
 0x5c4   :  { %19003 = vmatprep.mubr.f32.mxu1 %v39419_v6 }
 0x5c5   :  { %20536 = vrot.lane.b32.xlu1 %v36477_v56, %s33854_s19 }
 0x5c6   :  { %32461 = vmatmul.mubr.msk.f32.vlgmr.msra.gmra.mrb[12].mxu0 %vm16601_vm1, %v84_v41  ;;  %31299 = vmatmul.mubr.msk.f32.vlgmr.msra.gmra.mrb[110].mxu1 %vm16601_vm1, %v83_v0 }
 0x5c7   :  { %31302 = vmatpush1.msk.msra.mxu0 %vm16608_vm0, %v37094_v21  ;;  %32464 = vmatpush3.msk.msra.mxu1 %vm16608_vm0, %v37047_v59  ;;  %v19729_v40 = vpop.permute.xlu0 %19728 }
 0x5c8   :  { %31308 = vmatprep.subr.msk.mxu0 %vm16608_vm0, %v37108_v62  ;;  %31312 = vmatprep.subr.msk.mxu1 %vm16608_vm0, %v37112_v9  ;;  %v19464_v9 = vsel %vm6640_vm12, %v19453_v45, %v37018_v23  ;;  %v19740_v59 = vsel %vm7956_vm14, %v19729_v40, %v37149_v14  ;;  %v87_v40 = vld [vmem:[%s39409_s3 + $0x60] sm:$0xff] }
 0x5c9   :  { %24363 = vrot.lane.b32.xlu0 %v37100_v37, %s33850_s15  ;;  %19009 = vmatprep.mubr.f32.mxu1 %v39419_v6 }
 0x5ca   :  { %19080 = vmatprep.mubr.f32.mxu0 %v39419_v6  ;;  %20814 = vrot.lane.b32.xlu1 %v36723_v4, %s33863_s13 }
 0x5cb   :  { %31300 = vmatmul.mubr.msk.f32.gmra.mrb[112].mxu1 %vm16601_vm1, %v84_v41  ;;  %31303 = vmatmul.mubr.msk.f32.vlgmr.msra.gmra.mrb[14].mxu0 %vm16601_vm1, %v83_v0  ;;  %v37182_v36 = vpop.permute.xlu0 %19736 }
 0x5cc   :  { %31309 = vmatpush1.msk.msra.mxu0 %vm16608_vm0, %v19201_v63  ;;  %32465 = vmatprep.mubr.msk.f32.mxu1 %vm16601_vm1, %v83_v0 }
 0x5cd   :  { %24858 = vrot.lane.b32.xlu0 %v37100_v37, %s33852_s29  ;;  %19086 = vmatprep.mubr.f32.mxu0 %v39419_v6 }
 0x5ce   :  { %20538 = vrot.lane.b32.xlu1 %v36909_v52, %s33854_s19 }
 0x5cf   :  { %32466 = vmatmul.mubr.msk.f32.vlgmr.msra.gmra.mrb[114].mxu1 %vm16601_vm1, %v84_v41  ;;  %31304 = vmatmul.mubr.msk.f32.gmra.mrb[16].mxu0 %vm16601_vm1, %v84_v41  ;;  %v37192_v0 = vpop.permute.xlu0 %19992 }
 0x5d0   :  { %31313 = vmatpush1.msk.msra.mxu1 %vm16608_vm0, %v37137_v54  ;;  %19286 = vmatprep.mubr.f32.mxu0 %v39419_v6 }
 0x5d1   :  { %25352 = vrot.lane.b32.xlu0 %v37100_v37, %s33854_s19  ;;  %19363 = vmatprep.mubr.f32.mxu1 %v39419_v6 }
 0x5d2   :  { %21071 = vrot.lane.b32.xlu1 %v36468_v46, %s33863_s13 }
 0x5d3   :  { %31310 = vmatmul.mubr.msk.f32.vlgmr.msra.gmra.mrb[8].mxu0 %vm16601_vm1, %v37147_v35  ;;  %31314 = vmatmul.mubr.msk.f32.vlgmr.msra.gmra.mrb[106].mxu1 %vm16601_vm1, %v37147_v35  ;;  %v37198_v33 = vpop.permute.xlu0 %19996 }
 0x5d4   :  { %19292 = vmatprep.mubr.f32.mxu0 %v39419_v6  ;;  %19369 = vmatprep.mubr.f32.mxu1 %v39419_v6 }
 0x5d5   :  { %25846 = vrot.lane.b32.xlu0 %v37100_v37, %s33863_s13 }
 0x5d6   :  { %21347 = vrot.lane.b32.xlu1 %v36450_v17, %s33864_s18 }
 0x5d7   :  { %31311 = vmatmul.mubr.msk.f32.gmra.mrb[10].mxu0 %vm16601_vm1, %v37164_v39  ;;  %31315 = vmatmul.mubr.msk.f32.gmra.mrb[108].mxu1 %vm16601_vm1, %v37164_v39  ;;  %v37209_v41 = vpop.permute.xlu0 %19990 }
 0x5d8   :  { %32470 = vmatprep.mubr.msk.f32.mxu0 %vm16601_vm1, %v37147_v35  ;;  %19543 = vmatprep.mubr.f32.mxu1 %v39419_v6 }
 0x5d9   :  { %26340 = vrot.lane.b32.xlu0 %v37100_v37, %s33864_s18 }
 0x5da   :  { %21075 = vrot.lane.b32.xlu1 %v36477_v56, %s33863_s13 }
 0x5db   :  { %v37222_v6 = vpop.permute.xlu0 %20268 }
 0x5dd   :  { %27322 = vrot.lane.b32.xlu0 %v37100_v37, %s33841_s20 }
 0x5de   :  { %21349 = vrot.lane.b32.xlu1 %v36459_v26, %s33864_s18 }
 0x5e1   :  { %27820 = vrot.lane.b32.xlu0 %v37100_v37, %s33843_s22 }
 0x5e2   :  { %21077 = vrot.lane.b32.xlu1 %v36909_v52, %s33863_s13 }
 0x5e5   :  { %28318 = vrot.lane.b32.xlu0 %v37100_v37, %s33861_s2 }
 0x5e6   :  { %21353 = vrot.lane.b32.xlu1 %v36723_v4, %s33864_s18 }
 0x5e9   :  { %28816 = vrot.lane.b32.xlu0 %v37100_v37, %s33862_s25  ;;  %v39475_v37 = vmov 0.0  }
 0x5ea   :  { %21610 = vrot.lane.b32.xlu1 %v36468_v46, %s33864_s18 }
 0x5ed   :  { %29318 = vperm.xlu0 %33710, %v29314_v8  }
 0x5ee   :  { %21614 = vrot.lane.b32.xlu1 %v36477_v56, %s33864_s18 }
 0x5f2   :  { %21616 = vrot.lane.b32.xlu1 %v36909_v52, %s33864_s18  ;;  %v37213_v49 = vpop.permute.xlu1 %19199 }
 0x5f3   :  { %39473 = vst [vmem:[#allocation14_spill] sm:$0xff] %v37213_v49  ;;  %v37218_v63 = vsel %vm6640_vm12, %v36986_v29, %v37213_v49 }
 0x5f4   :  { %39474 = vst [vmem:[#allocation15_spill] sm:$0xff] %v37218_v63  ;;  %32468 = vmatprep.subr.msk.mxu0 %vm16608_vm0, %v37218_v63 }
 0x5f5   :  { %32469 = vmatpush3.msk.msra.mxu0 %vm16608_vm0, %v37218_v63  ;;  %v37242_v63 = vpop.permute.xlu0 %20266 }
 0x5f6   :  { %22612 = vrot.lane.b32.xlu1 %v36909_v52, %s33841_s20  ;;  %32471 = vmatmul.mubr.msk.f32.vlgmr.msra.gmra.mrb[12].mxu0 %vm16601_vm1, %v37164_v39 }
 0x5f7   :  { %v19457_v8 = vpop.permute.xlu1 %19456  ;;  %19620 = vmatprep.mubr.f32.mxu0 %v39475_v37 }
 0x5f8   :  { %v37233_v29 = vsel %vm6640_vm12, %v37018_v23, %v19457_v8 }
 0x5f9   :  { %39476 = vst [vmem:[#allocation16_spill] sm:$0xff] %v37233_v29  ;;  %31319 = vmatprep.subr.msk.mxu1 %vm16608_vm0, %v37233_v29  ;;  %v37253_v45 = vpop.permute.xlu0 %20274 }
 0x5fa   :  { %23110 = vrot.lane.b32.xlu1 %v36909_v52, %s33843_s22  ;;  %31320 = vmatpush1.msk.msra.mxu1 %vm16608_vm0, %v19464_v9  ;;  %v37259_v9 = vmax.f32 %v36523_v18, %v36746_v15  ;;  %v37277_v18 = vsel %vm6640_vm12, %v19457_v8, %v37088_v34 }
 0x5fb   :  { %v19733_v62 = vpop.permute.xlu1 %19732  ;;  %31321 = vmatmul.mubr.msk.f32.vlgmr.msra.gmra.mrb[110].mxu1 %vm16601_vm1, %v37147_v35 }
 0x5fc   :  { %19549 = vmatprep.mubr.f32.mxu1 %v39475_v37  ;;  %39477 = vst [vmem:[#allocation17_spill] sm:$0xff] %v37259_v9  ;;  %v37287_v15 = vsel %vm7956_vm14, %v37149_v14, %v19733_v62 }
 0x5fd   :  { %v37265_v49 = vpop.permute.xlu0 %20530  ;;  %39480 = vst [vmem:[#allocation20_spill] sm:$0xff] %v37287_v15 }
 0x5fe   :  { %23608 = vrot.lane.b32.xlu1 %v36909_v52, %s33861_s2 }
 0x5ff   :  { %31322 = vmatmul.mubr.msk.f32.gmra.mrb[112].mxu1 %vm16601_vm1, %v37164_v39 }
 0x600   :  { %v19735_v23 = vpop.permute.xlu1 %19734  ;;  %32475 = vmatprep.mubr.msk.f32.mxu1 %vm16601_vm1, %v37147_v35 }
 0x601   :  { %v37269_v2 = vpop.permute.xlu0 %20534 }
 0x602   :  { %24106 = vrot.lane.b32.xlu1 %v36909_v52, %s33862_s25 }
 0x604   :  { %v37261_v29 = vpop.permute.xlu1 %19738 }
 0x605   :  { %39478 = vst [vmem:[#allocation18_spill] sm:$0xff] %v37261_v29  ;;  %v37301_v8 = vsel %vm7956_vm14, %v37182_v36, %v37261_v29 }
 0x606   :  { %24604 = vrot.lane.b32.xlu1 %v37259_v9, %s33850_s15  ;;  %39481 = vst [vmem:[#allocation21_spill] sm:$0xff] %v37301_v8 }
 0x608   :  { %v19995_v54 = vpop.permute.xlu1 %19994 }
 0x60a   :  { %25098 = vrot.lane.b32.xlu1 %v37259_v9, %s33852_s29  ;;  %s33871_s29 = smov 47  }
 0x60c   :  { %v19461_v58 = vpop.permute.xlu1 %19460 }
 0x60d   :  { %v37273_v21 = vsel %vm6640_vm12, %v37088_v34, %v19461_v58 }
 0x60e   :  { %39479 = vst [vmem:[#allocation19_spill] sm:$0xff] %v37273_v21  ;;  %25592 = vrot.lane.b32.xlu1 %v37259_v9, %s33854_s19  ;;  %31323 = vmatprep.subr.msk.mxu0 %vm16608_vm0, %v37273_v21  ;;  %v37338_v21 = vsel %vm7956_vm14, %v19733_v62, %v19735_v23  ;;  %v37353_v62 = vsel %vm7956_vm14, %v37192_v0, %v19995_v54 }
 0x60f   :  { %31324 = vmatpush1.msk.msra.mxu0 %vm16608_vm0, %v37277_v18  ;;  %39483 = vst [vmem:[#allocation23_spill] sm:$0xff] %v37353_v62 }
 0x610   :  { %31325 = vmatmul.mubr.msk.f32.vlgmr.msra.gmra.mrb[14].mxu0 %vm16601_vm1, %v37147_v35  ;;  %31330 = vmatprep.subr.msk.mxu0 %vm16608_vm0, %v37287_v15  ;;  %v37295_v34 = vpop.permute.xlu1 %20270  ;;  %v37308_v35 = vpop.permute.xlu0 %20528 }
 0x611   :  { %31331 = vmatpush1.msk.msra.mxu0 %vm16608_vm0, %v19740_v59  ;;  %19626 = vmatprep.mubr.f32.mxu0 %v39475_v37 }
 0x612   :  { %26086 = vrot.lane.b32.xlu1 %v37259_v9, %s33863_s13  ;;  %32478 = vmatprep.subr.msk.mxu0 %vm16608_vm0, %v37301_v8  ;;  %s33877_s13 = smov 119  }
 0x614   :  { %31326 = vmatmul.mubr.msk.f32.gmra.mrb[16].mxu0 %vm16601_vm1, %v37164_v39  ;;  %v37312_v14 = vpop.permute.xlu1 %19462  ;;  %v37335_v29 = vpop.permute.xlu0 %20806 }
 0x615   :  { %v37316_v59 = vsel %vm6640_vm12, %v19461_v58, %v37312_v14  ;;  %19825 = vmatprep.mubr.f32.mxu0 %v39475_v37  ;;  %v37333_v58 = vsel %vm7956_vm14, %v19735_v23, %v37182_v36  ;;  %v20002_v36 = vsel %vm7956_vm14, %v37209_v41, %v37192_v0 }
 0x616   :  { %26580 = vrot.lane.b32.xlu1 %v37259_v9, %s33864_s18  ;;  %32473 = vmatprep.subr.msk.mxu1 %vm16608_vm0, %v37316_v59  ;;  %39482 = vst [vmem:[#allocation22_spill] sm:$0xff] %v37333_v58 }
 0x617   :  { %32474 = vmatpush3.msk.msra.mxu1 %vm16608_vm0, %v37316_v59 }
 0x618   :  { %32476 = vmatmul.mubr.msk.f32.vlgmr.msra.gmra.mrb[114].mxu1 %vm16601_vm1, %v37164_v39  ;;  %31332 = vmatmul.mubr.msk.f32.vlgmr.msra.gmra.mrb[8].mxu0 %vm16601_vm1, %v87_v40  ;;  %v20273_v15 = vpop.permute.xlu1 %20272  ;;  %v88_v39 = vld [vmem:[%s39409_s3 + $0x68] sm:$0xff] }
 0x619   :  { %31334 = vmatprep.subr.msk.mxu1 %vm16608_vm0, %v37333_v58  ;;  %32479 = vmatpush3.msk.msra.mxu0 %vm16608_vm0, %v37301_v8  ;;  %v37398_v8 = vsel %vm9272_vm8, %v37222_v6, %v37295_v34 }
 0x61a   :  { %27564 = vrot.lane.b32.xlu1 %v37259_v9, %s33841_s20  ;;  %31335 = vmatpush1.msk.msra.mxu1 %vm16608_vm0, %v37338_v21  ;;  %39486 = vst [vmem:[#allocation26_spill] sm:$0xff] %v37398_v8 }
 0x61b   :  { %31341 = vmatprep.subr.msk.mxu1 %vm16608_vm0, %v37353_v62  ;;  %19831 = vmatprep.mubr.f32.mxu0 %v39475_v37  ;;  %v37370_v62 = vpop.permute.xlu0 %20804 }
 0x61c   :  { %19902 = vmatprep.mubr.f32.mxu1 %v39475_v37  ;;  %31333 = vmatmul.mubr.msk.f32.gmra.mrb[10].mxu0 %vm16601_vm1, %v88_v39 }
 0x61d   :  { %31336 = vmatmul.mubr.msk.f32.vlgmr.msra.gmra.mrb[106].mxu1 %vm16601_vm1, %v87_v40  ;;  %v37364_v23 = vpop.permute.xlu1 %20276  ;;  %32480 = vmatprep.mubr.msk.f32.mxu0 %vm16601_vm1, %v87_v40 }
 0x61e   :  { %39484 = vst [vmem:[#allocation24_spill] sm:$0xff] %v37364_v23  ;;  %28062 = vrot.lane.b32.xlu1 %v37259_v9, %s33843_s22  ;;  %31342 = vmatpush1.msk.msra.mxu1 %vm16608_vm0, %v20002_v36  ;;  %v37385_v36 = vsel %vm7956_vm14, %v19995_v54, %v37198_v33  ;;  %v20278_v54 = vsel %vm9272_vm8, %v37242_v63, %v37222_v6  ;;  %v89_v63 = vld [vmem:[%s39409_s3 + $0x70] sm:$0xff] }
 0x61f   :  { %19908 = vmatprep.mubr.f32.mxu1 %v39475_v37  ;;  %v37391_v58 = vpop.permute.xlu0 %20812 }
 0x620   :  { %32481 = vmatmul.mubr.msk.f32.vlgmr.msra.gmra.mrb[12].mxu0 %vm16601_vm1, %v88_v39 }
 0x621   :  { %31337 = vmatmul.mubr.msk.f32.gmra.mrb[108].mxu1 %vm16601_vm1, %v88_v39  ;;  %v19999_v0 = vpop.permute.xlu1 %19998  ;;  %20158 = vmatprep.mubr.f32.mxu0 %v39475_v37 }
 0x622   :  { %28560 = vrot.lane.b32.xlu1 %v37259_v9, %s33861_s2  ;;  %v37380_v41 = vsel %vm7956_vm14, %v37198_v33, %v19999_v0  ;;  %20081 = vmatprep.mubr.f32.mxu1 %v39475_v37 }
 0x623   :  { %39485 = vst [vmem:[#allocation25_spill] sm:$0xff] %v37380_v41  ;;  %31345 = vmatprep.subr.msk.mxu0 %vm16608_vm0, %v37380_v41  ;;  %v37411_v41 = vsel %vm9272_vm8, %v37253_v45, %v37364_v23  ;;  %v90_v23 = vld [vmem:[%s39409_s3 + $0x78] sm:$0xff] }
 0x624   :  { %31346 = vmatpush1.msk.msra.mxu0 %vm16608_vm0, %v37385_v36  ;;  %39487 = vst [vmem:[#allocation27_spill] sm:$0xff] %v37411_v41 }
 0x625   :  { %31343 = vmatmul.mubr.msk.f32.vlgmr.msra.gmra.mrb[110].mxu1 %vm16601_vm1, %v87_v40  ;;  %31347 = vmatmul.mubr.msk.f32.vlgmr.msra.gmra.mrb[14].mxu0 %vm16601_vm1, %v87_v40 }
 0x626   :  { %29058 = vrot.lane.b32.xlu1 %v37259_v9, %s33862_s25  ;;  %31352 = vmatprep.subr.msk.mxu0 %vm16608_vm0, %v37398_v8  ;;  %v20533_v33 = vpop.permute.xlu1 %20532  ;;  %v37443_v8 = vsel %vm9272_vm8, %v37295_v34, %v20273_v15  ;;  %v20540_v34 = vsel %vm9272_vm8, %v37308_v35, %v37265_v49 }
 0x627   :  { %31353 = vmatpush1.msk.msra.mxu0 %vm16608_vm0, %v20278_v54  ;;  %20087 = vmatprep.mubr.f32.mxu1 %v39475_v37  ;;  %v37426_v54 = vpop.permute.xlu0 %21069  ;;  %v37483_v35 = vsel %vm9272_vm8, %v20533_v33, %v37269_v2 }
 0x628   :  { %32488 = vmatprep.subr.msk.mxu0 %vm16608_vm0, %v37411_v41  ;;  %20164 = vmatprep.mubr.f32.mxu0 %v39475_v37 }
 0x629   :  { %31344 = vmatmul.mubr.msk.f32.gmra.mrb[112].mxu1 %vm16601_vm1, %v88_v39  ;;  %31348 = vmatmul.mubr.msk.f32.gmra.mrb[16].mxu0 %vm16601_vm1, %v88_v39 }
 0x62a   :  { %v37419_v6 = vpop.permute.xlu1 %20000  ;;  %32485 = vmatprep.mubr.msk.f32.mxu1 %vm16601_vm1, %v87_v40  ;;  %20363 = vmatprep.mubr.f32.mxu0 %v39475_v37  ;;  %v37439_v40 = vsel %vm9272_vm8, %v20273_v15, %v37253_v45  ;;  %v37457_v45 = vsel %vm9272_vm8, %v37265_v49, %v20533_v33 }
 0x62b   :  { %v37430_v9 = vsel %vm7956_vm14, %v19999_v0, %v37419_v6  ;;  %39488 = vst [vmem:[#allocation28_spill] sm:$0xff] %v37439_v40  ;;  %39489 = vst [vmem:[#allocation29_spill] sm:$0xff] %v37457_v45  ;;  %v37462_v15 = vpop.permute.xlu0 %21073 }
 0x62c   :  { %32483 = vmatprep.subr.msk.mxu1 %vm16608_vm0, %v37430_v9 }
 0x62d   :  { %32484 = vmatpush3.msk.msra.mxu1 %vm16608_vm0, %v37430_v9  ;;  %31354 = vmatmul.mubr.msk.f32.vlgmr.msra.gmra.mrb[8].mxu0 %vm16601_vm1, %v89_v63 }
 0x62e   :  { %32486 = vmatmul.mubr.msk.f32.vlgmr.msra.gmra.mrb[114].mxu1 %vm16601_vm1, %v88_v39  ;;  %31356 = vmatprep.subr.msk.mxu1 %vm16608_vm0, %v37439_v40  ;;  %v20809_v0 = vpop.permute.xlu1 %20808 }
 0x62f   :  { %32489 = vmatpush3.msk.msra.mxu0 %vm16608_vm0, %v37411_v41  ;;  %31357 = vmatpush1.msk.msra.mxu1 %vm16608_vm0, %v37443_v8  ;;  %v20817_v41 = vsel %vm20816_vm10, %v37370_v62, %v37335_v29  ;;  %v91_v62 = vld [vmem:[%s39409_s3 + $0x80] sm:$0xff] }
 0x630   :  { %31363 = vmatprep.subr.msk.mxu1 %vm16608_vm0, %v37457_v45  ;;  %20369 = vmatprep.mubr.f32.mxu0 %v39475_v37  ;;  %v21068_v45 = vpop.permute.xlu0 %21067 }
 0x631   :  { %20440 = vmatprep.mubr.f32.mxu1 %v39475_v37  ;;  %31355 = vmatmul.mubr.msk.f32.gmra.mrb[10].mxu0 %vm16601_vm1, %v90_v23 }
 0x632   :  { %31358 = vmatmul.mubr.msk.f32.vlgmr.msra.gmra.mrb[106].mxu1 %vm16601_vm1, %v89_v63  ;;  %32490 = vmatprep.mubr.msk.f32.mxu0 %vm16601_vm1, %v89_v63 }
 0x633   :  { %31364 = vmatpush1.msk.msra.mxu1 %vm16608_vm0, %v20540_v34  ;;  %v20811_v39 = vpop.permute.xlu1 %20810  ;;  %20446 = vmatprep.mubr.f32.mxu1 %v39475_v37  ;;  %v37489_v34 = vsel %vm20816_vm10, %v37335_v29, %v20809_v0 }
 0x634   :  { %39491 = vst [vmem:[#allocation31_spill] sm:$0xff] %v37489_v34  ;;  %v21346_v33 = vpop.permute.xlu0 %21345 }
 0x635   :  { %32491 = vmatmul.mubr.msk.f32.vlgmr.msra.gmra.mrb[12].mxu0 %vm16601_vm1, %v90_v23 }
 0x636   :  { %31359 = vmatmul.mubr.msk.f32.gmra.mrb[108].mxu1 %vm16601_vm1, %v90_v23  ;;  %20696 = vmatprep.mubr.f32.mxu0 %v39475_v37 }
 0x637   :  { %v20537_v40 = vpop.permute.xlu1 %20536  ;;  %20619 = vmatprep.mubr.f32.mxu1 %v39475_v37 }
 0x638   :  { %v37479_v49 = vsel %vm9272_vm8, %v37269_v2, %v20537_v40 }
 0x639   :  { %39490 = vst [vmem:[#allocation30_spill] sm:$0xff] %v37479_v49  ;;  %31367 = vmatprep.subr.msk.mxu0 %vm16608_vm0, %v37479_v49 }
 0x63a   :  { %31368 = vmatpush1.msk.msra.mxu0 %vm16608_vm0, %v37483_v35  ;;  %31365 = vmatmul.mubr.msk.f32.vlgmr.msra.gmra.mrb[110].mxu1 %vm16601_vm1, %v89_v63 }
 0x63b   :  { %31369 = vmatmul.mubr.msk.f32.vlgmr.msra.gmra.mrb[14].mxu0 %vm16601_vm1, %v89_v63  ;;  %31374 = vmatprep.subr.msk.mxu0 %vm16608_vm0, %v37489_v34  ;;  %v21344_v34 = vpop.permute.xlu0 %21343 }
 0x63c   :  { %v37500_v2 = vpop.permute.xlu1 %20814  ;;  %31375 = vmatpush1.msk.msra.mxu0 %vm16608_vm0, %v20817_v41  ;;  %20625 = vmatprep.mubr.f32.mxu1 %v39475_v37 }
 0x63d   :  { %39492 = vst [vmem:[#allocation32_spill] sm:$0xff] %v37500_v2  ;;  %v37507_v49 = vsel %vm20816_vm10, %v37391_v58, %v37500_v2  ;;  %20702 = vmatprep.mubr.f32.mxu0 %v39475_v37  ;;  %v37529_v2 = vsel %vm20816_vm10, %v20811_v39, %v37391_v58 }
 0x63e   :  { %39493 = vst [vmem:[#allocation33_spill] sm:$0xff] %v37507_v49  ;;  %32498 = vmatprep.subr.msk.mxu0 %vm16608_vm0, %v37507_v49  ;;  %31366 = vmatmul.mubr.msk.f32.gmra.mrb[112].mxu1 %vm16601_vm1, %v90_v23  ;;  %39495 = vst [vmem:[#allocation35_spill] sm:$0xff] %v37529_v2 }
 0x63f   :  { %31370 = vmatmul.mubr.msk.f32.gmra.mrb[16].mxu0 %vm16601_vm1, %v90_v23  ;;  %32495 = vmatprep.mubr.msk.f32.mxu1 %vm16601_vm1, %v89_v63  ;;  %v37535_v63 = vsel %vm20816_vm10, %v20809_v0, %v20811_v39  ;;  %v21352_v39 = vpop.permute.xlu0 %21351 }
 0x640   :  { %v37515_v29 = vpop.permute.xlu1 %20538  ;;  %20902 = vmatprep.mubr.f32.mxu0 %v39475_v37  ;;  %39496 = vst [vmem:[#allocation36_spill] sm:$0xff] %v37535_v63 }
 0x641   :  { %39494 = vst [vmem:[#allocation34_spill] sm:$0xff] %v37515_v29  ;;  %v37523_v41 = vsel %vm9272_vm8, %v20537_v40, %v37515_v29  ;;  %v92_v29 = vld [vmem:[%s39409_s3 + $0x88] sm:$0xff] }
 0x642   :  { %32493 = vmatprep.subr.msk.mxu1 %vm16608_vm0, %v37523_v41 }
 0x643   :  { %32494 = vmatpush3.msk.msra.mxu1 %vm16608_vm0, %v37523_v41  ;;  %31376 = vmatmul.mubr.msk.f32.vlgmr.msra.gmra.mrb[8].mxu0 %vm16601_vm1, %v91_v62 }
 0x644   :  { %32496 = vmatmul.mubr.msk.f32.vlgmr.msra.gmra.mrb[114].mxu1 %vm16601_vm1, %v90_v23  ;;  %31378 = vmatprep.subr.msk.mxu1 %vm16608_vm0, %v37529_v2  ;;  %v21072_v40 = vpop.permute.xlu1 %21071  ;;  %v21079_v23 = vsel %vm20816_vm10, %v21068_v45, %v37426_v54 }
 0x645   :  { %32499 = vmatpush3.msk.msra.mxu0 %vm16608_vm0, %v37507_v49  ;;  %v37547_v58 = vsel %vm20816_vm10, %v37426_v54, %v21072_v40  ;;  %31379 = vmatpush1.msk.msra.mxu1 %vm16608_vm0, %v37535_v63  ;;  %v37572_v45 = vsel %vm20816_vm10, %v21072_v40, %v37462_v15  ;;  %v21356_v63 = vsel %vm21355_vm11, %v21344_v34, %v21346_v33  ;;  %v93_v34 = vld [vmem:[%s39409_s3 + $0x90] sm:$0xff] }
 0x646   :  { %39497 = vst [vmem:[#allocation37_spill] sm:$0xff] %v37547_v58  ;;  %31385 = vmatprep.subr.msk.mxu1 %vm16608_vm0, %v37547_v58  ;;  %20908 = vmatprep.mubr.f32.mxu0 %v39475_v37 }
 0x647   :  { %20979 = vmatprep.mubr.f32.mxu1 %v39475_v37  ;;  %31377 = vmatmul.mubr.msk.f32.gmra.mrb[10].mxu0 %vm16601_vm1, %v92_v29 }
 0x648   :  { %31380 = vmatmul.mubr.msk.f32.vlgmr.msra.gmra.mrb[106].mxu1 %vm16601_vm1, %v91_v62  ;;  %v21348_v0 = vpop.permute.xlu1 %21347  ;;  %32500 = vmatprep.mubr.msk.f32.mxu0 %vm16601_vm1, %v91_v62 }
 0x649   :  { %31386 = vmatpush1.msk.msra.mxu1 %vm16608_vm0, %v21079_v23  ;;  %20985 = vmatprep.mubr.f32.mxu1 %v39475_v37  ;;  %v21609_v23 = vpop.permute.xlu0 %21608  ;;  %v37579_v2 = vsel %vm21355_vm11, %v21346_v33, %v21348_v0 }
 0x64a   :  { %39499 = vst [vmem:[#allocation39_spill] sm:$0xff] %v37579_v2 }
 0x64b   :  { %32501 = vmatmul.mubr.msk.f32.vlgmr.msra.gmra.mrb[12].mxu0 %vm16601_vm1, %v92_v29 }
 0x64c   :  { %31381 = vmatmul.mubr.msk.f32.gmra.mrb[108].mxu1 %vm16601_vm1, %v92_v29  ;;  %v21076_v58 = vpop.permute.xlu1 %21075  ;;  %21235 = vmatprep.mubr.f32.mxu0 %v39475_v37 }
 0x64d   :  { %v37567_v54 = vsel %vm20816_vm10, %v37462_v15, %v21076_v58  ;;  %21158 = vmatprep.mubr.f32.mxu1 %v39475_v37  ;;  %v21613_v40 = vpop.permute.xlu0 %21612 }
 0x64e   :  { %39498 = vst [vmem:[#allocation38_spill] sm:$0xff] %v37567_v54  ;;  %31389 = vmatprep.subr.msk.mxu0 %vm16608_vm0, %v37567_v54 }
 0x64f   :  { %31390 = vmatpush1.msk.msra.mxu0 %vm16608_vm0, %v37572_v45 }
 0x650   :  { %31387 = vmatmul.mubr.msk.f32.vlgmr.msra.gmra.mrb[110].mxu1 %vm16601_vm1, %v91_v62  ;;  %31391 = vmatmul.mubr.msk.f32.vlgmr.msra.gmra.mrb[14].mxu0 %vm16601_vm1, %v91_v62  ;;  %v21350_v49 = vpop.permute.xlu1 %21349 }
 0x651   :  { %31396 = vmatprep.subr.msk.mxu0 %vm16608_vm0, %v37579_v2  ;;  %21164 = vmatprep.mubr.f32.mxu1 %v39475_v37  ;;  %v37607_v33 = vsel %vm21355_vm11, %v21350_v49, %v21352_v39 }
 0x652   :  { %31397 = vmatpush1.msk.msra.mxu0 %vm16608_vm0, %v21356_v63  ;;  %21241 = vmatprep.mubr.f32.mxu0 %v39475_v37  ;;  %39500 = vst [vmem:[#allocation40_spill] sm:$0xff] %v37607_v33  ;;  %v37614_v63 = vsel %vm21355_vm11, %v21348_v0, %v21350_v49  ;;  %v21607_v49 = vpop.permute.xlu0 %21606 }
 0x654   :  { %31388 = vmatmul.mubr.msk.f32.gmra.mrb[112].mxu1 %vm16601_vm1, %v92_v29  ;;  %31392 = vmatmul.mubr.msk.f32.gmra.mrb[16].mxu0 %vm16601_vm1, %v92_v29  ;;  %v37591_v15 = vpop.permute.xlu1 %21077 }
 0x655   :  { %v37595_v54 = vsel %vm20816_vm10, %v21076_v58, %v37591_v15  ;;  %32505 = vmatprep.mubr.msk.f32.mxu1 %vm16601_vm1, %v91_v62  ;;  %21441 = vmatprep.mubr.f32.mxu0 %v39475_v37 }
 0x656   :  { %32503 = vmatprep.subr.msk.mxu1 %vm16608_vm0, %v37595_v54 }
 0x657   :  { %32504 = vmatpush3.msk.msra.mxu1 %vm16608_vm0, %v37595_v54 }
 0x658   :  { %32506 = vmatmul.mubr.msk.f32.vlgmr.msra.gmra.mrb[114].mxu1 %vm16601_vm1, %v92_v29  ;;  %31398 = vmatmul.mubr.msk.f32.vlgmr.msra.gmra.mrb[8].mxu0 %vm16601_vm1, %v93_v34  ;;  %v37611_v62 = vpop.permute.xlu1 %21353  ;;  %v94_v29 = vld [vmem:[%s39409_s3 + $0x98] sm:$0xff] }
 0x659   :  { %39501 = vst [vmem:[#allocation41_spill] sm:$0xff] %v37611_v62  ;;  %31400 = vmatprep.subr.msk.mxu1 %vm16608_vm0, %v37607_v33  ;;  %v37620_v58 = vsel %vm21355_vm11, %v21352_v39, %v37611_v62  ;;  %21447 = vmatprep.mubr.f32.mxu0 %v39475_v37  ;;  %v21618_v33 = vsel %vm21355_vm11, %v21607_v49, %v21609_v23 }
 0x65a   :  { %39502 = vst [vmem:[#allocation42_spill] sm:$0xff] %v37620_v58  ;;  %31401 = vmatpush1.msk.msra.mxu1 %vm16608_vm0, %v37614_v63  ;;  %32508 = vmatprep.subr.msk.mxu0 %vm16608_vm0, %v37620_v58 }
 0x65b   :  { %21518 = vmatprep.mubr.f32.mxu1 %v39475_v37  ;;  %32509 = vmatpush3.msk.msra.mxu0 %vm16608_vm0, %v37620_v58 }
 0x65c   :  { %31399 = vmatmul.mubr.msk.f32.gmra.mrb[10].mxu0 %vm16601_vm1, %v94_v29  ;;  %31402 = vmatmul.mubr.msk.f32.vlgmr.msra.gmra.mrb[106].mxu1 %vm16601_vm1, %v93_v34  ;;  %v21611_v0 = vpop.permute.xlu1 %21610 }
 0x65d   :  { %v37636_v39 = vsel %vm21355_vm11, %v21609_v23, %v21611_v0  ;;  %21524 = vmatprep.mubr.f32.mxu1 %v39475_v37  ;;  %32510 = vmatprep.mubr.msk.f32.mxu0 %vm16601_vm1, %v93_v34  ;;  %v37652_v62 = vsel %vm21355_vm11, %v21611_v0, %v21613_v40  ;;  %v100_v0 = vld [vmem:[%s39409_s3 + $0xc8] sm:$0xff] }
 0x65e   :  { %31407 = vmatprep.subr.msk.mxu1 %vm16608_vm0, %v37636_v39 }
 0x65f   :  { %31408 = vmatpush1.msk.msra.mxu1 %vm16608_vm0, %v21618_v33 }
 0x660   :  { %31403 = vmatmul.mubr.msk.f32.gmra.mrb[108].mxu1 %vm16601_vm1, %v94_v29  ;;  %32511 = vmatmul.mubr.msk.f32.vlgmr.msra.gmra.mrb[12].mxu0 %vm16601_vm1, %v94_v29  ;;  %v21615_v58 = vpop.permute.xlu1 %21614 }
 0x661   :  { %v37647_v2 = vsel %vm21355_vm11, %v21613_v40, %v21615_v58  ;;  %21697 = vmatprep.mubr.f32.mxu1 %v39475_v37  ;;  %21774 = vmatprep.mubr.f32.mxu0 %v39475_v37  ;;  %v96_v40 = vld [vmem:[%s39409_s3 + $0xa8] sm:$0xff] }
 0x662   :  { %31411 = vmatprep.subr.msk.mxu0 %vm16608_vm0, %v37647_v2 }
 0x663   :  { %31412 = vmatpush1.msk.msra.mxu0 %vm16608_vm0, %v37652_v62 }
 0x664   :  { %31409 = vmatmul.mubr.msk.f32.vlgmr.msra.gmra.mrb[110].mxu1 %vm16601_vm1, %v93_v34  ;;  %31413 = vmatmul.mubr.msk.f32.vlgmr.msra.gmra.mrb[14].mxu0 %vm16601_vm1, %v93_v34  ;;  %v37660_v23 = vpop.permute.xlu1 %21616 }
 0x665   :  { %31418 = vmatprep.subr.msk.mxu0 %vm16608_vm0, %v36450_v17  ;;  %v37666_v33 = vsel %vm21355_vm11, %v21615_v58, %v37660_v23  ;;  %21703 = vmatprep.mubr.f32.mxu1 %v39475_v37 }
 0x666   :  { %31419 = vmatpush1.msk.msra.mxu0 %vm16608_vm0, %v36448_v28  ;;  %32513 = vmatprep.subr.msk.mxu1 %vm16608_vm0, %v37666_v33  ;;  %v95_v28 = vld [vmem:[%s39409_s3 + $0xa0] sm:$0xff] }
 0x667   :  { %32518 = vmatprep.subr.msk.mxu0 %vm16608_vm0, %v36723_v4  ;;  %21780 = vmatprep.mubr.f32.mxu0 %v39475_v37 }
 0x668   :  { %32514 = vmatpush3.msk.msra.mxu1 %vm16608_vm0, %v37666_v33  ;;  %31414 = vmatmul.mubr.msk.f32.gmra.mrb[16].mxu0 %vm16601_vm1, %v94_v29 }
 0x669   :  { %31410 = vmatmul.mubr.msk.f32.gmra.mrb[112].mxu1 %vm16601_vm1, %v94_v29  ;;  %31422 = vmatprep.subr.msk.mxu1 %vm16608_vm0, %v36461_v44 }
 0x66a   :  { %32515 = vmatprep.mubr.msk.f32.mxu1 %vm16601_vm1, %v93_v34  ;;  %21954 = vmatprep.mubr.f32.mxu0 %v39475_v37  ;;  %v37717_v34 = vpop.permute.xlu0 %22370 }
 0x66c   :  { %31420 = vmatmul.mubr.msk.f32.vlgmr.msra.gmra.mrb[8].mxu0 %vm16601_vm1, %v95_v28 }
 0x66d   :  { %32516 = vmatmul.mubr.msk.f32.vlgmr.msra.gmra.mrb[114].mxu1 %vm16601_vm1, %v94_v29  ;;  %32519 = vmatpush3.msk.msra.mxu0 %vm16608_vm0, %v36723_v4  ;;  %v98_v29 = vld [vmem:[%s39409_s3 + $0xb8] sm:$0xff] }
 0x66e   :  { %31423 = vmatpush1.msk.msra.mxu1 %vm16608_vm0, %v36459_v26  ;;  %31433 = vmatprep.subr.msk.mxu0 %vm16608_vm0, %v36477_v56 }
 0x66f   :  { %31429 = vmatprep.subr.msk.mxu1 %vm16608_vm0, %v36468_v46  ;;  %21960 = vmatprep.mubr.f32.mxu0 %v39475_v37 }
 0x670   :  { %22031 = vmatprep.mubr.f32.mxu1 %v39475_v37  ;;  %31421 = vmatmul.mubr.msk.f32.gmra.mrb[10].mxu0 %vm16601_vm1, %v96_v40 }
 0x671   :  { %31424 = vmatmul.mubr.msk.f32.vlgmr.msra.gmra.mrb[106].mxu1 %vm16601_vm1, %v95_v28  ;;  %32520 = vmatprep.mubr.msk.f32.mxu0 %vm16601_vm1, %v95_v28 }
 0x672   :  { %31430 = vmatpush1.msk.msra.mxu1 %vm16608_vm0, %v36486_v13  ;;  %22037 = vmatprep.mubr.f32.mxu1 %v39475_v37  ;;  %v37729_v13 = vsel %vm1390_vm4, %v36603_v27, %v37717_v34  ;;  %v37744_v27 = vpop.permute.xlu1 %22612 }
 0x673   :  { %32523 = vmatprep.subr.msk.mxu1 %vm16608_vm0, %v36909_v52  ;;  %v37755_v58 = vsel %vm1390_vm4, %v36633_v25, %v37744_v27  ;;  %v37779_v25 = vpop.permute.xlu0 %22868 }
 0x674   :  { %32521 = vmatmul.mubr.msk.f32.vlgmr.msra.gmra.mrb[12].mxu0 %vm16601_vm1, %v96_v40 }
 0x675   :  { %31425 = vmatmul.mubr.msk.f32.gmra.mrb[108].mxu1 %vm16601_vm1, %v96_v40  ;;  %31434 = vmatpush1.msk.msra.mxu0 %vm16608_vm0, %v36493_v47 }
 0x676   :  { %31440 = vmatprep.subr.msk.mxu0 %vm16608_vm0, %v36607_v60  ;;  %22185 = vmatprep.mubr.f32.mxu1 %v39475_v37 }
 0x677   :  { %22262 = vmatprep.mubr.f32.mxu0 %v39475_v37 }
 0x678   :  { %31435 = vmatmul.mubr.msk.f32.vlgmr.msra.gmra.mrb[14].mxu0 %vm16601_vm1, %v95_v28 }
 0x679   :  { %31431 = vmatmul.mubr.msk.f32.vlgmr.msra.gmra.mrb[110].mxu1 %vm16601_vm1, %v95_v28  ;;  %31441 = vmatpush1.msk.msra.mxu0 %vm16608_vm0, %v36593_v24  ;;  %v97_v24 = vld [vmem:[%s39409_s3 + $0xb0] sm:$0xff] }
 0x67a   :  { %32524 = vmatpush3.msk.msra.mxu1 %vm16608_vm0, %v36909_v52  ;;  %32528 = vmatprep.subr.msk.mxu0 %vm16608_vm0, %v37717_v34 }
 0x67b   :  { %31444 = vmatprep.subr.msk.mxu1 %vm16608_vm0, %v37729_v13  ;;  %22191 = vmatprep.mubr.f32.mxu1 %v39475_v37 }
 0x67c   :  { %22268 = vmatprep.mubr.f32.mxu0 %v39475_v37 }
 0x67d   :  { %31432 = vmatmul.mubr.msk.f32.gmra.mrb[112].mxu1 %vm16601_vm1, %v96_v40  ;;  %31436 = vmatmul.mubr.msk.f32.gmra.mrb[16].mxu0 %vm16601_vm1, %v96_v40 }
 0x67e   :  { %32525 = vmatprep.mubr.msk.f32.mxu1 %vm16601_vm1, %v95_v28  ;;  %22447 = vmatprep.mubr.f32.mxu0 %v39475_v37 }
 0x681   :  { %32526 = vmatmul.mubr.msk.f32.vlgmr.msra.gmra.mrb[114].mxu1 %vm16601_vm1, %v96_v40  ;;  %31442 = vmatmul.mubr.msk.f32.vlgmr.msra.gmra.mrb[8].mxu0 %vm16601_vm1, %v97_v24  ;;  %v102_v40 = vld [vmem:[%s39409_s3 + $0xd8] sm:$0xff] }
 0x682   :  { %31445 = vmatpush1.msk.msra.mxu1 %vm16608_vm0, %v36613_v31  ;;  %32529 = vmatpush3.msk.msra.mxu0 %vm16608_vm0, %v37717_v34 }
 0x683   :  { %31451 = vmatprep.subr.msk.mxu1 %vm16608_vm0, %v36658_v38  ;;  %31455 = vmatprep.subr.msk.mxu0 %vm16608_vm0, %v37755_v58 }
 0x684   :  { %22453 = vmatprep.mubr.f32.mxu0 %v39475_v37  ;;  %22524 = vmatprep.mubr.f32.mxu1 %v39475_v37 }
 0x685   :  { %31443 = vmatmul.mubr.msk.f32.gmra.mrb[10].mxu0 %vm16601_vm1, %v98_v29  ;;  %31446 = vmatmul.mubr.msk.f32.vlgmr.msra.gmra.mrb[106].mxu1 %vm16601_vm1, %v97_v24 }
 0x686   :  { %31452 = vmatpush1.msk.msra.mxu1 %vm16608_vm0, %v36645_v61  ;;  %22530 = vmatprep.mubr.f32.mxu1 %v39475_v37  ;;  %v37793_v61 = vsel %vm2694_vm6, %v36675_v3, %v37779_v25  ;;  %v99_v3 = vld [vmem:[%s39409_s3 + $0xc0] sm:$0xff] }
 0x687   :  { %32533 = vmatprep.subr.msk.mxu1 %vm16608_vm0, %v37744_v27  ;;  %32530 = vmatprep.mubr.msk.f32.mxu0 %vm16601_vm1, %v97_v24 }
 0x689   :  { %31447 = vmatmul.mubr.msk.f32.gmra.mrb[108].mxu1 %vm16601_vm1, %v98_v29  ;;  %32531 = vmatmul.mubr.msk.f32.vlgmr.msra.gmra.mrb[12].mxu0 %vm16601_vm1, %v98_v29 }
 0x68a   :  { %31456 = vmatpush1.msk.msra.mxu0 %vm16608_vm0, %v36664_v10  ;;  %22683 = vmatprep.mubr.f32.mxu1 %v39475_v37 }
 0x68b   :  { %31462 = vmatprep.subr.msk.mxu0 %vm16608_vm0, %v36796_v53  ;;  %22760 = vmatprep.mubr.f32.mxu0 %v39475_v37 }
 0x68d   :  { %31453 = vmatmul.mubr.msk.f32.vlgmr.msra.gmra.mrb[110].mxu1 %vm16601_vm1, %v97_v24  ;;  %31457 = vmatmul.mubr.msk.f32.vlgmr.msra.gmra.mrb[14].mxu0 %vm16601_vm1, %v97_v24 }
 0x68e   :  { %32534 = vmatpush3.msk.msra.mxu1 %vm16608_vm0, %v37744_v27  ;;  %31463 = vmatpush1.msk.msra.mxu0 %vm16608_vm0, %v36758_v12  ;;  %v37808_v12 = vpop.permute.xlu1 %23110 }
 0x68f   :  { %31466 = vmatprep.subr.msk.mxu1 %vm16608_vm0, %v37793_v61  ;;  %32538 = vmatprep.subr.msk.mxu0 %vm16608_vm0, %v37779_v25  ;;  %v37819_v49 = vsel %vm2694_vm6, %v36852_v30, %v37808_v12  ;;  %v37843_v30 = vpop.permute.xlu0 %23366 }
 0x690   :  { %22689 = vmatprep.mubr.f32.mxu1 %v39475_v37  ;;  %22766 = vmatprep.mubr.f32.mxu0 %v39475_v37 }
 0x691   :  { %31454 = vmatmul.mubr.msk.f32.gmra.mrb[112].mxu1 %vm16601_vm1, %v98_v29  ;;  %31458 = vmatmul.mubr.msk.f32.gmra.mrb[16].mxu0 %vm16601_vm1, %v98_v29 }
 0x692   :  { %32535 = vmatprep.mubr.msk.f32.mxu1 %vm16601_vm1, %v97_v24  ;;  %22945 = vmatprep.mubr.f32.mxu0 %v39475_v37  ;;  %v39504_v24 = vld [vmem:[#allocation7_spill] sm:$0xff] }
 0x695   :  { %32536 = vmatmul.mubr.msk.f32.vlgmr.msra.gmra.mrb[114].mxu1 %vm16601_vm1, %v98_v29  ;;  %31464 = vmatmul.mubr.msk.f32.vlgmr.msra.gmra.mrb[8].mxu0 %vm16601_vm1, %v99_v3 }
 0x696   :  { %31467 = vmatpush1.msk.msra.mxu1 %vm16608_vm0, %v36762_v51  ;;  %32539 = vmatpush3.msk.msra.mxu0 %vm16608_vm0, %v37779_v25 }
 0x697   :  { %31473 = vmatprep.subr.msk.mxu1 %vm16608_vm0, %v36870_v16  ;;  %31477 = vmatprep.subr.msk.mxu0 %vm16608_vm0, %v37819_v49 }
 0x698   :  { %22951 = vmatprep.mubr.f32.mxu0 %v39475_v37  ;;  %23022 = vmatprep.mubr.f32.mxu1 %v39475_v37 }
 0x699   :  { %31465 = vmatmul.mubr.msk.f32.gmra.mrb[10].mxu0 %vm16601_vm1, %v100_v0  ;;  %31468 = vmatmul.mubr.msk.f32.vlgmr.msra.gmra.mrb[106].mxu1 %vm16601_vm1, %v99_v3 }
 0x69a   :  { %31474 = vmatpush1.msk.msra.mxu1 %vm16608_vm0, %v36807_v5  ;;  %23028 = vmatprep.mubr.f32.mxu1 %v39475_v37  ;;  %v37857_v5 = vsel %vm18132_vm2, %v36789_v50, %v37843_v30  ;;  %v101_v50 = vld [vmem:[%s39409_s3 + $0xd0] sm:$0xff] }
 0x69b   :  { %32543 = vmatprep.subr.msk.mxu1 %vm16608_vm0, %v37808_v12  ;;  %32540 = vmatprep.mubr.msk.f32.mxu0 %vm16601_vm1, %v99_v3 }
 0x69d   :  { %31469 = vmatmul.mubr.msk.f32.gmra.mrb[108].mxu1 %vm16601_vm1, %v100_v0  ;;  %32541 = vmatmul.mubr.msk.f32.vlgmr.msra.gmra.mrb[12].mxu0 %vm16601_vm1, %v100_v0 }
 0x69e   :  { %31478 = vmatpush1.msk.msra.mxu0 %vm16608_vm0, %v36859_v19  ;;  %23181 = vmatprep.mubr.f32.mxu1 %v39475_v37 }
 0x69f   :  { %31484 = vmatprep.subr.msk.mxu0 %vm16608_vm0, %v36925_v11  ;;  %23258 = vmatprep.mubr.f32.mxu0 %v39475_v37 }
 0x6a1   :  { %31475 = vmatmul.mubr.msk.f32.vlgmr.msra.gmra.mrb[110].mxu1 %vm16601_vm1, %v99_v3  ;;  %31479 = vmatmul.mubr.msk.f32.vlgmr.msra.gmra.mrb[14].mxu0 %vm16601_vm1, %v99_v3 }
 0x6a2   :  { %32544 = vmatpush3.msk.msra.mxu1 %vm16608_vm0, %v37808_v12  ;;  %31485 = vmatpush1.msk.msra.mxu0 %vm16608_vm0, %v36898_v42  ;;  %v37872_v42 = vpop.permute.xlu1 %23608 }
 0x6a3   :  { %31488 = vmatprep.subr.msk.mxu1 %vm16608_vm0, %v37857_v5  ;;  %32548 = vmatprep.subr.msk.mxu0 %vm16608_vm0, %v37843_v30  ;;  %v37883_v28 = vsel %vm18132_vm2, %v36929_v32, %v37872_v42  ;;  %v37907_v32 = vpop.permute.xlu0 %23864 }
 0x6a4   :  { %23187 = vmatprep.mubr.f32.mxu1 %v39475_v37  ;;  %23264 = vmatprep.mubr.f32.mxu0 %v39475_v37 }
 0x6a5   :  { %31476 = vmatmul.mubr.msk.f32.gmra.mrb[112].mxu1 %vm16601_vm1, %v100_v0  ;;  %31480 = vmatmul.mubr.msk.f32.gmra.mrb[16].mxu0 %vm16601_vm1, %v100_v0 }
 0x6a6   :  { %32545 = vmatprep.mubr.msk.f32.mxu1 %vm16601_vm1, %v99_v3  ;;  %23443 = vmatprep.mubr.f32.mxu0 %v39475_v37  ;;  %v104_v3 = vld [vmem:[%s39409_s3 + $0xe8] sm:$0xff] }
 0x6a9   :  { %32546 = vmatmul.mubr.msk.f32.vlgmr.msra.gmra.mrb[114].mxu1 %vm16601_vm1, %v100_v0  ;;  %31486 = vmatmul.mubr.msk.f32.vlgmr.msra.gmra.mrb[8].mxu0 %vm16601_vm1, %v101_v50  ;;  %v39506_v0 = vld [vmem:[#allocation9_spill] sm:$0xff] }
 0x6aa   :  { %31489 = vmatpush1.msk.msra.mxu1 %vm16608_vm0, %v36884_v20  ;;  %32549 = vmatpush3.msk.msra.mxu0 %vm16608_vm0, %v37843_v30 }
 0x6ab   :  { %31495 = vmatprep.subr.msk.mxu1 %vm16608_vm0, %v36991_v55  ;;  %31499 = vmatprep.subr.msk.mxu0 %vm16608_vm0, %v37883_v28 }
 0x6ac   :  { %23449 = vmatprep.mubr.f32.mxu0 %v39475_v37  ;;  %23520 = vmatprep.mubr.f32.mxu1 %v39475_v37 }
 0x6ad   :  { %31487 = vmatmul.mubr.msk.f32.gmra.mrb[10].mxu0 %vm16601_vm1, %v102_v40  ;;  %31490 = vmatmul.mubr.msk.f32.vlgmr.msra.gmra.mrb[106].mxu1 %vm16601_vm1, %v101_v50 }
 0x6ae   :  { %31496 = vmatpush1.msk.msra.mxu1 %vm16608_vm0, %v36936_v1  ;;  %23526 = vmatprep.mubr.f32.mxu1 %v39475_v37  ;;  %v37921_v1 = vsel %vm18665_vm7, %v36876_v57, %v37907_v32  ;;  %v103_v57 = vld [vmem:[%s39409_s3 + $0xe0] sm:$0xff] }
 0x6af   :  { %32553 = vmatprep.subr.msk.mxu1 %vm16608_vm0, %v37872_v42  ;;  %32550 = vmatprep.mubr.msk.f32.mxu0 %vm16601_vm1, %v101_v50  ;;  %39503 = vst [vmem:[#allocation43_spill] sm:$0xff] %v37921_v1 }
 0x6b1   :  { %31491 = vmatmul.mubr.msk.f32.gmra.mrb[108].mxu1 %vm16601_vm1, %v102_v40  ;;  %32551 = vmatmul.mubr.msk.f32.vlgmr.msra.gmra.mrb[12].mxu0 %vm16601_vm1, %v102_v40 }
 0x6b2   :  { %31500 = vmatpush1.msk.msra.mxu0 %vm16608_vm0, %v36956_v48  ;;  %23679 = vmatprep.mubr.f32.mxu1 %v39475_v37 }
 0x6b3   :  { %31506 = vmatprep.subr.msk.mxu0 %vm16608_vm0, %v37036_v22  ;;  %23756 = vmatprep.mubr.f32.mxu0 %v39475_v37 }
 0x6b5   :  { %31497 = vmatmul.mubr.msk.f32.vlgmr.msra.gmra.mrb[110].mxu1 %vm16601_vm1, %v101_v50  ;;  %31501 = vmatmul.mubr.msk.f32.vlgmr.msra.gmra.mrb[14].mxu0 %vm16601_vm1, %v101_v50 }
 0x6b6   :  { %32554 = vmatpush3.msk.msra.mxu1 %vm16608_vm0, %v37872_v42  ;;  %31507 = vmatpush1.msk.msra.mxu0 %vm16608_vm0, %v37002_v7  ;;  %v37936_v7 = vpop.permute.xlu1 %24106 }
 0x6b7   :  { %31510 = vmatprep.subr.msk.mxu1 %vm16608_vm0, %v37921_v1  ;;  %32558 = vmatprep.subr.msk.mxu0 %vm16608_vm0, %v37907_v32  ;;  %v37947_v29 = vsel %vm18665_vm7, %v39504_v24, %v37936_v7  ;;  %v24364_v24 = vpop.permute.xlu0 %24363  ;;  %v39511_v1 = vld [vmem:[#allocation11_spill] sm:$0xff] }
 0x6b8   :  { %23685 = vmatprep.mubr.f32.mxu1 %v39475_v37  ;;  %23762 = vmatprep.mubr.f32.mxu0 %v39475_v37  ;;  %39505 = vst [vmem:[#allocation7_spill] sm:$0xff] %v37947_v29 }
 0x6b9   :  { %31498 = vmatmul.mubr.msk.f32.gmra.mrb[112].mxu1 %vm16601_vm1, %v102_v40  ;;  %31502 = vmatmul.mubr.msk.f32.gmra.mrb[16].mxu0 %vm16601_vm1, %v102_v40 }
 0x6ba   :  { %32555 = vmatprep.mubr.msk.f32.mxu1 %vm16601_vm1, %v101_v50  ;;  %23941 = vmatprep.mubr.f32.mxu0 %v39475_v37  ;;  %v39507_v50 = vld [vmem:[#allocation6_spill] sm:$0xff] }
 0x6bd   :  { %32556 = vmatmul.mubr.msk.f32.vlgmr.msra.gmra.mrb[114].mxu1 %vm16601_vm1, %v102_v40  ;;  %31508 = vmatmul.mubr.msk.f32.vlgmr.msra.gmra.mrb[8].mxu0 %vm16601_vm1, %v103_v57  ;;  %v39508_v40 = vld [vmem:[#allocation8_spill] sm:$0xff] }
 0x6be   :  { %31511 = vmatpush1.msk.msra.mxu1 %vm16608_vm0, %v37006_v43  ;;  %32559 = vmatpush3.msk.msra.mxu0 %vm16608_vm0, %v37907_v32 }
 0x6bf   :  { %31517 = vmatprep.subr.msk.mxu1 %vm16608_vm0, %v39506_v0  ;;  %31521 = vmatprep.subr.msk.mxu0 %vm16608_vm0, %v37947_v29  ;;  %v39509_v29 = vld [vmem:[#allocation13_spill] sm:$0xff] }
 0x6c0   :  { %23947 = vmatprep.mubr.f32.mxu0 %v39475_v37  ;;  %24018 = vmatprep.mubr.f32.mxu1 %v39475_v37 }
 0x6c1   :  { %31509 = vmatmul.mubr.msk.f32.gmra.mrb[10].mxu0 %vm16601_vm1, %v104_v3  ;;  %31512 = vmatmul.mubr.msk.f32.vlgmr.msra.gmra.mrb[106].mxu1 %vm16601_vm1, %v103_v57 }
 0x6c2   :  { %31518 = vmatpush1.msk.msra.mxu1 %vm16608_vm0, %v39507_v50  ;;  %24024 = vmatprep.mubr.f32.mxu1 %v39475_v37  ;;  %v39510_v50 = vld [vmem:[#allocation14_spill] sm:$0xff] }
 0x6c3   :  { %32563 = vmatprep.subr.msk.mxu1 %vm16608_vm0, %v37936_v7  ;;  %32560 = vmatprep.mubr.msk.f32.mxu0 %vm16601_vm1, %v103_v57  ;;  %v24365_v0 = vsel %vm6640_vm12, %v39510_v50, %v24364_v24  ;;  %v39517_v50 = vld [vmem:[#allocation20_spill] sm:$0xff] }
 0x6c5   :  { %31513 = vmatmul.mubr.msk.f32.gmra.mrb[108].mxu1 %vm16601_vm1, %v104_v3  ;;  %32561 = vmatmul.mubr.msk.f32.vlgmr.msra.gmra.mrb[12].mxu0 %vm16601_vm1, %v104_v3 }
 0x6c6   :  { %31522 = vmatpush1.msk.msra.mxu0 %vm16608_vm0, %v39508_v40  ;;  %24177 = vmatprep.mubr.f32.mxu1 %v39475_v37  ;;  %v39512_v40 = vld [vmem:[#allocation15_spill] sm:$0xff] }
 0x6c7   :  { %31528 = vmatprep.subr.msk.mxu0 %vm16608_vm0, %v39509_v29  ;;  %24254 = vmatprep.mubr.f32.mxu0 %v39475_v37  ;;  %v39513_v29 = vld [vmem:[#allocation12_spill] sm:$0xff] }
 0x6c9   :  { %31519 = vmatmul.mubr.msk.f32.vlgmr.msra.gmra.mrb[110].mxu1 %vm16601_vm1, %v103_v57  ;;  %31523 = vmatmul.mubr.msk.f32.vlgmr.msra.gmra.mrb[14].mxu0 %vm16601_vm1, %v103_v57 }
 0x6ca   :  { %32564 = vmatpush3.msk.msra.mxu1 %vm16608_vm0, %v37936_v7  ;;  %31529 = vmatpush1.msk.msra.mxu0 %vm16608_vm0, %v39511_v1  ;;  %v105_v1 = vld [vmem:[%s39409_s3 + $0xf0] sm:$0xff] }
 0x6cb   :  { %31532 = vmatprep.subr.msk.mxu1 %vm16608_vm0, %v39512_v40  ;;  %32568 = vmatprep.subr.msk.mxu0 %vm16608_vm0, %v24365_v0  ;;  %v106_v40 = vld [vmem:[%s39409_s3 + $0xf8] sm:$0xff] }
 0x6cc   :  { %24183 = vmatprep.mubr.f32.mxu1 %v39475_v37  ;;  %24260 = vmatprep.mubr.f32.mxu0 %v39475_v37 }
 0x6cd   :  { %31520 = vmatmul.mubr.msk.f32.gmra.mrb[112].mxu1 %vm16601_vm1, %v104_v3  ;;  %31524 = vmatmul.mubr.msk.f32.gmra.mrb[16].mxu0 %vm16601_vm1, %v104_v3 }
 0x6ce   :  { %32565 = vmatprep.mubr.msk.f32.mxu1 %vm16601_vm1, %v103_v57  ;;  %24438 = vmatprep.mubr.f32.mxu0 %v39475_v37  ;;  %v24605_v57 = vpop.permute.xlu1 %24604 }
 0x6d1   :  { %32566 = vmatmul.mubr.msk.f32.vlgmr.msra.gmra.mrb[114].mxu1 %vm16601_vm1, %v104_v3  ;;  %31530 = vmatmul.mubr.msk.f32.vlgmr.msra.gmra.mrb[8].mxu0 %vm16601_vm1, %v105_v1  ;;  %v24606_v3 = vsel %vm6640_vm12, %v37312_v14, %v24605_v57  ;;  %v39516_v14 = vld [vmem:[#allocation18_spill] sm:$0xff] }
 0x6d2   :  { %31533 = vmatpush1.msk.msra.mxu1 %vm16608_vm0, %v39513_v29  ;;  %32569 = vmatpush3.msk.msra.mxu0 %vm16608_vm0, %v24365_v0  ;;  %v39514_v0 = vld [vmem:[#allocation16_spill] sm:$0xff]  ;;  %v39518_v29 = vld [vmem:[#allocation21_spill] sm:$0xff]  ;;  %v39519_v57 = vld [vmem:[#allocation22_spill] sm:$0xff] }
 0x6d3   :  { %31539 = vmatprep.subr.msk.mxu1 %vm16608_vm0, %v37277_v18  ;;  %31543 = vmatprep.subr.msk.mxu0 %vm16608_vm0, %v37316_v59  ;;  %v39515_v18 = vld [vmem:[#allocation19_spill] sm:$0xff]  ;;  %v24859_v59 = vpop.permute.xlu0 %24858 }
 0x6d4   :  { %24444 = vmatprep.mubr.f32.mxu0 %v39475_v37  ;;  %24515 = vmatprep.mubr.f32.mxu1 %v39475_v37  ;;  %v24860_v24 = vsel %vm7956_vm14, %v39516_v14, %v24859_v59  ;;  %v39523_v59 = vld [vmem:[#allocation26_spill] sm:$0xff]  ;;  %v39524_v14 = vld [vmem:[#allocation27_spill] sm:$0xff] }
 0x6d5   :  { %31531 = vmatmul.mubr.msk.f32.gmra.mrb[10].mxu0 %vm16601_vm1, %v106_v40  ;;  %31534 = vmatmul.mubr.msk.f32.vlgmr.msra.gmra.mrb[106].mxu1 %vm16601_vm1, %v105_v1 }
 0x6d6   :  { %31540 = vmatpush1.msk.msra.mxu1 %vm16608_vm0, %v39514_v0  ;;  %24521 = vmatprep.mubr.f32.mxu1 %v39475_v37  ;;  %v39520_v0 = vld [vmem:[#allocation23_spill] sm:$0xff] }
 0x6d7   :  { %32573 = vmatprep.subr.msk.mxu1 %vm16608_vm0, %v24606_v3  ;;  %32570 = vmatprep.mubr.msk.f32.mxu0 %vm16601_vm1, %v105_v1 }
 0x6d9   :  { %31535 = vmatmul.mubr.msk.f32.gmra.mrb[108].mxu1 %vm16601_vm1, %v106_v40  ;;  %32571 = vmatmul.mubr.msk.f32.vlgmr.msra.gmra.mrb[12].mxu0 %vm16601_vm1, %v106_v40 }
 0x6da   :  { %31544 = vmatpush1.msk.msra.mxu0 %vm16608_vm0, %v39515_v18  ;;  %24673 = vmatprep.mubr.f32.mxu1 %v39475_v37 }
 0x6db   :  { %31550 = vmatprep.subr.msk.mxu0 %vm16608_vm0, %v37338_v21  ;;  %24750 = vmatprep.mubr.f32.mxu0 %v39475_v37  ;;  %v107_v21 = vld [vmem:[%s39409_s3 + $0x100] sm:$0xff] }
 0x6dd   :  { %31541 = vmatmul.mubr.msk.f32.vlgmr.msra.gmra.mrb[110].mxu1 %vm16601_vm1, %v105_v1  ;;  %31545 = vmatmul.mubr.msk.f32.vlgmr.msra.gmra.mrb[14].mxu0 %vm16601_vm1, %v105_v1 }
 0x6de   :  { %32574 = vmatpush3.msk.msra.mxu1 %vm16608_vm0, %v24606_v3  ;;  %31551 = vmatpush1.msk.msra.mxu0 %vm16608_vm0, %v39517_v50  ;;  %v108_v3 = vld [vmem:[%s39409_s3 + $0x108] sm:$0xff]  ;;  %v110_v50 = vld [vmem:[%s39409_s3 + $0x118] sm:$0xff] }
 0x6df   :  { %31554 = vmatprep.subr.msk.mxu1 %vm16608_vm0, %v39518_v29  ;;  %32578 = vmatprep.subr.msk.mxu0 %vm16608_vm0, %v24860_v24 }
 0x6e0   :  { %24679 = vmatprep.mubr.f32.mxu1 %v39475_v37  ;;  %24756 = vmatprep.mubr.f32.mxu0 %v39475_v37 }
 0x6e1   :  { %31542 = vmatmul.mubr.msk.f32.gmra.mrb[112].mxu1 %vm16601_vm1, %v106_v40  ;;  %31546 = vmatmul.mubr.msk.f32.gmra.mrb[16].mxu0 %vm16601_vm1, %v106_v40 }
 0x6e2   :  { %32575 = vmatprep.mubr.msk.f32.mxu1 %vm16601_vm1, %v105_v1  ;;  %24933 = vmatprep.mubr.f32.mxu0 %v39475_v37  ;;  %v25099_v1 = vpop.permute.xlu1 %25098 }
 0x6e5   :  { %32576 = vmatmul.mubr.msk.f32.vlgmr.msra.gmra.mrb[114].mxu1 %vm16601_vm1, %v106_v40  ;;  %31552 = vmatmul.mubr.msk.f32.vlgmr.msra.gmra.mrb[8].mxu0 %vm16601_vm1, %v107_v21  ;;  %v25100_v40 = vsel %vm7956_vm14, %v37419_v6, %v25099_v1  ;;  %v39522_v6 = vld [vmem:[#allocation24_spill] sm:$0xff]  ;;  %vm29960_vm14 = vcmask 1043459  }
 0x6e6   :  { %31555 = vmatpush1.msk.msra.mxu1 %vm16608_vm0, %v39519_v57  ;;  %32579 = vmatpush3.msk.msra.mxu0 %vm16608_vm0, %v24860_v24  ;;  %v39525_v24 = vld [vmem:[#allocation28_spill] sm:$0xff]  ;;  %v25593_v29 = vpop.permute.xlu1 %25592 }
 0x6e7   :  { %31561 = vmatprep.subr.msk.mxu1 %vm16608_vm0, %v37385_v36  ;;  %31565 = vmatprep.subr.msk.mxu0 %vm16608_vm0, %v37430_v9  ;;  %v39521_v9 = vld [vmem:[#allocation25_spill] sm:$0xff]  ;;  %v25353_v36 = vpop.permute.xlu0 %25352  ;;  %v39529_v1 = vld [vmem:[#allocation36_spill] sm:$0xff] }
 0x6e8   :  { %24939 = vmatprep.mubr.f32.mxu0 %v39475_v37  ;;  %25010 = vmatprep.mubr.f32.mxu1 %v39475_v37  ;;  %v25354_v18 = vsel %vm9272_vm8, %v39522_v6, %v25353_v36  ;;  %v39532_v36 = vld [vmem:[#allocation33_spill] sm:$0xff] }
 0x6e9   :  { %31553 = vmatmul.mubr.msk.f32.gmra.mrb[10].mxu0 %vm16601_vm1, %v108_v3  ;;  %31556 = vmatmul.mubr.msk.f32.vlgmr.msra.gmra.mrb[106].mxu1 %vm16601_vm1, %v107_v21  ;;  %v111_v6 = vld [vmem:[%s39409_s3 + $0x120] sm:$0xff] }
 0x6ea   :  { %31562 = vmatpush1.msk.msra.mxu1 %vm16608_vm0, %v39520_v0  ;;  %25016 = vmatprep.mubr.f32.mxu1 %v39475_v37 }
 0x6eb   :  { %32583 = vmatprep.subr.msk.mxu1 %vm16608_vm0, %v25100_v40  ;;  %32580 = vmatprep.mubr.msk.f32.mxu0 %vm16601_vm1, %v107_v21 }
 0x6ed   :  { %31557 = vmatmul.mubr.msk.f32.gmra.mrb[108].mxu1 %vm16601_vm1, %v108_v3  ;;  %32581 = vmatmul.mubr.msk.f32.vlgmr.msra.gmra.mrb[12].mxu0 %vm16601_vm1, %v108_v3 }
 0x6ee   :  { %31566 = vmatpush1.msk.msra.mxu0 %vm16608_vm0, %v39521_v9  ;;  %25167 = vmatprep.mubr.f32.mxu1 %v39475_v37  ;;  %v39531_v9 = vld [vmem:[#allocation31_spill] sm:$0xff] }
 0x6ef   :  { %31572 = vmatprep.subr.msk.mxu0 %vm16608_vm0, %v37443_v8  ;;  %25244 = vmatprep.mubr.f32.mxu0 %v39475_v37  ;;  %v109_v8 = vld [vmem:[%s39409_s3 + $0x110] sm:$0xff] }
 0x6f1   :  { %31563 = vmatmul.mubr.msk.f32.vlgmr.msra.gmra.mrb[110].mxu1 %vm16601_vm1, %v107_v21  ;;  %31567 = vmatmul.mubr.msk.f32.vlgmr.msra.gmra.mrb[14].mxu0 %vm16601_vm1, %v107_v21 }
 0x6f2   :  { %32584 = vmatpush3.msk.msra.mxu1 %vm16608_vm0, %v25100_v40  ;;  %31573 = vmatpush1.msk.msra.mxu0 %vm16608_vm0, %v39523_v59  ;;  %v39530_v40 = vld [vmem:[#allocation32_spill] sm:$0xff]  ;;  %v112_v59 = vld [vmem:[%s39409_s3 + $0x128] sm:$0xff] }
 0x6f3   :  { %31576 = vmatprep.subr.msk.mxu1 %vm16608_vm0, %v39524_v14  ;;  %32588 = vmatprep.subr.msk.mxu0 %vm16608_vm0, %v25354_v18  ;;  %v26087_v14 = vpop.permute.xlu1 %26086 }
 0x6f4   :  { %25173 = vmatprep.mubr.f32.mxu1 %v39475_v37  ;;  %25250 = vmatprep.mubr.f32.mxu0 %v39475_v37 }
 0x6f5   :  { %31564 = vmatmul.mubr.msk.f32.gmra.mrb[112].mxu1 %vm16601_vm1, %v108_v3  ;;  %31568 = vmatmul.mubr.msk.f32.gmra.mrb[16].mxu0 %vm16601_vm1, %v108_v3 }
 0x6f6   :  { %32585 = vmatprep.mubr.msk.f32.mxu1 %vm16601_vm1, %v107_v21  ;;  %25427 = vmatprep.mubr.f32.mxu0 %v39475_v37  ;;  %v39526_v21 = vld [vmem:[#allocation34_spill] sm:$0xff] }
 0x6f7   :  { %v25594_v57 = vsel %vm9272_vm8, %v39526_v21, %v25593_v29  ;;  %v39537_v29 = vld [vmem:[#allocation39_spill] sm:$0xff]  ;;  %v39538_v21 = vld [vmem:[#allocation42_spill] sm:$0xff]  ;;  %vm29962_vm8 = vcmask 1045509  }
 0x6f9   :  { %32586 = vmatmul.mubr.msk.f32.vlgmr.msra.gmra.mrb[114].mxu1 %vm16601_vm1, %v108_v3  ;;  %31574 = vmatmul.mubr.msk.f32.vlgmr.msra.gmra.mrb[8].mxu0 %vm16601_vm1, %v109_v8  ;;  %v39527_v3 = vld [vmem:[#allocation29_spill] sm:$0xff] }
 0x6fa   :  { %31577 = vmatpush1.msk.msra.mxu1 %vm16608_vm0, %v39525_v24  ;;  %32589 = vmatpush3.msk.msra.mxu0 %vm16608_vm0, %v25354_v18  ;;  %v39533_v18 = vld [vmem:[#allocation35_spill] sm:$0xff]  ;;  %v39534_v24 = vld [vmem:[#allocation37_spill] sm:$0xff] }
 0x6fb   :  { %31583 = vmatprep.subr.msk.mxu1 %vm16608_vm0, %v37483_v35  ;;  %31587 = vmatprep.subr.msk.mxu0 %vm16608_vm0, %v37523_v41  ;;  %v39528_v35 = vld [vmem:[#allocation30_spill] sm:$0xff]  ;;  %v25847_v41 = vpop.permute.xlu0 %25846 }
 0x6fc   :  { %25433 = vmatprep.mubr.f32.mxu0 %v39475_v37  ;;  %25504 = vmatprep.mubr.f32.mxu1 %v39475_v37  ;;  %v25848_v0 = vsel %vm20816_vm10, %v39530_v40, %v25847_v41  ;;  %v26581_v41 = vpop.permute.xlu1 %26580 }
 0x6fd   :  { %31575 = vmatmul.mubr.msk.f32.gmra.mrb[10].mxu0 %vm16601_vm1, %v110_v50  ;;  %31578 = vmatmul.mubr.msk.f32.vlgmr.msra.gmra.mrb[106].mxu1 %vm16601_vm1, %v109_v8 }
 0x6fe   :  { %31584 = vmatpush1.msk.msra.mxu1 %vm16608_vm0, %v39527_v3  ;;  %25510 = vmatprep.mubr.f32.mxu1 %v39475_v37  ;;  %v39539_v3 = vld [vmem:[#allocation40_spill] sm:$0xff] }
 0x6ff   :  { %32593 = vmatprep.subr.msk.mxu1 %vm16608_vm0, %v25594_v57  ;;  %32590 = vmatprep.mubr.msk.f32.mxu0 %vm16601_vm1, %v109_v8 }
 0x701   :  { %31579 = vmatmul.mubr.msk.f32.gmra.mrb[108].mxu1 %vm16601_vm1, %v110_v50  ;;  %32591 = vmatmul.mubr.msk.f32.vlgmr.msra.gmra.mrb[12].mxu0 %vm16601_vm1, %v110_v50 }
 0x702   :  { %31588 = vmatpush1.msk.msra.mxu0 %vm16608_vm0, %v39528_v35  ;;  %25661 = vmatprep.mubr.f32.mxu1 %v39475_v37  ;;  %v114_v35 = vld [vmem:[%s39409_s3 + $0x138] sm:$0xff] }
 0x703   :  { %31594 = vmatprep.subr.msk.mxu0 %vm16608_vm0, %v39529_v1  ;;  %25738 = vmatprep.mubr.f32.mxu0 %v39475_v37  ;;  %v26582_v1 = vsel %vm21355_vm11, %v37660_v23, %v26581_v41  ;;  %v122_v23 = vld [vmem:[%s39409_s3 + $0x178] sm:$0xff] }
 0x705   :  { %31585 = vmatmul.mubr.msk.f32.vlgmr.msra.gmra.mrb[110].mxu1 %vm16601_vm1, %v109_v8  ;;  %31589 = vmatmul.mubr.msk.f32.vlgmr.msra.gmra.mrb[14].mxu0 %vm16601_vm1, %v109_v8 }
 0x706   :  { %32594 = vmatpush3.msk.msra.mxu1 %vm16608_vm0, %v25594_v57  ;;  %31595 = vmatpush1.msk.msra.mxu0 %vm16608_vm0, %v39531_v9  ;;  %v113_v57 = vld [vmem:[%s39409_s3 + $0x130] sm:$0xff] }
 0x707   :  { %31598 = vmatprep.subr.msk.mxu1 %vm16608_vm0, %v39532_v36  ;;  %32598 = vmatprep.subr.msk.mxu0 %vm16608_vm0, %v25848_v0 }
 0x708   :  { %25667 = vmatprep.mubr.f32.mxu1 %v39475_v37  ;;  %25744 = vmatprep.mubr.f32.mxu0 %v39475_v37 }
 0x709   :  { %31586 = vmatmul.mubr.msk.f32.gmra.mrb[112].mxu1 %vm16601_vm1, %v110_v50  ;;  %31590 = vmatmul.mubr.msk.f32.gmra.mrb[16].mxu0 %vm16601_vm1, %v110_v50 }
 0x70a   :  { %32595 = vmatprep.mubr.msk.f32.mxu1 %vm16601_vm1, %v109_v8  ;;  %25921 = vmatprep.mubr.f32.mxu0 %v39475_v37  ;;  %v26088_v8 = vsel %vm20816_vm10, %v37591_v15, %v26087_v14  ;;  %v39536_v15 = vld [vmem:[#allocation41_spill] sm:$0xff]  ;;  %vm30047_vm10 = vcmask 1042408  }
 0x70d   :  { %32596 = vmatmul.mubr.msk.f32.vlgmr.msra.gmra.mrb[114].mxu1 %vm16601_vm1, %v110_v50  ;;  %31596 = vmatmul.mubr.msk.f32.vlgmr.msra.gmra.mrb[8].mxu0 %vm16601_vm1, %v111_v6 }
 0x70e   :  { %31599 = vmatpush1.msk.msra.mxu1 %vm16608_vm0, %v39533_v18  ;;  %32599 = vmatpush3.msk.msra.mxu0 %vm16608_vm0, %v25848_v0 }
 0x70f   :  { %31605 = vmatprep.subr.msk.mxu1 %vm16608_vm0, %v37572_v45  ;;  %31609 = vmatprep.subr.msk.mxu0 %vm16608_vm0, %v37595_v54  ;;  %v39535_v54 = vld [vmem:[#allocation38_spill] sm:$0xff]  ;;  %v26341_v45 = vpop.permute.xlu0 %26340 }
 0x710   :  { %25927 = vmatprep.mubr.f32.mxu0 %v39475_v37  ;;  %25998 = vmatprep.mubr.f32.mxu1 %v39475_v37  ;;  %v26342_v50 = vsel %vm21355_vm11, %v39536_v15, %v26341_v45  ;;  %vm30048_vm11 = vcmask 175106  }
 0x711   :  { %31597 = vmatmul.mubr.msk.f32.gmra.mrb[10].mxu0 %vm16601_vm1, %v112_v59  ;;  %31600 = vmatmul.mubr.msk.f32.vlgmr.msra.gmra.mrb[106].mxu1 %vm16601_vm1, %v111_v6 }
 0x712   :  { %31606 = vmatpush1.msk.msra.mxu1 %vm16608_vm0, %v39534_v24  ;;  %26004 = vmatprep.mubr.f32.mxu1 %v39475_v37 }
 0x713   :  { %32603 = vmatprep.subr.msk.mxu1 %vm16608_vm0, %v26088_v8  ;;  %32600 = vmatprep.mubr.msk.f32.mxu0 %vm16601_vm1, %v111_v6 }
 0x715   :  { %31601 = vmatmul.mubr.msk.f32.gmra.mrb[108].mxu1 %vm16601_vm1, %v112_v59  ;;  %32601 = vmatmul.mubr.msk.f32.vlgmr.msra.gmra.mrb[12].mxu0 %vm16601_vm1, %v112_v59 }
 0x716   :  { %31610 = vmatpush1.msk.msra.mxu0 %vm16608_vm0, %v39535_v54  ;;  %26155 = vmatprep.mubr.f32.mxu1 %v39475_v37 }
 0x717   :  { %31616 = vmatprep.subr.msk.mxu0 %vm16608_vm0, %v37614_v63  ;;  %26232 = vmatprep.mubr.f32.mxu0 %v39475_v37  ;;  %v29315_v63 = vld [vmem:[%s39410_s4 + $0x8] sm:$0xff] }
 0x718   :  { %29323 = vperm.xlu1 %33711, %v29315_v63  }
 0x719   :  { %31607 = vmatmul.mubr.msk.f32.vlgmr.msra.gmra.mrb[110].mxu1 %vm16601_vm1, %v111_v6  ;;  %31611 = vmatmul.mubr.msk.f32.vlgmr.msra.gmra.mrb[14].mxu0 %vm16601_vm1, %v111_v6 }
 0x71a   :  { %32604 = vmatpush3.msk.msra.mxu1 %vm16608_vm0, %v26088_v8  ;;  %31617 = vmatpush1.msk.msra.mxu0 %vm16608_vm0, %v39537_v29 }
 0x71b   :  { %31620 = vmatprep.subr.msk.mxu1 %vm16608_vm0, %v39538_v21  ;;  %32608 = vmatprep.subr.msk.mxu0 %vm16608_vm0, %v26342_v50 }
 0x71c   :  { %26161 = vmatprep.mubr.f32.mxu1 %v39475_v37  ;;  %26238 = vmatprep.mubr.f32.mxu0 %v39475_v37 }
 0x71d   :  { %31608 = vmatmul.mubr.msk.f32.gmra.mrb[112].mxu1 %vm16601_vm1, %v112_v59  ;;  %31612 = vmatmul.mubr.msk.f32.gmra.mrb[16].mxu0 %vm16601_vm1, %v112_v59 }
 0x71e   :  { %32605 = vmatprep.mubr.msk.f32.mxu1 %vm16601_vm1, %v111_v6  ;;  %26415 = vmatprep.mubr.f32.mxu0 %v39475_v37 }
 0x721   :  { %32606 = vmatmul.mubr.msk.f32.vlgmr.msra.gmra.mrb[114].mxu1 %vm16601_vm1, %v112_v59  ;;  %31618 = vmatmul.mubr.msk.f32.vlgmr.msra.gmra.mrb[8].mxu0 %vm16601_vm1, %v113_v57 }
 0x722   :  { %31621 = vmatpush1.msk.msra.mxu1 %vm16608_vm0, %v39539_v3  ;;  %32609 = vmatpush3.msk.msra.mxu0 %vm16608_vm0, %v26342_v50 }
 0x723   :  { %31627 = vmatprep.subr.msk.mxu1 %vm16608_vm0, %v37652_v62  ;;  %31631 = vmatprep.subr.msk.mxu0 %vm16608_vm0, %v37666_v33  ;;  %v120_v62 = vld [vmem:[%s39409_s3 + $0x168] sm:$0xff]  ;;  %v39542_v33 = vld [vmem:[#allocation43_spill] sm:$0xff] }
 0x724   :  { %26421 = vmatprep.mubr.f32.mxu0 %v39475_v37  ;;  %26492 = vmatprep.mubr.f32.mxu1 %v39475_v37 }
 0x725   :  { %31619 = vmatmul.mubr.msk.f32.gmra.mrb[10].mxu0 %vm16601_vm1, %v114_v35  ;;  %31622 = vmatmul.mubr.msk.f32.vlgmr.msra.gmra.mrb[106].mxu1 %vm16601_vm1, %v113_v57 }
 0x726   :  { %31628 = vmatpush1.msk.msra.mxu1 %vm16608_vm0, %v37636_v39  ;;  %26498 = vmatprep.mubr.f32.mxu1 %v39475_v37 }
 0x727   :  { %32613 = vmatprep.subr.msk.mxu1 %vm16608_vm0, %v26582_v1  ;;  %32610 = vmatprep.mubr.msk.f32.mxu0 %vm16601_vm1, %v113_v57 }
 0x729   :  { %31623 = vmatmul.mubr.msk.f32.gmra.mrb[108].mxu1 %vm16601_vm1, %v114_v35  ;;  %32611 = vmatmul.mubr.msk.f32.vlgmr.msra.gmra.mrb[12].mxu0 %vm16601_vm1, %v114_v35 }
 0x72a   :  { %31632 = vmatpush1.msk.msra.mxu0 %vm16608_vm0, %v37647_v2  ;;  %26649 = vmatprep.mubr.f32.mxu1 %v39475_v37  ;;  %v39540_v2 = vld [vmem:[#allocation10_spill] sm:$0xff] }
 0x72b   :  { %31638 = vmatprep.subr.msk.mxu0 %vm16608_vm0, %v36459_v26  ;;  %26726 = vmatprep.mubr.f32.mxu0 %v39475_v37  ;;  %v116_v26 = vld [vmem:[%s39409_s3 + $0x148] sm:$0xff] }
 0x72d   :  { %31629 = vmatmul.mubr.msk.f32.vlgmr.msra.gmra.mrb[110].mxu1 %vm16601_vm1, %v113_v57  ;;  %31633 = vmatmul.mubr.msk.f32.vlgmr.msra.gmra.mrb[14].mxu0 %vm16601_vm1, %v113_v57 }
 0x72e   :  { %32614 = vmatpush3.msk.msra.mxu1 %vm16608_vm0, %v26582_v1  ;;  %31639 = vmatpush1.msk.msra.mxu0 %vm16608_vm0, %v36450_v17  ;;  %v115_v17 = vld [vmem:[%s39409_s3 + $0x140] sm:$0xff] }
 0x72f   :  { %31642 = vmatprep.subr.msk.mxu1 %vm16608_vm0, %v36723_v4  ;;  %32618 = vmatprep.subr.msk.mxu0 %vm16608_vm0, %v39540_v2  ;;  %v118_v4 = vld [vmem:[%s39409_s3 + $0x158] sm:$0xff] }
 0x730   :  { %26655 = vmatprep.mubr.f32.mxu1 %v39475_v37  ;;  %26732 = vmatprep.mubr.f32.mxu0 %v39475_v37 }
 0x731   :  { %31630 = vmatmul.mubr.msk.f32.gmra.mrb[112].mxu1 %vm16601_vm1, %v114_v35  ;;  %31634 = vmatmul.mubr.msk.f32.gmra.mrb[16].mxu0 %vm16601_vm1, %v114_v35 }
 0x732   :  { %32615 = vmatprep.mubr.msk.f32.mxu1 %vm16601_vm1, %v113_v57  ;;  %26906 = vmatprep.mubr.f32.mxu0 %v39475_v37 }
 0x735   :  { %32616 = vmatmul.mubr.msk.f32.vlgmr.msra.gmra.mrb[114].mxu1 %vm16601_vm1, %v114_v35  ;;  %31640 = vmatmul.mubr.msk.f32.vlgmr.msra.gmra.mrb[8].mxu0 %vm16601_vm1, %v115_v17 }
 0x736   :  { %31643 = vmatpush1.msk.msra.mxu1 %vm16608_vm0, %v36461_v44  ;;  %32619 = vmatpush3.msk.msra.mxu0 %vm16608_vm0, %v39540_v2  ;;  %v39541_v44 = vld [vmem:[#allocation17_spill] sm:$0xff] }
 0x737   :  { %31649 = vmatprep.subr.msk.mxu1 %vm16608_vm0, %v36493_v47  ;;  %31653 = vmatprep.subr.msk.mxu0 %vm16608_vm0, %v36909_v52  ;;  %v27323_v47 = vpop.permute.xlu0 %27322 }
 0x738   :  { %26912 = vmatprep.mubr.f32.mxu0 %v39475_v37  ;;  %26983 = vmatprep.mubr.f32.mxu1 %v39475_v37 }
 0x739   :  { %31641 = vmatmul.mubr.msk.f32.gmra.mrb[10].mxu0 %vm16601_vm1, %v116_v26  ;;  %31644 = vmatmul.mubr.msk.f32.vlgmr.msra.gmra.mrb[106].mxu1 %vm16601_vm1, %v115_v17 }
 0x73a   :  { %31650 = vmatpush1.msk.msra.mxu1 %vm16608_vm0, %v36468_v46  ;;  %26989 = vmatprep.mubr.f32.mxu1 %v39475_v37  ;;  %v27324_v46 = vsel %vm1390_vm4, %v37717_v34, %v27323_v47 }
 0x73b   :  { %32623 = vmatprep.subr.msk.mxu1 %vm16608_vm0, %v39541_v44  ;;  %32620 = vmatprep.mubr.msk.f32.mxu0 %vm16601_vm1, %v115_v17 }
 0x73d   :  { %31645 = vmatmul.mubr.msk.f32.gmra.mrb[108].mxu1 %vm16601_vm1, %v116_v26  ;;  %32621 = vmatmul.mubr.msk.f32.vlgmr.msra.gmra.mrb[12].mxu0 %vm16601_vm1, %v116_v26 }
 0x73e   :  { %31654 = vmatpush1.msk.msra.mxu0 %vm16608_vm0, %v36477_v56  ;;  %27137 = vmatprep.mubr.f32.mxu1 %v39475_v37  ;;  %v117_v56 = vld [vmem:[%s39409_s3 + $0x150] sm:$0xff] }
 0x73f   :  { %31660 = vmatprep.subr.msk.mxu0 %vm16608_vm0, %v36613_v31  ;;  %27214 = vmatprep.mubr.f32.mxu0 %v39475_v37 }
 0x741   :  { %31651 = vmatmul.mubr.msk.f32.vlgmr.msra.gmra.mrb[110].mxu1 %vm16601_vm1, %v115_v17  ;;  %31655 = vmatmul.mubr.msk.f32.vlgmr.msra.gmra.mrb[14].mxu0 %vm16601_vm1, %v115_v17 }
 0x742   :  { %32624 = vmatpush3.msk.msra.mxu1 %vm16608_vm0, %v39541_v44  ;;  %31661 = vmatpush1.msk.msra.mxu0 %vm16608_vm0, %v36607_v60  ;;  %v27565_v60 = vpop.permute.xlu1 %27564 }
 0x743   :  { %31664 = vmatprep.subr.msk.mxu1 %vm16608_vm0, %v27324_v46  ;;  %32628 = vmatprep.subr.msk.mxu0 %vm16608_vm0, %v27323_v47  ;;  %v27566_v31 = vsel %vm1390_vm4, %v37744_v27, %v27565_v60  ;;  %v39543_v27 = vld [vmem:[#allocation8_spill] sm:$0xff] }
 0x744   :  { %27143 = vmatprep.mubr.f32.mxu1 %v39475_v37  ;;  %27220 = vmatprep.mubr.f32.mxu0 %v39475_v37 }
 0x745   :  { %31652 = vmatmul.mubr.msk.f32.gmra.mrb[112].mxu1 %vm16601_vm1, %v116_v26  ;;  %31656 = vmatmul.mubr.msk.f32.gmra.mrb[16].mxu0 %vm16601_vm1, %v116_v26 }
 0x746   :  { %32625 = vmatprep.mubr.msk.f32.mxu1 %vm16601_vm1, %v115_v17  ;;  %27399 = vmatprep.mubr.f32.mxu0 %v39475_v37 }
 0x749   :  { %32626 = vmatmul.mubr.msk.f32.vlgmr.msra.gmra.mrb[114].mxu1 %vm16601_vm1, %v116_v26  ;;  %31662 = vmatmul.mubr.msk.f32.vlgmr.msra.gmra.mrb[8].mxu0 %vm16601_vm1, %v117_v56 }
 0x74a   :  { %31665 = vmatpush1.msk.msra.mxu1 %vm16608_vm0, %v37729_v13  ;;  %32629 = vmatpush3.msk.msra.mxu0 %vm16608_vm0, %v27323_v47  ;;  %v124_v13 = vld [vmem:[%s39409_s3 + $0x188] sm:$0xff] }
 0x74b   :  { %31671 = vmatprep.subr.msk.mxu1 %vm16608_vm0, %v36664_v10  ;;  %31675 = vmatprep.subr.msk.mxu0 %vm16608_vm0, %v27566_v31  ;;  %v27821_v10 = vpop.permute.xlu0 %27820 }
 0x74c   :  { %27405 = vmatprep.mubr.f32.mxu0 %v39475_v37  ;;  %27476 = vmatprep.mubr.f32.mxu1 %v39475_v37 }
 0x74d   :  { %31663 = vmatmul.mubr.msk.f32.gmra.mrb[10].mxu0 %vm16601_vm1, %v118_v4  ;;  %31666 = vmatmul.mubr.msk.f32.vlgmr.msra.gmra.mrb[106].mxu1 %vm16601_vm1, %v117_v56 }
 0x74e   :  { %31672 = vmatpush1.msk.msra.mxu1 %vm16608_vm0, %v36658_v38  ;;  %27482 = vmatprep.mubr.f32.mxu1 %v39475_v37  ;;  %v27822_v38 = vsel %vm2694_vm6, %v37779_v25, %v27821_v10  ;;  %v39545_v25 = vld [vmem:[#allocation7_spill] sm:$0xff] }
 0x74f   :  { %32633 = vmatprep.subr.msk.mxu1 %vm16608_vm0, %v27565_v60  ;;  %32630 = vmatprep.mubr.msk.f32.mxu0 %vm16601_vm1, %v117_v56 }
 0x751   :  { %31667 = vmatmul.mubr.msk.f32.gmra.mrb[108].mxu1 %vm16601_vm1, %v118_v4  ;;  %32631 = vmatmul.mubr.msk.f32.vlgmr.msra.gmra.mrb[12].mxu0 %vm16601_vm1, %v118_v4 }
 0x752   :  { %31676 = vmatpush1.msk.msra.mxu0 %vm16608_vm0, %v37755_v58  ;;  %27635 = vmatprep.mubr.f32.mxu1 %v39475_v37  ;;  %v39544_v58 = vld [vmem:[#allocation9_spill] sm:$0xff] }
 0x753   :  { %31682 = vmatprep.subr.msk.mxu0 %vm16608_vm0, %v36762_v51  ;;  %27712 = vmatprep.mubr.f32.mxu0 %v39475_v37  ;;  %v119_v51 = vld [vmem:[%s39409_s3 + $0x160] sm:$0xff] }
 0x755   :  { %31673 = vmatmul.mubr.msk.f32.vlgmr.msra.gmra.mrb[110].mxu1 %vm16601_vm1, %v117_v56  ;;  %31677 = vmatmul.mubr.msk.f32.vlgmr.msra.gmra.mrb[14].mxu0 %vm16601_vm1, %v117_v56 }
 0x756   :  { %32634 = vmatpush3.msk.msra.mxu1 %vm16608_vm0, %v27565_v60  ;;  %31683 = vmatpush1.msk.msra.mxu0 %vm16608_vm0, %v36796_v53  ;;  %v28063_v53 = vpop.permute.xlu1 %28062 }
 0x757   :  { %31686 = vmatprep.subr.msk.mxu1 %vm16608_vm0, %v27822_v38  ;;  %32638 = vmatprep.subr.msk.mxu0 %vm16608_vm0, %v27821_v10  ;;  %v28064_v52 = vsel %vm2694_vm6, %v37808_v12, %v28063_v53  ;;  %vm29665_vm6 = vcmask 138240  }
 0x758   :  { %27641 = vmatprep.mubr.f32.mxu1 %v39475_v37  ;;  %27718 = vmatprep.mubr.f32.mxu0 %v39475_v37 }
 0x759   :  { %31674 = vmatmul.mubr.msk.f32.gmra.mrb[112].mxu1 %vm16601_vm1, %v118_v4  ;;  %31678 = vmatmul.mubr.msk.f32.gmra.mrb[16].mxu0 %vm16601_vm1, %v118_v4 }
 0x75a   :  { %32635 = vmatprep.mubr.msk.f32.mxu1 %vm16601_vm1, %v117_v56  ;;  %27897 = vmatprep.mubr.f32.mxu0 %v39475_v37 }
 0x75d   :  { %32636 = vmatmul.mubr.msk.f32.vlgmr.msra.gmra.mrb[114].mxu1 %vm16601_vm1, %v118_v4  ;;  %31684 = vmatmul.mubr.msk.f32.vlgmr.msra.gmra.mrb[8].mxu0 %vm16601_vm1, %v119_v51 }
 0x75e   :  { %31687 = vmatpush1.msk.msra.mxu1 %vm16608_vm0, %v37793_v61  ;;  %32639 = vmatpush3.msk.msra.mxu0 %vm16608_vm0, %v27821_v10 }
 0x75f   :  { %31693 = vmatprep.subr.msk.mxu1 %vm16608_vm0, %v36859_v19  ;;  %31697 = vmatprep.subr.msk.mxu0 %vm16608_vm0, %v28064_v52  ;;  %v28319_v19 = vpop.permute.xlu0 %28318 }
 0x760   :  { %27903 = vmatprep.mubr.f32.mxu0 %v39475_v37  ;;  %27974 = vmatprep.mubr.f32.mxu1 %v39475_v37 }
 0x761   :  { %31685 = vmatmul.mubr.msk.f32.gmra.mrb[10].mxu0 %vm16601_vm1, %v120_v62  ;;  %31688 = vmatmul.mubr.msk.f32.vlgmr.msra.gmra.mrb[106].mxu1 %vm16601_vm1, %v119_v51 }
 0x762   :  { %31694 = vmatpush1.msk.msra.mxu1 %vm16608_vm0, %v36870_v16  ;;  %27980 = vmatprep.mubr.f32.mxu1 %v39475_v37  ;;  %v28320_v16 = vsel %vm18132_vm2, %v37843_v30, %v28319_v19 }
 0x763   :  { %32643 = vmatprep.subr.msk.mxu1 %vm16608_vm0, %v28063_v53  ;;  %32640 = vmatprep.mubr.msk.f32.mxu0 %vm16601_vm1, %v119_v51 }
 0x765   :  { %31689 = vmatmul.mubr.msk.f32.gmra.mrb[108].mxu1 %vm16601_vm1, %v120_v62  ;;  %32641 = vmatmul.mubr.msk.f32.vlgmr.msra.gmra.mrb[12].mxu0 %vm16601_vm1, %v120_v62 }
 0x766   :  { %31698 = vmatpush1.msk.msra.mxu0 %vm16608_vm0, %v37819_v49  ;;  %28133 = vmatprep.mubr.f32.mxu1 %v39475_v37 }
 0x767   :  { %31704 = vmatprep.subr.msk.mxu0 %vm16608_vm0, %v36884_v20  ;;  %28210 = vmatprep.mubr.f32.mxu0 %v39475_v37  ;;  %v121_v20 = vld [vmem:[%s39409_s3 + $0x170] sm:$0xff] }
 0x769   :  { %31695 = vmatmul.mubr.msk.f32.vlgmr.msra.gmra.mrb[110].mxu1 %vm16601_vm1, %v119_v51  ;;  %31699 = vmatmul.mubr.msk.f32.vlgmr.msra.gmra.mrb[14].mxu0 %vm16601_vm1, %v119_v51 }
 0x76a   :  { %32644 = vmatpush3.msk.msra.mxu1 %vm16608_vm0, %v28063_v53  ;;  %31705 = vmatpush1.msk.msra.mxu0 %vm16608_vm0, %v36925_v11  ;;  %v28561_v11 = vpop.permute.xlu1 %28560 }
 0x76b   :  { %31708 = vmatprep.subr.msk.mxu1 %vm16608_vm0, %v28320_v16  ;;  %32648 = vmatprep.subr.msk.mxu0 %vm16608_vm0, %v28319_v19  ;;  %v28562_v39 = vsel %vm18132_vm2, %v37872_v42, %v28561_v11 }
 0x76c   :  { %28139 = vmatprep.mubr.f32.mxu1 %v39475_v37  ;;  %28216 = vmatprep.mubr.f32.mxu0 %v39475_v37 }
 0x76d   :  { %31696 = vmatmul.mubr.msk.f32.gmra.mrb[112].mxu1 %vm16601_vm1, %v120_v62  ;;  %31700 = vmatmul.mubr.msk.f32.gmra.mrb[16].mxu0 %vm16601_vm1, %v120_v62 }
 0x76e   :  { %32645 = vmatprep.mubr.msk.f32.mxu1 %vm16601_vm1, %v119_v51  ;;  %28395 = vmatprep.mubr.f32.mxu0 %v39475_v37 }
 0x771   :  { %32646 = vmatmul.mubr.msk.f32.vlgmr.msra.gmra.mrb[114].mxu1 %vm16601_vm1, %v120_v62  ;;  %31706 = vmatmul.mubr.msk.f32.vlgmr.msra.gmra.mrb[8].mxu0 %vm16601_vm1, %v121_v20 }
 0x772   :  { %31709 = vmatpush1.msk.msra.mxu1 %vm16608_vm0, %v37857_v5  ;;  %32649 = vmatpush3.msk.msra.mxu0 %vm16608_vm0, %v28319_v19 }
 0x773   :  { %31715 = vmatprep.subr.msk.mxu1 %vm16608_vm0, %v36956_v48  ;;  %31719 = vmatprep.subr.msk.mxu0 %vm16608_vm0, %v28562_v39  ;;  %v28817_v48 = vpop.permute.xlu0 %28816 }
 0x774   :  { %28401 = vmatprep.mubr.f32.mxu0 %v39475_v37  ;;  %28472 = vmatprep.mubr.f32.mxu1 %v39475_v37 }
 0x775   :  { %31707 = vmatmul.mubr.msk.f32.gmra.mrb[10].mxu0 %vm16601_vm1, %v122_v23  ;;  %31710 = vmatmul.mubr.msk.f32.vlgmr.msra.gmra.mrb[106].mxu1 %vm16601_vm1, %v121_v20 }
 0x776   :  { %31716 = vmatpush1.msk.msra.mxu1 %vm16608_vm0, %v36991_v55  ;;  %28478 = vmatprep.mubr.f32.mxu1 %v39475_v37  ;;  %v28818_v55 = vsel %vm18665_vm7, %v37907_v32, %v28817_v48 }
 0x777   :  { %32653 = vmatprep.subr.msk.mxu1 %vm16608_vm0, %v28561_v11  ;;  %32650 = vmatprep.mubr.msk.f32.mxu0 %vm16601_vm1, %v121_v20  ;;  %v38477_v49 = vpop.permute.xlu0 %29318 }
 0x779   :  { %31711 = vmatmul.mubr.msk.f32.gmra.mrb[108].mxu1 %vm16601_vm1, %v122_v23  ;;  %32651 = vmatmul.mubr.msk.f32.vlgmr.msra.gmra.mrb[12].mxu0 %vm16601_vm1, %v122_v23 }
 0x77a   :  { %31720 = vmatpush1.msk.msra.mxu0 %vm16608_vm0, %v37883_v28  ;;  %28631 = vmatprep.mubr.f32.mxu1 %v39475_v37 }
 0x77b   :  { %31726 = vmatprep.subr.msk.mxu0 %vm16608_vm0, %v37006_v43  ;;  %28708 = vmatprep.mubr.f32.mxu0 %v39475_v37  ;;  %v123_v43 = vld [vmem:[%s39409_s3 + $0x180] sm:$0xff] }
 0x77d   :  { %31717 = vmatmul.mubr.msk.f32.vlgmr.msra.gmra.mrb[110].mxu1 %vm16601_vm1, %v121_v20  ;;  %31721 = vmatmul.mubr.msk.f32.vlgmr.msra.gmra.mrb[14].mxu0 %vm16601_vm1, %v121_v20 }
 0x77e   :  { %32654 = vmatpush3.msk.msra.mxu1 %vm16608_vm0, %v28561_v11  ;;  %31727 = vmatpush1.msk.msra.mxu0 %vm16608_vm0, %v37036_v22  ;;  %v29059_v22 = vpop.permute.xlu1 %29058 }
 0x77f   :  { %31730 = vmatprep.subr.msk.mxu1 %vm16608_vm0, %v28818_v55  ;;  %32658 = vmatprep.subr.msk.mxu0 %vm16608_vm0, %v28817_v48  ;;  %v29060_v34 = vsel %vm18665_vm7, %v37936_v7, %v29059_v22 }
 0x780   :  { %28637 = vmatprep.mubr.f32.mxu1 %v39475_v37  ;;  %28714 = vmatprep.mubr.f32.mxu0 %v39475_v37 }
 0x781   :  { %31718 = vmatmul.mubr.msk.f32.gmra.mrb[112].mxu1 %vm16601_vm1, %v122_v23  ;;  %31722 = vmatmul.mubr.msk.f32.gmra.mrb[16].mxu0 %vm16601_vm1, %v122_v23 }
 0x782   :  { %32655 = vmatprep.mubr.msk.f32.mxu1 %vm16601_vm1, %v121_v20  ;;  %28893 = vmatprep.mubr.f32.mxu0 %v39475_v37 }
 0x785   :  { %32656 = vmatmul.mubr.msk.f32.vlgmr.msra.gmra.mrb[114].mxu1 %vm16601_vm1, %v122_v23  ;;  %31728 = vmatmul.mubr.msk.f32.vlgmr.msra.gmra.mrb[8].mxu0 %vm16601_vm1, %v123_v43 }
 0x786   :  { %31731 = vmatpush1.msk.msra.mxu1 %vm16608_vm0, %v39542_v33  ;;  %32659 = vmatpush3.msk.msra.mxu0 %vm16608_vm0, %v28817_v48 }
 0x787   :  { %31737 = vmatprep.subr.msk.mxu1 %vm16608_vm0, %v39543_v27  ;;  %31741 = vmatprep.subr.msk.mxu0 %vm16608_vm0, %v29060_v34 }
 0x788   :  { %28899 = vmatprep.mubr.f32.mxu0 %v39475_v37  ;;  %28970 = vmatprep.mubr.f32.mxu1 %v39475_v37 }
 0x789   :  { %31729 = vmatmul.mubr.msk.f32.gmra.mrb[10].mxu0 %vm16601_vm1, %v124_v13  ;;  %31732 = vmatmul.mubr.msk.f32.vlgmr.msra.gmra.mrb[106].mxu1 %vm16601_vm1, %v123_v43 }
 0x78a   :  { %31738 = vmatpush1.msk.msra.mxu1 %vm16608_vm0, %v39544_v58  ;;  %28976 = vmatprep.mubr.f32.mxu1 %v39475_v37 }
 0x78b   :  { %32663 = vmatprep.subr.msk.mxu1 %vm16608_vm0, %v29059_v22  ;;  %32660 = vmatprep.mubr.msk.f32.mxu0 %vm16601_vm1, %v123_v43 }
 0x78d   :  { %31733 = vmatmul.mubr.msk.f32.gmra.mrb[108].mxu1 %vm16601_vm1, %v124_v13  ;;  %32661 = vmatmul.mubr.msk.f32.vlgmr.msra.gmra.mrb[12].mxu0 %vm16601_vm1, %v124_v13 }
 0x78e   :  { %31742 = vmatpush1.msk.msra.mxu0 %vm16608_vm0, %v39545_v25  ;;  %29129 = vmatprep.mubr.f32.mxu1 %v39475_v37 }
 0x78f   :  { %29206 = vmatprep.mubr.f32.mxu0 %v39475_v37 }
 0x791   :  { %31739 = vmatmul.mubr.msk.f32.vlgmr.msra.gmra.mrb[110].mxu1 %vm16601_vm1, %v123_v43  ;;  %31743 = vmatmul.mubr.msk.f32.vlgmr.msra.gmra.mrb[14].mxu0 %vm16601_vm1, %v123_v43 }
 0x792   :  { %32664 = vmatpush3.msk.msra.mxu1 %vm16608_vm0, %v29059_v22  ;;  %29135 = vmatprep.mubr.f32.mxu1 %v39475_v37  ;;  %vm29979_vm0 = vcmask 402632  }
 0x793   :  { %29212 = vmatprep.mubr.f32.mxu0 %v39475_v37 }
 0x795   :  { %31740 = vmatmul.mubr.msk.f32.gmra.mrb[112].mxu1 %vm16601_vm1, %v124_v13  ;;  %31744 = vmatmul.mubr.msk.f32.gmra.mrb[16].mxu0 %vm16601_vm1, %v124_v13 }
 0x796   :  { %32665 = vmatprep.mubr.msk.f32.mxu1 %vm16601_vm1, %v123_v43 }
 0x797   :  { %v38482_v5 = vpop.permute.xlu1 %29323 }
 0x799   :  { %32666 = vmatmul.mubr.msk.f32.vlgmr.msra.gmra.mrb[114].mxu1 %vm16601_vm1, %v124_v13  ;;  %vm29993_vm1 = vcmask 607632  }
 0x858   :  { %v28895_v61 = vpop.f32.mrb[8].mxu0 }
 0x859   :  { %v28897_v12 = vpop.f32.mrb[9].mxu0  ;;  %v38485_v42 = vadd.f32 %v38477_v49, %v28895_v61 }
 0x85a   :  { %v38480_v30 = vadd.f32 %v38477_v49, %v28897_v12 }
 0x85b   :  { %v29346_v59 = vmax.f32 %v38485_v42, 0.0 }
 0x85c   :  { %v28901_v28 = vpop.f32.mrb[10].mxu0  ;;  %v28972_v32 = vpop.f32.mrb[106].mxu1  ;;  %v29347_v36 = vmax.f32 %v38480_v30, 0.0 }
 0x85d   :  { %v38488_v7 = vadd.f32 %v38477_v49, %v28972_v32  ;;  %v28903_v40 = vpop.f32.mrb[11].mxu0  ;;  %v28974_v0 = vpop.f32.mrb[107].mxu1  ;;  %v38515_v63 = vadd.f32 %v38482_v5, %v28901_v28 }
 0x85e   :  { %v38491_v9 = vadd.f32 %v38477_v49, %v28974_v0  ;;  %v38496_v18 = vadd.f32 %v38482_v5, %v28903_v40 }
 0x85f   :  { %v29348_v6 = vmax.f32 %v38488_v7, 0.0  ;;  %v29351_v31 = vmax.f32 %v38515_v63, 0.0 }
 0x860   :  { %v29349_v14 = vmax.f32 %v38491_v9, 0.0  ;;  %v28978_v8 = vpop.f32.mrb[108].mxu1  ;;  %v32662_v24 = vpop.f32.mrb[12].mxu0  ;;  %v29352_v3 = vmax.f32 %v38496_v18, 0.0  ;;  %v29644_v18 = vld [vmem:[%s39411_s5 + $0x170] sm:$0xff]  ;;  %v29663_v9 = vld [vmem:[%s39411_s5 + $0x208] sm:$0xff] }
 0x861   :  { %v33712_v54 = vpack.i.bf16 %v29348_v6, %v29347_v36  ;;  %v38505_v45 = vadd.f32 %v38482_v5, %v28978_v8  ;;  %v28980_v15 = vpop.f32.mrb[109].mxu1  ;;  %v29049_v50 = vpop.f32.mrb[13].mxu0  ;;  %v38512_v21 = vadd.f32 %v32662_v24, %v38482_v5  ;;  %v29598_v24 = vld [vmem:[%s39411_s5] sm:$0xff] }
 0x862   :  { %v33717_v29 = vpack.i.bf16 %v29346_v59, %v29349_v14  ;;  %v38518_v57 = vadd.f32 %v38482_v5, %v28980_v15  ;;  %v38525_v1 = vadd.f32 %v38477_v49, %v29049_v50  ;;  %v29599_v15 = vld [vmem:[%s39411_s5 + $0x8] sm:$0xff]  ;;  %v29616_v50 = vld [vmem:[%s39411_s5 + $0x90] sm:$0xff] }
 0x863   :  { %v29353_v35 = vmax.f32 %v38505_v45, 0.0  ;;  %33713 = vrot.lane.b32.xlu0 %v33712_v54, %s33841_s20  ;;  %v29355_v60 = vmax.f32 %v38512_v21, 0.0 }
 0x864   :  { %v29354_v41 = vmax.f32 %v38518_v57, 0.0  ;;  %v29131_v2 = vpop.f32.mrb[110].mxu1  ;;  %33718 = vrot.lane.b32.xlu1 %v33717_v29, %s33841_s20  ;;  %v29208_v17 = vpop.f32.mrb[14].mxu0  ;;  %v29350_v51 = vmax.f32 %v38525_v1, 0.0  ;;  %v29617_v29 = vld [vmem:[%s39411_s5 + $0x98] sm:$0xff] }
 0x865   :  { %v33722_v26 = vpack.i.bf16 %v29353_v35, %v29352_v3  ;;  %v38533_v44 = vadd.f32 %v38477_v49, %v29131_v2  ;;  %v38536_v47 = vadd.f32 %v38477_v49, %v29208_v17  ;;  %v29133_v46 = vpop.f32.mrb[111].mxu1  ;;  %v29210_v56 = vpop.f32.mrb[15].mxu0  ;;  %v32740_v2 = vpack.c.bf16 %v29599_v15, %v29598_v24  ;;  %v29648_v24 = vld [vmem:[%s39411_s5 + $0x190] sm:$0xff] }
 0x866   :  { %v38541_v4 = vadd.f32 %v38477_v49, %v29133_v46  ;;  %v38544_v10 = vadd.f32 %v38477_v49, %v29210_v56  ;;  %v33727_v38 = vpack.i.bf16 %v29351_v31, %v29354_v41  ;;  %v32742_v17 = vpack.c.bf16 %v29617_v29, %v29616_v50  ;;  %v29601_v46 = vld [vmem:[%s39411_s5 + $0x18] sm:$0xff]  ;;  %v29618_v56 = vld [vmem:[%s39411_s5 + $0xa0] sm:$0xff]  ;;  %v29632_v15 = vld [vmem:[%s39411_s5 + $0x110] sm:$0xff] }
 0x867   :  { %33723 = vrot.lane.b32.xlu0 %v33722_v26, %s33841_s20  ;;  %v29356_v62 = vmax.f32 %v38533_v44, 0.0  ;;  %v29358_v19 = vmax.f32 %v38536_v47, 0.0  ;;  %v29600_v26 = vld [vmem:[%s39411_s5 + $0x10] sm:$0xff]  ;;  %v29633_v50 = vld [vmem:[%s39411_s5 + $0x118] sm:$0xff] }
 0x868   :  { %v29137_v53 = vpop.f32.mrb[112].mxu1  ;;  %v29214_v52 = vpop.f32.mrb[16].mxu0  ;;  %29404 = vrot.lane.b32.xlu1 %v29355_v60, %s33841_s20  ;;  %v29359_v16 = vmax.f32 %v38544_v10, 0.0  ;;  %v29357_v23 = vmax.f32 %v38541_v4, 0.0 }
 0x869   :  { %v38559_v20 = vadd.f32 %v38482_v5, %v29214_v52  ;;  %v29139_v11 = vpop.f32.mrb[113].mxu1  ;;  %v29216_v39 = vpop.f32.mrb[17].mxu0  ;;  %v38563_v48 = vadd.f32 %v38482_v5, %v29137_v53  ;;  %v32744_v53 = vpack.c.bf16 %v29601_v46, %v29600_v26  ;;  %v29646_v52 = vld [vmem:[%s39411_s5 + $0x180] sm:$0xff]  ;;  %v32776_v46 = vpack.c.bf16 %v29633_v50, %v29632_v15  ;;  %v29636_v15 = vld [vmem:[%s39411_s5 + $0x130] sm:$0xff]  ;;  %v29637_v50 = vld [vmem:[%s39411_s5 + $0x138] sm:$0xff] }
 0x86a   :  { %v38566_v55 = vadd.f32 %v38482_v5, %v29139_v11  ;;  %v38569_v43 = vadd.f32 %v38482_v5, %v29216_v39  ;;  %v33737_v33 = vpack.i.bf16 %v29356_v62, %v29359_v16  ;;  %v33732_v58 = vpack.i.bf16 %v29358_v19, %v29357_v23  ;;  %v29647_v11 = vld [vmem:[%s39411_s5 + $0x188] sm:$0xff]  ;;  %v29630_v39 = vld [vmem:[%s39411_s5 + $0x100] sm:$0xff] }
 0x86b   :  { %29394 = vrot.lane.b32.xlu0 %v29350_v51, %s33841_s20  ;;  %v29363_v34 = vmax.f32 %v38559_v20, 0.0  ;;  %v29361_v25 = vmax.f32 %v38563_v48, 0.0 }
 0x86c   :  { %v32667_v22 = vpop.f32.mrb[114].mxu1  ;;  %33728 = vrot.lane.b32.xlu1 %v33727_v38, %s33841_s20  ;;  %v29362_v13 = vmax.f32 %v38566_v55, 0.0  ;;  %v29364_v61 = vmax.f32 %v38569_v43, 0.0  ;;  %v29619_v38 = vld [vmem:[%s39411_s5 + $0xa8] sm:$0xff] }
 0x86d   :  { %v29285_v27 = vpop.f32.mrb[115].mxu1  ;;  %v38601_v40 = vadd.f32 %v32667_v22, %v38482_v5  ;;  %v29615_v5 = vld [vmem:[%s39411_s5 + $0x88] sm:$0xff]  ;;  %v32746_v22 = vpack.c.bf16 %v29619_v38, %v29618_v56  ;;  %v29622_v38 = vld [vmem:[%s39411_s5 + $0xc0] sm:$0xff] }
 0x86e   :  { %v33742_v12 = vpack.i.bf16 %v29363_v34, %v29362_v13  ;;  %v38594_v28 = vadd.f32 %v38477_v49, %v29285_v27  ;;  %v33747_v32 = vpack.i.bf16 %v29361_v25, %v29364_v61  ;;  %v29614_v49 = vld [vmem:[%s39411_s5 + $0x80] sm:$0xff]  ;;  %v29603_v27 = vld [vmem:[%s39411_s5 + $0x28] sm:$0xff] }
 0x86f   :  { %33738 = vrot.lane.b32.xlu0 %v33737_v33, %s33841_s20  ;;  %v29365_v8 = vmax.f32 %v38601_v40, 0.0  ;;  %v32738_v54 = vpack.c.bf16 %v29615_v5, %v29614_v49  ;;  %v29602_v33 = vld [vmem:[%s39411_s5 + $0x20] sm:$0xff]  ;;  %v29620_v49 = vld [vmem:[%s39411_s5 + $0xb0] sm:$0xff]  ;;  %v29621_v5 = vld [vmem:[%s39411_s5 + $0xb8] sm:$0xff] }
 0x870   :  { %33733 = vrot.lane.b32.xlu1 %v33732_v58, %s33841_s20  ;;  %v29360_v0 = vmax.f32 %v38594_v28, 0.0  ;;  %v32770_v58 = vpack.c.bf16 %v29647_v11, %v29646_v52  ;;  %v32748_v29 = vpack.c.bf16 %v29603_v27, %v29602_v33  ;;  %v32750_v56 = vpack.c.bf16 %v29621_v5, %v29620_v49  ;;  %v29651_v52 = vld [vmem:[%s39411_s5 + $0x1a8] sm:$0xff]  ;;  %v29653_v49 = vld [vmem:[%s39411_s5 + $0x1b8] sm:$0xff] }
 0x871   :  { %32739 = vmatprep.subr.bf16.mxu0 %v32738_v54  ;;  %v29649_v54 = vld [vmem:[%s39411_s5 + $0x198] sm:$0xff]  ;;  %v29623_v11 = vld [vmem:[%s39411_s5 + $0xc8] sm:$0xff] }
 0x872   :  { %32741 = vmatpush3.bf16.msra.mxu0 %v32740_v2  ;;  %32771 = vmatprep.subr.bf16.mxu1 %v32770_v58  ;;  %v29604_v2 = vld [vmem:[%s39411_s5 + $0x30] sm:$0xff]  ;;  %v32774_v26 = vpack.c.bf16 %v29649_v54, %v29648_v24  ;;  %v29635_v33 = vld [vmem:[%s39411_s5 + $0x128] sm:$0xff]  ;;  %v29606_v58 = vld [vmem:[%s39411_s5 + $0x40] sm:$0xff]  ;;  %v32754_v5 = vpack.c.bf16 %v29623_v11, %v29622_v38 }
 0x873   :  { %33743 = vrot.lane.b32.xlu0 %v33742_v12, %s33841_s20  ;;  %32743 = vmatprep.subr.bf16.mxu0 %v32742_v17  ;;  %v29631_v12 = vld [vmem:[%s39411_s5 + $0x108] sm:$0xff]  ;;  %v29605_v17 = vld [vmem:[%s39411_s5 + $0x38] sm:$0xff] }
 0x874   :  { %33748 = vrot.lane.b32.xlu1 %v33747_v32, %s33841_s20  ;;  %v32772_v32 = vpack.c.bf16 %v29631_v12, %v29630_v39  ;;  %v32752_v27 = vpack.c.bf16 %v29605_v17, %v29604_v2  ;;  %v29607_v24 = vld [vmem:[%s39411_s5 + $0x48] sm:$0xff]  ;;  %v29625_v2 = vld [vmem:[%s39411_s5 + $0xd8] sm:$0xff] }
 0x875   :  { %v32756_v17 = vpack.c.bf16 %v29607_v24, %v29606_v58  ;;  %v29609_v38 = vld [vmem:[%s39411_s5 + $0x58] sm:$0xff]  ;;  %v29627_v11 = vld [vmem:[%s39411_s5 + $0xe8] sm:$0xff]  ;;  %v29654_v58 = vld [vmem:[%s39411_s5 + $0x1c0] sm:$0xff] }
 0x876   :  { %32745 = vmatpush3.bf16.msra.mxu0 %v32744_v53  ;;  %32773 = vmatpush3.bf16.msra.mxu1 %v32772_v32  ;;  %v29650_v53 = vld [vmem:[%s39411_s5 + $0x1a0] sm:$0xff]  ;;  %v29652_v32 = vld [vmem:[%s39411_s5 + $0x1b0] sm:$0xff] }
 0x877   :  { %29414 = vrot.lane.b32.xlu0 %v29360_v0, %s33841_s20  ;;  %32747 = vmatprep.subr.bf16.mxu0 %v32746_v22  ;;  %v32778_v39 = vpack.c.bf16 %v29651_v52, %v29650_v53  ;;  %v29634_v22 = vld [vmem:[%s39411_s5 + $0x120] sm:$0xff]  ;;  %v32782_v54 = vpack.c.bf16 %v29653_v49, %v29652_v32 }
 0x878   :  { %29424 = vrot.lane.b32.xlu1 %v29365_v8, %s33841_s20  ;;  %32775 = vmatprep.subr.bf16.mxu1 %v32774_v26  ;;  %v32780_v12 = vpack.c.bf16 %v29635_v33, %v29634_v22  ;;  %v32784_v26 = vpack.c.bf16 %v29637_v50, %v29636_v15  ;;  %v29626_v52 = vld [vmem:[%s39411_s5 + $0xe0] sm:$0xff]  ;;  %v29611_v33 = vld [vmem:[%s39411_s5 + $0x68] sm:$0xff]  ;;  %v29629_v15 = vld [vmem:[%s39411_s5 + $0xf8] sm:$0xff] }
 0x879   :  { %v29610_v22 = vld [vmem:[%s39411_s5 + $0x60] sm:$0xff] }
 0x87a   :  { %32749 = vmatpush3.bf16.msra.mxu0 %v32748_v29  ;;  %32777 = vmatpush3.bf16.msra.mxu1 %v32776_v46  ;;  %v29624_v29 = vld [vmem:[%s39411_s5 + $0xd0] sm:$0xff]  ;;  %v29638_v49 = vld [vmem:[%s39411_s5 + $0x140] sm:$0xff] }
 0x87b   :  { %32751 = vmatprep.subr.bf16.mxu0 %v32750_v56  ;;  %32779 = vmatprep.subr.bf16.mxu1 %v32778_v39  ;;  %v32758_v46 = vpack.c.bf16 %v29625_v2, %v29624_v29  ;;  %v29608_v56 = vld [vmem:[%s39411_s5 + $0x50] sm:$0xff]  ;;  %v32762_v39 = vpack.c.bf16 %v29627_v11, %v29626_v52  ;;  %v29613_v2 = vld [vmem:[%s39411_s5 + $0x78] sm:$0xff] }
 0x87c   :  { %v32760_v53 = vpack.c.bf16 %v29609_v38, %v29608_v56  ;;  %v29612_v29 = vld [vmem:[%s39411_s5 + $0x70] sm:$0xff]  ;;  %v29657_v56 = vld [vmem:[%s39411_s5 + $0x1d8] sm:$0xff] }
 0x87e   :  { %32753 = vmatpush3.bf16.msra.mxu0 %v32752_v27  ;;  %32781 = vmatpush3.bf16.msra.mxu1 %v32780_v12  ;;  %v32764_v27 = vpack.c.bf16 %v29611_v33, %v29610_v22  ;;  %v29655_v12 = vld [vmem:[%s39411_s5 + $0x1c8] sm:$0xff]  ;;  %v29641_v22 = vld [vmem:[%s39411_s5 + $0x158] sm:$0xff] }
 0x87f   :  { %32755 = vmatprep.subr.bf16.mxu0 %v32754_v5  ;;  %32783 = vmatprep.subr.bf16.mxu1 %v32782_v54  ;;  %v32786_v32 = vpack.c.bf16 %v29655_v12, %v29654_v58  ;;  %v29639_v5 = vld [vmem:[%s39411_s5 + $0x148] sm:$0xff]  ;;  %v29628_v54 = vld [vmem:[%s39411_s5 + $0xf0] sm:$0xff] }
 0x880   :  { %v32788_v24 = vpack.c.bf16 %v29639_v5, %v29638_v49  ;;  %v32766_v50 = vpack.c.bf16 %v29629_v15, %v29628_v54  ;;  %v29659_v54 = vld [vmem:[%s39411_s5 + $0x1e8] sm:$0xff]  ;;  %v29642_v15 = vld [vmem:[%s39411_s5 + $0x160] sm:$0xff] }
 0x882   :  { %32757 = vmatpush3.bf16.msra.mxu0 %v32756_v17  ;;  %32785 = vmatpush3.bf16.msra.mxu1 %v32784_v26  ;;  %v32768_v26 = vpack.c.bf16 %v29613_v2, %v29612_v29 }
 0x883   :  { %32759 = vmatprep.subr.bf16.mxu0 %v32758_v46  ;;  %32787 = vmatprep.subr.bf16.mxu1 %v32786_v32  ;;  %v29656_v46 = vld [vmem:[%s39411_s5 + $0x1d0] sm:$0xff] }
 0x884   :  { %v32790_v11 = vpack.c.bf16 %v29657_v56, %v29656_v46 }
 0x886   :  { %32761 = vmatpush3.bf16.msra.mxu0 %v32760_v53  ;;  %32789 = vmatpush3.bf16.msra.mxu1 %v32788_v24  ;;  %v29658_v24 = vld [vmem:[%s39411_s5 + $0x1e0] sm:$0xff] }
 0x887   :  { %32763 = vmatprep.subr.bf16.mxu0 %v32762_v39  ;;  %v29640_v39 = vld [vmem:[%s39411_s5 + $0x150] sm:$0xff]  ;;  %32791 = vmatprep.subr.bf16.mxu1 %v32790_v11  ;;  %v29661_v11 = vld [vmem:[%s39411_s5 + $0x1f8] sm:$0xff] }
 0x888   :  { %v32792_v58 = vpack.c.bf16 %v29641_v22, %v29640_v39 }
 0x88a   :  { %32765 = vmatpush3.bf16.msra.mxu0 %v32764_v27  ;;  %32793 = vmatpush3.bf16.msra.mxu1 %v32792_v58 }
 0x88b   :  { %32767 = vmatprep.subr.bf16.mxu0 %v32766_v50 }
 0x88e   :  { %32769 = vmatpush3.bf16.msra.mxu0 %v32768_v26  ;;  %v32794_v26 = vpack.c.bf16 %v29659_v54, %v29658_v24 }
 0x890   :  { %32795 = vmatprep.subr.bf16.mxu1 %v32794_v26 }
 0x8d5   :  { %v33714_v17 = vpop.permute.xlu0 %33713 }
 0x8d6   :  { %v33716_v38 = vunpack.i.h.bf16 %v33714_v17  ;;  %v33715_v53 = vunpack.i.l.bf16 %v33714_v17  ;;  %v33719_v52 = vpop.permute.xlu1 %33718  ;;  %v29643_v17 = vld [vmem:[%s39411_s5 + $0x168] sm:$0xff] }
 0x8d7   :  { %v33721_v33 = vunpack.i.h.bf16 %v33719_v52  ;;  %v33720_v27 = vunpack.i.l.bf16 %v33719_v52  ;;  %v32796_v46 = vpack.c.bf16 %v29643_v17, %v29642_v15  ;;  %v29660_v52 = vld [vmem:[%s39411_s5 + $0x1f0] sm:$0xff] }
 0x8d8   :  { %v29427_v12 = vsel %vm1390_vm4, %v33715_v53, %v33716_v38  ;;  %v32798_v42 = vpack.c.bf16 %v29661_v11, %v29660_v52  ;;  %v29662_v52 = vld [vmem:[%s39411_s5 + $0x200] sm:$0xff] }
 0x8d9   :  { %v38784_v32 = vmax.f32 %v29347_v36, %v29427_v12  ;;  %v29428_v49 = vsel %vm1390_vm4, %v33716_v38, %v33720_v27  ;;  %v33724_v5 = vpop.permute.xlu0 %33723  ;;  %v29426_v30 = vsel %vm1390_vm4, %v33721_v33, %v33715_v53  ;;  %32797 = vmatpush3.bf16.msra.mxu1 %v32796_v46 }
 0x8da   :  { %v38799_v36 = vmax.f32 %v29348_v6, %v29428_v49  ;;  %v33726_v50 = vunpack.i.h.bf16 %v33724_v5  ;;  %v33725_v29 = vunpack.i.l.bf16 %v33724_v5  ;;  %v38801_v2 = vpop.permute.xlu1 %29404  ;;  %v38811_v7 = vmax.f32 %v29346_v59, %v29426_v30  ;;  %v29645_v59 = vld [vmem:[%s39411_s5 + $0x178] sm:$0xff]  ;;  %32799 = vmatprep.subr.bf16.mxu1 %v32798_v42 }
 0x8db   :  { %v32800_v12 = vpack.c.bf16 %v29645_v59, %v29644_v18  ;;  %v32802_v42 = vpack.c.bf16 %v29663_v9, %v29662_v52  ;;  %v38911_v48 = vmax.f32 %v29355_v60, %v38801_v2 }
 0x8dc   :  { %v29431_v56 = vsel %vm1390_vm4, %v33725_v29, %v33726_v50  ;;  %v33752_v38 = vpack.i.bf16 %v38799_v36, %v38784_v32 }
 0x8dd   :  { %v38815_v6 = vmax.f32 %v29352_v3, %v29431_v56  ;;  %v29395_v53 = vpop.permute.xlu0 %29394  ;;  %32801 = vmatpush3.bf16.msra.mxu1 %v32800_v12  ;;  %32803 = vmatprep.subr.bf16.mxu0 %v32802_v42 }
 0x8de   :  { %v33729_v39 = vpop.permute.xlu1 %33728  ;;  %33753 = vrot.lane.b32.xlu0 %v33752_v38, %s33850_s15  ;;  %v38834_v58 = vmax.f32 %v29350_v51, %v29395_v53  ;;  %v29429_v30 = vsel %vm1390_vm4, %v33720_v27, %v29395_v53 }
 0x8df   :  { %v33731_v3 = vunpack.i.h.bf16 %v33729_v39  ;;  %v33730_v22 = vunpack.i.l.bf16 %v33729_v39  ;;  %v33757_v33 = vpack.i.bf16 %v38815_v6, %v38811_v7  ;;  %v38857_v46 = vmax.f32 %v29349_v14, %v29429_v30 }
 0x8e1   :  { %v29430_v49 = vsel %vm1390_vm4, %v33731_v3, %v33725_v29  ;;  %v29432_v5 = vsel %vm1390_vm4, %v33726_v50, %v33730_v22  ;;  %v33739_v24 = vpop.permute.xlu0 %33738  ;;  %33758 = vrot.lane.b32.xlu1 %v33757_v33, %s33850_s15  ;;  %v29433_v27 = vsel %vm1390_vm4, %v33730_v22, %v38801_v2 }
 0x8e2   :  { %v38841_v54 = vmax.f32 %v29351_v31, %v29430_v49  ;;  %v38845_v15 = vmax.f32 %v29353_v35, %v29432_v5  ;;  %v33741_v1 = vunpack.i.h.bf16 %v33739_v24  ;;  %v33734_v51 = vpop.permute.xlu1 %33733  ;;  %29510 = vrot.lane.b32.xlu0 %v38834_v58, %s33850_s15  ;;  %v33740_v50 = vunpack.i.l.bf16 %v33739_v24  ;;  %v29664_v24 = vld [vmem:[%s39411_s5 + $0x210] sm:$0x1]  ;;  %s33866_s5 = smov 25  }
 0x8e3   :  { %v33736_v29 = vunpack.i.h.bf16 %v33734_v51  ;;  %v33735_v17 = vunpack.i.l.bf16 %v33734_v51  ;;  %v38887_v33 = vmax.f32 %v29354_v41, %v29433_v27 }
 0x8e4   :  { %v33762_v63 = vpack.i.bf16 %v38841_v54, %v38845_v15 }
 0x8e5   :  { %v29436_v31 = vsel %vm1390_vm4, %v33736_v29, %v33740_v50  ;;  %v29434_v45 = vsel %vm1390_vm4, %v33741_v1, %v33735_v17  ;;  %v29435_v35 = vsel %vm1390_vm4, %v33735_v17, %v33736_v29  ;;  %v33744_v26 = vpop.permute.xlu0 %33743 }
 0x8e6   :  { %v38863_v56 = vmax.f32 %v29357_v23, %v29435_v35  ;;  %v33746_v38 = vunpack.i.h.bf16 %v33744_v26  ;;  %v33749_v53 = vpop.permute.xlu1 %33748  ;;  %33763 = vrot.lane.b32.xlu0 %v33762_v63, %s33850_s15  ;;  %v33745_v14 = vunpack.i.l.bf16 %v33744_v26  ;;  %v38874_v4 = vmax.f32 %v29358_v19, %v29436_v31 }
 0x8e7   :  { %v33751_v11 = vunpack.i.h.bf16 %v33749_v53  ;;  %v33750_v39 = vunpack.i.l.bf16 %v33749_v53  ;;  %v38878_v23 = vmax.f32 %v29356_v62, %v29434_v45 }
 0x8e8   :  { %v33767_v18 = vpack.i.bf16 %v38863_v56, %v38857_v46  ;;  %v29439_v59 = vsel %vm1390_vm4, %v33745_v14, %v33746_v38 }
 0x8e9   :  { %v29438_v3 = vsel %vm1390_vm4, %v33751_v11, %v33745_v14  ;;  %v29440_v22 = vsel %vm1390_vm4, %v33746_v38, %v33750_v39  ;;  %v38891_v47 = vmax.f32 %v29362_v13, %v29439_v59  ;;  %v33772_v57 = vpack.i.bf16 %v38878_v23, %v38874_v4  ;;  %v29415_v41 = vpop.permute.xlu0 %29414 }
 0x8ea   :  { %33768 = vrot.lane.b32.xlu1 %v33767_v18, %s33850_s15  ;;  %v38896_v44 = vmax.f32 %v29361_v25, %v29438_v3  ;;  %v38900_v62 = vmax.f32 %v29363_v34, %v29440_v22  ;;  %v29437_v55 = vsel %vm1390_vm4, %v33740_v50, %v29415_v41  ;;  %v29425_v34 = vpop.permute.xlu1 %29424  ;;  %v38925_v21 = vmax.f32 %v29360_v0, %v29415_v41 }
 0x8eb   :  { %v33777_v19 = vpack.i.bf16 %v38891_v47, %v38887_v33  ;;  %v38921_v13 = vmax.f32 %v29359_v16, %v29437_v55  ;;  %v29441_v60 = vsel %vm1390_vm4, %v33750_v39, %v29425_v34  ;;  %v38938_v10 = vmax.f32 %v29365_v8, %v29425_v34 }
 0x8ec   :  { %v33782_v20 = vpack.i.bf16 %v38896_v44, %v38900_v62  ;;  %v38934_v25 = vmax.f32 %v29364_v61, %v29441_v60  ;;  %vm29678_vm4 = vcmask 1040384  }
 0x8ed   :  { %33778 = vrot.lane.b32.xlu0 %v33777_v19, %s33850_s15 }
 0x8ee   :  { %33773 = vrot.lane.b32.xlu1 %v33772_v57, %s33850_s15 }
 0x8f1   :  { %33783 = vrot.lane.b32.xlu0 %v33782_v20, %s33850_s15 }
 0x8f2   :  { %29520 = vrot.lane.b32.xlu1 %v38911_v48, %s33850_s15 }
 0x8f5   :  { %29530 = vrot.lane.b32.xlu0 %v38925_v21, %s33850_s15 }
 0x8f6   :  { %29528 = vrot.lane.b32.xlu1 %v38921_v13, %s33850_s15 }
 0x8f9   :  { %29540 = vrot.lane.b32.xlu0 %v38938_v10, %s33850_s15 }
 0x8fa   :  { %29538 = vrot.lane.b32.xlu1 %v38934_v25, %s33850_s15  ;;  %s33867_s15 = smov 75  }
 0x950   :  { %v33754_v16 = vpop.permute.xlu0 %33753 }
 0x951   :  { %v33756_v28 = vunpack.i.h.bf16 %v33754_v16  ;;  %v33755_v0 = vunpack.i.l.bf16 %v33754_v16 }
 0x953   :  { %v33759_v2 = vpop.permute.xlu1 %33758  ;;  %v29543_v12 = vsel %vm6640_vm12, %v33755_v0, %v33756_v28 }
 0x954   :  { %v33760_v49 = vunpack.i.l.bf16 %v33759_v2  ;;  %v38945_v43 = vpop.permute.xlu0 %29510  ;;  %v29579_v61 = vmax.f32 %v38784_v32, %v29543_v12  ;;  %v33761_v1 = vunpack.i.h.bf16 %v33759_v2 }
 0x955   :  { %v29582_v16 = vmax.f32 %v38834_v58, %v38945_v43 }
 0x956   :  { %v29542_v40 = vsel %vm6640_vm12, %v33760_v49, %v33755_v0  ;;  %29746 = vmatprep.mubr.f32.mxu0 %v29579_v61 }
 0x957   :  { %v29578_v8 = vmax.f32 %v38811_v7, %v29542_v40 }
 0x958   :  { %v33764_v5 = vpop.permute.xlu0 %33763 }
 0x959   :  { %v33766_v51 = vunpack.i.h.bf16 %v33764_v5  ;;  %v33765_v30 = vunpack.i.l.bf16 %v33764_v5  ;;  %29747 = vmatmul.mubr.f32.vlgmr.msra.gmra.mrb[18].mxu0 %v29578_v8 }
 0x95a   :  { %32805 = vmatpush3.bf16.msra.mxu0 %v32802_v42 }
 0x95b   :  { %v29547_v50 = vsel %vm6640_vm12, %v33761_v1, %v33765_v30  ;;  %v29546_v32 = vsel %vm6640_vm12, %v33766_v51, %v33761_v1  ;;  %32672 = vmatprep.subr.msk.mxu0 %vm29678_vm4, %v29664_v24  ;;  %v29942_v51 = vlaneseq }
 0x95c   :  { %v33769_v29 = vpop.permute.xlu1 %33768  ;;  %v29584_v17 = vmax.f32 %v38815_v6, %v29547_v50  ;;  %v29583_v7 = vmax.f32 %v38841_v54, %v29546_v32 }
 0x95d   :  { %v33770_v63 = vunpack.i.l.bf16 %v33769_v29  ;;  %v33771_v53 = vunpack.i.h.bf16 %v33769_v29 }
 0x95e   :  { %29751 = vmatprep.mubr.f32.mxu0 %v29584_v17  ;;  %32673 = vmatpush3.msk.msra.mxu0 %vm29678_vm4, %v29664_v24  ;;  %vm30005_vm4 = vcmask 812632  }
 0x95f   :  { %v29544_v31 = vsel %vm6640_vm12, %v33756_v28, %v33770_v63  ;;  %29752 = vmatmul.mubr.f32.gmra.mrb[20].mxu0 %v29583_v7  ;;  %v29545_v45 = vsel %vm6640_vm12, %v33770_v63, %v38945_v43  ;;  %v33779_v26 = vpop.permute.xlu0 %33778  ;;  %v29943_v63 = vshrl.u32 %v29942_v51, 7 }
 0x960   :  { %v29580_v35 = vmax.f32 %v38799_v36, %v29544_v31  ;;  %v33774_v27 = vpop.permute.xlu1 %33773  ;;  %v29581_v38 = vmax.f32 %v38857_v46, %v29545_v45  ;;  %v33780_v52 = vunpack.i.l.bf16 %v33779_v26  ;;  %v33781_v59 = vunpack.i.h.bf16 %v33779_v26 }
 0x961   :  { %v33776_v6 = vunpack.i.h.bf16 %v33774_v27  ;;  %v33775_v9 = vunpack.i.l.bf16 %v33774_v27 }
 0x962   :  { %29831 = vmatprep.mubr.f32.mxu1 %v29581_v38  ;;  %v29548_v18 = vsel %vm6640_vm12, %v33765_v30, %v33780_v52 }
 0x963   :  { %29832 = vmatmul.mubr.f32.vlgmr.msra.gmra.mrb[116].mxu1 %v29580_v35  ;;  %v29551_v54 = vsel %vm6640_vm12, %v33771_v53, %v33775_v9  ;;  %v29550_v14 = vsel %vm6640_vm12, %v33776_v6, %v33771_v53  ;;  %v33784_v11 = vpop.permute.xlu0 %33783  ;;  %v29585_v41 = vmax.f32 %v38845_v15, %v29548_v18 }
 0x964   :  { %v29521_v39 = vpop.permute.xlu1 %29520  ;;  %v29589_v42 = vmax.f32 %v38863_v56, %v29551_v54  ;;  %v29588_v36 = vmax.f32 %v38878_v23, %v29550_v14  ;;  %v33786_v46 = vunpack.i.h.bf16 %v33784_v11  ;;  %v33785_v3 = vunpack.i.l.bf16 %v33784_v11 }
 0x965   :  { %v29549_v22 = vsel %vm6640_vm12, %v33780_v52, %v29521_v39 }
 0x966   :  { %v29586_v19 = vmax.f32 %v38887_v33, %v29549_v22  ;;  %29756 = vmatprep.mubr.f32.mxu0 %v29589_v42  ;;  %v29555_v57 = vsel %vm6640_vm12, %v33781_v59, %v33785_v3  ;;  %v29554_v20 = vsel %vm6640_vm12, %v33786_v46, %v33781_v59 }
 0x967   :  { %29757 = vmatmul.mubr.f32.gmra.mrb[22].mxu0 %v29588_v36  ;;  %v29531_v56 = vpop.permute.xlu0 %29530  ;;  %v29594_v23 = vmax.f32 %v38891_v47, %v29555_v57  ;;  %v29593_v33 = vmax.f32 %v38896_v44, %v29554_v20  ;;  %v29587_v47 = vmax.f32 %v38911_v48, %v29521_v39 }
 0x968   :  { %v29529_v55 = vpop.permute.xlu1 %29528  ;;  %29836 = vmatprep.mubr.f32.mxu1 %v29586_v19  ;;  %v29592_v58 = vmax.f32 %v38925_v21, %v29531_v56 }
 0x969   :  { %v29552_v34 = vsel %vm6640_vm12, %v33775_v9, %v29529_v55  ;;  %v29553_v60 = vsel %vm6640_vm12, %v29529_v55, %v29531_v56  ;;  %29837 = vmatmul.mubr.f32.gmra.mrb[118].mxu1 %v29585_v41  ;;  %29761 = vmatprep.mubr.f32.mxu0 %v29594_v23 }
 0x96a   :  { %v29590_v15 = vmax.f32 %v38874_v4, %v29552_v34  ;;  %v29591_v28 = vmax.f32 %v38921_v13, %v29553_v60 }
 0x96b   :  { %29762 = vmatmul.mubr.f32.gmra.mrb[24].mxu0 %v29593_v33  ;;  %v29541_v0 = vpop.permute.xlu0 %29540 }
 0x96c   :  { %v29539_v2 = vpop.permute.xlu1 %29538  ;;  %29841 = vmatprep.mubr.f32.mxu1 %v29591_v28  ;;  %32674 = vmatprep.mubr.msk.f32.mxu0 %vm29665_vm6, %v29582_v16  ;;  %v29597_v49 = vmax.f32 %v38938_v10, %v29541_v0 }
 0x96d   :  { %v29556_v12 = vsel %vm6640_vm12, %v33785_v3, %v29539_v2  ;;  %v29557_v44 = vsel %vm6640_vm12, %v29539_v2, %v29541_v0  ;;  %29842 = vmatmul.mubr.f32.gmra.mrb[120].mxu1 %v29590_v15  ;;  %vm29958_vm12 = vcmask 1041409  }
 0x96e   :  { %v29595_v4 = vmax.f32 %v38900_v62, %v29556_v12  ;;  %v29596_v13 = vmax.f32 %v38934_v25, %v29557_v44  ;;  %v33865_v25 = vmov 1983009808  }
 0x96f   :  { %32675 = vmatmul.mubr.msk.f32.vlgmr.msra.gmra.mrb[26].mxu0 %vm29665_vm6, %v29587_v47  ;;  %v29940_v1 = vunpack.c.l.s4 %v33865_v25 }
 0x970   :  { %29846 = vmatprep.mubr.f32.mxu1 %v29596_v13  ;;  %32677 = vmatprep.mubr.msk.f32.mxu0 %vm29665_vm6, %v29592_v58 }
 0x971   :  { %29847 = vmatmul.mubr.f32.gmra.mrb[122].mxu1 %v29595_v4  ;;  %v29941_v7 = vunpack.c.0.s8 %v29940_v1 }
 0x973   :  { %32678 = vmatmul.mubr.msk.f32.gmra.mrb[28].mxu0 %vm29665_vm6, %v29597_v49  ;;  %v38991_v52 = vsub.s32 %v29941_v7, %v29943_v63  ;;  %vm30033_vm6 = vcmask 1017632  }
 0xa2c   :  { %v32042_v48 = vpop.f32.mrb[18].mxu0 }
 0xa2d   :  { %v32043_v43 = vpop.f32.mrb[19].mxu0 }
 0xa2e   :  { %v32044_v61 = vadd.f32 %v32043_v43, %v32042_v48 }
 0xa32   :  { %v32045_v40 = vpop.f32.mrb[20].mxu0 }
 0xa33   :  { %v32046_v8 = vpop.f32.mrb[21].mxu0 }
 0xa34   :  { %v32047_v21 = vadd.f32 %v32046_v8, %v32045_v40 }
 0xa36   :  { %v32086_v5 = vpop.f32.mrb[116].mxu1 }
 0xa37   :  { %v32087_v62 = vpop.f32.mrb[117].mxu1 }
 0xa38   :  { %v32088_v24 = vadd.f32 %v32087_v62, %v32086_v5 }
 0xa3a   :  { %v32048_v30 = vpop.f32.mrb[22].mxu0  ;;  %v29834_v50 = vadd.f32 %v32088_v24, %v32044_v61 }
 0xa3b   :  { %v32049_v32 = vpop.f32.mrb[23].mxu0 }
 0xa3c   :  { %v32050_v29 = vadd.f32 %v32049_v32, %v32048_v30  ;;  %v32089_v10 = vpop.f32.mrb[118].mxu1 }
 0xa3d   :  { %v32090_v17 = vpop.f32.mrb[119].mxu1 }
 0xa3e   :  { %v32091_v31 = vadd.f32 %v32090_v17, %v32089_v10  ;;  %v32051_v45 = vpop.f32.mrb[24].mxu0 }
 0xa3f   :  { %v32052_v35 = vpop.f32.mrb[25].mxu0 }
 0xa40   :  { %v32053_v26 = vadd.f32 %v32052_v35, %v32051_v45  ;;  %v32092_v27 = vpop.f32.mrb[120].mxu1  ;;  %v29839_v38 = vadd.f32 %v32091_v31, %v32047_v21 }
 0xa41   :  { %v32093_v53 = vpop.f32.mrb[121].mxu1 }
 0xa42   :  { %v32094_v6 = vadd.f32 %v32093_v53, %v32092_v27  ;;  %v32676_v9 = vpop.f32.mrb[26].mxu0 }
 0xa43   :  { %v29924_v54 = vadd.f32 %v32676_v9, %v29839_v38  ;;  %v29918_v14 = vpop.f32.mrb[27].mxu0 }
 0xa44   :  { %v29919_v11 = vadd.f32 %v29918_v14, %v29834_v50  ;;  %v32095_v39 = vpop.f32.mrb[122].mxu1  ;;  %v29844_v42 = vadd.f32 %v32094_v6, %v32050_v29 }
 0xa45   :  { %v38994_v36 = vrot.slane %v29924_v54, %v38991_v52  ;;  %v30147_v18 = vcombine.high %v29924_v54, %v29924_v54  ;;  %v32096_v59 = vpop.f32.mrb[123].mxu1 }
 0xa46   :  { %v38997_v46 = vrot.slane %v29919_v11, %v38991_v52  ;;  %v30007_v3 = vcombine.high %v29919_v11, %v29919_v11  ;;  %v32097_v22 = vadd.f32 %v32096_v59, %v32095_v39  ;;  %v32679_v19 = vpop.f32.mrb[28].mxu0 }
 0xa47   :  { %v39001_v57 = vcombine.high %v38994_v36, %v38994_v36  ;;  %v39004_v41 = vrot.slane %v30147_v18, %v38991_v52  ;;  %v29928_v20 = vpop.f32.mrb[29].mxu0  ;;  %v30105_v34 = vrot.slane %v38994_v36, 1 }
 0xa48   :  { %v29981_v56 = vcombine.high %v38997_v46, %v38997_v46  ;;  %v30014_v55 = vrot.slane %v30007_v3, %v38991_v52  ;;  %v29849_v23 = vadd.f32 %v32097_v22, %v32053_v26  ;;  %v29969_v33 = vrot.slane %v38997_v46, 1 }
 0xa49   :  { %v39012_v60 = vcombine.high %v39004_v41, %v39004_v41  ;;  %v29929_v16 = vadd.f32 %v29928_v20, %v29844_v42  ;;  %v30135_v15 = vrot.slane %v39001_v57, 1  ;;  %v30175_v28 = vrot.slane %v39004_v41, 1 }
 0xa4a   :  { %v30051_v0 = vcombine.high %v30014_v55, %v30014_v55  ;;  %v29934_v2 = vadd.f32 %v32679_v19, %v29849_v23  ;;  %v29995_v47 = vrot.slane %v29981_v56, 1  ;;  %v30035_v12 = vrot.slane %v30014_v55, 1 }
 0xa4b   :  { %v29952_v44 = vrot.slane %v29929_v16, %v38991_v52  ;;  %v30015_v58 = vcombine.high %v29929_v16, %v29929_v16  ;;  %v30201_v4 = vrot.slane %v39012_v60, 1 }
 0xa4c   :  { %v30065_v13 = vrot.slane %v30051_v0, 1  ;;  %v30092_v49 = vrot.slane %v29934_v2, %v38991_v52  ;;  %v30155_v48 = vcombine.high %v29934_v2, %v29934_v2 }
 0xa4d   :  { %v30022_v43 = vrot.slane %v30015_v58, %v38991_v52  ;;  %v29972_v61 = vsel %vm29958_vm12, %v29952_v44, %v29969_v33  ;;  %v29982_v40 = vcombine.high %v29952_v44, %v29952_v44  ;;  %v39022_v8 = vrot.slane %v29952_v44, 7 }
 0xa4e   :  { %v39024_v21 = vcombine.high %v30092_v49, %v30092_v49  ;;  %v39027_v5 = vrot.slane %v30155_v48, %v38991_v52  ;;  %v29973_v62 = vsel %vm29960_vm14, %v29952_v44, %v29972_v61  ;;  %v30108_v24 = vsel %vm29958_vm12, %v30092_v49, %v30105_v34 }
 0xa4f   :  { %v29974_v25 = vsel %vm29962_vm8, %v29952_v44, %v29973_v62  ;;  %v29998_v1 = vsel %vm29958_vm12, %v29982_v40, %v29995_v47  ;;  %v30038_v51 = vsel %vm29958_vm12, %v30022_v43, %v30035_v12  ;;  %v29985_v30 = vrot.slane %v29982_v40, 7 }
 0xa50   :  { %v29975_v50 = vsel %vm29964_vm13, %v29952_v44, %v29974_v25  ;;  %v29999_v32 = vsel %vm29960_vm14, %v29982_v40, %v29998_v1  ;;  %v30039_v29 = vsel %vm29960_vm14, %v30022_v43, %v30038_v51  ;;  %v30025_v10 = vrot.slane %v30022_v43, 7  ;;  %v30251_v25 = vld [vmem:[%s39412_s6 + $0x100] sm:$0xff] }
 0xa51   :  { %29976 = vrot.lane.b32.xlu1 %v29975_v50, %s33866_s5  ;;  %v30000_v17 = vsel %vm29962_vm8, %v29982_v40, %v29999_v32  ;;  %v30040_v7 = vsel %vm29962_vm8, %v30022_v43, %v30039_v29  ;;  %v29986_v63 = vsel %vm29958_vm12, %v29985_v30, %v29981_v56  ;;  %v30109_v31 = vsel %vm29960_vm14, %v30092_v49, %v30108_v24  ;;  %v30236_v50 = vld [vmem:[%s39412_s6 + $0x88] sm:$0xff] }
 0xa52   :  { %v30001_v45 = vsel %vm29964_vm13, %v29982_v40, %v30000_v17  ;;  %v30041_v35 = vsel %vm29964_vm13, %v30022_v43, %v30040_v7  ;;  %v29987_v26 = vsel %vm29960_vm14, %v29985_v30, %v29986_v63  ;;  %v30026_v27 = vsel %vm29958_vm12, %v30025_v10, %v30014_v55  ;;  %v30220_v17 = vld [vmem:[%s39412_s6 + $0x8] sm:$0xff]  ;;  %v30253_v7 = vld [vmem:[%s39412_s6 + $0x110] sm:$0xff] }
 0xa53   :  { %30002 = vrot.lane.b32.xlu0 %v30001_v45, %s33867_s15  ;;  %v29988_v38 = vsel %vm29962_vm8, %v29985_v30, %v29987_v26  ;;  %v30027_v53 = vsel %vm29960_vm14, %v30025_v10, %v30026_v27  ;;  %v30110_v6 = vsel %vm29962_vm8, %v30092_v49, %v30109_v31  ;;  %v30052_v9 = vcombine.high %v30022_v43, %v30022_v43  ;;  %v30237_v26 = vld [vmem:[%s39412_s6 + $0x90] sm:$0xff]  ;;  %v30238_v27 = vld [vmem:[%s39412_s6 + $0x98] sm:$0xff]  ;;  %s33879_s15 = smov [#allocation3]  }
 0xa54   :  { %v29989_v54 = vsel %vm29964_vm13, %v29985_v30, %v29988_v38  ;;  %v30028_v14 = vsel %vm29962_vm8, %v30025_v10, %v30027_v53  ;;  %v30111_v11 = vsel %vm29964_vm13, %v30092_v49, %v30110_v6  ;;  %v30095_v39 = vrot.slane %v30092_v49, 7  ;;  %v30235_v30 = vld [vmem:[%s39412_s6 + $0x80] sm:$0xff] }
 0xa55   :  { %30042 = vrot.lane.b32.xlu1 %v30041_v35, %s33842_s21  ;;  %v30029_v42 = vsel %vm29964_vm13, %v30025_v10, %v30028_v14  ;;  %v30068_v18 = vsel %vm29958_vm12, %v30052_v9, %v30065_v13  ;;  %v30055_v59 = vrot.slane %v30052_v9, 7  ;;  %v30121_v3 = vrot.slane %v39024_v21, 7  ;;  %s33869_s21 = smov 100   ;;  %v30219_v10 = vld [vmem:[%s39412_s6] sm:$0xff]  ;;  %v30254_v35 = vld [vmem:[%s39412_s6 + $0x118] sm:$0xff] }
 0xa56   :  { %v30069_v22 = vsel %vm29960_vm14, %v30052_v9, %v30068_v18  ;;  %v30096_v19 = vsel %vm29958_vm12, %v30095_v39, %v38994_v36  ;;  %v30138_v20 = vsel %vm29958_vm12, %v39024_v21, %v30135_v15  ;;  %v30165_v56 = vrot.slane %v39027_v5, 7 }
 0xa57   :  { %29990 = vrot.lane.b32.xlu0 %v29989_v54, %s33868_s0  ;;  %v30070_v55 = vsel %vm29962_vm8, %v30052_v9, %v30069_v22  ;;  %v30056_v23 = vsel %vm29958_vm12, %v30055_v59, %v30051_v0  ;;  %v30097_v34 = vsel %vm29960_vm14, %v30095_v39, %v30096_v19  ;;  %v30122_v33 = vsel %vm29958_vm12, %v30121_v3, %v39001_v57  ;;  %v30255_v22 = vld [vmem:[%s39412_s6 + $0x120] sm:$0xff]  ;;  %v30256_v19 = vld [vmem:[%s39412_s6 + $0x128] sm:$0xff]  ;;  %s30640_s0 = sshll.u32 %s33879_s15, 4  ;;  %s30641_s0 = int_to_ptr.vmem [resolvable:$true] %s30640_s0 }
 0xa58   :  { %v30071_v16 = vsel %vm29964_vm13, %v30052_v9, %v30070_v55  ;;  %v30057_v36 = vsel %vm29960_vm14, %v30055_v59, %v30056_v23  ;;  %v30098_v2 = vsel %vm29962_vm8, %v30095_v39, %v30097_v34  ;;  %v30123_v15 = vsel %vm29960_vm14, %v30121_v3, %v30122_v33  ;;  %v30223_v55 = vld [vmem:[%s39412_s6 + $0x20] sm:$0xff]  ;;  %v30224_v23 = vld [vmem:[%s39412_s6 + $0x28] sm:$0xff]  ;;  %v30241_v33 = vld [vmem:[%s39412_s6 + $0xb0] sm:$0xff]  ;;  %p33820_p1 = scmp.lt.s32.totalorder %s30641_s0, %s30641_s0 }
 0xa59   :  { %30030 = vrot.lane.b32.xlu1 %v30029_v42, %s33869_s21  ;;  %v30058_v47 = vsel %vm29962_vm8, %v30055_v59, %v30057_v36  ;;  %v30099_v12 = vsel %vm29964_vm13, %v30095_v39, %v30098_v2  ;;  %v30124_v0 = vsel %vm29962_vm8, %v30121_v3, %v30123_v15  ;;  %v30139_v44 = vsel %vm29960_vm14, %v39024_v21, %v30138_v20  ;;  %v30222_v39 = vld [vmem:[%s39412_s6 + $0x18] sm:$0xff]  ;;  %v30257_v36 = vld [vmem:[%s39412_s6 + $0x130] sm:$0xff] }
 0xa5a   :  { %v30059_v57 = vsel %vm29964_vm13, %v30055_v59, %v30058_v47  ;;  %v30125_v58 = vsel %vm29964_vm13, %v30121_v3, %v30124_v0  ;;  %v30140_v13 = vsel %vm29962_vm8, %v39024_v21, %v30139_v44  ;;  %v30166_v49 = vsel %vm29958_vm12, %v30165_v56, %v39004_v41  ;;  %v30239_v59 = vld [vmem:[%s39412_s6 + $0xa0] sm:$0xff]  ;;  %v30240_v3 = vld [vmem:[%s39412_s6 + $0xa8] sm:$0xff]  ;;  %v30258_v2 = vld [vmem:[%s39412_s6 + $0x138] sm:$0xff] }
 0xa5b   :  { %30112 = vrot.lane.b32.xlu0 %v30111_v11, %s33870_s27  ;;  %v30141_v48 = vsel %vm29964_vm13, %v39024_v21, %v30140_v13  ;;  %v30167_v43 = vsel %vm29960_vm14, %v30165_v56, %v30166_v49  ;;  %v30188_v61 = vcombine.high %v39027_v5, %v39027_v5  ;;  %v30178_v40 = vsel %vm29958_vm12, %v39027_v5, %v30175_v28  ;;  %v30221_v11 = vld [vmem:[%s39412_s6 + $0x10] sm:$0xff]  ;;  %s33876_s27 = smov 44   ;;  %v30226_v0 = vld [vmem:[%s39412_s6 + $0x38] sm:$0xff]  ;;  %v30259_v13 = vld [vmem:[%s39412_s6 + $0x140] sm:$0xff] }
 0xa5c   :  { %v30168_v62 = vsel %vm29962_vm8, %v30165_v56, %v30167_v43  ;;  %v30179_v24 = vsel %vm29960_vm14, %v39027_v5, %v30178_v40  ;;  %v29959_v21 = vsel %vm29958_vm12, %v39022_v8, %v38997_v46  ;;  %v30252_v46 = vld [vmem:[%s39412_s6 + $0x108] sm:$0xff]  ;;  %v33873_v45 = vmov 0.0|0.0  }
 0xa5d   :  { %30072 = vrot.lane.b32.xlu1 %v30071_v16, %s33871_s29  ;;  %v30169_v41 = vsel %vm29964_vm13, %v30165_v56, %v30168_v62  ;;  %v30204_v28 = vsel %vm29958_vm12, %v30188_v61, %v30201_v4  ;;  %v30180_v1 = vsel %vm29962_vm8, %v39027_v5, %v30179_v24  ;;  %v30191_v51 = vrot.slane %v30188_v61, 7  ;;  %32838 = vmatprep.subr.bf16.mxu0 %v33873_v45  ;;  %v30242_v16 = vld [vmem:[%s39412_s6 + $0xb8] sm:$0xff]  ;;  %v30260_v49 = vld [vmem:[%s39412_s6 + $0x148] sm:$0xff]  ;;  %v30245_v24 = vld [vmem:[%s39412_s6 + $0xd0] sm:$0xff] }
 0xa5e   :  { %v30205_v32 = vsel %vm29960_vm14, %v30188_v61, %v30204_v28  ;;  %v39117_v4 = vsel %vm29964_vm13, %v39027_v5, %v30180_v1  ;;  %v29961_v29 = vsel %vm29960_vm14, %v39022_v8, %v29959_v21  ;;  %v32839_v6 = vpack.c.bf16 %v30252_v46, %v30251_v25  ;;  %v30228_v40 = vld [vmem:[%s39412_s6 + $0x48] sm:$0xff]  ;;  %v30246_v21 = vld [vmem:[%s39412_s6 + $0xd8] sm:$0xff]  ;;  %v30261_v25 = vld [vmem:[%s39412_s6 + $0x150] sm:$0xff] }
 0xa5f   :  { %30060 = vrot.lane.b32.xlu0 %v30059_v57, %s33872_s23  ;;  %v30206_v5 = vsel %vm29962_vm8, %v30188_v61, %v30205_v32  ;;  %v30192_v63 = vsel %vm29958_vm12, %v30191_v51, %v39012_v60  ;;  %v29963_v31 = vsel %vm29962_vm8, %v39022_v8, %v29961_v29  ;;  %v32806_v54 = vpack.c.bf16 %v30236_v50, %v30235_v30  ;;  %v30243_v57 = vld [vmem:[%s39412_s6 + $0xc0] sm:$0xff]  ;;  %v30230_v46 = vld [vmem:[%s39412_s6 + $0x58] sm:$0xff]  ;;  %v30248_v32 = vld [vmem:[%s39412_s6 + $0xe8] sm:$0xff] }
 0xa60   :  { %v30207_v60 = vsel %vm29964_vm13, %v30188_v61, %v30206_v5  ;;  %v30193_v38 = vsel %vm29960_vm14, %v30191_v51, %v30192_v63  ;;  %v29965_v53 = vsel %vm29964_vm13, %v39022_v8, %v29963_v31  ;;  %v32808_v14 = vpack.c.bf16 %v30220_v17, %v30219_v10  ;;  %32840 = vmatpush1.bf16.msra.mxu0 %v32839_v6  ;;  %v30227_v61 = vld [vmem:[%s39412_s6 + $0x40] sm:$0xff]  ;;  %v30264_v29 = vld [vmem:[%s39412_s6 + $0x168] sm:$0xff]  ;;  %v30249_v31 = vld [vmem:[%s39412_s6 + $0xf0] sm:$0xff] }
 0xa61   :  { %30100 = vrot.lane.b32.xlu1 %v30099_v12, %s33874_s28  ;;  %v30194_v9 = vsel %vm29962_vm8, %v30191_v51, %v30193_v38  ;;  %29968 = vst.msk [vmem:[#allocation2] sm:$0x3] %vm29967_vm15, %v29965_v53  ;;  %v32842_v8 = vpack.c.bf16 %v30254_v35, %v30253_v7  ;;  %v32810_v18 = vpack.c.bf16 %v30238_v27, %v30237_v26  ;;  %v30225_v12 = vld [vmem:[%s39412_s6 + $0x30] sm:$0xff]  ;;  %v30247_v50 = vld [vmem:[%s39412_s6 + $0xe0] sm:$0xff]  ;;  %v30232_v5 = vld [vmem:[%s39412_s6 + $0x68] sm:$0xff]  ;;  %vm30063_vm14 = vcmask 378032  }
 0xa62   :  { %v30195_v42 = vsel %vm29964_vm13, %v30191_v51, %v30194_v9  ;;  %32807 = vmatprep.subr.bf16.mxu1 %v32806_v54  ;;  %32841 = vmatprep.subr.bf16.mxu0 %v33873_v45  ;;  %v32812_v20 = vpack.c.bf16 %v30222_v39, %v30221_v11  ;;  %v32814_v56 = vpack.c.bf16 %v30240_v3, %v30239_v59  ;;  %v30229_v51 = vld [vmem:[%s39412_s6 + $0x50] sm:$0xff]  ;;  %v30231_v7 = vld [vmem:[%s39412_s6 + $0x60] sm:$0xff]  ;;  %v30250_v35 = vld [vmem:[%s39412_s6 + $0xf8] sm:$0xff]  ;;  %vm30075_vm8 = vcmask 583032  }
 0xa63   :  { %30126 = vrot.lane.b32.xlu0 %v30125_v58, %s33861_s2  ;;  %32809 = vmatpush3.bf16.msra.mxu1 %v32808_v14  ;;  %v32845_v34 = vpack.c.bf16 %v30256_v19, %v30255_v22  ;;  %v32816_v15 = vpack.c.bf16 %v30224_v23, %v30223_v55  ;;  %v32818_v47 = vpack.c.bf16 %v30242_v16, %v30241_v33  ;;  %v30244_v58 = vld [vmem:[%s39412_s6 + $0xc8] sm:$0xff]  ;;  %v30265_v26 = vld [vmem:[%s39412_s6 + $0x170] sm:$0xff]  ;;  %v30266_v27 = vld [vmem:[%s39412_s6 + $0x178] sm:$0xff]  ;;  %vm30103_vm13 = vcmask 788032  }
 0xa64   :  { %32811 = vmatprep.subr.bf16.mxu1 %v32810_v18  ;;  %32843 = vmatpush1.bf16.msra.mxu0 %v32842_v8  ;;  %v32848_v44 = vpack.c.bf16 %v30258_v2, %v30257_v36  ;;  %v32822_v43 = vpack.c.bf16 %v30244_v58, %v30243_v57  ;;  %v32851_v62 = vpack.c.bf16 %v30260_v49, %v30259_v13  ;;  %v30233_v53 = vld [vmem:[%s39412_s6 + $0x70] sm:$0xff]  ;;  %v30234_v6 = vld [vmem:[%s39412_s6 + $0x78] sm:$0xff]  ;;  %v30267_v54 = vld [vmem:[%s39412_s6 + $0x180] sm:$0xff]  ;;  %vm30115_vm15 = vcmask 993032  }
 0xa65   :  { %30142 = vrot.lane.b32.xlu1 %v30141_v48, %s33875_s1  ;;  %32844 = vmatprep.subr.bf16.mxu0 %v33873_v45  ;;  %s33878_s1 = smov 69   ;;  %v32820_v48 = vpack.c.bf16 %v30226_v0, %v30225_v12  ;;  %v32824_v28 = vpack.c.bf16 %v30228_v40, %v30227_v61  ;;  %v32826_v1 = vpack.c.bf16 %v30246_v21, %v30245_v24  ;;  %v30268_v14 = vld [vmem:[%s39412_s6 + $0x188] sm:$0xff]  ;;  %vm30049_vm12 = vmor %vm30048_vm11, %vm30047_vm10  ;;  %vm30173_vm10 = vcmask 558432   ;;  %v30441_v58 = vld [vmem:[%s39414_s8] sm:$0xff] }
 0xa66   :  { %v32828_v10 = vpack.c.bf16 %v30230_v46, %v30229_v51  ;;  %v32830_v17 = vpack.c.bf16 %v30248_v32, %v30247_v50  ;;  %v32834_v38 = vpack.c.bf16 %v30250_v35, %v30249_v31  ;;  %v32860_v9 = vpack.c.bf16 %v30266_v27, %v30265_v26  ;;  %v30442_v13 = vld [vmem:[%s39414_s8 + $0x8] sm:$0xff]  ;;  %v30444_v24 = vld [vmem:[%s39414_s8 + $0x18] sm:$0xff]  ;;  %v30539_v35 = vld [vmem:[%s39416_s10 + $0x10] sm:$0xff] }
 0xa67   :  { %30170 = vrot.lane.b32.xlu0 %v30169_v41, %s33876_s27  ;;  %32813 = vmatpush3.bf16.msra.mxu1 %v32812_v20  ;;  %v30262_v41 = vld [vmem:[%s39412_s6 + $0x158] sm:$0xff]  ;;  %v32836_v11 = vpack.c.bf16 %v30234_v6, %v30233_v53  ;;  %v32863_v39 = vpack.c.bf16 %v30268_v14, %v30267_v54  ;;  %vm30185_vm11 = vcmask 763432   ;;  %v32866_v40 = vpack.c.bf16 %v30442_v13, %v30441_v58  ;;  %v30450_v50 = vld [vmem:[%s39414_s8 + $0x48] sm:$0xff]  ;;  %v30541_v53 = vld [vmem:[%s39416_s10 + $0x20] sm:$0xff] }
 0xa68   :  { %32815 = vmatprep.subr.bf16.mxu1 %v32814_v56  ;;  %32846 = vmatpush1.bf16.msra.mxu0 %v32845_v34  ;;  %v32854_v30 = vpack.c.bf16 %v30262_v41, %v30261_v25  ;;  %v30446_v41 = vld [vmem:[%s39414_s8 + $0x28] sm:$0xff]  ;;  %v30448_v51 = vld [vmem:[%s39414_s8 + $0x38] sm:$0xff]  ;;  %v30543_v54 = vld [vmem:[%s39416_s10 + $0x30] sm:$0xff] }
 0xa69   :  { %30208 = vrot.lane.b32.xlu1 %v30207_v60, %s33877_s13  ;;  %32847 = vmatprep.subr.bf16.mxu0 %v33873_v45  ;;  %v32832_v60 = vpack.c.bf16 %v30232_v5, %v30231_v7  ;;  %v30454_v7 = vld [vmem:[%s39414_s8 + $0x68] sm:$0xff]  ;;  %v30540_v27 = vld [vmem:[%s39416_s10 + $0x18] sm:$0xff] }
 0xa6a   :  { %v30538_v31 = vld [vmem:[%s39416_s10 + $0x8] sm:$0xff]  ;;  %v30544_v14 = vld [vmem:[%s39416_s10 + $0x38] sm:$0xff] }
 0xa6b   :  { %30182 = vrot.lane.b32.xlu0 %v39117_v4, %s33878_s1  ;;  %32817 = vmatpush3.bf16.msra.mxu1 %v32816_v15  ;;  %v30263_v4 = vld [vmem:[%s39412_s6 + $0x160] sm:$0xff]  ;;  %v30542_v6 = vld [vmem:[%s39416_s10 + $0x28] sm:$0xff] }
 0xa6c   :  { %32819 = vmatprep.subr.bf16.mxu1 %v32818_v47  ;;  %32849 = vmatpush1.bf16.msra.mxu0 %v32848_v44  ;;  %v32857_v63 = vpack.c.bf16 %v30264_v29, %v30263_v4  ;;  %v30451_v4 = vld [vmem:[%s39414_s8 + $0x50] sm:$0xff]  ;;  %v30452_v29 = vld [vmem:[%s39414_s8 + $0x58] sm:$0xff] }
 0xa6d   :  { %30196 = vrot.lane.b32.xlu1 %v30195_v42, %s33847_s14  ;;  %32850 = vmatprep.subr.bf16.mxu0 %v33873_v45 }
 0xa6f   :  { %32821 = vmatpush3.bf16.msra.mxu1 %v32820_v48 }
 0xa70   :  { %32823 = vmatprep.subr.bf16.mxu1 %v32822_v43  ;;  %32852 = vmatpush1.bf16.msra.mxu0 %v32851_v62  ;;  %v30443_v62 = vld [vmem:[%s39414_s8 + $0x10] sm:$0xff] }
 0xa71   :  { %32853 = vmatprep.subr.bf16.mxu0 %v33873_v45  ;;  %v32869_v25 = vpack.c.bf16 %v30444_v24, %v30443_v62 }
 0xa73   :  { %32825 = vmatpush3.bf16.msra.mxu1 %v32824_v28 }
 0xa74   :  { %32827 = vmatprep.subr.bf16.mxu1 %v32826_v1  ;;  %32855 = vmatpush1.bf16.msra.mxu0 %v32854_v30  ;;  %v30447_v1 = vld [vmem:[%s39414_s8 + $0x30] sm:$0xff]  ;;  %v30449_v30 = vld [vmem:[%s39414_s8 + $0x40] sm:$0xff] }
 0xa75   :  { %32856 = vmatprep.subr.bf16.mxu0 %v33873_v45  ;;  %v32875_v46 = vpack.c.bf16 %v30448_v51, %v30447_v1  ;;  %v32878_v32 = vpack.c.bf16 %v30450_v50, %v30449_v30 }
 0xa77   :  { %32829 = vmatpush3.bf16.msra.mxu1 %v32828_v10  ;;  %v32881_v10 = vpack.c.bf16 %v30452_v29, %v30451_v4 }
 0xa78   :  { %32831 = vmatprep.subr.bf16.mxu1 %v32830_v17  ;;  %32858 = vmatpush1.bf16.msra.mxu0 %v32857_v63  ;;  %v30453_v17 = vld [vmem:[%s39414_s8 + $0x60] sm:$0xff] }
 0xa79   :  { %32859 = vmatprep.subr.bf16.mxu0 %v33873_v45  ;;  %v32884_v5 = vpack.c.bf16 %v30454_v7, %v30453_v17  ;;  %v30537_v63 = vld [vmem:[%s39416_s10] sm:$0xff] }
 0xa7a   :  { %v32887_v26 = vpack.c.bf16 %v30538_v31, %v30537_v63 }
 0xa7b   :  { %32833 = vmatpush3.bf16.msra.mxu1 %v32832_v60  ;;  %v30455_v60 = vld [vmem:[%s39414_s8 + $0x70] sm:$0xff] }
 0xa7c   :  { %32835 = vmatprep.subr.bf16.mxu1 %v32834_v38  ;;  %32861 = vmatpush1.bf16.msra.mxu0 %v32860_v9  ;;  %v32890_v38 = vpack.c.bf16 %v30540_v27, %v30539_v35  ;;  %v32893_v9 = vpack.c.bf16 %v30542_v6, %v30541_v53 }
 0xa7d   :  { %32862 = vmatprep.subr.bf16.mxu0 %v33873_v45 }
 0xa7f   :  { %32837 = vmatpush3.bf16.msra.mxu1 %v32836_v11  ;;  %v32896_v11 = vpack.c.bf16 %v30544_v14, %v30543_v54 }
 0xa80   :  { %32865 = vmatprep.subr.bf16.mxu1 %v33873_v45  ;;  %32864 = vmatpush1.bf16.msra.mxu0 %v32863_v39 }
 0xa81   :  { %32886 = vmatprep.subr.bf16.mxu0 %v33873_v45 }
 0xac3   :  { %v29977_v42 = vpop.permute.xlu1 %29976 }
 0xac4   :  { %29980 = vst.msk [vmem:[#allocation2] sm:$0x3] %vm29979_vm0, %v29977_v42  ;;  %vm30131_vm0 = vcmask 1042384  }
 0xac5   :  { %v30003_v8 = vpop.permute.xlu0 %30002 }
 0xac7   :  { %v30043_v18 = vpop.permute.xlu1 %30042 }
 0xac8   :  { %v30044_v59 = vrot.slane %v30043_v18, 6 }
 0xac9   :  { %v29991_v3 = vpop.permute.xlu0 %29990 }
 0xaca   :  { %29994 = vst.msk [vmem:[#allocation2] sm:$0x3] %vm29993_vm1, %v29991_v3  ;;  %v30045_v19 = vsel %vm2042_vm5, %v30044_v59, %v30043_v18  ;;  %vm30133_vm1 = vmor %vm30132_vm9, %vm30131_vm0  ;;  %vm30145_vm5 = vcmask 353432   ;;  %vm30297_vm9 = vcmask 130048  }
 0xacb   :  { %v30031_v22 = vpop.permute.xlu1 %30030  ;;  %30006 = vst.msk [vmem:[#allocation2] sm:$0x3] %vm30005_vm4, %v30003_v8  ;;  %vm30214_vm4 = vcmask 1042360   ;;  %v31753_v8 = vld [vmem:[%s39413_s7] ss:$0 sm:$0xff] }
 0xacc   :  { %30034 = vst.msk [vmem:[#allocation2] sm:$0x3] %vm30033_vm6, %v30031_v22  ;;  %vm30215_vm6 = vcmask 125954  }
 0xacd   :  { %v30113_v20 = vpop.permute.xlu0 %30112  ;;  %30050 = vst.msk [vmem:[#allocation2] sm:$0xf] %vm30049_vm12, %v30045_v19  ;;  %vm30211_vm12 = vcmask 973824  }
 0xacf   :  { %v30073_v56 = vpop.permute.xlu1 %30072 }
 0xad1   :  { %v30061_v55 = vpop.permute.xlu0 %30060 }
 0xad2   :  { %30064 = vst.msk [vmem:[#allocation2 + $0x2] sm:$0x3] %vm30063_vm14, %v30061_v55  ;;  %vm30199_vm14 = vcmask 968432  }
 0xad3   :  { %v30101_v23 = vpop.permute.xlu1 %30100  ;;  %30076 = vst.msk [vmem:[#allocation2 + $0x2] sm:$0x3] %vm30075_vm8, %v30073_v56  ;;  %vm30216_vm8 = vmor %vm30215_vm6, %vm30214_vm4  ;;  %v30545_v56 = vld [vmem:[%s39416_s10 + $0x40] sm:$0xff] }
 0xad4   :  { %30104 = vst.msk [vmem:[#allocation2 + $0x2] sm:$0x3] %vm30103_vm13, %v30101_v23  ;;  %v30547_v23 = vld [vmem:[%s39416_s10 + $0x50] sm:$0xf] }
 0xad5   :  { %30116 = vst.msk [vmem:[#allocation2 + $0x2] sm:$0x3] %vm30115_vm15, %v30113_v20  ;;  %v30127_v34 = vpop.permute.xlu0 %30126 }
 0xad6   :  { %v30128_v33 = vrot.slane %v30127_v34, 6 }
 0xad7   :  { %v30143_v16 = vpop.permute.xlu1 %30142 }
 0xad8   :  { %v30129_v36 = vsel %vm18132_vm2, %v30128_v33, %v30127_v34  ;;  %v31755_v34 = vld [vmem:[%s39415_s9] ss:$0 sm:$0xff]  ;;  %vm30555_vm2 = vcmask 687104  }
 0xad9   :  { %30134 = vst.msk [vmem:[#allocation2 + $0x2] sm:$0xf] %vm30133_vm1, %v30129_v36  ;;  %v30171_v2 = vpop.permute.xlu0 %30170 }
 0xada   :  { %30146 = vst.msk [vmem:[#allocation2 + $0x4] sm:$0x3] %vm30145_vm5, %v30143_v16 }
 0xadb   :  { %30174 = vst.msk [vmem:[#allocation2 + $0x4] sm:$0x3] %vm30173_vm10, %v30171_v2  ;;  %v30209_v15 = vpop.permute.xlu1 %30208 }
 0xadc   :  { %v30210_v47 = vrot.slane %v30209_v15, 6 }
 0xadd   :  { %v30183_v12 = vpop.permute.xlu0 %30182 }
 0xade   :  { %30186 = vst.msk [vmem:[#allocation2 + $0x4] sm:$0x3] %vm30185_vm11, %v30183_v12  ;;  %v30212_v44 = vsel %vm30211_vm12, %v30210_v47, %v30209_v15 }
 0xadf   :  { %v30197_v0 = vpop.permute.xlu1 %30196 }
 0xae0   :  { %30200 = vst.msk [vmem:[#allocation2 + $0x4] sm:$0x3] %vm30199_vm14, %v30197_v0 }
 0xae1   :  { %30217 = vst.msk [vmem:[#allocation2 + $0x4] sm:$0xf] %vm30216_vm8, %v30212_v44 }
 0xae8   :  { %v30218_v57 = vld [vmem:[#allocation2] sm:$0xff] }
 0xae9   :  { %v30277_v49 = vcombine.high %v30218_v57, %v30218_v57  ;;  %v30284_v48 = vrot.slane %v30218_v57, %v38991_v52 }
 0xaeb   :  { %v30292_v43 = vcombine.high %v30284_v48, %v30284_v48  ;;  %v30291_v61 = vrot.slane %v30277_v49, %v38991_v52  ;;  %v30445_v52 = vld [vmem:[%s39414_s8 + $0x20] sm:$0xff] }
 0xaec   :  { %v32872_v28 = vpack.c.bf16 %v30446_v41, %v30445_v52 }
 0xaed   :  { %30364 = vmatprep.mubr.f32.mxu1 %v30292_v43  ;;  %v30293_v21 = vcombine.high %v30291_v61, %v30291_v61 }
 0xaee   :  { %30365 = vmatmul.mubr.f32.vlgmr.msra.gmra.mrb[124].mxu1 %v30284_v48 }
 0xaef   :  { %31754 = vmatprep.mubr.msk.f32.mxu0 %vm30297_vm9, %v30293_v21  ;;  %32867 = vmatpush3.bf16.msra.mxu1 %v32866_v40 }
 0xaf0   :  { %30435 = vmatmul.mubr.f32.vlgmr.msra.gmra.mrb[30].mxu0 %v30291_v61  ;;  %32868 = vmatprep.subr.bf16.mxu1 %v33873_v45 }
 0xaf1   :  { %32710 = vmatprep.mubr.msk.f32.mxu1 %vm33845_vm3, %v39475_v37  ;;  %32735 = vmatprep.mubr.msk.f32.mxu0 %vm33845_vm3, %v39475_v37  ;;  %vm39546_vm3 = vcmask 1043456  }
 0xaf2   :  { %32888 = vmatpush3.bf16.msra.mxu0 %v32887_v26 }
 0xaf3   :  { %32870 = vmatpush3.bf16.msra.mxu1 %v32869_v25  ;;  %32889 = vmatprep.subr.bf16.mxu0 %v33873_v45 }
 0xaf4   :  { %32871 = vmatprep.subr.bf16.mxu1 %v33873_v45 }
 0xaf6   :  { %32891 = vmatpush3.bf16.msra.mxu0 %v32890_v38 }
 0xaf7   :  { %32873 = vmatpush3.bf16.msra.mxu1 %v32872_v28  ;;  %32892 = vmatprep.subr.bf16.mxu0 %v33873_v45 }
 0xaf8   :  { %32874 = vmatprep.subr.bf16.mxu1 %v33873_v45 }
 0xafa   :  { %32894 = vmatpush3.bf16.msra.mxu0 %v32893_v9 }
 0xafb   :  { %32876 = vmatpush3.bf16.msra.mxu1 %v32875_v46  ;;  %32895 = vmatprep.subr.bf16.mxu0 %v33873_v45 }
 0xafc   :  { %32877 = vmatprep.subr.bf16.mxu1 %v33873_v45 }
 0xafe   :  { %32897 = vmatpush3.bf16.msra.mxu0 %v32896_v11 }
 0xaff   :  { %32879 = vmatpush3.bf16.msra.mxu1 %v32878_v32  ;;  %32898 = vmatprep.subr.bf16.mxu0 %v33873_v45 }
 0xb00   :  { %32880 = vmatprep.subr.bf16.mxu1 %v33873_v45 }
 0xb03   :  { %32882 = vmatpush3.bf16.msra.mxu1 %v32881_v10 }
 0xb04   :  { %32883 = vmatprep.subr.bf16.mxu1 %v33873_v45  ;;  %v30546_v45 = vld [vmem:[%s39416_s10 + $0x48] sm:$0xff]  ;;  %s33815_s10 = scalar_lea.vmem %s30641_s0, 32 }
 0xb05   :  { %v32899_v55 = vpack.c.bf16 %v30546_v45, %v30545_v56  ;;  %p33816_p0 = scmp.ne.s32.totalorder %s30641_s0, %s33815_s10  ;;  %p33821_p2 = scmp.lt.s32.totalorder %s33815_s10, %s33815_s10 }
 0xb07   :  { %32885 = vmatpush3.bf16.msra.mxu1 %v32884_v5  ;;  %32900 = vmatpush3.bf16.msra.mxu0 %v32899_v55  ;;  %p33822_p3 = por %p33821_p2, %p33820_p1 }
 0xb08   :  { %32708 = vmatprep.subr.mxu1 %v39475_v37  ;;  %32733 = vmatprep.subr.mxu0 %v39475_v37  ;;  %v31757_v37 = vld [vmem:[%s39417_s11] ss:$0 sm:$0xff] }
 0xb09   :  { %p33823_p4 = pnand %p33822_p3, %p33816_p0 }
 0xb0b   :  { %32709 = vmatpush3.msra.mxu1 %v30455_v60  ;;  %32734 = vmatpush3.msk.msra.mxu0 %vm39546_vm3, %v30547_v23 }
 0xbc1   :  { %v32137_v39 = vpop.f32.mrb[124].mxu1 }
 0xbc2   :  { %v32138_v42 = vpop.f32.mrb[125].mxu1 }
 0xbc3   :  { %v32139_v18 = vadd.f32 %v32138_v42, %v32137_v39  ;;  %v30436_v59 = vpop.f32.mrb[30].mxu0 }
 0xbc4   :  { %v30438_v3 = vpop.f32.mrb[31].mxu0 }
 0xbc5   :  { %v30367_v22 = vadd.f32 %v32139_v18, %v31753_v8 }
 0xbc7   :  { %v30437_v19 = vadd.f32 %v30436_v59, %v30367_v22 }
 0xbc9   :  { %v30440_v20 = vmax.f32 %v30437_v19, 0.0 }
 0xbcb   :  { %32711 = vmatmul.mubr.msk.f32.vlgmr.msra.gmra.mrb[126].mxu1 %vm18665_vm7, %v30440_v20  ;;  %vm30632_vm7 = vcmask 74752  }
 0xc9e   :  { %v30532_v33 = vpop.f32.mrb[126].mxu1 }
 0xc9f   :  { %v30533_v16 = vadd.f32 %v31755_v34, %v30532_v33  ;;  %v32712_v36 = vpop.f32.mrb[127].mxu1 }
 0xca1   :  { %v30536_v2 = vmax.f32 %v30533_v16, 0.0 }
 0xca3   :  { %32736 = vmatmul.mubr.msk.f32.vlgmr.msra.gmra.mrb[32].mxu0 %vm30555_vm2, %v30536_v2 }
 0xd76   :  { %v30628_v15 = vpop.f32.mrb[32].mxu0 }
 0xd77   :  { %v30629_v47 = vadd.f32 %v31757_v37, %v30628_v15  ;;  %v32737_v12 = vpop.f32.mrb[33].mxu0 }
 0xd79   :  { %30633 = vst.msk [vmem:[#allocation3] sm:$0x3] %vm30632_vm7, %v30629_v47 }
 0xd7a   :  { %33826 = shalt.err (!%p33823_p4)
}
 0xd7b   :  { %s33827_s27 = scalar_lea.hbm %s39418_s12, 32 }
 0xd7c   :  { %p33828_p5 = scmp.ne.s32.totalorder %s39418_s12, %s33827_s27  ;;  %p33831_p6 = scmp.lt.u32.totalorder %s33827_s27, %s39418_s12 }
 0xd7e   :  { %p33833_p7 = pnand %p33831_p6, %p33828_p5 }
 0xd80   :  { %33836 = shalt.err (!%p33833_p7)
}
 0xd81   :  { %30643 = dma.vmem_to_hbm [thread:$0]  %s30641_s0, 32, %s39418_s12, [#allocation4]  }
 0xd82   :  { %33837 = dma.done.wait [#allocation4], 32  }
 0xd83   :  { %33838 = vsyncadd [#allocation4], 4294967264 }
 0xd84   :  { %30647 = vsyncpa [#allocation4], 1 }

</bundles_post_ra>
